<compile_context>
chip_gen: v7x
topology: tpu7x:2x2x1
jax: 0.10.0
libtpu: 0.0.40
codegen_flags: <defaults>
</compile_context>

<pallas_src>
import functools

import jax
import jax.numpy as jnp
import numpy as np
from jax.experimental import pallas as pl
from jax.experimental.pallas import tpu as pltpu


# ---------------------------------------------------------------------------
# Small helpers
# ---------------------------------------------------------------------------
def _vmem_limit_bytes():
    """Per-generation VMEM budget (v7x has 64 MiB physical vs 128 MiB on v5e/v6e)."""
    try:
        cap = int(pltpu.get_tpu_info().vmem_capacity_bytes)
    except Exception:  # pragma: no cover - conservative fallback
        cap = 64 * 1024 * 1024
    return min(max(cap // 2, 16 * 1024 * 1024), 100 * 1024 * 1024)


def _compiler_params():
    return pltpu.CompilerParams(
        dimension_semantics=("parallel",),
        vmem_limit_bytes=_vmem_limit_bytes(),
    )


def _pin(shape):
    """Resident (block-index-pinned) operand: same block for every grid step."""
    nd = len(shape)
    return pl.BlockSpec(shape, lambda *_: (0,) * nd)


def _conv1_valid_mask(s, pd, H, W, Hq, Wq):
    """1.0 where a stride-phase position maps to real input, 0.0 on zero padding.

    Needed because conv1(0) -> relu(b1) is generally nonzero, but PyTorch pads *after*
    conv1, so padded positions of y1 must be exactly zero before the grouped conv.
    """
    m = np.zeros((s * s, Hq * Wq, 1), np.float32)
    for py in range(s):
        for px in range(s):
            ry = np.arange(Hq) * s + py
            rx = np.arange(Wq) * s + px
            vy = (ry >= pd) & (ry < pd + H)
            vx = (rx >= pd) & (rx < pd + W)
            m[py * s + px, :, 0] = (vy[:, None] & vx[None, :]).astype(np.float32).reshape(-1)
    return jnp.asarray(m)


# ---------------------------------------------------------------------------
# Fused ResNeXt block kernel
#   conv1(1x1)+bn1+relu -> grouped ks x ks conv2+bn2+relu ->
#   conv3+bn3 + strided conv4+bn4 + relu  [+ chunk-level 1x1 shortcut]
# One grid step == one batch element; all intermediates stay in VMEM.
# ---------------------------------------------------------------------------
def _block_kernel(xph_ref, xsubT_ref, mask_ref,
                  w1_ref, w2T_ref, w3T_ref, w4T_ref,
                  b1_ref, b2_ref, b34_ref, *rest,
                  ks, s, Hq, Wq, Ho, Wo, bc, kstride, has_shortcut):
    if has_shortcut:
        rsT_ref, wcT_ref, bcc_ref, o_ref, y1_scr, p_scr = rest
    else:
        o_ref, y1_scr, p_scr = rest

    M2 = Ho * Wo
    nphase = s * s
    cin = xph_ref.shape[-1]

    # ---- conv1 (1x1) + folded-BN + relu, per stride phase -> f32 VMEM scratch ----
    for ph in range(nphase):
        xin = xph_ref[0, ph].reshape(Hq * Wq, cin)                      # bf16
        y1 = jnp.dot(xin, w1_ref[...], preferred_element_type=jnp.float32)
        y1 = jnp.maximum(y1 + b1_ref[...], 0.0) * mask_ref[ph]          # zero the padding
        y1_scr[ph] = y1.reshape(Hq, Wq, bc)

    # ---- grouped ks x ks conv2 + folded-BN + relu: single wide-K MXU matmul ----
    if kstride != bc:
        p_scr[...] = jnp.zeros_like(p_scr)                              # zero padded K cols
    for dy in range(ks):
        for dx in range(ks):
            t = dy * ks + dx
            ph = (dy % s) * s + (dx % s)
            qy, qx = dy // s, dx // s
            patch = y1_scr[ph, qy:qy + Ho, qx:qx + Wo, :].reshape(M2, bc)
            p_scr[:, t * kstride:t * kstride + bc] = patch.astype(p_scr.dtype)
    # (bc, K) x (M2, K)^T -> channel-major y2 with the pixel axis on lanes.
    y2t = jnp.einsum("ck,mk->cm", w2T_ref[...], p_scr[...],
                     preferred_element_type=jnp.float32)
    y2t = jnp.maximum(y2t + b2_ref[...], 0.0).astype(jnp.bfloat16)      # (bc, M2)

    # ---- conv3+bn3 + strided conv4+bn4 + relu (+ chunk 1x1 shortcut), lane-dense ----
    acc = jnp.dot(w3T_ref[...], y2t, preferred_element_type=jnp.float32)
    acc = acc + jnp.dot(w4T_ref[...], xsubT_ref[0],
                        preferred_element_type=jnp.float32)
    acc = jnp.maximum(acc + b34_ref[...], 0.0)
    if has_shortcut:
        acc = acc + jnp.dot(wcT_ref[...], rsT_ref[0],
                            preferred_element_type=jnp.float32)
        acc = acc + bcc_ref[...]
    o_ref[0] = acc.astype(o_ref.dtype)                                  # (Cout, Ho*Wo)


def _fused_block(x_nhwc, p, ks, stride, shortcut=None, out_dtype=jnp.bfloat16):
    """Runs one ResNeXt bottleneck block; returns channel-major (Nb, Cout, Ho*Wo)."""
    Nb, H, W, Cin = x_nhwc.shape
    bc = p["w1"].shape[1]
    Cout = p["w3T"].shape[0]
    s, pd = stride, ks // 2
    Ho = (H + 2 * pd - ks) // s + 1
    Wo = (W + 2 * pd - ks) // s + 1
    Hq, Wq = Ho + (ks - 1) // s, Wo + (ks - 1) // s
    Hp, Wp = max(H + 2 * pd, s * Hq), max(W + 2 * pd, s * Wq)
    M2 = Ho * Wo
    ss = s * s
    kstride = p["w2T"].shape[1] // (ks * ks)

    xb = x_nhwc.astype(jnp.bfloat16)
    xp_ = jnp.pad(xb, ((0, 0), (pd, Hp - H - pd), (pd, Wp - W - pd), (0, 0)))
    if s == 1:
        phases = xp_[:, None]                       # no copy for the stride-1 block
    else:
        phases = jnp.stack([xp_[:, py::s, px::s, :][:, :Hq, :Wq, :]
                            for py in range(s) for px in range(s)], axis=1)
    # conv4 operand: block input subsampled at the block stride, channel-major (lane-dense)
    xsubT = jnp.transpose(
        xb[:, ::s, ::s, :][:, :Ho, :Wo, :].reshape(Nb, M2, Cin), (0, 2, 1))
    mask = _conv1_valid_mask(s, pd, H, W, Hq, Wq)

    inputs = [phases, xsubT, mask,
              p["w1"], p["w2T"], p["w3T"], p["w4T"],
              p["b1"], p["b2"], p["b34"]]
    in_specs = [
        pl.BlockSpec((1, ss, Hq, Wq, Cin), lambda n: (n, 0, 0, 0, 0)),
        pl.BlockSpec((1, Cin, M2), lambda n: (n, 0, 0)),
        _pin((ss, Hq * Wq, 1)),
        _pin((Cin, bc)),
        _pin((bc, ks * ks * kstride)),
        _pin((Cout, bc)),
        _pin((Cout, Cin)),
        _pin((1, bc)),
        _pin((bc, 1)),
        _pin((Cout, 1)),
    ]
    has_sc = shortcut is not None
    if has_sc:
        rsubT, wcT, bcc = shortcut
        Cr = wcT.shape[1]
        inputs += [rsubT, wcT, bcc]
        in_specs += [pl.BlockSpec((1, Cr, M2), lambda n: (n, 0, 0)),
                     _pin((Cout, Cr)),
                     _pin((Cout, 1))]

    kernel = functools.partial(
        _block_kernel, ks=ks, s=s, Hq=Hq, Wq=Wq, Ho=Ho, Wo=Wo,
        bc=bc, kstride=kstride, has_shortcut=has_sc)

    return pl.pallas_call(
        kernel,
        out_shape=jax.ShapeDtypeStruct((Nb, Cout, M2), out_dtype),
        grid=(Nb,),
        in_specs=in_specs,
        out_specs=pl.BlockSpec((1, Cout, M2), lambda n: (n, 0, 0)),
        scratch_shapes=[
            pltpu.VMEM((ss, Hq, Wq, bc), jnp.float32),            # y1 (phase-split, padded)
            pltpu.VMEM((M2, ks * ks * kstride), jnp.bfloat16),    # wide-K tap patch matrix
        ],
        compiler_params=_compiler_params(),
    )(*inputs)


# ---------------------------------------------------------------------------
# Weight prep / BN folding (inference-mode: scales folded into bf16 weights)
# ---------------------------------------------------------------------------
def conv1x1_to_mm(w):
    # (Cout, Cin, 1, 1) -> (Cin, Cout)
    return jnp.transpose(w[:, :, 0, 0], (1, 0))


def grouped_to_wide(w_grouped, groups, kstride):
    """(Cout, Cin_per_group, kh, kw) -> (kh*kw*kstride, Cout) block-diagonal wide-K weight.

    Per-tap K blocks are padded to `kstride` (lane-aligned) columns; padded rows are zero.
    """
    Cout, Cin_g, kh, kw = w_grouped.shape
    out_g = Cout // groups
    taps = jnp.zeros((kh * kw, kstride, Cout), jnp.float32)
    for g in range(groups):
        blk = jnp.transpose(w_grouped[g * out_g:(g + 1) * out_g], (2, 3, 1, 0))
        blk = blk.reshape(kh * kw, Cin_g, out_g)
        taps = taps.at[:, g * Cin_g:(g + 1) * Cin_g, g * out_g:(g + 1) * out_g].set(blk)
    return taps.reshape(kh * kw * kstride, Cout)


def bn_fold(gamma, beta, mean, var, conv_bias, eps=1e-5):
    scale = gamma / jnp.sqrt(var + eps)
    bias = beta + scale * (conv_bias - mean)
    return scale, bias


def _bn_params(key, c):
    k1, k2, k3, k4 = jax.random.split(key, 4)
    gamma = 1.0 + 0.1 * jax.random.normal(k1, (c,), jnp.float32)
    beta = 0.1 * jax.random.normal(k2, (c,), jnp.float32)
    mean = 0.1 * jax.random.normal(k3, (c,), jnp.float32)
    var = 1.0 + 0.1 * jax.random.uniform(k4, (c,), jnp.float32)
    return gamma, beta, mean, var


def init_block_params(key, in_ch, out_ch, cardinality, bw, ks):
    bc = cardinality * bw
    kk = jax.random.split(key, 12)

    def wgt(k, shape, fan_in):
        return jax.random.normal(k, shape, jnp.float32) / jnp.sqrt(float(fan_in))

    w1 = wgt(kk[0], (bc, in_ch, 1, 1), in_ch)
    b1c = 0.01 * jax.random.normal(kk[1], (bc,), jnp.float32)
    w2g = wgt(kk[2], (bc, bw, ks, ks), bw * ks * ks)
    b2c = 0.01 * jax.random.normal(kk[3], (bc,), jnp.float32)
    w3 = wgt(kk[4], (out_ch, bc, 1, 1), bc)
    b3c = 0.01 * jax.random.normal(kk[5], (out_ch,), jnp.float32)
    w4 = wgt(kk[6], (out_ch, in_ch, 1, 1), in_ch)
    b4c = 0.01 * jax.random.normal(kk[7], (out_ch,), jnp.float32)

    s1, b1 = bn_fold(*_bn_params(kk[8], bc), b1c)
    s2, b2 = bn_fold(*_bn_params(kk[9], bc), b2c)
    s3, b3 = bn_fold(*_bn_params(kk[10], out_ch), b3c)
    s4, b4 = bn_fold(*_bn_params(kk[11], out_ch), b4c)

    kstride = -(-bc // 128) * 128  # per-tap K block rounded up to the 128-lane width

    w1m = conv1x1_to_mm(w1) * s1[None, :]                                 # (Cin, bc)
    w2w = grouped_to_wide(w2g, cardinality, kstride) * s2[None, :]        # (9*kstride, bc)
    w3m = conv1x1_to_mm(w3) * s3[None, :]                                 # (bc, out)
    w4m = conv1x1_to_mm(w4) * s4[None, :]                                 # (Cin, out)

    return {
        "w1": w1m.astype(jnp.bfloat16),                                   # (Cin, bc)
        "w2T": jnp.transpose(w2w, (1, 0)).astype(jnp.bfloat16),           # (bc, 9*kstride)
        "w3T": jnp.transpose(w3m, (1, 0)).astype(jnp.bfloat16),           # (out, bc)
        "w4T": jnp.transpose(w4m, (1, 0)).astype(jnp.bfloat16),           # (out, Cin)
        "b1": b1.reshape(1, bc).astype(jnp.float32),
        "b2": b2.reshape(bc, 1).astype(jnp.float32),
        "b34": (b3 + b4).reshape(out_ch, 1).astype(jnp.float32),
    }


def init_chunk_params(key, in_ch, cardinality, bw, ks, expansion):
    k1, k2, k3, k4 = jax.random.split(key, 4)
    out_ch = expansion * in_ch
    wc = jax.random.normal(k3, (out_ch, in_ch, 1, 1), jnp.float32) / jnp.sqrt(float(in_ch))
    bcv = 0.01 * jax.random.normal(k4, (out_ch,), jnp.float32)
    return {
        "block1": init_block_params(k1, in_ch, in_ch, cardinality, bw, ks),
        "block2": init_block_params(k2, in_ch, out_ch, cardinality, bw, ks),
        "wcT": wc[:, :, 0, 0].astype(jnp.bfloat16),                       # (out, in)
        "bc_col": bcv.reshape(out_ch, 1).astype(jnp.float32),
    }


# ---------------------------------------------------------------------------
# Forward pass (NCHW at the module boundary, NHWC/channel-major internally)
# ---------------------------------------------------------------------------
def resnext_chunk_fwd(x_nchw, params, ks, down_stride):
    x_nhwc = jnp.transpose(x_nchw, (0, 2, 3, 1)).astype(jnp.bfloat16)
    Nb, H, W, Cin = x_nhwc.shape
    pd = ks // 2

    # block1 (stride 1): output kept bf16 + channel-major; it only feeds block2 matmuls.
    y1t = _fused_block(x_nhwc, params["block1"], ks, 1, out_dtype=jnp.bfloat16)
    x2 = jnp.transpose(y1t, (0, 2, 1)).reshape(Nb, H, W, Cin)

    # chunk-level 1x1 shortcut operand: residual subsampled, channel-major (lane-dense).
    ds = down_stride
    Ho2 = (H + 2 * pd - ks) // ds + 1
    Wo2 = (W + 2 * pd - ks) // ds + 1
    r = x_nhwc[:, ::ds, ::ds, :][:, :Ho2, :Wo2, :]
    rsubT = jnp.transpose(r.reshape(Nb, Ho2 * Wo2, Cin), (0, 2, 1))

    # block2 (stride = down_stride) with the chunk shortcut fused into its tail.
    # Note: matches PyTorch op order (shortcut added AFTER block2's relu, no final relu).
    out_t = _fused_block(x2, params["block2"], ks, ds,
                         shortcut=(rsubT, params["wcT"], params["bc_col"]),
                         out_dtype=jnp.float32)

    out_ch = params["wcT"].shape[0]
    return out_t.reshape(Nb, out_ch, Ho2, Wo2)        # channel-major output == NCHW


# ---------------------------------------------------------------------------
if __name__ == "__main__":
    batch, in_ch, spatial = 2, 16, 16
    cardinality, bottleneck_width = 8, 4
    ks, expansion = 3, 2
    down_stride = expansion  # matches module default

    key = jax.random.PRNGKey(0)
    k_x, k_p = jax.random.split(key)
    x = jax.random.normal(k_x, (batch, in_ch, spatial, spatial), jnp.float32)  # NCHW
    params = init_chunk_params(k_p, in_ch, cardinality, bottleneck_width, ks, expansion)

    fwd = jax.jit(functools.partial(resnext_chunk_fwd, ks=ks, down_stride=down_stride))
    out = fwd(x, params)
    jax.block_until_ready(out)

    expected = (batch, expansion * in_ch, spatial // down_stride, spatial // down_stride)
    assert out.shape == expected, (out.shape, expected)
    assert bool(jnp.all(jnp.isfinite(out)))
    print("KERNEL_OK")
</pallas_src>

<mosaic_0001>
module attributes {stable_mosaic.version = 11 : i64} {
  func.func @_block_kernel(%arg0: i32, %arg1: memref<1x1x18x18x16xbf16, #tpu.memory_space<vmem>>, %arg2: memref<1x16x256xbf16, #tpu.memory_space<vmem>>, %arg3: memref<1x324x1xf32, #tpu.memory_space<vmem>>, %arg4: memref<16x32xbf16, #tpu.memory_space<vmem>>, %arg5: memref<32x1152xbf16, #tpu.memory_space<vmem>>, %arg6: memref<16x32xbf16, #tpu.memory_space<vmem>>, %arg7: memref<16x16xbf16, #tpu.memory_space<vmem>>, %arg8: memref<1x32xf32, #tpu.memory_space<vmem>>, %arg9: memref<32x1xf32, #tpu.memory_space<vmem>>, %arg10: memref<16x1xf32, #tpu.memory_space<vmem>>, %arg11: memref<1x16x256xbf16, #tpu.memory_space<vmem>>, %arg12: memref<1x18x18x32xf32, #tpu.memory_space<vmem>>, %arg13: memref<256x1152xbf16, #tpu.memory_space<vmem>>) attributes {dimension_semantics = [#tpu.dimension_semantics<parallel>], iteration_bounds = array<i64: 2>, scalar_prefetch = 0 : i64, scratch_operands = 2 : i64, tpu.core_type = #tpu.core_type<tc>, window_params = [{transform_indices = @transform_0, window_bounds = array<i64: 1, 1, 18, 18, 16>}, {transform_indices = @transform_1, window_bounds = array<i64: 1, 16, 256>}, {pipeline_mode = #tpu.pipeline_mode<synchronous>, transform_indices = @transform_2, window_bounds = array<i64: 1, 324, 1>}, {pipeline_mode = #tpu.pipeline_mode<synchronous>, transform_indices = @transform_3, window_bounds = array<i64: 16, 32>}, {pipeline_mode = #tpu.pipeline_mode<synchronous>, transform_indices = @transform_4, window_bounds = array<i64: 32, 1152>}, {pipeline_mode = #tpu.pipeline_mode<synchronous>, transform_indices = @transform_5, window_bounds = array<i64: 16, 32>}, {pipeline_mode = #tpu.pipeline_mode<synchronous>, transform_indices = @transform_6, window_bounds = array<i64: 16, 16>}, {pipeline_mode = #tpu.pipeline_mode<synchronous>, transform_indices = @transform_7, window_bounds = array<i64: 1, 32>}, {pipeline_mode = #tpu.pipeline_mode<synchronous>, transform_indices = @transform_8, window_bounds = array<i64: 32, 1>}, {pipeline_mode = #tpu.pipeline_mode<synchronous>, transform_indices = @transform_9, window_bounds = array<i64: 16, 1>}, {transform_indices = @transform_10, window_bounds = array<i64: 1, 16, 256>}]} {
    %c0 = arith.constant 0 : index
    %c0_0 = arith.constant 0 : index
    %c0_1 = arith.constant 0 : index
    %c0_2 = arith.constant 0 : index
    %c0_3 = arith.constant 0 : index
    %0 = vector.load %arg1[%c0, %c0_0, %c0_1, %c0_2, %c0_3] : memref<1x1x18x18x16xbf16, #tpu.memory_space<vmem>>, vector<1x1x18x18x16xbf16>
    %1 = vector.shape_cast %0 : vector<1x1x18x18x16xbf16> to vector<18x18x16xbf16>
    %2 = vector.shape_cast %1 : vector<18x18x16xbf16> to vector<324x16xbf16>
    %c0_4 = arith.constant 0 : index
    %c0_5 = arith.constant 0 : index
    %3 = vector.load %arg4[%c0_4, %c0_5] : memref<16x32xbf16, #tpu.memory_space<vmem>>, vector<16x32xbf16>
    %cst = arith.constant dense<0.000000e+00> : vector<324x32xf32>
    %4 = tpu.matmul %2, %3, %cst {dimension_numbers = #tpu.dot_dimension_numbers<[1], [0], [0], [1], [0, 0, 1, 1], [], []>} : vector<324x16xbf16>, vector<16x32xbf16>, vector<324x32xf32> -> vector<324x32xf32>
    %c0_6 = arith.constant 0 : index
    %c0_7 = arith.constant 0 : index
    %5 = vector.load %arg8[%c0_6, %c0_7] : memref<1x32xf32, #tpu.memory_space<vmem>>, vector<1x32xf32>
    %6 = vector.broadcast %5 : vector<1x32xf32> to vector<324x32xf32>
    %7 = arith.addf %4, %6 : vector<324x32xf32>
    %cst_8 = arith.constant 0.000000e+00 : f32
    %8 = vector.broadcast %cst_8 : f32 to vector<324x32xf32>
    %9 = arith.maximumf %7, %8 : vector<324x32xf32>
    %c0_9 = arith.constant 0 : index
    %c0_10 = arith.constant 0 : index
    %c0_11 = arith.constant 0 : index
    %10 = vector.load %arg3[%c0_9, %c0_10, %c0_11] : memref<1x324x1xf32, #tpu.memory_space<vmem>>, vector<1x324x1xf32>
    %11 = vector.shape_cast %10 : vector<1x324x1xf32> to vector<324x1xf32>
    %12 = vector.broadcast %11 : vector<324x1xf32> to vector<324x32xf32>
    %13 = arith.mulf %9, %12 : vector<324x32xf32>
    %14 = vector.shape_cast %13 : vector<324x32xf32> to vector<18x18x32xf32>
    %c0_12 = arith.constant 0 : index
    %c0_13 = arith.constant 0 : index
    %c0_14 = arith.constant 0 : index
    %c0_15 = arith.constant 0 : index
    %15 = vector.load %arg12[%c0_12, %c0_13, %c0_14, %c0_15] : memref<1x18x18x32xf32, #tpu.memory_space<vmem>>, vector<1x18x18x32xf32>
    %16 = vector.shape_cast %15 : vector<1x18x18x32xf32> to vector<18x18x32xf32>
    %17 = vector.shape_cast %14 : vector<18x18x32xf32> to vector<1x18x18x32xf32>
    tpu.vector_store %arg12[%c0_12, %c0_13, %c0_14, %c0_15], %17 {strides = array<i32>} : memref<1x18x18x32xf32, #tpu.memory_space<vmem>>, vector<1x18x18x32xf32>,
    %cst_16 = arith.constant 0.000000e+00 : bf16
    %18 = vector.broadcast %cst_16 : bf16 to vector<256x1152xbf16>
    %c0_17 = arith.constant 0 : index
    %c0_18 = arith.constant 0 : index
    %19 = vector.load %arg13[%c0_17, %c0_18] : memref<256x1152xbf16, #tpu.memory_space<vmem>>, vector<256x1152xbf16>
    tpu.vector_store %arg13[%c0_17, %c0_18], %18 {strides = array<i32>} : memref<256x1152xbf16, #tpu.memory_space<vmem>>, vector<256x1152xbf16>,
    %c0_19 = arith.constant 0 : index
    %c0_20 = arith.constant 0 : index
    %c0_21 = arith.constant 0 : index
    %c0_22 = arith.constant 0 : index
    %20 = vector.load %arg12[%c0_19, %c0_20, %c0_21, %c0_22] : memref<1x18x18x32xf32, #tpu.memory_space<vmem>>, vector<1x16x16x32xf32>
    %21 = vector.shape_cast %20 : vector<1x16x16x32xf32> to vector<16x16x32xf32>
    %22 = vector.shape_cast %21 : vector<16x16x32xf32> to vector<256x32xf32>
    %23 = arith.truncf %22 : vector<256x32xf32> to vector<256x32xbf16>
    %c0_23 = arith.constant 0 : index
    %c0_24 = arith.constant 0 : index
    %24 = vector.load %arg13[%c0_23, %c0_24] : memref<256x1152xbf16, #tpu.memory_space<vmem>>, vector<256x32xbf16>
    tpu.vector_store %arg13[%c0_23, %c0_24], %23 {strides = array<i32>} : memref<256x1152xbf16, #tpu.memory_space<vmem>>, vector<256x32xbf16>,
    %c0_25 = arith.constant 0 : index
    %c0_26 = arith.constant 0 : index
    %c1 = arith.constant 1 : index
    %c0_27 = arith.constant 0 : index
    %25 = vector.load %arg12[%c0_25, %c0_26, %c1, %c0_27] : memref<1x18x18x32xf32, #tpu.memory_space<vmem>>, vector<1x16x16x32xf32>
    %26 = vector.shape_cast %25 : vector<1x16x16x32xf32> to vector<16x16x32xf32>
    %27 = vector.shape_cast %26 : vector<16x16x32xf32> to vector<256x32xf32>
    %28 = arith.truncf %27 : vector<256x32xf32> to vector<256x32xbf16>
    %c0_28 = arith.constant 0 : index
    %c128 = arith.constant 128 : index
    %29 = vector.load %arg13[%c0_28, %c128] : memref<256x1152xbf16, #tpu.memory_space<vmem>>, vector<256x32xbf16>
    tpu.vector_store %arg13[%c0_28, %c128], %28 {strides = array<i32>} : memref<256x1152xbf16, #tpu.memory_space<vmem>>, vector<256x32xbf16>,
    %c0_29 = arith.constant 0 : index
    %c0_30 = arith.constant 0 : index
    %c2 = arith.constant 2 : index
    %c0_31 = arith.constant 0 : index
    %30 = vector.load %arg12[%c0_29, %c0_30, %c2, %c0_31] : memref<1x18x18x32xf32, #tpu.memory_space<vmem>>, vector<1x16x16x32xf32>
    %31 = vector.shape_cast %30 : vector<1x16x16x32xf32> to vector<16x16x32xf32>
    %32 = vector.shape_cast %31 : vector<16x16x32xf32> to vector<256x32xf32>
    %33 = arith.truncf %32 : vector<256x32xf32> to vector<256x32xbf16>
    %c0_32 = arith.constant 0 : index
    %c256 = arith.constant 256 : index
    %34 = vector.load %arg13[%c0_32, %c256] : memref<256x1152xbf16, #tpu.memory_space<vmem>>, vector<256x32xbf16>
    tpu.vector_store %arg13[%c0_32, %c256], %33 {strides = array<i32>} : memref<256x1152xbf16, #tpu.memory_space<vmem>>, vector<256x32xbf16>,
    %c0_33 = arith.constant 0 : index
    %c1_34 = arith.constant 1 : index
    %c0_35 = arith.constant 0 : index
    %c0_36 = arith.constant 0 : index
    %35 = vector.load %arg12[%c0_33, %c1_34, %c0_35, %c0_36] : memref<1x18x18x32xf32, #tpu.memory_space<vmem>>, vector<1x16x16x32xf32>
    %36 = vector.shape_cast %35 : vector<1x16x16x32xf32> to vector<16x16x32xf32>
    %37 = vector.shape_cast %36 : vector<16x16x32xf32> to vector<256x32xf32>
    %38 = arith.truncf %37 : vector<256x32xf32> to vector<256x32xbf16>
    %c0_37 = arith.constant 0 : index
    %c384 = arith.constant 384 : index
    %39 = vector.load %arg13[%c0_37, %c384] : memref<256x1152xbf16, #tpu.memory_space<vmem>>, vector<256x32xbf16>
    tpu.vector_store %arg13[%c0_37, %c384], %38 {strides = array<i32>} : memref<256x1152xbf16, #tpu.memory_space<vmem>>, vector<256x32xbf16>,
    %c0_38 = arith.constant 0 : index
    %c1_39 = arith.constant 1 : index
    %c1_40 = arith.constant 1 : index
    %c0_41 = arith.constant 0 : index
    %40 = vector.load %arg12[%c0_38, %c1_39, %c1_40, %c0_41] : memref<1x18x18x32xf32, #tpu.memory_space<vmem>>, vector<1x16x16x32xf32>
    %41 = vector.shape_cast %40 : vector<1x16x16x32xf32> to vector<16x16x32xf32>
    %42 = vector.shape_cast %41 : vector<16x16x32xf32> to vector<256x32xf32>
    %43 = arith.truncf %42 : vector<256x32xf32> to vector<256x32xbf16>
    %c0_42 = arith.constant 0 : index
    %c512 = arith.constant 512 : index
    %44 = vector.load %arg13[%c0_42, %c512] : memref<256x1152xbf16, #tpu.memory_space<vmem>>, vector<256x32xbf16>
    tpu.vector_store %arg13[%c0_42, %c512], %43 {strides = array<i32>} : memref<256x1152xbf16, #tpu.memory_space<vmem>>, vector<256x32xbf16>,
    %c0_43 = arith.constant 0 : index
    %c1_44 = arith.constant 1 : index
    %c2_45 = arith.constant 2 : index
    %c0_46 = arith.constant 0 : index
    %45 = vector.load %arg12[%c0_43, %c1_44, %c2_45, %c0_46] : memref<1x18x18x32xf32, #tpu.memory_space<vmem>>, vector<1x16x16x32xf32>
    %46 = vector.shape_cast %45 : vector<1x16x16x32xf32> to vector<16x16x32xf32>
    %47 = vector.shape_cast %46 : vector<16x16x32xf32> to vector<256x32xf32>
    %48 = arith.truncf %47 : vector<256x32xf32> to vector<256x32xbf16>
    %c0_47 = arith.constant 0 : index
    %c640 = arith.constant 640 : index
    %49 = vector.load %arg13[%c0_47, %c640] : memref<256x1152xbf16, #tpu.memory_space<vmem>>, vector<256x32xbf16>
    tpu.vector_store %arg13[%c0_47, %c640], %48 {strides = array<i32>} : memref<256x1152xbf16, #tpu.memory_space<vmem>>, vector<256x32xbf16>,
    %c0_48 = arith.constant 0 : index
    %c2_49 = arith.constant 2 : index
    %c0_50 = arith.constant 0 : index
    %c0_51 = arith.constant 0 : index
    %50 = vector.load %arg12[%c0_48, %c2_49, %c0_50, %c0_51] : memref<1x18x18x32xf32, #tpu.memory_space<vmem>>, vector<1x16x16x32xf32>
    %51 = vector.shape_cast %50 : vector<1x16x16x32xf32> to vector<16x16x32xf32>
    %52 = vector.shape_cast %51 : vector<16x16x32xf32> to vector<256x32xf32>
    %53 = arith.truncf %52 : vector<256x32xf32> to vector<256x32xbf16>
    %c0_52 = arith.constant 0 : index
    %c768 = arith.constant 768 : index
    %54 = vector.load %arg13[%c0_52, %c768] : memref<256x1152xbf16, #tpu.memory_space<vmem>>, vector<256x32xbf16>
    tpu.vector_store %arg13[%c0_52, %c768], %53 {strides = array<i32>} : memref<256x1152xbf16, #tpu.memory_space<vmem>>, vector<256x32xbf16>,
    %c0_53 = arith.constant 0 : index
    %c2_54 = arith.constant 2 : index
    %c1_55 = arith.constant 1 : index
    %c0_56 = arith.constant 0 : index
    %55 = vector.load %arg12[%c0_53, %c2_54, %c1_55, %c0_56] : memref<1x18x18x32xf32, #tpu.memory_space<vmem>>, vector<1x16x16x32xf32>
    %56 = vector.shape_cast %55 : vector<1x16x16x32xf32> to vector<16x16x32xf32>
    %57 = vector.shape_cast %56 : vector<16x16x32xf32> to vector<256x32xf32>
    %58 = arith.truncf %57 : vector<256x32xf32> to vector<256x32xbf16>
    %c0_57 = arith.constant 0 : index
    %c896 = arith.constant 896 : index
    %59 = vector.load %arg13[%c0_57, %c896] : memref<256x1152xbf16, #tpu.memory_space<vmem>>, vector<256x32xbf16>
    tpu.vector_store %arg13[%c0_57, %c896], %58 {strides = array<i32>} : memref<256x1152xbf16, #tpu.memory_space<vmem>>, vector<256x32xbf16>,
    %c0_58 = arith.constant 0 : index
    %c2_59 = arith.constant 2 : index
    %c2_60 = arith.constant 2 : index
    %c0_61 = arith.constant 0 : index
    %60 = vector.load %arg12[%c0_58, %c2_59, %c2_60, %c0_61] : memref<1x18x18x32xf32, #tpu.memory_space<vmem>>, vector<1x16x16x32xf32>
    %61 = vector.shape_cast %60 : vector<1x16x16x32xf32> to vector<16x16x32xf32>
    %62 = vector.shape_cast %61 : vector<16x16x32xf32> to vector<256x32xf32>
    %63 = arith.truncf %62 : vector<256x32xf32> to vector<256x32xbf16>
    %c0_62 = arith.constant 0 : index
    %c1024 = arith.constant 1024 : index
    %64 = vector.load %arg13[%c0_62, %c1024] : memref<256x1152xbf16, #tpu.memory_space<vmem>>, vector<256x32xbf16>
    tpu.vector_store %arg13[%c0_62, %c1024], %63 {strides = array<i32>} : memref<256x1152xbf16, #tpu.memory_space<vmem>>, vector<256x32xbf16>,
    %c0_63 = arith.constant 0 : index
    %c0_64 = arith.constant 0 : index
    %65 = vector.load %arg5[%c0_63, %c0_64] : memref<32x1152xbf16, #tpu.memory_space<vmem>>, vector<32x1152xbf16>
    %c0_65 = arith.constant 0 : index
    %c0_66 = arith.constant 0 : index
    %66 = vector.load %arg13[%c0_65, %c0_66] : memref<256x1152xbf16, #tpu.memory_space<vmem>>, vector<256x1152xbf16>
    "tpu.trace_start"() <{level = 10 : i32, message = "ck,mk->cm"}> : () -> ()
    %cst_67 = arith.constant dense<0.000000e+00> : vector<32x256xf32>
    %67 = tpu.matmul %65, %66, %cst_67 {dimension_numbers = #tpu.dot_dimension_numbers<[1], [1], [0], [0], [0, 0, 1, 0], [], []>} : vector<32x1152xbf16>, vector<256x1152xbf16>, vector<32x256xf32> -> vector<32x256xf32>
    "tpu.trace_stop"() : () -> ()
    %c0_68 = arith.constant 0 : index
    %c0_69 = arith.constant 0 : index
    %68 = vector.load %arg9[%c0_68, %c0_69] : memref<32x1xf32, #tpu.memory_space<vmem>>, vector<32x1xf32>
    %69 = vector.broadcast %68 : vector<32x1xf32> to vector<32x256xf32>
    %70 = arith.addf %67, %69 : vector<32x256xf32>
    %cst_70 = arith.constant 0.000000e+00 : f32
    %71 = vector.broadcast %cst_70 : f32 to vector<32x256xf32>
    %72 = arith.maximumf %70, %71 : vector<32x256xf32>
    %73 = arith.truncf %72 : vector<32x256xf32> to vector<32x256xbf16>
    %c0_71 = arith.constant 0 : index
    %c0_72 = arith.constant 0 : index
    %74 = vector.load %arg6[%c0_71, %c0_72] : memref<16x32xbf16, #tpu.memory_space<vmem>>, vector<16x32xbf16>
    %cst_73 = arith.constant dense<0.000000e+00> : vector<16x256xf32>
    %75 = tpu.matmul %74, %73, %cst_73 {dimension_numbers = #tpu.dot_dimension_numbers<[1], [0], [0], [1], [0, 0, 1, 1], [], []>} : vector<16x32xbf16>, vector<32x256xbf16>, vector<16x256xf32> -> vector<16x256xf32>
    %c0_74 = arith.constant 0 : index
    %c0_75 = arith.constant 0 : index
    %76 = vector.load %arg7[%c0_74, %c0_75] : memref<16x16xbf16, #tpu.memory_space<vmem>>, vector<16x16xbf16>
    %c0_76 = arith.constant 0 : index
    %c0_77 = arith.constant 0 : index
    %c0_78 = arith.constant 0 : index
    %77 = vector.load %arg2[%c0_76, %c0_77, %c0_78] : memref<1x16x256xbf16, #tpu.memory_space<vmem>>, vector<1x16x256xbf16>
    %78 = vector.shape_cast %77 : vector<1x16x256xbf16> to vector<16x256xbf16>
    %cst_79 = arith.constant dense<0.000000e+00> : vector<16x256xf32>
    %79 = tpu.matmul %76, %78, %cst_79 {dimension_numbers = #tpu.dot_dimension_numbers<[1], [0], [0], [1], [0, 0, 1, 1], [], []>} : vector<16x16xbf16>, vector<16x256xbf16>, vector<16x256xf32> -> vector<16x256xf32>
    %80 = arith.addf %75, %79 : vector<16x256xf32>
    %c0_80 = arith.constant 0 : index
    %c0_81 = arith.constant 0 : index
    %81 = vector.load %arg10[%c0_80, %c0_81] : memref<16x1xf32, #tpu.memory_space<vmem>>, vector<16x1xf32>
    %82 = vector.broadcast %81 : vector<16x1xf32> to vector<16x256xf32>
    %83 = arith.addf %80, %82 : vector<16x256xf32>
    %cst_82 = arith.constant 0.000000e+00 : f32
    %84 = vector.broadcast %cst_82 : f32 to vector<16x256xf32>
    %85 = arith.maximumf %83, %84 : vector<16x256xf32>
    %86 = arith.truncf %85 : vector<16x256xf32> to vector<16x256xbf16>
    %c0_83 = arith.constant 0 : index
    %c0_84 = arith.constant 0 : index
    %c0_85 = arith.constant 0 : index
    %87 = vector.load %arg11[%c0_83, %c0_84, %c0_85] : memref<1x16x256xbf16, #tpu.memory_space<vmem>>, vector<1x16x256xbf16>
    %88 = vector.shape_cast %87 : vector<1x16x256xbf16> to vector<16x256xbf16>
    %89 = vector.shape_cast %86 : vector<16x256xbf16> to vector<1x16x256xbf16>
    tpu.vector_store %arg11[%c0_83, %c0_84, %c0_85], %89 {strides = array<i32>} : memref<1x16x256xbf16, #tpu.memory_space<vmem>>, vector<1x16x256xbf16>,
    return
  }
  func.func @transform_0(%arg0: i32) -> (i32, i32, i32, i32, i32) {
    %c0_i32 = arith.constant 0 : i32
    %c0_i32_0 = arith.constant 0 : i32
    %c0_i32_1 = arith.constant 0 : i32
    %c0_i32_2 = arith.constant 0 : i32
    %c0_i32_3 = arith.constant 0 : i32
    return %arg0, %c0_i32, %c0_i32_0, %c0_i32_1, %c0_i32_2 : i32, i32, i32, i32, i32
  }
  func.func @transform_1(%arg0: i32) -> (i32, i32, i32) {
    %c0_i32 = arith.constant 0 : i32
    %c0_i32_0 = arith.constant 0 : i32
    %c0_i32_1 = arith.constant 0 : i32
    return %arg0, %c0_i32, %c0_i32_0 : i32, i32, i32
  }
  func.func @transform_2(%arg0: i32) -> (i32, i32, i32) {
    %c0_i32 = arith.constant 0 : i32
    %c0_i32_0 = arith.constant 0 : i32
    %c0_i32_1 = arith.constant 0 : i32
    %c0_i32_2 = arith.constant 0 : i32
    return %c0_i32, %c0_i32_0, %c0_i32_1 : i32, i32, i32
  }
  func.func @transform_3(%arg0: i32) -> (i32, i32) {
    %c0_i32 = arith.constant 0 : i32
    %c0_i32_0 = arith.constant 0 : i32
    %c0_i32_1 = arith.constant 0 : i32
    return %c0_i32, %c0_i32_0 : i32, i32
  }
  func.func @transform_4(%arg0: i32) -> (i32, i32) {
    %c0_i32 = arith.constant 0 : i32
    %c0_i32_0 = arith.constant 0 : i32
    %c0_i32_1 = arith.constant 0 : i32
    return %c0_i32, %c0_i32_0 : i32, i32
  }
  func.func @transform_5(%arg0: i32) -> (i32, i32) {
    %c0_i32 = arith.constant 0 : i32
    %c0_i32_0 = arith.constant 0 : i32
    %c0_i32_1 = arith.constant 0 : i32
    return %c0_i32, %c0_i32_0 : i32, i32
  }
  func.func @transform_6(%arg0: i32) -> (i32, i32) {
    %c0_i32 = arith.constant 0 : i32
    %c0_i32_0 = arith.constant 0 : i32
    %c0_i32_1 = arith.constant 0 : i32
    return %c0_i32, %c0_i32_0 : i32, i32
  }
  func.func @transform_7(%arg0: i32) -> (i32, i32) {
    %c0_i32 = arith.constant 0 : i32
    %c0_i32_0 = arith.constant 0 : i32
    %c0_i32_1 = arith.constant 0 : i32
    return %c0_i32, %c0_i32_0 : i32, i32
  }
  func.func @transform_8(%arg0: i32) -> (i32, i32) {
    %c0_i32 = arith.constant 0 : i32
    %c0_i32_0 = arith.constant 0 : i32
    %c0_i32_1 = arith.constant 0 : i32
    return %c0_i32, %c0_i32_0 : i32, i32
  }
  func.func @transform_9(%arg0: i32) -> (i32, i32) {
    %c0_i32 = arith.constant 0 : i32
    %c0_i32_0 = arith.constant 0 : i32
    %c0_i32_1 = arith.constant 0 : i32
    return %c0_i32, %c0_i32_0 : i32, i32
  }
  func.func @transform_10(%arg0: i32) -> (i32, i32, i32) {
    %c0_i32 = arith.constant 0 : i32
    %c0_i32_0 = arith.constant 0 : i32
    %c0_i32_1 = arith.constant 0 : i32
    return %arg0, %c0_i32, %c0_i32_0 : i32, i32, i32
  }
}

module attributes {stable_mosaic.version = 11 : i64} {
  func.func @_block_kernel(%arg0: i32, %arg1: memref<1x4x9x9x16xbf16, #tpu.memory_space<vmem>>, %arg2: memref<1x16x64xbf16, #tpu.memory_space<vmem>>, %arg3: memref<4x81x1xf32, #tpu.memory_space<vmem>>, %arg4: memref<16x32xbf16, #tpu.memory_space<vmem>>, %arg5: memref<32x1152xbf16, #tpu.memory_space<vmem>>, %arg6: memref<32x32xbf16, #tpu.memory_space<vmem>>, %arg7: memref<32x16xbf16, #tpu.memory_space<vmem>>, %arg8: memref<1x32xf32, #tpu.memory_space<vmem>>, %arg9: memref<32x1xf32, #tpu.memory_space<vmem>>, %arg10: memref<32x1xf32, #tpu.memory_space<vmem>>, %arg11: memref<1x16x64xbf16, #tpu.memory_space<vmem>>, %arg12: memref<32x16xbf16, #tpu.memory_space<vmem>>, %arg13: memref<32x1xf32, #tpu.memory_space<vmem>>, %arg14: memref<1x32x64xf32, #tpu.memory_space<vmem>>, %arg15: memref<4x9x9x32xf32, #tpu.memory_space<vmem>>, %arg16: memref<64x1152xbf16, #tpu.memory_space<vmem>>) attributes {dimension_semantics = [#tpu.dimension_semantics<parallel>], iteration_bounds = array<i64: 2>, scalar_prefetch = 0 : i64, scratch_operands = 2 : i64, tpu.core_type = #tpu.core_type<tc>, window_params = [{transform_indices = @transform_0, window_bounds = array<i64: 1, 4, 9, 9, 16>}, {transform_indices = @transform_1, window_bounds = array<i64: 1, 16, 64>}, {pipeline_mode = #tpu.pipeline_mode<synchronous>, transform_indices = @transform_2, window_bounds = array<i64: 4, 81, 1>}, {pipeline_mode = #tpu.pipeline_mode<synchronous>, transform_indices = @transform_3, window_bounds = array<i64: 16, 32>}, {pipeline_mode = #tpu.pipeline_mode<synchronous>, transform_indices = @transform_4, window_bounds = array<i64: 32, 1152>}, {pipeline_mode = #tpu.pipeline_mode<synchronous>, transform_indices = @transform_5, window_bounds = array<i64: 32, 32>}, {pipeline_mode = #tpu.pipeline_mode<synchronous>, transform_indices = @transform_6, window_bounds = array<i64: 32, 16>}, {pipeline_mode = #tpu.pipeline_mode<synchronous>, transform_indices = @transform_7, window_bounds = array<i64: 1, 32>}, {pipeline_mode = #tpu.pipeline_mode<synchronous>, transform_indices = @transform_8, window_bounds = array<i64: 32, 1>}, {pipeline_mode = #tpu.pipeline_mode<synchronous>, transform_indices = @transform_9, window_bounds = array<i64: 32, 1>}, {transform_indices = @transform_10, window_bounds = array<i64: 1, 16, 64>}, {pipeline_mode = #tpu.pipeline_mode<synchronous>, transform_indices = @transform_11, window_bounds = array<i64: 32, 16>}, {pipeline_mode = #tpu.pipeline_mode<synchronous>, transform_indices = @transform_12, window_bounds = array<i64: 32, 1>}, {transform_indices = @transform_13, window_bounds = array<i64: 1, 32, 64>}]} {
    %c0 = arith.constant 0 : index
    %c0_0 = arith.constant 0 : index
    %c0_1 = arith.constant 0 : index
    %c0_2 = arith.constant 0 : index
    %c0_3 = arith.constant 0 : index
    %0 = vector.load %arg1[%c0, %c0_0, %c0_1, %c0_2, %c0_3] : memref<1x4x9x9x16xbf16, #tpu.memory_space<vmem>>, vector<1x1x9x9x16xbf16>
    %1 = vector.shape_cast %0 : vector<1x1x9x9x16xbf16> to vector<9x9x16xbf16>
    %2 = vector.shape_cast %1 : vector<9x9x16xbf16> to vector<81x16xbf16>
    %c0_4 = arith.constant 0 : index
    %c0_5 = arith.constant 0 : index
    %3 = vector.load %arg4[%c0_4, %c0_5] : memref<16x32xbf16, #tpu.memory_space<vmem>>, vector<16x32xbf16>
    %cst = arith.constant dense<0.000000e+00> : vector<81x32xf32>
    %4 = tpu.matmul %2, %3, %cst {dimension_numbers = #tpu.dot_dimension_numbers<[1], [0], [0], [1], [0, 0, 1, 1], [], []>} : vector<81x16xbf16>, vector<16x32xbf16>, vector<81x32xf32> -> vector<81x32xf32>
    %c0_6 = arith.constant 0 : index
    %c0_7 = arith.constant 0 : index
    %5 = vector.load %arg8[%c0_6, %c0_7] : memref<1x32xf32, #tpu.memory_space<vmem>>, vector<1x32xf32>
    %6 = vector.broadcast %5 : vector<1x32xf32> to vector<81x32xf32>
    %7 = arith.addf %4, %6 : vector<81x32xf32>
    %cst_8 = arith.constant 0.000000e+00 : f32
    %8 = vector.broadcast %cst_8 : f32 to vector<81x32xf32>
    %9 = arith.maximumf %7, %8 : vector<81x32xf32>
    %c0_9 = arith.constant 0 : index
    %c0_10 = arith.constant 0 : index
    %c0_11 = arith.constant 0 : index
    %10 = vector.load %arg3[%c0_9, %c0_10, %c0_11] : memref<4x81x1xf32, #tpu.memory_space<vmem>>, vector<1x81x1xf32>
    %11 = vector.shape_cast %10 : vector<1x81x1xf32> to vector<81x1xf32>
    %12 = vector.broadcast %11 : vector<81x1xf32> to vector<81x32xf32>
    %13 = arith.mulf %9, %12 : vector<81x32xf32>
    %14 = vector.shape_cast %13 : vector<81x32xf32> to vector<9x9x32xf32>
    %c0_12 = arith.constant 0 : index
    %c0_13 = arith.constant 0 : index
    %c0_14 = arith.constant 0 : index
    %c0_15 = arith.constant 0 : index
    %15 = vector.load %arg15[%c0_12, %c0_13, %c0_14, %c0_15] : memref<4x9x9x32xf32, #tpu.memory_space<vmem>>, vector<1x9x9x32xf32>
    %16 = vector.shape_cast %15 : vector<1x9x9x32xf32> to vector<9x9x32xf32>
    %17 = vector.shape_cast %14 : vector<9x9x32xf32> to vector<1x9x9x32xf32>
    tpu.vector_store %arg15[%c0_12, %c0_13, %c0_14, %c0_15], %17 {strides = array<i32>} : memref<4x9x9x32xf32, #tpu.memory_space<vmem>>, vector<1x9x9x32xf32>,
    %c0_16 = arith.constant 0 : index
    %c1 = arith.constant 1 : index
    %c0_17 = arith.constant 0 : index
    %c0_18 = arith.constant 0 : index
    %c0_19 = arith.constant 0 : index
    %18 = vector.load %arg1[%c0_16, %c1, %c0_17, %c0_18, %c0_19] : memref<1x4x9x9x16xbf16, #tpu.memory_space<vmem>>, vector<1x1x9x9x16xbf16>
    %19 = vector.shape_cast %18 : vector<1x1x9x9x16xbf16> to vector<9x9x16xbf16>
    %20 = vector.shape_cast %19 : vector<9x9x16xbf16> to vector<81x16xbf16>
    %c0_20 = arith.constant 0 : index
    %c0_21 = arith.constant 0 : index
    %21 = vector.load %arg4[%c0_20, %c0_21] : memref<16x32xbf16, #tpu.memory_space<vmem>>, vector<16x32xbf16>
    %cst_22 = arith.constant dense<0.000000e+00> : vector<81x32xf32>
    %22 = tpu.matmul %20, %21, %cst_22 {dimension_numbers = #tpu.dot_dimension_numbers<[1], [0], [0], [1], [0, 0, 1, 1], [], []>} : vector<81x16xbf16>, vector<16x32xbf16>, vector<81x32xf32> -> vector<81x32xf32>
    %c0_23 = arith.constant 0 : index
    %c0_24 = arith.constant 0 : index
    %23 = vector.load %arg8[%c0_23, %c0_24] : memref<1x32xf32, #tpu.memory_space<vmem>>, vector<1x32xf32>
    %24 = vector.broadcast %23 : vector<1x32xf32> to vector<81x32xf32>
    %25 = arith.addf %22, %24 : vector<81x32xf32>
    %cst_25 = arith.constant 0.000000e+00 : f32
    %26 = vector.broadcast %cst_25 : f32 to vector<81x32xf32>
    %27 = arith.maximumf %25, %26 : vector<81x32xf32>
    %c1_26 = arith.constant 1 : index
    %c0_27 = arith.constant 0 : index
    %c0_28 = arith.constant 0 : index
    %28 = vector.load %arg3[%c1_26, %c0_27, %c0_28] : memref<4x81x1xf32, #tpu.memory_space<vmem>>, vector<1x81x1xf32>
    %29 = vector.shape_cast %28 : vector<1x81x1xf32> to vector<81x1xf32>
    %30 = vector.broadcast %29 : vector<81x1xf32> to vector<81x32xf32>
    %31 = arith.mulf %27, %30 : vector<81x32xf32>
    %32 = vector.shape_cast %31 : vector<81x32xf32> to vector<9x9x32xf32>
    %c1_29 = arith.constant 1 : index
    %c0_30 = arith.constant 0 : index
    %c0_31 = arith.constant 0 : index
    %c0_32 = arith.constant 0 : index
    %33 = vector.load %arg15[%c1_29, %c0_30, %c0_31, %c0_32] : memref<4x9x9x32xf32, #tpu.memory_space<vmem>>, vector<1x9x9x32xf32>
    %34 = vector.shape_cast %33 : vector<1x9x9x32xf32> to vector<9x9x32xf32>
    %35 = vector.shape_cast %32 : vector<9x9x32xf32> to vector<1x9x9x32xf32>
    tpu.vector_store %arg15[%c1_29, %c0_30, %c0_31, %c0_32], %35 {strides = array<i32>} : memref<4x9x9x32xf32, #tpu.memory_space<vmem>>, vector<1x9x9x32xf32>,
    %c0_33 = arith.constant 0 : index
    %c2 = arith.constant 2 : index
    %c0_34 = arith.constant 0 : index
    %c0_35 = arith.constant 0 : index
    %c0_36 = arith.constant 0 : index
    %36 = vector.load %arg1[%c0_33, %c2, %c0_34, %c0_35, %c0_36] : memref<1x4x9x9x16xbf16, #tpu.memory_space<vmem>>, vector<1x1x9x9x16xbf16>
    %37 = vector.shape_cast %36 : vector<1x1x9x9x16xbf16> to vector<9x9x16xbf16>
    %38 = vector.shape_cast %37 : vector<9x9x16xbf16> to vector<81x16xbf16>
    %c0_37 = arith.constant 0 : index
    %c0_38 = arith.constant 0 : index
    %39 = vector.load %arg4[%c0_37, %c0_38] : memref<16x32xbf16, #tpu.memory_space<vmem>>, vector<16x32xbf16>
    %cst_39 = arith.constant dense<0.000000e+00> : vector<81x32xf32>
    %40 = tpu.matmul %38, %39, %cst_39 {dimension_numbers = #tpu.dot_dimension_numbers<[1], [0], [0], [1], [0, 0, 1, 1], [], []>} : vector<81x16xbf16>, vector<16x32xbf16>, vector<81x32xf32> -> vector<81x32xf32>
    %c0_40 = arith.constant 0 : index
    %c0_41 = arith.constant 0 : index
    %41 = vector.load %arg8[%c0_40, %c0_41] : memref<1x32xf32, #tpu.memory_space<vmem>>, vector<1x32xf32>
    %42 = vector.broadcast %41 : vector<1x32xf32> to vector<81x32xf32>
    %43 = arith.addf %40, %42 : vector<81x32xf32>
    %cst_42 = arith.constant 0.000000e+00 : f32
    %44 = vector.broadcast %cst_42 : f32 to vector<81x32xf32>
    %45 = arith.maximumf %43, %44 : vector<81x32xf32>
    %c2_43 = arith.constant 2 : index
    %c0_44 = arith.constant 0 : index
    %c0_45 = arith.constant 0 : index
    %46 = vector.load %arg3[%c2_43, %c0_44, %c0_45] : memref<4x81x1xf32, #tpu.memory_space<vmem>>, vector<1x81x1xf32>
    %47 = vector.shape_cast %46 : vector<1x81x1xf32> to vector<81x1xf32>
    %48 = vector.broadcast %47 : vector<81x1xf32> to vector<81x32xf32>
    %49 = arith.mulf %45, %48 : vector<81x32xf32>
    %50 = vector.shape_cast %49 : vector<81x32xf32> to vector<9x9x32xf32>
    %c2_46 = arith.constant 2 : index
    %c0_47 = arith.constant 0 : index
    %c0_48 = arith.constant 0 : index
    %c0_49 = arith.constant 0 : index
    %51 = vector.load %arg15[%c2_46, %c0_47, %c0_48, %c0_49] : memref<4x9x9x32xf32, #tpu.memory_space<vmem>>, vector<1x9x9x32xf32>
    %52 = vector.shape_cast %51 : vector<1x9x9x32xf32> to vector<9x9x32xf32>
    %53 = vector.shape_cast %50 : vector<9x9x32xf32> to vector<1x9x9x32xf32>
    tpu.vector_store %arg15[%c2_46, %c0_47, %c0_48, %c0_49], %53 {strides = array<i32>} : memref<4x9x9x32xf32, #tpu.memory_space<vmem>>, vector<1x9x9x32xf32>,
    %c0_50 = arith.constant 0 : index
    %c3 = arith.constant 3 : index
    %c0_51 = arith.constant 0 : index
    %c0_52 = arith.constant 0 : index
    %c0_53 = arith.constant 0 : index
    %54 = vector.load %arg1[%c0_50, %c3, %c0_51, %c0_52, %c0_53] : memref<1x4x9x9x16xbf16, #tpu.memory_space<vmem>>, vector<1x1x9x9x16xbf16>
    %55 = vector.shape_cast %54 : vector<1x1x9x9x16xbf16> to vector<9x9x16xbf16>
    %56 = vector.shape_cast %55 : vector<9x9x16xbf16> to vector<81x16xbf16>
    %c0_54 = arith.constant 0 : index
    %c0_55 = arith.constant 0 : index
    %57 = vector.load %arg4[%c0_54, %c0_55] : memref<16x32xbf16, #tpu.memory_space<vmem>>, vector<16x32xbf16>
    %cst_56 = arith.constant dense<0.000000e+00> : vector<81x32xf32>
    %58 = tpu.matmul %56, %57, %cst_56 {dimension_numbers = #tpu.dot_dimension_numbers<[1], [0], [0], [1], [0, 0, 1, 1], [], []>} : vector<81x16xbf16>, vector<16x32xbf16>, vector<81x32xf32> -> vector<81x32xf32>
    %c0_57 = arith.constant 0 : index
    %c0_58 = arith.constant 0 : index
    %59 = vector.load %arg8[%c0_57, %c0_58] : memref<1x32xf32, #tpu.memory_space<vmem>>, vector<1x32xf32>
    %60 = vector.broadcast %59 : vector<1x32xf32> to vector<81x32xf32>
    %61 = arith.addf %58, %60 : vector<81x32xf32>
    %cst_59 = arith.constant 0.000000e+00 : f32
    %62 = vector.broadcast %cst_59 : f32 to vector<81x32xf32>
    %63 = arith.maximumf %61, %62 : vector<81x32xf32>
    %c3_60 = arith.constant 3 : index
    %c0_61 = arith.constant 0 : index
    %c0_62 = arith.constant 0 : index
    %64 = vector.load %arg3[%c3_60, %c0_61, %c0_62] : memref<4x81x1xf32, #tpu.memory_space<vmem>>, vector<1x81x1xf32>
    %65 = vector.shape_cast %64 : vector<1x81x1xf32> to vector<81x1xf32>
    %66 = vector.broadcast %65 : vector<81x1xf32> to vector<81x32xf32>
    %67 = arith.mulf %63, %66 : vector<81x32xf32>
    %68 = vector.shape_cast %67 : vector<81x32xf32> to vector<9x9x32xf32>
    %c3_63 = arith.constant 3 : index
    %c0_64 = arith.constant 0 : index
    %c0_65 = arith.constant 0 : index
    %c0_66 = arith.constant 0 : index
    %69 = vector.load %arg15[%c3_63, %c0_64, %c0_65, %c0_66] : memref<4x9x9x32xf32, #tpu.memory_space<vmem>>, vector<1x9x9x32xf32>
    %70 = vector.shape_cast %69 : vector<1x9x9x32xf32> to vector<9x9x32xf32>
    %71 = vector.shape_cast %68 : vector<9x9x32xf32> to vector<1x9x9x32xf32>
    tpu.vector_store %arg15[%c3_63, %c0_64, %c0_65, %c0_66], %71 {strides = array<i32>} : memref<4x9x9x32xf32, #tpu.memory_space<vmem>>, vector<1x9x9x32xf32>,
    %cst_67 = arith.constant 0.000000e+00 : bf16
    %72 = vector.broadcast %cst_67 : bf16 to vector<64x1152xbf16>
    %c0_68 = arith.constant 0 : index
    %c0_69 = arith.constant 0 : index
    %73 = vector.load %arg16[%c0_68, %c0_69] : memref<64x1152xbf16, #tpu.memory_space<vmem>>, vector<64x1152xbf16>
    tpu.vector_store %arg16[%c0_68, %c0_69], %72 {strides = array<i32>} : memref<64x1152xbf16, #tpu.memory_space<vmem>>, vector<64x1152xbf16>,
    %c0_70 = arith.constant 0 : index
    %c0_71 = arith.constant 0 : index
    %c0_72 = arith.constant 0 : index
    %c0_73 = arith.constant 0 : index
    %74 = vector.load %arg15[%c0_70, %c0_71, %c0_72, %c0_73] : memref<4x9x9x32xf32, #tpu.memory_space<vmem>>, vector<1x8x8x32xf32>
    %75 = vector.shape_cast %74 : vector<1x8x8x32xf32> to vector<8x8x32xf32>
    %76 = vector.shape_cast %75 : vector<8x8x32xf32> to vector<64x32xf32>
    %77 = arith.truncf %76 : vector<64x32xf32> to vector<64x32xbf16>
    %c0_74 = arith.constant 0 : index
    %c0_75 = arith.constant 0 : index
    %78 = vector.load %arg16[%c0_74, %c0_75] : memref<64x1152xbf16, #tpu.memory_space<vmem>>, vector<64x32xbf16>
    tpu.vector_store %arg16[%c0_74, %c0_75], %77 {strides = array<i32>} : memref<64x1152xbf16, #tpu.memory_space<vmem>>, vector<64x32xbf16>,
    %c1_76 = arith.constant 1 : index
    %c0_77 = arith.constant 0 : index
    %c0_78 = arith.constant 0 : index
    %c0_79 = arith.constant 0 : index
    %79 = vector.load %arg15[%c1_76, %c0_77, %c0_78, %c0_79] : memref<4x9x9x32xf32, #tpu.memory_space<vmem>>, vector<1x8x8x32xf32>
    %80 = vector.shape_cast %79 : vector<1x8x8x32xf32> to vector<8x8x32xf32>
    %81 = vector.shape_cast %80 : vector<8x8x32xf32> to vector<64x32xf32>
    %82 = arith.truncf %81 : vector<64x32xf32> to vector<64x32xbf16>
    %c0_80 = arith.constant 0 : index
    %c128 = arith.constant 128 : index
    %83 = vector.load %arg16[%c0_80, %c128] : memref<64x1152xbf16, #tpu.memory_space<vmem>>, vector<64x32xbf16>
    tpu.vector_store %arg16[%c0_80, %c128], %82 {strides = array<i32>} : memref<64x1152xbf16, #tpu.memory_space<vmem>>, vector<64x32xbf16>,
    %c0_81 = arith.constant 0 : index
    %c0_82 = arith.constant 0 : index
    %c1_83 = arith.constant 1 : index
    %c0_84 = arith.constant 0 : index
    %84 = vector.load %arg15[%c0_81, %c0_82, %c1_83, %c0_84] : memref<4x9x9x32xf32, #tpu.memory_space<vmem>>, vector<1x8x8x32xf32>
    %85 = vector.shape_cast %84 : vector<1x8x8x32xf32> to vector<8x8x32xf32>
    %86 = vector.shape_cast %85 : vector<8x8x32xf32> to vector<64x32xf32>
    %87 = arith.truncf %86 : vector<64x32xf32> to vector<64x32xbf16>
    %c0_85 = arith.constant 0 : index
    %c256 = arith.constant 256 : index
    %88 = vector.load %arg16[%c0_85, %c256] : memref<64x1152xbf16, #tpu.memory_space<vmem>>, vector<64x32xbf16>
    tpu.vector_store %arg16[%c0_85, %c256], %87 {strides = array<i32>} : memref<64x1152xbf16, #tpu.memory_space<vmem>>, vector<64x32xbf16>,
    %c2_86 = arith.constant 2 : index
    %c0_87 = arith.constant 0 : index
    %c0_88 = arith.constant 0 : index
    %c0_89 = arith.constant 0 : index
    %89 = vector.load %arg15[%c2_86, %c0_87, %c0_88, %c0_89] : memref<4x9x9x32xf32, #tpu.memory_space<vmem>>, vector<1x8x8x32xf32>
    %90 = vector.shape_cast %89 : vector<1x8x8x32xf32> to vector<8x8x32xf32>
    %91 = vector.shape_cast %90 : vector<8x8x32xf32> to vector<64x32xf32>
    %92 = arith.truncf %91 : vector<64x32xf32> to vector<64x32xbf16>
    %c0_90 = arith.constant 0 : index
    %c384 = arith.constant 384 : index
    %93 = vector.load %arg16[%c0_90, %c384] : memref<64x1152xbf16, #tpu.memory_space<vmem>>, vector<64x32xbf16>
    tpu.vector_store %arg16[%c0_90, %c384], %92 {strides = array<i32>} : memref<64x1152xbf16, #tpu.memory_space<vmem>>, vector<64x32xbf16>,
    %c3_91 = arith.constant 3 : index
    %c0_92 = arith.constant 0 : index
    %c0_93 = arith.constant 0 : index
    %c0_94 = arith.constant 0 : index
    %94 = vector.load %arg15[%c3_91, %c0_92, %c0_93, %c0_94] : memref<4x9x9x32xf32, #tpu.memory_space<vmem>>, vector<1x8x8x32xf32>
    %95 = vector.shape_cast %94 : vector<1x8x8x32xf32> to vector<8x8x32xf32>
    %96 = vector.shape_cast %95 : vector<8x8x32xf32> to vector<64x32xf32>
    %97 = arith.truncf %96 : vector<64x32xf32> to vector<64x32xbf16>
    %c0_95 = arith.constant 0 : index
    %c512 = arith.constant 512 : index
    %98 = vector.load %arg16[%c0_95, %c512] : memref<64x1152xbf16, #tpu.memory_space<vmem>>, vector<64x32xbf16>
    tpu.vector_store %arg16[%c0_95, %c512], %97 {strides = array<i32>} : memref<64x1152xbf16, #tpu.memory_space<vmem>>, vector<64x32xbf16>,
    %c2_96 = arith.constant 2 : index
    %c0_97 = arith.constant 0 : index
    %c1_98 = arith.constant 1 : index
    %c0_99 = arith.constant 0 : index
    %99 = vector.load %arg15[%c2_96, %c0_97, %c1_98, %c0_99] : memref<4x9x9x32xf32, #tpu.memory_space<vmem>>, vector<1x8x8x32xf32>
    %100 = vector.shape_cast %99 : vector<1x8x8x32xf32> to vector<8x8x32xf32>
    %101 = vector.shape_cast %100 : vector<8x8x32xf32> to vector<64x32xf32>
    %102 = arith.truncf %101 : vector<64x32xf32> to vector<64x32xbf16>
    %c0_100 = arith.constant 0 : index
    %c640 = arith.constant 640 : index
    %103 = vector.load %arg16[%c0_100, %c640] : memref<64x1152xbf16, #tpu.memory_space<vmem>>, vector<64x32xbf16>
    tpu.vector_store %arg16[%c0_100, %c640], %102 {strides = array<i32>} : memref<64x1152xbf16, #tpu.memory_space<vmem>>, vector<64x32xbf16>,
    %c0_101 = arith.constant 0 : index
    %c1_102 = arith.constant 1 : index
    %c0_103 = arith.constant 0 : index
    %c0_104 = arith.constant 0 : index
    %104 = vector.load %arg15[%c0_101, %c1_102, %c0_103, %c0_104] : memref<4x9x9x32xf32, #tpu.memory_space<vmem>>, vector<1x8x8x32xf32>
    %105 = vector.shape_cast %104 : vector<1x8x8x32xf32> to vector<8x8x32xf32>
    %106 = vector.shape_cast %105 : vector<8x8x32xf32> to vector<64x32xf32>
    %107 = arith.truncf %106 : vector<64x32xf32> to vector<64x32xbf16>
    %c0_105 = arith.constant 0 : index
    %c768 = arith.constant 768 : index
    %108 = vector.load %arg16[%c0_105, %c768] : memref<64x1152xbf16, #tpu.memory_space<vmem>>, vector<64x32xbf16>
    tpu.vector_store %arg16[%c0_105, %c768], %107 {strides = array<i32>} : memref<64x1152xbf16, #tpu.memory_space<vmem>>, vector<64x32xbf16>,
    %c1_106 = arith.constant 1 : index
    %c1_107 = arith.constant 1 : index
    %c0_108 = arith.constant 0 : index
    %c0_109 = arith.constant 0 : index
    %109 = vector.load %arg15[%c1_106, %c1_107, %c0_108, %c0_109] : memref<4x9x9x32xf32, #tpu.memory_space<vmem>>, vector<1x8x8x32xf32>
    %110 = vector.shape_cast %109 : vector<1x8x8x32xf32> to vector<8x8x32xf32>
    %111 = vector.shape_cast %110 : vector<8x8x32xf32> to vector<64x32xf32>
    %112 = arith.truncf %111 : vector<64x32xf32> to vector<64x32xbf16>
    %c0_110 = arith.constant 0 : index
    %c896 = arith.constant 896 : index
    %113 = vector.load %arg16[%c0_110, %c896] : memref<64x1152xbf16, #tpu.memory_space<vmem>>, vector<64x32xbf16>
    tpu.vector_store %arg16[%c0_110, %c896], %112 {strides = array<i32>} : memref<64x1152xbf16, #tpu.memory_space<vmem>>, vector<64x32xbf16>,
    %c0_111 = arith.constant 0 : index
    %c1_112 = arith.constant 1 : index
    %c1_113 = arith.constant 1 : index
    %c0_114 = arith.constant 0 : index
    %114 = vector.load %arg15[%c0_111, %c1_112, %c1_113, %c0_114] : memref<4x9x9x32xf32, #tpu.memory_space<vmem>>, vector<1x8x8x32xf32>
    %115 = vector.shape_cast %114 : vector<1x8x8x32xf32> to vector<8x8x32xf32>
    %116 = vector.shape_cast %115 : vector<8x8x32xf32> to vector<64x32xf32>
    %117 = arith.truncf %116 : vector<64x32xf32> to vector<64x32xbf16>
    %c0_115 = arith.constant 0 : index
    %c1024 = arith.constant 1024 : index
    %118 = vector.load %arg16[%c0_115, %c1024] : memref<64x1152xbf16, #tpu.memory_space<vmem>>, vector<64x32xbf16>
    tpu.vector_store %arg16[%c0_115, %c1024], %117 {strides = array<i32>} : memref<64x1152xbf16, #tpu.memory_space<vmem>>, vector<64x32xbf16>,
    %c0_116 = arith.constant 0 : index
    %c0_117 = arith.constant 0 : index
    %119 = vector.load %arg5[%c0_116, %c0_117] : memref<32x1152xbf16, #tpu.memory_space<vmem>>, vector<32x1152xbf16>
    %c0_118 = arith.constant 0 : index
    %c0_119 = arith.constant 0 : index
    %120 = vector.load %arg16[%c0_118, %c0_119] : memref<64x1152xbf16, #tpu.memory_space<vmem>>, vector<64x1152xbf16>
    "tpu.trace_start"() <{level = 10 : i32, message = "ck,mk->cm"}> : () -> ()
    %cst_120 = arith.constant dense<0.000000e+00> : vector<32x64xf32>
    %121 = tpu.matmul %119, %120, %cst_120 {dimension_numbers = #tpu.dot_dimension_numbers<[1], [1], [0], [0], [0, 0, 1, 0], [], []>} : vector<32x1152xbf16>, vector<64x1152xbf16>, vector<32x64xf32> -> vector<32x64xf32>
    "tpu.trace_stop"() : () -> ()
    %c0_121 = arith.constant 0 : index
    %c0_122 = arith.constant 0 : index
    %122 = vector.load %arg9[%c0_121, %c0_122] : memref<32x1xf32, #tpu.memory_space<vmem>>, vector<32x1xf32>
    %123 = vector.broadcast %122 : vector<32x1xf32> to vector<32x64xf32>
    %124 = arith.addf %121, %123 : vector<32x64xf32>
    %cst_123 = arith.constant 0.000000e+00 : f32
    %125 = vector.broadcast %cst_123 : f32 to vector<32x64xf32>
    %126 = arith.maximumf %124, %125 : vector<32x64xf32>
    %127 = arith.truncf %126 : vector<32x64xf32> to vector<32x64xbf16>
    %c0_124 = arith.constant 0 : index
    %c0_125 = arith.constant 0 : index
    %128 = vector.load %arg6[%c0_124, %c0_125] : memref<32x32xbf16, #tpu.memory_space<vmem>>, vector<32x32xbf16>
    %cst_126 = arith.constant dense<0.000000e+00> : vector<32x64xf32>
    %129 = tpu.matmul %128, %127, %cst_126 {dimension_numbers = #tpu.dot_dimension_numbers<[1], [0], [0], [1], [0, 0, 1, 1], [], []>} : vector<32x32xbf16>, vector<32x64xbf16>, vector<32x64xf32> -> vector<32x64xf32>
    %c0_127 = arith.constant 0 : index
    %c0_128 = arith.constant 0 : index
    %130 = vector.load %arg7[%c0_127, %c0_128] : memref<32x16xbf16, #tpu.memory_space<vmem>>, vector<32x16xbf16>
    %c0_129 = arith.constant 0 : index
    %c0_130 = arith.constant 0 : index
    %c0_131 = arith.constant 0 : index
    %131 = vector.load %arg2[%c0_129, %c0_130, %c0_131] : memref<1x16x64xbf16, #tpu.memory_space<vmem>>, vector<1x16x64xbf16>
    %132 = vector.shape_cast %131 : vector<1x16x64xbf16> to vector<16x64xbf16>
    %cst_132 = arith.constant dense<0.000000e+00> : vector<32x64xf32>
    %133 = tpu.matmul %130, %132, %cst_132 {dimension_numbers = #tpu.dot_dimension_numbers<[1], [0], [0], [1], [0, 0, 1, 1], [], []>} : vector<32x16xbf16>, vector<16x64xbf16>, vector<32x64xf32> -> vector<32x64xf32>
    %134 = arith.addf %129, %133 : vector<32x64xf32>
    %c0_133 = arith.constant 0 : index
    %c0_134 = arith.constant 0 : index
    %135 = vector.load %arg10[%c0_133, %c0_134] : memref<32x1xf32, #tpu.memory_space<vmem>>, vector<32x1xf32>
    %136 = vector.broadcast %135 : vector<32x1xf32> to vector<32x64xf32>
    %137 = arith.addf %134, %136 : vector<32x64xf32>
    %cst_135 = arith.constant 0.000000e+00 : f32
    %138 = vector.broadcast %cst_135 : f32 to vector<32x64xf32>
    %139 = arith.maximumf %137, %138 : vector<32x64xf32>
    %c0_136 = arith.constant 0 : index
    %c0_137 = arith.constant 0 : index
    %140 = vector.load %arg12[%c0_136, %c0_137] : memref<32x16xbf16, #tpu.memory_space<vmem>>, vector<32x16xbf16>
    %c0_138 = arith.constant 0 : index
    %c0_139 = arith.constant 0 : index
    %c0_140 = arith.constant 0 : index
    %141 = vector.load %arg11[%c0_138, %c0_139, %c0_140] : memref<1x16x64xbf16, #tpu.memory_space<vmem>>, vector<1x16x64xbf16>
    %142 = vector.shape_cast %141 : vector<1x16x64xbf16> to vector<16x64xbf16>
    %cst_141 = arith.constant dense<0.000000e+00> : vector<32x64xf32>
    %143 = tpu.matmul %140, %142, %cst_141 {dimension_numbers = #tpu.dot_dimension_numbers<[1], [0], [0], [1], [0, 0, 1, 1], [], []>} : vector<32x16xbf16>, vector<16x64xbf16>, vector<32x64xf32> -> vector<32x64xf32>
    %144 = arith.addf %139, %143 : vector<32x64xf32>
    %c0_142 = arith.constant 0 : index
    %c0_143 = arith.constant 0 : index
    %145 = vector.load %arg13[%c0_142, %c0_143] : memref<32x1xf32, #tpu.memory_space<vmem>>, vector<32x1xf32>
    %146 = vector.broadcast %145 : vector<32x1xf32> to vector<32x64xf32>
    %147 = arith.addf %144, %146 : vector<32x64xf32>
    %c0_144 = arith.constant 0 : index
    %c0_145 = arith.constant 0 : index
    %c0_146 = arith.constant 0 : index
    %148 = vector.load %arg14[%c0_144, %c0_145, %c0_146] : memref<1x32x64xf32, #tpu.memory_space<vmem>>, vector<1x32x64xf32>
    %149 = vector.shape_cast %148 : vector<1x32x64xf32> to vector<32x64xf32>
    %150 = vector.shape_cast %147 : vector<32x64xf32> to vector<1x32x64xf32>
    tpu.vector_store %arg14[%c0_144, %c0_145, %c0_146], %150 {strides = array<i32>} : memref<1x32x64xf32, #tpu.memory_space<vmem>>, vector<1x32x64xf32>,
    return
  }
  func.func @transform_0(%arg0: i32) -> (i32, i32, i32, i32, i32) {
    %c0_i32 = arith.constant 0 : i32
    %c0_i32_0 = arith.constant 0 : i32
    %c0_i32_1 = arith.constant 0 : i32
    %c0_i32_2 = arith.constant 0 : i32
    %c0_i32_3 = arith.constant 0 : i32
    return %arg0, %c0_i32, %c0_i32_0, %c0_i32_1, %c0_i32_2 : i32, i32, i32, i32, i32
  }
  func.func @transform_1(%arg0: i32) -> (i32, i32, i32) {
    %c0_i32 = arith.constant 0 : i32
    %c0_i32_0 = arith.constant 0 : i32
    %c0_i32_1 = arith.constant 0 : i32
    return %arg0, %c0_i32, %c0_i32_0 : i32, i32, i32
  }
  func.func @transform_2(%arg0: i32) -> (i32, i32, i32) {
    %c0_i32 = arith.constant 0 : i32
    %c0_i32_0 = arith.constant 0 : i32
    %c0_i32_1 = arith.constant 0 : i32
    %c0_i32_2 = arith.constant 0 : i32
    return %c0_i32, %c0_i32_0, %c0_i32_1 : i32, i32, i32
  }
  func.func @transform_3(%arg0: i32) -> (i32, i32) {
    %c0_i32 = arith.constant 0 : i32
    %c0_i32_0 = arith.constant 0 : i32
    %c0_i32_1 = arith.constant 0 : i32
    return %c0_i32, %c0_i32_0 : i32, i32
  }
  func.func @transform_4(%arg0: i32) -> (i32, i32) {
    %c0_i32 = arith.constant 0 : i32
    %c0_i32_0 = arith.constant 0 : i32
    %c0_i32_1 = arith.constant 0 : i32
    return %c0_i32, %c0_i32_0 : i32, i32
  }
  func.func @transform_5(%arg0: i32) -> (i32, i32) {
    %c0_i32 = arith.constant 0 : i32
    %c0_i32_0 = arith.constant 0 : i32
    %c0_i32_1 = arith.constant 0 : i32
    return %c0_i32, %c0_i32_0 : i32, i32
  }
  func.func @transform_6(%arg0: i32) -> (i32, i32) {
    %c0_i32 = arith.constant 0 : i32
    %c0_i32_0 = arith.constant 0 : i32
    %c0_i32_1 = arith.constant 0 : i32
    return %c0_i32, %c0_i32_0 : i32, i32
  }
  func.func @transform_7(%arg0: i32) -> (i32, i32) {
    %c0_i32 = arith.constant 0 : i32
    %c0_i32_0 = arith.constant 0 : i32
    %c0_i32_1 = arith.constant 0 : i32
    return %c0_i32, %c0_i32_0 : i32, i32
  }
  func.func @transform_8(%arg0: i32) -> (i32, i32) {
    %c0_i32 = arith.constant 0 : i32
    %c0_i32_0 = arith.constant 0 : i32
    %c0_i32_1 = arith.constant 0 : i32
    return %c0_i32, %c0_i32_0 : i32, i32
  }
  func.func @transform_9(%arg0: i32) -> (i32, i32) {
    %c0_i32 = arith.constant 0 : i32
    %c0_i32_0 = arith.constant 0 : i32
    %c0_i32_1 = arith.constant 0 : i32
    return %c0_i32, %c0_i32_0 : i32, i32
  }
  func.func @transform_10(%arg0: i32) -> (i32, i32, i32) {
    %c0_i32 = arith.constant 0 : i32
    %c0_i32_0 = arith.constant 0 : i32
    %c0_i32_1 = arith.constant 0 : i32
    return %arg0, %c0_i32, %c0_i32_0 : i32, i32, i32
  }
  func.func @transform_11(%arg0: i32) -> (i32, i32) {
    %c0_i32 = arith.constant 0 : i32
    %c0_i32_0 = arith.constant 0 : i32
    %c0_i32_1 = arith.constant 0 : i32
    return %c0_i32, %c0_i32_0 : i32, i32
  }
  func.func @transform_12(%arg0: i32) -> (i32, i32) {
    %c0_i32 = arith.constant 0 : i32
    %c0_i32_0 = arith.constant 0 : i32
    %c0_i32_1 = arith.constant 0 : i32
    return %c0_i32, %c0_i32_0 : i32, i32
  }
  func.func @transform_13(%arg0: i32) -> (i32, i32, i32) {
    %c0_i32 = arith.constant 0 : i32
    %c0_i32_0 = arith.constant 0 : i32
    %c0_i32_1 = arith.constant 0 : i32
    return %arg0, %c0_i32, %c0_i32_0 : i32, i32, i32
  }
}

</mosaic_0001>

<bundles_post_ra>
// kernel: resnext_chunk_fwd.2
= control target key start
LH: loop header
LB: loop body
LE: loop exit
PB: predicated region body
PF: predicated region fallthrough
CT: control target
= control target key end

     0   :  { %s6709_s13 = smov 0   ;;  %s7928_s0 = inlined_call_operand.vmem [shape: bf16[2,1,18,18,16], index: 0, kind: input, shape index: {}]   ;;  %s7929_s1 = inlined_call_operand.vmem [shape: bf16[2,16,256], index: 1, kind: input, shape index: {}]   ;;  %s7930_s2 = inlined_call_operand.vmem [shape: f32[1,324,1], index: 2, kind: input, shape index: {}]   ;;  %s7931_s3 = inlined_call_operand.vmem [shape: bf16[16,32], index: 3, kind: input, shape index: {}]   ;;  %s7932_s4 = inlined_call_operand.vmem [shape: bf16[32,1152], index: 4, kind: input, shape index: {}]   ;;  %s7933_s5 = inlined_call_operand.vmem [shape: bf16[16,32], index: 5, kind: input, shape index: {}]   ;;  %s7934_s6 = inlined_call_operand.vmem [shape: bf16[16,16], index: 6, kind: input, shape index: {}]   ;;  %s7935_s7 = inlined_call_operand.vmem [shape: f32[1,32], index: 7, kind: input, shape index: {}]   ;;  %s7936_s8 = inlined_call_operand.vmem [shape: f32[32,1], index: 8, kind: input, shape index: {}]   ;;  %s7937_s9 = inlined_call_operand.vmem [shape: f32[16,1], index: 9, kind: input, shape index: {}]   ;;  %s7938_s10 = inlined_call_operand.vmem [shape: bf16[2,16,256], index: 10, kind: output, shape index: {}]  }
   0x1 LB: > { %s6282_s14 = sadd.s32 4294967295, %s6647_s13   ;;  %p6286_p0 = scmp.ge.s32.totalorder %s6647_s13, 1  ;;  %s6647_s13 = sphi %s6709_s13, %s20_s13  }
   0x2   : > { %p322_p1 = scmp.lt.s32.totalorder %s6647_s13, 3 }
   0x4   : > { %p323_p2 = pnand %p6286_p0, %p322_p1 }
   0x5   : > { %v6607_v0 = vld [vmem:[%s7931_s3] sm:$0xff] (!%p323_p2)   ;;  %v500_v1 = vlaneseq (!%p323_p2)  ;;  %v6649_v2 = vmov (!%p323_p2), 0.0   ;;  %p6723_p3 = scmp.lt.s32.totalorder (!%p323_p2), %s6282_s14, 1  ;;  %vm6650_vm0 = vmmov (!%p323_p2), 0   ;;  %v6651_v3 = vmov (!%p323_p2), 1966171168  }
   0x6   : > { %326 = sbr.rel (%p323_p2) target bundleno = 1098 (0x44a), region = 60  ;;  %6461 = vmatprep.subr.bf16.mxu0 (!%p323_p2), %v6649_v2  ;;  %6463 = vmatprep.mubr.msk.bf16.mxu0 (!%p323_p2), %vm6650_vm0, %v6649_v2  ;;  %v6729_v4 = vunpack.c.l.s4 (!%p323_p2), %v6651_v3  ;;  %v6652_v6 = vmov (!%p323_p2), 0   ;;  %v2922_v7 = vld [vmem:[%s7930_s2 + $0x10] sm:$0xff] (!%p323_p2)  ;;  %v2924_v8 = vld [vmem:[%s7930_s2 + $0x20] sm:$0xff] (!%p323_p2)  ;;  %v2923_v10 = vld [vmem:[%s7930_s2 + $0x18] sm:$0xff] (!%p323_p2)  ;;  %vm2615_vm1 = vcmask (!%p323_p2), 130048  }
   0x7   : > { %6462 = vmatpush3.bf16.msra.mxu0 (!%p323_p2), %v6607_v0  ;;  %v6731_v5 = vshrl.u32 (!%p323_p2), %v500_v1, 7  ;;  %4784 = vst [vmem:[#allocation3] sm:$0xff] (!%p323_p2), %v6652_v6  ;;  %4785 = vst [vmem:[#allocation3 + $0x8] sm:$0xff] (!%p323_p2), %v6652_v6  ;;  %6605 = vset.pattern.permute.xlu0 (!%p323_p2), %v6652_v6  ;;  %v2925_v11 = vld [vmem:[%s7930_s2 + $0x28] sm:$0xff] (!%p323_p2)  ;;  %v2926_v17 = vld [vmem:[%s7930_s2 + $0x30] sm:$0xff] (!%p323_p2)  ;;  %vm4728_vm2 = vcmask (!%p323_p2), 261120  }
   0x8   : > { %4786 = vst [vmem:[#allocation3 + $0x10] sm:$0xff] (!%p323_p2), %v6652_v6  ;;  %4787 = vst [vmem:[#allocation3 + $0x18] sm:$0xff] (!%p323_p2), %v6652_v6  ;;  %6606 = vset.pattern.permute.xlu1 (!%p323_p2), %v6652_v6  ;;  %v499_v9 = vunpack.c.0.s8 (!%p323_p2), %v6729_v4  ;;  %2973 = vperm.xlu0 (!%p323_p2), %6605, %v2922_v7   ;;  %v2927_v18 = vld [vmem:[%s7930_s2 + $0x38] sm:$0xff] (!%p323_p2)  ;;  %v2928_v33 = vld [vmem:[%s7930_s2 + $0x40] sm:$0xff] (!%p323_p2)  ;;  %vm4731_vm3 = vcmask (!%p323_p2), 254976  }
   0x9   : > { %4788 = vst [vmem:[#allocation3 + $0x20] sm:$0xff] (!%p323_p2), %v6652_v6  ;;  %4789 = vst [vmem:[#allocation3 + $0x28] sm:$0xff] (!%p323_p2), %v6652_v6  ;;  %2983 = vperm.xlu1 (!%p323_p2), %6606, %v2924_v8   ;;  %v2929_v38 = vld [vmem:[%s7930_s2 + $0x48] sm:$0xff] (!%p323_p2)  ;;  %v2930_v54 = vld [vmem:[%s7930_s2 + $0x50] sm:$0xff] (!%p323_p2) }
   0xa   : > { %4790 = vst [vmem:[#allocation3 + $0x30] sm:$0xff] (!%p323_p2), %v6652_v6  ;;  %4791 = vst [vmem:[#allocation3 + $0x38] sm:$0xff] (!%p323_p2), %v6652_v6  ;;  %v6900_v12 = vsub.s32 (!%p323_p2), %v499_v9, %v6731_v5  ;;  %v2931_v59 = vld [vmem:[%s7930_s2 + $0x58] sm:$0xff] (!%p323_p2) }
   0xb   : > { %4792 = vst [vmem:[#allocation3 + $0x40] sm:$0xff] (!%p323_p2), %v6652_v6  ;;  %4793 = vst [vmem:[#allocation3 + $0x48] sm:$0xff] (!%p323_p2), %v6652_v6 }
   0xc   : > { %4794 = vst [vmem:[#allocation3 + $0x50] sm:$0xff] (!%p323_p2), %v6652_v6  ;;  %4795 = vst [vmem:[#allocation3 + $0x58] sm:$0xff] (!%p323_p2), %v6652_v6  ;;  %2978 = vperm.xlu0 (!%p323_p2), %6605, %v2923_v10  }
   0xd   : > { %4796 = vst [vmem:[#allocation3 + $0x60] sm:$0xff] %v6652_v6  ;;  %4797 = vst [vmem:[#allocation3 + $0x68] sm:$0xff] %v6652_v6  ;;  %s7941_s14 = smov (!%p6723_p3, %s6282_s14), 1  ;;  %2988 = vperm.xlu1 %6606, %v2925_v11  }
   0xe   : > { %4798 = vst [vmem:[#allocation3 + $0x70] sm:$0xff] %v6652_v6  ;;  %4799 = vst [vmem:[#allocation3 + $0x78] sm:$0xff] %v6652_v6  ;;  %s6591_s22 = smul.u32 216, %s7941_s14  ;;  %s6415_s18 = sshll.u32 %s7941_s14, 4 }
   0xf   : > { %4800 = vst [vmem:[#allocation3 + $0x80] sm:$0xff] %v6652_v6  ;;  %4801 = vst [vmem:[#allocation3 + $0x88] sm:$0xff] %v6652_v6  ;;  %s374_s21 = scalar_lea.vmem %s7929_s1, %s6415_s18  ;;  %s379_s28 = scalar_lea.vmem %s7938_s10, %s6415_s18 }
  0x10   : > { %4802 = vst [vmem:[#allocation3 + $0x90] sm:$0xff] %v6652_v6  ;;  %4803 = vst [vmem:[#allocation3 + $0x98] sm:$0xff] %v6652_v6  ;;  %s6905_s29 = scalar_lea.vmem %s7928_s0, %s6591_s22  ;;  %2993 = vperm.xlu0 %6605, %v2926_v17  }
  0x11   : > { %4804 = vst [vmem:[#allocation3 + $0xa0] sm:$0xff] %v6652_v6  ;;  %4805 = vst [vmem:[#allocation3 + $0xa8] sm:$0xff] %v6652_v6  ;;  %v6292_v13 = vld.sshfl [vmem:[%s6905_s29] sm:$0x33 pattern:$0x75316420]  ;;  %2998 = vperm.xlu1 %6606, %v2927_v18  }
  0x12   : > { %4806 = vst [vmem:[#allocation3 + $0xb0] sm:$0xff] %v6652_v6  ;;  %4807 = vst [vmem:[#allocation3 + $0xb8] sm:$0xff] %v6652_v6  ;;  %v6293_v14 = vld.sshfl [vmem:[%s6905_s29 + $0x4] sm:$0x33 pattern:$0x75316420]  ;;  %v496_v15 = vcombine.high %v6292_v13, %v6292_v13  ;;  %v503_v16 = vrot.slane %v6292_v13, %v6900_v12 }
  0x13   : > { %4808 = vst [vmem:[#allocation3 + $0xc0] sm:$0xff] %v6652_v6  ;;  %4809 = vst [vmem:[#allocation3 + $0xc8] sm:$0xff] %v6652_v6  ;;  %v520_v19 = vcombine.high %v6293_v14, %v6293_v14  ;;  %v527_v20 = vrot.slane %v6293_v14, %v6900_v12  ;;  %v6294_v21 = vld.sshfl [vmem:[%s6905_s29 + $0x8] sm:$0x1 pattern:$0x75316420] }
  0x14   : > { %4810 = vst [vmem:[#allocation3 + $0xd0] sm:$0xff] %v6652_v6  ;;  %4811 = vst [vmem:[#allocation3 + $0xd8] sm:$0xff] %v6652_v6  ;;  %v510_v22 = vrot.slane %v496_v15, %v6900_v12  ;;  %v6295_v23 = vld.sshfl [vmem:[%s6905_s29 + $0xc] sm:$0x33 pattern:$0x75316420]  ;;  %v550_v24 = vrot.slane %v6294_v21, %v6900_v12  ;;  %3003 = vperm.xlu0 %6605, %v2928_v33  }
  0x15   : > { %4812 = vst [vmem:[#allocation3 + $0xe0] sm:$0xff] %v6652_v6  ;;  %4813 = vst [vmem:[#allocation3 + $0xe8] sm:$0xff] %v6652_v6  ;;  %v534_v25 = vrot.slane %v520_v19, %v6900_v12  ;;  %v6296_v26 = vld.sshfl [vmem:[%s6905_s29 + $0x10] sm:$0x33 pattern:$0x75316420]  ;;  %v558_v27 = vcombine.high %v6295_v23, %v6295_v23  ;;  %v565_v28 = vrot.slane %v6295_v23, %v6900_v12  ;;  %3008 = vperm.xlu1 %6606, %v2929_v38  }
  0x16   : > { %4814 = vst [vmem:[#allocation3 + $0xf0] sm:$0xff] %v6652_v6  ;;  %4815 = vst [vmem:[#allocation3 + $0xf8] sm:$0xff] %v6652_v6  ;;  %v1614_v29 = vcombine.low %v503_v16, %v510_v22  ;;  %v6347_v30 = vcombine.high %v503_v16, %v510_v22  ;;  %v582_v31 = vcombine.high %v6296_v26, %v6296_v26  ;;  %v6297_v43 = vld.sshfl [vmem:[%s6905_s29 + $0x14] sm:$0x1 pattern:$0x75316420] }
  0x17   : > { %4816 = vst [vmem:[#allocation3 + $0x100] sm:$0xff] %v6652_v6  ;;  %4817 = vst [vmem:[#allocation3 + $0x108] sm:$0xff] %v6652_v6  ;;  %v589_v32 = vrot.slane %v6296_v26, %v6900_v12  ;;  %v1616_v34 = vcombine.low %v527_v20, %v534_v25  ;;  %v6348_v35 = vcombine.high %v527_v20, %v534_v25  ;;  %v6298_v48 = vld.sshfl [vmem:[%s6905_s29 + $0x18] sm:$0x33 pattern:$0x75316420] }
  0x18   : > { %4818 = vst [vmem:[#allocation3 + $0x110] sm:$0xff] %v6652_v6  ;;  %4819 = vst [vmem:[#allocation3 + $0x118] sm:$0xff] %v6652_v6  ;;  %v572_v36 = vrot.slane %v558_v27, %v6900_v12  ;;  %v573_v37 = vcombine.high %v565_v28, %v565_v28  ;;  %v1624_v39 = vrot.slane %v1614_v29, %v6900_v12  ;;  %v6299_v52 = vld.sshfl [vmem:[%s6905_s29 + $0x1c] sm:$0x33 pattern:$0x75316420]  ;;  %3013 = vperm.xlu0 %6605, %v2930_v54  }
  0x19   : > { %4820 = vst [vmem:[#allocation3 + $0x120] sm:$0xff] %v6652_v6  ;;  %4821 = vst [vmem:[#allocation3 + $0x128] sm:$0xff] %v6652_v6  ;;  %v1631_v40 = vrot.slane %v6347_v30, %v6900_v12  ;;  %v596_v41 = vrot.slane %v582_v31, %v6900_v12  ;;  %v597_v42 = vcombine.high %v589_v32, %v589_v32  ;;  %v6300_v0 = vld.sshfl [vmem:[%s6905_s29 + $0x20] sm:$0x1 pattern:$0x75316420]  ;;  %3018 = vperm.xlu1 %6606, %v2931_v59  }
  0x1a   : > { %4822 = vst [vmem:[#allocation3 + $0x130] sm:$0xff] %v6652_v6  ;;  %4823 = vst [vmem:[#allocation3 + $0x138] sm:$0xff] %v6652_v6  ;;  %v1638_v44 = vrot.slane %v1616_v34, %v6900_v12  ;;  %v1645_v45 = vrot.slane %v6348_v35, %v6900_v12  ;;  %v574_v46 = vcombine.high %v572_v36, %v572_v36  ;;  %v6301_v13 = vld.sshfl [vmem:[%s6905_s29 + $0x24] sm:$0x33 pattern:$0x75316420] }
  0x1b   : > { %4824 = vst [vmem:[#allocation3 + $0x140] sm:$0xff] %v6652_v6  ;;  %4825 = vst [vmem:[#allocation3 + $0x148] sm:$0xff] %v6652_v6  ;;  %v1663_v47 = vcombine.low %v550_v24, %v565_v28  ;;  %v1646_v49 = vcombine.low %v1624_v39, %v1631_v40  ;;  %v1664_v50 = vcombine.low %v572_v36, %v573_v37  ;;  %v6302_v17 = vld.sshfl [vmem:[%s6905_s29 + $0x28] sm:$0x33 pattern:$0x75316420] }
  0x1c   : > { %4826 = vst [vmem:[#allocation3 + $0x150] sm:$0xff] %v6652_v6  ;;  %4827 = vst [vmem:[#allocation3 + $0x158] sm:$0xff] %v6652_v6  ;;  %v1666_v51 = vcombine.low %v596_v41, %v597_v42  ;;  %v598_v53 = vcombine.high %v596_v41, %v596_v41  ;;  %v1647_v55 = vcombine.low %v1638_v44, %v1645_v45  ;;  %v2932_v23 = vld [vmem:[%s7930_s2 + $0x60] sm:$0xff]  ;;  %v2933_v28 = vld [vmem:[%s7930_s2 + $0x68] sm:$0xff] }
  0x1d   : > { %4828 = vst [vmem:[#allocation3 + $0x160] sm:$0xff] %v6652_v6  ;;  %4829 = vst [vmem:[#allocation3 + $0x168] sm:$0xff] %v6652_v6  ;;  %v1665_v56 = vcombine.low %v574_v46, %v589_v32  ;;  %v1673_v57 = vrot.slane %v1663_v47, %v6900_v12  ;;  %v612_v58 = vrot.slane %v6297_v43, %v6900_v12  ;;  %v2934_v32 = vld [vmem:[%s7930_s2 + $0x70] sm:$0xff]  ;;  %3023 = vperm.xlu0 %6605, %v2932_v23   ;;  %v2935_v46 = vld [vmem:[%s7930_s2 + $0x78] sm:$0xff] }
  0x1e   : > { %4830 = vst [vmem:[#allocation3 + $0x170] sm:$0xff] %v6652_v6  ;;  %4831 = vst [vmem:[#allocation3 + $0x178] sm:$0xff] %v6652_v6  ;;  %v1654_v60 = vrot.slane %v1646_v49, %v6900_v12  ;;  %v1680_v61 = vrot.slane %v1664_v50, %v6900_v12  ;;  %v1694_v62 = vrot.slane %v1666_v51, %v6900_v12  ;;  %v6303_v37 = vld.sshfl [vmem:[%s6905_s29 + $0x2c] sm:$0x1 pattern:$0x75316420]  ;;  %3028 = vperm.xlu1 %6606, %v2933_v28  }
  0x1f   : > { %4832 = vst [vmem:[#allocation3 + $0x180] sm:$0xff] %v6652_v6  ;;  %4833 = vst [vmem:[#allocation3 + $0x188] sm:$0xff] %v6652_v6  ;;  %v620_v63 = vcombine.high %v6298_v48, %v6298_v48  ;;  %v1661_v1 = vrot.slane %v1647_v55, %v6900_v12  ;;  %v1687_v3 = vrot.slane %v1665_v56, %v6900_v12  ;;  %v6304_v40 = vld.sshfl [vmem:[%s6905_s29 + $0x30] sm:$0x33 pattern:$0x75316420] }
  0x20   : > { %4834 = vst [vmem:[#allocation3 + $0x190] sm:$0xff] %v6652_v6  ;;  %4835 = vst [vmem:[#allocation3 + $0x198] sm:$0xff] %v6652_v6  ;;  %v627_v4 = vrot.slane %v6298_v48, %v6900_v12  ;;  %v644_v7 = vcombine.high %v6299_v52, %v6299_v52  ;;  %v1695_v8 = vcombine.low %v1673_v57, %v1680_v61  ;;  %v2936_v49 = vld [vmem:[%s7930_s2 + $0x80] sm:$0xff]  ;;  %v2937_v54 = vld [vmem:[%s7930_s2 + $0x88] sm:$0xff] }
  0x21   : > { %4836 = vst [vmem:[#allocation3 + $0x1a0] sm:$0xff] %v6652_v6  ;;  %4837 = vst [vmem:[#allocation3 + $0x1a8] sm:$0xff] %v6652_v6  ;;  %v634_v9 = vrot.slane %v620_v63, %v6900_v12  ;;  %v651_v10 = vrot.slane %v6299_v52, %v6900_v12  ;;  %v1712_v11 = vcombine.low %v598_v53, %v612_v58  ;;  %3033 = vperm.xlu0 %6605, %v2934_v32   ;;  %v6305_v59 = vld.sshfl [vmem:[%s6905_s29 + $0x34] sm:$0x33 pattern:$0x75316420] }
  0x22   : > { %4838 = vst [vmem:[#allocation3 + $0x1b0] sm:$0xff] %v6652_v6  ;;  %4839 = vst [vmem:[#allocation3 + $0x1b8] sm:$0xff] %v6652_v6  ;;  %v1662_v14 = vcombine.low %v1654_v60, %v1661_v1  ;;  %v1696_v15 = vcombine.low %v1687_v3, %v1694_v62  ;;  %v658_v16 = vrot.slane %v644_v7, %v6900_v12  ;;  %3038 = vperm.xlu1 %6606, %v2935_v46   ;;  %v2938_v7 = vld [vmem:[%s7930_s2 + $0x90] sm:$0xff]  ;;  %v2920_v28 = vld [vmem:[%s7930_s2] sm:$0xff] }
  0x23   : > { %4840 = vst [vmem:[#allocation3 + $0x1c0] sm:$0xff] %v6652_v6  ;;  %4841 = vst [vmem:[#allocation3 + $0x1c8] sm:$0xff] %v6652_v6  ;;  %v674_v18 = vrot.slane %v6300_v0, %v6900_v12  ;;  %v1703_v19 = vrot.slane %v1695_v8, %v6900_v12  ;;  %v1713_v20 = vcombine.low %v627_v4, %v634_v9  ;;  %v6307_v0 = vld.sshfl [vmem:[%s6905_s29 + $0x3c] sm:$0x33 pattern:$0x75316420] }
  0x24   : > { %4842 = vst [vmem:[#allocation3 + $0x1d0] sm:$0xff] %v6652_v6  ;;  %4843 = vst [vmem:[#allocation3 + $0x1d8] sm:$0xff] %v6652_v6  ;;  %v6349_v21 = vcombine.high %v627_v4, %v634_v9  ;;  %v1722_v22 = vrot.slane %v1712_v11, %v6900_v12  ;;  %6464 = vmatmul.mubr.msk.bf16.vlgmr.msra.gmra.mrb[0].mxu0 %vm2615_vm1, %v1662_v14  ;;  %v1710_v24 = vrot.slane %v1696_v15, %v6900_v12  ;;  %v2921_v32 = vld [vmem:[%s7930_s2 + $0x8] sm:$0xff] }
  0x25   : > { %4844 = vst [vmem:[#allocation3 + $0x1e0] sm:$0xff] %v6652_v6  ;;  %4845 = vst [vmem:[#allocation3 + $0x1e8] sm:$0xff] %v6652_v6  ;;  %v1715_v25 = vcombine.low %v651_v10, %v658_v16  ;;  %v682_v26 = vcombine.high %v6301_v13, %v6301_v13  ;;  %v689_v27 = vrot.slane %v6301_v13, %v6900_v12  ;;  %6467 = vmatprep.mubr.msk.bf16.mxu0 %vm6650_vm0, %v6649_v2  ;;  %v6309_v46 = vld.sshfl [vmem:[%s6905_s29 + $0x44] sm:$0x1 pattern:$0x75316420] }
  0x26   : > { %4846 = vst [vmem:[#allocation3 + $0x1f0] sm:$0xff] %v6652_v6  ;;  %4847 = vst [vmem:[#allocation3 + $0x1f8] sm:$0xff] %v6652_v6  ;;  %v1729_v29 = vrot.slane %v1713_v20, %v6900_v12  ;;  %v1736_v30 = vrot.slane %v6349_v21, %v6900_v12  ;;  %v713_v31 = vrot.slane %v6302_v17, %v6900_v12  ;;  %3043 = vperm.xlu0 %6605, %v2936_v49  }
  0x27   : > { %4848 = vst [vmem:[#allocation3 + $0x200] sm:$0xff] %v6652_v6  ;;  %4849 = vst [vmem:[#allocation3 + $0x208] sm:$0xff] %v6652_v6  ;;  %v1743_v33 = vrot.slane %v1715_v25, %v6900_v12  ;;  %v696_v34 = vrot.slane %v682_v26, %v6900_v12  ;;  %v697_v35 = vcombine.high %v689_v27, %v689_v27  ;;  %3048 = vperm.xlu1 %6606, %v2937_v54  }
  0x28   : > { %4850 = vst [vmem:[#allocation3 + $0x210] sm:$0xff] %v6652_v6  ;;  %4851 = vst [vmem:[#allocation3 + $0x218] sm:$0xff] %v6652_v6  ;;  %v6350_v36 = vcombine.high %v651_v10, %v658_v16  ;;  %v1744_v38 = vcombine.low %v1722_v22, %v1729_v29  ;;  %v1762_v39 = vcombine.low %v674_v18, %v689_v27  ;;  %v6306_v10 = vld.sshfl [vmem:[%s6905_s29 + $0x38] sm:$0x1 pattern:$0x75316420] }
  0x29   : > { %4852 = vst [vmem:[#allocation3 + $0x220] sm:$0xff] %v6652_v6  ;;  %4853 = vst [vmem:[#allocation3 + $0x228] sm:$0xff] %v6652_v6  ;;  %v706_v41 = vcombine.high %v6302_v17, %v6302_v17  ;;  %v1711_v42 = vcombine.low %v1703_v19, %v1710_v24  ;;  %v1745_v43 = vcombine.low %v1736_v30, %v1743_v33  ;;  %v2939_v17 = vld [vmem:[%s7930_s2 + $0x98] sm:$0xff] }
  0x2a   : > { %4854 = vst [vmem:[#allocation3 + $0x230] sm:$0xff] %v6652_v6  ;;  %4855 = vst [vmem:[#allocation3 + $0x238] sm:$0xff] %v6652_v6  ;;  %v698_v44 = vcombine.high %v696_v34, %v696_v34  ;;  %v1763_v45 = vcombine.low %v696_v34, %v697_v35  ;;  %v721_v48 = vcombine.high %v713_v31, %v713_v31  ;;  %v6308_v19 = vld.sshfl [vmem:[%s6905_s29 + $0x40] sm:$0x33 pattern:$0x75316420]  ;;  %3053 = vperm.xlu0 %6605, %v2938_v7  }
  0x2b   : > { %4856 = vst [vmem:[#allocation3 + $0x240] sm:$0xff] %v6652_v6  ;;  %4857 = vst [vmem:[#allocation3 + $0x248] sm:$0xff] %v6652_v6  ;;  %v720_v47 = vrot.slane %v706_v41, %v6900_v12  ;;  %v1771_v51 = vrot.slane %v6350_v36, %v6900_v12  ;;  %v736_v52 = vrot.slane %v6303_v37, %v6900_v12  ;;  %3058 = vperm.xlu1 %6606, %v2939_v17   ;;  %v6310_v33 = vld.sshfl [vmem:[%s6905_s29 + $0x48] sm:$0x33 pattern:$0x75316420] }
  0x2c   : > { %4858 = vst [vmem:[#allocation3 + $0x250] sm:$0xff] %v6652_v6  ;;  %4859 = vst [vmem:[#allocation3 + $0x258] sm:$0xff] %v6652_v6  ;;  %v1764_v50 = vcombine.low %v698_v44, %v713_v31  ;;  %v744_v53 = vcombine.high %v6304_v40, %v6304_v40  ;;  %v1752_v55 = vrot.slane %v1744_v38, %v6900_v12  ;;  %6468 = vmatmul.mubr.msk.bf16.gmra.mrb[4].mxu0 %vm2615_vm1, %v1711_v42  ;;  %v2940_v41 = vld [vmem:[%s7930_s2 + $0xa0] sm:$0xff] }
  0x2d   : > { %4860 = vst [vmem:[#allocation3 + $0x260] sm:$0xff] %v6652_v6  ;;  %4861 = vst [vmem:[#allocation3 + $0x268] sm:$0xff] %v6652_v6  ;;  %v1778_v56 = vrot.slane %v1762_v39, %v6900_v12  ;;  %v722_v57 = vcombine.high %v720_v47, %v720_v47  ;;  %v751_v58 = vrot.slane %v6304_v40, %v6900_v12  ;;  %6471 = vmatprep.mubr.msk.bf16.mxu0 %vm6650_vm0, %v6649_v2 }
  0x2e   : > { %4862 = vst [vmem:[#allocation3 + $0x270] sm:$0xff] %v6652_v6  ;;  %4863 = vst [vmem:[#allocation3 + $0x278] sm:$0xff] %v6652_v6  ;;  %v1759_v60 = vrot.slane %v1745_v43, %v6900_v12  ;;  %v1785_v61 = vrot.slane %v1763_v45, %v6900_v12  ;;  %v1792_v62 = vrot.slane %v1764_v50, %v6900_v12  ;;  %2963 = vperm.xlu0 %6605, %v2920_v28   ;;  %v2941_v45 = vld [vmem:[%s7930_s2 + $0xa8] sm:$0xff]  ;;  %v2947_v28 = vld [vmem:[%s7930_s2 + $0xd8] sm:$0xff] }
  0x2f   : > { %4864 = vst [vmem:[#allocation3 + $0x280] sm:$0xff] %v6652_v6  ;;  %4865 = vst [vmem:[#allocation3 + $0x288] sm:$0xff] %v6652_v6  ;;  %v758_v63 = vrot.slane %v744_v53, %v6900_v12  ;;  %v1810_v1 = vcombine.low %v720_v47, %v721_v48  ;;  %v1811_v3 = vcombine.low %v722_v57, %v736_v52  ;;  %2968 = vperm.xlu1 %6606, %v2921_v32  }
  0x30   : > { %4866 = vst [vmem:[#allocation3 + $0x290] sm:$0xff] %v6652_v6  ;;  %4867 = vst [vmem:[#allocation3 + $0x298] sm:$0xff] %v6652_v6  ;;  %v768_v4 = vcombine.high %v6305_v59, %v6305_v59  ;;  %v806_v11 = vcombine.high %v6307_v0, %v6307_v0  ;;  %v813_v13 = vrot.slane %v6307_v0, %v6900_v12 }
  0x31   : > { %4868 = vst [vmem:[#allocation3 + $0x2a0] sm:$0xff] %v6652_v6  ;;  %4869 = vst [vmem:[#allocation3 + $0x2a8] sm:$0xff] %v6652_v6  ;;  %v1812_v8 = vcombine.low %v751_v58, %v758_v63  ;;  %v6351_v9 = vcombine.high %v751_v58, %v758_v63  ;;  %v1760_v14 = vcombine.low %v1752_v55, %v1759_v60  ;;  %v2942_v55 = vld [vmem:[%s7930_s2 + $0xb0] sm:$0xff] }
  0x32   : > { %4870 = vst [vmem:[#allocation3 + $0x2b0] sm:$0xff] %v6652_v6  ;;  %4871 = vst [vmem:[#allocation3 + $0x2b8] sm:$0xff] %v6652_v6  ;;  %v1793_v15 = vcombine.low %v1771_v51, %v1778_v56  ;;  %v1794_v16 = vcombine.low %v1785_v61, %v1792_v62  ;;  %v1820_v18 = vrot.slane %v1810_v1, %v6900_v12  ;;  %3063 = vperm.xlu0 %6605, %v2940_v41   ;;  %v6311_v60 = vld.sshfl [vmem:[%s6905_s29 + $0x4c] sm:$0x33 pattern:$0x75316420] }
  0x33   : > { %4872 = vst [vmem:[#allocation3 + $0x2c0] sm:$0xff] %v6652_v6  ;;  %4873 = vst [vmem:[#allocation3 + $0x2c8] sm:$0xff] %v6652_v6  ;;  %v1827_v20 = vrot.slane %v1811_v3, %v6900_v12  ;;  %v775_v21 = vrot.slane %v6305_v59, %v6900_v12  ;;  %v782_v22 = vrot.slane %v768_v4, %v6900_v12  ;;  %3068 = vperm.xlu1 %6606, %v2941_v45   ;;  %v2943_v61 = vld [vmem:[%s7930_s2 + $0xb8] sm:$0xff]  ;;  %v2944_v4 = vld [vmem:[%s7930_s2 + $0xc0] sm:$0xff] }
  0x34   : > { %4874 = vst [vmem:[#allocation3 + $0x2d0] sm:$0xff] %v6652_v6  ;;  %4875 = vst [vmem:[#allocation3 + $0x2d8] sm:$0xff] %v6652_v6  ;;  %v798_v23 = vrot.slane %v6306_v10, %v6900_v12  ;;  %v1834_v24 = vrot.slane %v1812_v8, %v6900_v12  ;;  %v1841_v25 = vrot.slane %v6351_v9, %v6900_v12  ;;  %6472 = vmatmul.mubr.msk.bf16.gmra.mrb[8].mxu0 %vm2615_vm1, %v1760_v14  ;;  %v6312_v1 = vld.sshfl [vmem:[%s6905_s29 + $0x50] sm:$0x1 pattern:$0x75316420] }
  0x35   : > { %4876 = vst [vmem:[#allocation3 + $0x2e0] sm:$0xff] %v6652_v6  ;;  %4877 = vst [vmem:[#allocation3 + $0x2e8] sm:$0xff] %v6652_v6  ;;  %v820_v26 = vrot.slane %v806_v11, %v6900_v12  ;;  %v821_v27 = vcombine.high %v813_v13, %v813_v13  ;;  %v1801_v29 = vrot.slane %v1793_v15, %v6900_v12  ;;  %6475 = vmatprep.mubr.msk.bf16.mxu0 %vm6650_vm0, %v6649_v2  ;;  %v6313_v11 = vld.sshfl [vmem:[%s6905_s29 + $0x54] sm:$0x33 pattern:$0x75316420] }
  0x36   : > { %4878 = vst [vmem:[#allocation3 + $0x2f0] sm:$0xff] %v6652_v6  ;;  %4879 = vst [vmem:[#allocation3 + $0x2f8] sm:$0xff] %v6652_v6  ;;  %v1808_v30 = vrot.slane %v1794_v16, %v6900_v12  ;;  %v830_v31 = vcombine.high %v6308_v19, %v6308_v19  ;;  %v1859_v34 = vcombine.low %v775_v21, %v782_v22  ;;  %3073 = vperm.xlu0 %6605, %v2942_v55   ;;  %v6314_v14 = vld.sshfl [vmem:[%s6905_s29 + $0x58] sm:$0x33 pattern:$0x75316420] }
  0x37   : > { %4880 = vst [vmem:[#allocation3 + $0x300] sm:$0xff] %v6652_v6  ;;  %4881 = vst [vmem:[#allocation3 + $0x308] sm:$0xff] %v6652_v6  ;;  %v6352_v35 = vcombine.high %v775_v21, %v782_v22  ;;  %v837_v36 = vrot.slane %v6308_v19, %v6900_v12  ;;  %v1842_v37 = vcombine.low %v1820_v18, %v1827_v20  ;;  %3078 = vperm.xlu1 %6606, %v2943_v61   ;;  %v2946_v22 = vld [vmem:[%s7930_s2 + $0xd0] sm:$0xff] }
  0x38   : > { %4882 = vst [vmem:[#allocation3 + $0x310] sm:$0xff] %v6652_v6  ;;  %4883 = vst [vmem:[#allocation3 + $0x318] sm:$0xff] %v6652_v6  ;;  %v1843_v38 = vcombine.low %v1834_v24, %v1841_v25  ;;  %v1861_v39 = vcombine.low %v798_v23, %v813_v13  ;;  %v1862_v40 = vcombine.low %v820_v26, %v821_v27  ;;  %v2945_v13 = vld [vmem:[%s7930_s2 + $0xc8] sm:$0xff] }
  0x39   : > { %4884 = vst [vmem:[#allocation3 + $0x320] sm:$0xff] %v6652_v6  ;;  %4885 = vst [vmem:[#allocation3 + $0x328] sm:$0xff] %v6652_v6  ;;  %v1809_v42 = vcombine.low %v1801_v29, %v1808_v30  ;;  %v844_v43 = vrot.slane %v830_v31, %v6900_v12  ;;  %v868_v44 = vcombine.high %v6310_v33, %v6310_v33  ;;  %v6315_v41 = vld.sshfl [vmem:[%s6905_s29 + $0x5c] sm:$0x1 pattern:$0x75316420] }
  0x3a   : > { %4886 = vst [vmem:[#allocation3 + $0x330] sm:$0xff] %v6652_v6  ;;  %4887 = vst [vmem:[#allocation3 + $0x338] sm:$0xff] %v6652_v6  ;;  %v1869_v47 = vrot.slane %v1859_v34, %v6900_v12  ;;  %v1876_v48 = vrot.slane %v6352_v35, %v6900_v12  ;;  %v822_v49 = vcombine.high %v820_v26, %v820_v26  ;;  %3083 = vperm.xlu0 %6605, %v2944_v4   ;;  %v2948_v35 = vld [vmem:[%s7930_s2 + $0xe0] sm:$0xff]  ;;  %v2953_v4 = vld [vmem:[%s7930_s2 + $0x108] sm:$0xff] }
  0x3b   : > { %4888 = vst [vmem:[#allocation3 + $0x340] sm:$0xff] %v6652_v6  ;;  %4889 = vst [vmem:[#allocation3 + $0x348] sm:$0xff] %v6652_v6  ;;  %v845_v50 = vcombine.high %v837_v36, %v837_v36  ;;  %v1850_v51 = vrot.slane %v1842_v37, %v6900_v12  ;;  %v1857_v52 = vrot.slane %v1843_v38, %v6900_v12  ;;  %3088 = vperm.xlu1 %6606, %v2945_v13   ;;  %v6316_v45 = vld.sshfl [vmem:[%s6905_s29 + $0x60] sm:$0x33 pattern:$0x75316420] }
  0x3c   : > { %4890 = vst [vmem:[#allocation3 + $0x350] sm:$0xff] %v6652_v6  ;;  %4891 = vst [vmem:[#allocation3 + $0x358] sm:$0xff] %v6652_v6  ;;  %v1883_v53 = vrot.slane %v1861_v39, %v6900_v12  ;;  %v1890_v54 = vrot.slane %v1862_v40, %v6900_v12  ;;  %6476 = vmatmul.mubr.msk.bf16.gmra.mrb[12].mxu0 %vm2615_vm1, %v1809_v42  ;;  %v846_v56 = vcombine.high %v844_v43, %v844_v43  ;;  %v2949_v40 = vld [vmem:[%s7930_s2 + $0xe8] sm:$0xff] }
  0x3d   : > { %4892 = vst [vmem:[#allocation3 + $0x360] sm:$0xff] %v6652_v6  ;;  %4893 = vst [vmem:[#allocation3 + $0x368] sm:$0xff] %v6652_v6  ;;  %v860_v57 = vrot.slane %v6309_v46, %v6900_v12  ;;  %v875_v58 = vrot.slane %v6310_v33, %v6900_v12  ;;  %v882_v59 = vrot.slane %v868_v44, %v6900_v12  ;;  %6479 = vmatprep.mubr.msk.bf16.mxu0 %vm6650_vm0, %v6649_v2 }
  0x3e   : > { %4894 = vst [vmem:[#allocation3 + $0x370] sm:$0xff] %v6652_v6  ;;  %4895 = vst [vmem:[#allocation3 + $0x378] sm:$0xff] %v6652_v6  ;;  %v1891_v62 = vcombine.low %v1869_v47, %v1876_v48  ;;  %v1908_v63 = vcombine.low %v822_v49, %v837_v36  ;;  %v1909_v0 = vcombine.low %v844_v43, %v845_v50  ;;  %3093 = vperm.xlu0 %6605, %v2946_v22   ;;  %v2950_v50 = vld [vmem:[%s7930_s2 + $0xf0] sm:$0xff]  ;;  %v2955_v22 = vld [vmem:[%s7930_s2 + $0x118] sm:$0xff] }
  0x3f   : > { %4896 = vst [vmem:[#allocation3 + $0x380] sm:$0xff] %v6652_v6  ;;  %4897 = vst [vmem:[#allocation3 + $0x388] sm:$0xff] %v6652_v6  ;;  %v892_v3 = vcombine.high %v6311_v60, %v6311_v60  ;;  %v1858_v7 = vcombine.low %v1850_v51, %v1857_v52  ;;  %v1892_v8 = vcombine.low %v1883_v53, %v1890_v54  ;;  %3098 = vperm.xlu1 %6606, %v2947_v28   ;;  %v6317_v51 = vld.sshfl [vmem:[%s6905_s29 + $0x64] sm:$0x33 pattern:$0x75316420] }
  0x40   : > { %4898 = vst [vmem:[#allocation3 + $0x390] sm:$0xff] %v6652_v6  ;;  %4899 = vst [vmem:[#allocation3 + $0x398] sm:$0xff] %v6652_v6  ;;  %v1910_v9 = vcombine.low %v846_v56, %v860_v57  ;;  %v1911_v10 = vcombine.low %v875_v58, %v882_v59  ;;  %v1899_v15 = vrot.slane %v1891_v62, %v6900_v12  ;;  %v2951_v56 = vld [vmem:[%s7930_s2 + $0xf8] sm:$0xff]  ;;  %v2952_v62 = vld [vmem:[%s7930_s2 + $0x100] sm:$0xff] }
  0x41   : > { %4900 = vst [vmem:[#allocation3 + $0x3a0] sm:$0xff] %v6652_v6  ;;  %4901 = vst [vmem:[#allocation3 + $0x3a8] sm:$0xff] %v6652_v6  ;;  %v1918_v16 = vrot.slane %v1908_v63, %v6900_v12  ;;  %v1925_v17 = vrot.slane %v1909_v0, %v6900_v12  ;;  %v899_v18 = vrot.slane %v6311_v60, %v6900_v12  ;;  %v6318_v28 = vld.sshfl [vmem:[%s6905_s29 + $0x68] sm:$0x1 pattern:$0x75316420] }
  0x42   : > { %4902 = vst [vmem:[#allocation3 + $0x3b0] sm:$0xff] %v6652_v6  ;;  %4903 = vst [vmem:[#allocation3 + $0x3b8] sm:$0xff] %v6652_v6  ;;  %v906_v19 = vrot.slane %v892_v3, %v6900_v12  ;;  %v922_v20 = vrot.slane %v6312_v1, %v6900_v12  ;;  %v937_v21 = vrot.slane %v6313_v11, %v6900_v12  ;;  %3103 = vperm.xlu0 %6605, %v2948_v35  }
  0x43   : > { %4904 = vst [vmem:[#allocation3 + $0x3c0] sm:$0xff] %v6652_v6  ;;  %4905 = vst [vmem:[#allocation3 + $0x3c8] sm:$0xff] %v6652_v6  ;;  %v930_v23 = vcombine.high %v6313_v11, %v6313_v11  ;;  %v1906_v24 = vrot.slane %v1892_v8, %v6900_v12  ;;  %v1932_v25 = vrot.slane %v1910_v9, %v6900_v12  ;;  %3108 = vperm.xlu1 %6606, %v2949_v40  }
  0x44   : > { %4906 = vst [vmem:[#allocation3 + $0x3d0] sm:$0xff] %v6652_v6  ;;  %4907 = vst [vmem:[#allocation3 + $0x3d8] sm:$0xff] %v6652_v6  ;;  %6480 = vmatmul.mubr.msk.bf16.gmra.mrb[16].mxu0 %vm2615_vm1, %v1858_v7  ;;  %v1939_v26 = vrot.slane %v1911_v10, %v6900_v12  ;;  %v954_v27 = vcombine.high %v6314_v14, %v6314_v14  ;;  %v1940_v29 = vcombine.low %v1918_v16, %v1925_v17  ;;  %v6319_v7 = vld.sshfl [vmem:[%s6905_s29 + $0x6c] sm:$0x33 pattern:$0x75316420] }
  0x45   : > { %4908 = vst [vmem:[#allocation3 + $0x3e0] sm:$0xff] %v6652_v6  ;;  %4909 = vst [vmem:[#allocation3 + $0x3e8] sm:$0xff] %v6652_v6  ;;  %6483 = vmatprep.mubr.msk.bf16.mxu0 %vm6650_vm0, %v6649_v2  ;;  %v6353_v30 = vcombine.high %v875_v58, %v882_v59  ;;  %v1958_v31 = vcombine.low %v899_v18, %v906_v19  ;;  %v6354_v32 = vcombine.high %v899_v18, %v906_v19 }
  0x46   : > { %4910 = vst [vmem:[#allocation3 + $0x3f0] sm:$0xff] %v6652_v6  ;;  %4911 = vst [vmem:[#allocation3 + $0x3f8] sm:$0xff] %v6652_v6  ;;  %v1960_v33 = vcombine.low %v922_v20, %v937_v21  ;;  %v944_v34 = vrot.slane %v930_v23, %v6900_v12  ;;  %v1907_v36 = vcombine.low %v1899_v15, %v1906_v24  ;;  %3113 = vperm.xlu0 %6605, %v2950_v50   ;;  %v2954_v15 = vld [vmem:[%s7930_s2 + $0x110] sm:$0xff]  ;;  %v2959_v50 = vld [vmem:[%s7930_s2 + $0x138] sm:$0xff] }
  0x47   : > { %4912 = vst [vmem:[#allocation3 + $0x400] sm:$0xff] %v6652_v6  ;;  %4913 = vst [vmem:[#allocation3 + $0x408] sm:$0xff] %v6652_v6  ;;  %v1941_v37 = vcombine.low %v1932_v25, %v1939_v26  ;;  %v961_v38 = vrot.slane %v6314_v14, %v6900_v12  ;;  %v968_v39 = vrot.slane %v954_v27, %v6900_v12  ;;  %3118 = vperm.xlu1 %6606, %v2951_v56  }
  0x48   : > { %4914 = vst [vmem:[#allocation3 + $0x410] sm:$0xff] %v6652_v6  ;;  %4915 = vst [vmem:[#allocation3 + $0x418] sm:$0xff] %v6652_v6  ;;  %v1948_v42 = vrot.slane %v1940_v29, %v6900_v12  ;;  %v1967_v43 = vrot.slane %v6353_v30, %v6900_v12  ;;  %v945_v44 = vcombine.high %v937_v21, %v937_v21  ;;  %v6320_v21 = vld.sshfl [vmem:[%s6905_s29 + $0x70] sm:$0x33 pattern:$0x75316420] }
  0x49   : > { %4916 = vst [vmem:[#allocation3 + $0x420] sm:$0xff] %v6652_v6  ;;  %4917 = vst [vmem:[#allocation3 + $0x428] sm:$0xff] %v6652_v6  ;;  %v1974_v46 = vrot.slane %v1958_v31, %v6900_v12  ;;  %v1981_v47 = vrot.slane %v6354_v32, %v6900_v12  ;;  %v1988_v48 = vrot.slane %v1960_v33, %v6900_v12  ;;  %v2956_v32 = vld [vmem:[%s7930_s2 + $0x120] sm:$0xff] }
  0x4a   : > { %4918 = vst [vmem:[#allocation3 + $0x430] sm:$0xff] %v6652_v6  ;;  %4919 = vst [vmem:[#allocation3 + $0x438] sm:$0xff] %v6652_v6  ;;  %v946_v49 = vcombine.high %v944_v34, %v944_v34  ;;  %v1955_v52 = vrot.slane %v1941_v37, %v6900_v12  ;;  %v969_v53 = vcombine.high %v961_v38, %v961_v38  ;;  %3123 = vperm.xlu0 %6605, %v2952_v62  }
  0x4b   : > { %4920 = vst [vmem:[#allocation3 + $0x440] sm:$0xff] %v6652_v6  ;;  %4921 = vst [vmem:[#allocation3 + $0x448] sm:$0xff] %v6652_v6  ;;  %v970_v54 = vcombine.high %v968_v39, %v968_v39  ;;  %v984_v55 = vrot.slane %v6315_v41, %v6900_v12  ;;  %v992_v57 = vcombine.high %v6316_v45, %v6316_v45  ;;  %3128 = vperm.xlu1 %6606, %v2953_v4  }
  0x4c   : > { %4922 = vst [vmem:[#allocation3 + $0x450] sm:$0xff] %v6652_v6  ;;  %4923 = vst [vmem:[#allocation3 + $0x458] sm:$0xff] %v6652_v6  ;;  %6484 = vmatmul.mubr.msk.bf16.gmra.mrb[20].mxu0 %vm2615_vm1, %v1907_v36  ;;  %v1016_v58 = vcombine.high %v6317_v51, %v6317_v51  ;;  %v1989_v59 = vcombine.low %v1967_v43, %v1974_v46  ;;  %v1990_v60 = vcombine.low %v1981_v47, %v1988_v48  ;;  %v2957_v36 = vld [vmem:[%s7930_s2 + $0x128] sm:$0xff]  ;;  %v2958_v46 = vld [vmem:[%s7930_s2 + $0x130] sm:$0xff] }
  0x4d   : > { %4924 = vst [vmem:[#allocation3 + $0x460] sm:$0xff] %v6652_v6  ;;  %4925 = vst [vmem:[#allocation3 + $0x468] sm:$0xff] %v6652_v6  ;;  %6487 = vmatprep.mubr.msk.bf16.mxu0 %vm6650_vm0, %v6649_v2  ;;  %v2006_v61 = vcombine.low %v944_v34, %v945_v44  ;;  %v1956_v63 = vcombine.low %v1948_v42, %v1955_v52  ;;  %v2007_v0 = vcombine.low %v946_v49, %v961_v38  ;;  %v6322_v49 = vld.sshfl [vmem:[%s6905_s29 + $0x78] sm:$0x33 pattern:$0x75316420] }
  0x4e   : > { %4926 = vst [vmem:[#allocation3 + $0x470] sm:$0xff] %v6652_v6  ;;  %4927 = vst [vmem:[#allocation3 + $0x478] sm:$0xff] %v6652_v6  ;;  %v2008_v1 = vcombine.low %v968_v39, %v969_v53  ;;  %v2009_v3 = vcombine.low %v970_v54, %v984_v55  ;;  %v999_v8 = vrot.slane %v6316_v45, %v6900_v12  ;;  %3133 = vperm.xlu0 %6605, %v2954_v15   ;;  %v6323_v52 = vld.sshfl [vmem:[%s6905_s29 + $0x7c] sm:$0x33 pattern:$0x75316420] }
  0x4f   : > { %v1006_v9 = vrot.slane %v992_v57, %v6900_v12  ;;  %v1023_v10 = vrot.slane %v6317_v51, %v6900_v12  ;;  %v1030_v11 = vrot.slane %v1016_v58, %v6900_v12  ;;  %v1997_v13 = vrot.slane %v1989_v59, %v6900_v12  ;;  %3138 = vperm.xlu1 %6606, %v2955_v22   ;;  %v2960_v58 = vld [vmem:[%s7930_s2 + $0x140] sm:$0xf] }
  0x50   : > { %v2016_v14 = vrot.slane %v2006_v61, %v6900_v12  ;;  %v1054_v16 = vcombine.high %v6319_v7, %v6319_v7  ;;  %v2004_v17 = vrot.slane %v1990_v60, %v6900_v12  ;;  %v2023_v18 = vrot.slane %v2007_v0, %v6900_v12  ;;  %v6321_v60 = vld.sshfl [vmem:[%s6905_s29 + $0x74] sm:$0x1 pattern:$0x75316420] }
  0x51   : > { %v2030_v19 = vrot.slane %v2008_v1, %v6900_v12  ;;  %v2037_v20 = vrot.slane %v2009_v3, %v6900_v12  ;;  %v2055_v23 = vcombine.low %v999_v8, %v1006_v9  ;;  %v6355_v24 = vcombine.high %v999_v8, %v1006_v9  ;;  %v6325_v1 = vld.sshfl [vmem:[%s6905_s29 + $0x84] sm:$0x33 pattern:$0x75316420] }
  0x52   : > { %v2057_v25 = vcombine.low %v1023_v10, %v1030_v11  ;;  %v6356_v26 = vcombine.high %v1023_v10, %v1030_v11  ;;  %v1061_v27 = vrot.slane %v6319_v7, %v6900_v12  ;;  %v1068_v29 = vrot.slane %v1054_v16, %v6900_v12  ;;  %3143 = vperm.xlu0 %6605, %v2956_v32   ;;  %v6181_v32 = vld [vmem:[%s7937_s9] sm:$0xff] }
  0x53   : > { %v1078_v30 = vcombine.high %v6320_v21, %v6320_v21  ;;  %v1085_v31 = vrot.slane %v6320_v21, %v6900_v12  ;;  %v2005_v33 = vcombine.low %v1997_v13, %v2004_v17  ;;  %v2038_v34 = vcombine.low %v2016_v14, %v2023_v18  ;;  %3148 = vperm.xlu1 %6606, %v2957_v36   ;;  %v5671_v14 = vld [vmem:[%s7936_s8 + $0x8] sm:$0xff] }
  0x54   : > { %6488 = vmatmul.mubr.msk.bf16.gmra.mrb[24].mxu0 %vm2615_vm1, %v1956_v63  ;;  %v2039_v35 = vcombine.low %v2030_v19, %v2037_v20  ;;  %v2065_v37 = vrot.slane %v2055_v23, %v6900_v12  ;;  %v2072_v38 = vrot.slane %v6355_v24, %v6900_v12  ;;  %v2079_v39 = vrot.slane %v2057_v25, %v6900_v12  ;;  %v5670_v63 = vld [vmem:[%s7936_s8] sm:$0xff]  ;;  %v5672_v19 = vld [vmem:[%s7936_s8 + $0x10] sm:$0xff] }
  0x55   : > { %6491 = vmatprep.mubr.msk.bf16.mxu0 %vm6650_vm0, %v6649_v2  ;;  %v2086_v40 = vrot.slane %v6356_v26, %v6900_v12  ;;  %v1046_v41 = vrot.slane %v6318_v28, %v6900_v12  ;;  %v1069_v42 = vcombine.high %v1061_v27, %v1061_v27  ;;  %v1070_v43 = vcombine.high %v1068_v29, %v1068_v29  ;;  %v6324_v24 = vld.sshfl [vmem:[%s6905_s29 + $0x80] sm:$0x1 pattern:$0x75316420]  ;;  %v5673_v26 = vld [vmem:[%s7936_s8 + $0x18] sm:$0xff] }
  0x56   : > { %v1092_v44 = vrot.slane %v1078_v30, %v6900_v12  ;;  %v1093_v45 = vcombine.high %v1085_v31, %v1085_v31  ;;  %v2046_v47 = vrot.slane %v2038_v34, %v6900_v12  ;;  %v2053_v48 = vrot.slane %v2039_v35, %v6900_v12  ;;  %3153 = vperm.xlu0 %6605, %v2958_v46   ;;  %v6326_v30 = vld.sshfl [vmem:[%s6905_s29 + $0x88] sm:$0x33 pattern:$0x75316420] }
  0x57   : > { %v2087_v51 = vcombine.low %v2065_v37, %v2072_v38  ;;  %v2088_v53 = vcombine.low %v2079_v39, %v2086_v40  ;;  %v2104_v54 = vcombine.low %v1046_v41, %v1061_v27  ;;  %v2105_v55 = vcombine.low %v1068_v29, %v1069_v42  ;;  %3158 = vperm.xlu1 %6606, %v2959_v50   ;;  %v6182_v40 = vld [vmem:[%s7937_s9 + $0x8] sm:$0xff] }
  0x58   : > { %v2106_v56 = vcombine.low %v1070_v43, %v1085_v31  ;;  %v2107_v57 = vcombine.low %v1092_v44, %v1093_v45  ;;  %v2054_v59 = vcombine.low %v2046_v47, %v2053_v48  ;;  %v1116_v61 = vcombine.high %v6322_v49, %v6322_v49  ;;  %v6328_v45 = vld.sshfl [vmem:[%s6905_s29 + $0x90] sm:$0x33 pattern:$0x75316420] }
  0x59   : > { %v1140_v62 = vcombine.high %v6323_v52, %v6323_v52  ;;  %v2095_v0 = vrot.slane %v2087_v51, %v6900_v12  ;;  %v2102_v3 = vrot.slane %v2088_v53, %v6900_v12  ;;  %v2114_v4 = vrot.slane %v2104_v54, %v6900_v12  ;;  %v6327_v50 = vld.sshfl [vmem:[%s6905_s29 + $0x8c] sm:$0x1 pattern:$0x75316420] }
  0x5a   : > { %v2121_v7 = vrot.slane %v2105_v55, %v6900_v12  ;;  %v1094_v8 = vcombine.high %v1092_v44, %v1092_v44  ;;  %3163 = vperm.xlu0 %6605, %v2960_v58   ;;  %v2128_v9 = vrot.slane %v2106_v56, %v6900_v12  ;;  %v2135_v10 = vrot.slane %v2107_v57, %v6900_v12 }
  0x5b   : > { %v1108_v11 = vrot.slane %v6321_v60, %v6900_v12  ;;  %v1123_v13 = vrot.slane %v6322_v49, %v6900_v12  ;;  %5676 = vperm.xlu1 %6606, %v5670_v63   ;;  %v1130_v15 = vrot.slane %v1116_v61, %v6900_v12  ;;  %v1147_v16 = vrot.slane %v6323_v52, %v6900_v12  ;;  %v6329_v63 = vld.sshfl [vmem:[%s6905_s29 + $0x94] sm:$0x33 pattern:$0x75316420] }
  0x5c   : > { %6492 = vmatmul.mubr.msk.bf16.gmra.mrb[28].mxu0 %vm2615_vm1, %v2005_v33  ;;  %v1154_v17 = vrot.slane %v1140_v62, %v6900_v12  ;;  %v1178_v18 = vcombine.high %v6325_v1, %v6325_v1  ;;  %v2136_v20 = vcombine.low %v2114_v4, %v2121_v7  ;;  %v2103_v21 = vcombine.low %v2095_v0, %v2102_v3  ;;  %v6331_v7 = vld.sshfl [vmem:[%s6905_s29 + $0x9c] sm:$0x33 pattern:$0x75316420] }
  0x5d   : > { %6495 = vmatprep.mubr.msk.bf16.mxu0 %vm6650_vm0, %v6649_v2  ;;  %v2137_v22 = vcombine.low %v2128_v9, %v2135_v10  ;;  %v2153_v23 = vcombine.low %v1094_v8, %v1108_v11  ;;  %v1185_v25 = vrot.slane %v6325_v1, %v6900_v12  ;;  %v2154_v27 = vcombine.low %v1123_v13, %v1130_v15 }
  0x5e   : > { %5681 = vperm.xlu0 %6605, %v5671_v14   ;;  %v6357_v28 = vcombine.high %v1123_v13, %v1130_v15  ;;  %v2156_v29 = vcombine.low %v1147_v16, %v1154_v17  ;;  %v1192_v31 = vrot.slane %v1178_v18, %v6900_v12  ;;  %v2144_v33 = vrot.slane %v2136_v20, %v6900_v12  ;;  %v6332_v20 = vld.sshfl [vmem:[%s6905_s29 + $0xa0] sm:$0x33 pattern:$0x75316420] }
  0x5f   : > { %5686 = vperm.xlu1 %6606, %v5672_v19   ;;  %v1170_v34 = vrot.slane %v6324_v24, %v6900_v12  ;;  %v1202_v35 = vcombine.high %v6326_v30, %v6326_v30  ;;  %v2151_v36 = vrot.slane %v2137_v22, %v6900_v12  ;;  %v2163_v37 = vrot.slane %v2153_v23, %v6900_v12 }
  0x60   : > { %v1193_v38 = vcombine.high %v1185_v25, %v1185_v25  ;;  %v1209_v39 = vrot.slane %v6326_v30, %v6900_v12  ;;  %v2170_v41 = vrot.slane %v2154_v27, %v6900_v12  ;;  %v2177_v42 = vrot.slane %v6357_v28, %v6900_v12 }
  0x61   : > { %v2184_v43 = vrot.slane %v2156_v29, %v6900_v12  ;;  %v1194_v44 = vcombine.high %v1192_v31, %v1192_v31  ;;  %v1216_v46 = vrot.slane %v1202_v35, %v6900_v12  ;;  %v2152_v47 = vcombine.low %v2144_v33, %v2151_v36  ;;  %v6334_v33 = vld.sshfl [vmem:[%s6905_s29 + $0xa8] sm:$0x33 pattern:$0x75316420] }
  0x62   : > { %5691 = vperm.xlu0 %6605, %v5673_v26   ;;  %v6358_v48 = vcombine.high %v1147_v16, %v1154_v17  ;;  %v2203_v49 = vcombine.low %v1170_v34, %v1185_v25  ;;  %v1240_v51 = vcombine.high %v6328_v45, %v6328_v45  ;;  %v2185_v52 = vcombine.low %v2163_v37, %v2170_v41  ;;  %v6330_v17 = vld.sshfl [vmem:[%s6905_s29 + $0x98] sm:$0x1 pattern:$0x75316420] }
  0x63   : > { %6185 = vperm.xlu1 %6606, %v6181_v32   ;;  %v2186_v53 = vcombine.low %v2177_v42, %v2184_v43  ;;  %v2204_v54 = vcombine.low %v1192_v31, %v1193_v38  ;;  %v2205_v55 = vcombine.low %v1194_v44, %v1209_v39  ;;  %v1217_v56 = vcombine.high %v1209_v39, %v1209_v39  ;;  %v6333_v42 = vld.sshfl [vmem:[%s6905_s29 + $0xa4] sm:$0x1 pattern:$0x75316420] }
  0x64   : > { %6496 = vmatmul.mubr.msk.bf16.gmra.mrb[32].mxu0 %vm2615_vm1, %v2054_v59  ;;  %v1218_v57 = vcombine.high %v1216_v46, %v1216_v46  ;;  %v1232_v58 = vrot.slane %v6327_v50, %v6900_v12  ;;  %v2212_v59 = vrot.slane %v6358_v48, %v6900_v12  ;;  %v2219_v60 = vrot.slane %v2203_v49, %v6900_v12  ;;  %v6335_v49 = vld.sshfl [vmem:[%s6905_s29 + $0xac] sm:$0x33 pattern:$0x75316420] }
  0x65   : > { %6499 = vmatprep.mubr.msk.bf16.mxu0 %vm6650_vm0, %v6649_v2  ;;  %v1247_v61 = vrot.slane %v6328_v45, %v6900_v12  ;;  %v1254_v62 = vrot.slane %v1240_v51, %v6900_v12  ;;  %v2193_v0 = vrot.slane %v2185_v52, %v6900_v12  ;;  %v2200_v1 = vrot.slane %v2186_v53, %v6900_v12 }
  0x66   : > { %6190 = vperm.xlu0 %6605, %v6182_v40   ;;  %v2226_v3 = vrot.slane %v2204_v54, %v6900_v12  ;;  %v2233_v4 = vrot.slane %v2205_v55, %v6900_v12  ;;  %v2251_v8 = vcombine.low %v1216_v46, %v1217_v56  ;;  %v2252_v9 = vcombine.low %v1218_v57, %v1232_v58  ;;  %v6336_v58 = vld.sshfl [vmem:[%s6905_s29 + $0xb0] sm:$0x1 pattern:$0x75316420] }
  0x67   : > { %v1264_v10 = vcombine.high %v6329_v63, %v6329_v63  ;;  %v2234_v11 = vcombine.low %v2212_v59, %v2219_v60  ;;  %v2253_v13 = vcombine.low %v1247_v61, %v1254_v62  ;;  %v6359_v14 = vcombine.high %v1247_v61, %v1254_v62  ;;  %v6337_v60 = vld.sshfl [vmem:[%s6905_s29 + $0xb4] sm:$0x33 pattern:$0x75316420] }
  0x68   : > { %v2201_v15 = vcombine.low %v2193_v0, %v2200_v1  ;;  %v2235_v16 = vcombine.low %v2226_v3, %v2233_v4  ;;  %v1302_v18 = vcombine.high %v6331_v7, %v6331_v7  ;;  %v1309_v19 = vrot.slane %v6331_v7, %v6900_v12 }
  0x69   : > { %v2268_v22 = vrot.slane %v2252_v9, %v6900_v12  ;;  %v1271_v23 = vrot.slane %v6329_v63, %v6900_v12  ;;  %v1278_v24 = vrot.slane %v1264_v10, %v6900_v12  ;;  %v2242_v25 = vrot.slane %v2234_v11, %v6900_v12  ;;  %v6338_v11 = vld.sshfl [vmem:[%s6905_s29 + $0xb8] sm:$0x33 pattern:$0x75316420] }
  0x6a   : > { %v2275_v26 = vrot.slane %v2253_v13, %v6900_v12  ;;  %v2282_v27 = vrot.slane %v6359_v14, %v6900_v12  ;;  %v1294_v28 = vrot.slane %v6330_v17, %v6900_v12  ;;  %v2249_v29 = vrot.slane %v2235_v16, %v6900_v12 }
  0x6b   : > { %v1316_v30 = vrot.slane %v1302_v18, %v6900_v12  ;;  %v1317_v31 = vcombine.high %v1309_v19, %v1309_v19  ;;  %v1326_v32 = vcombine.high %v6332_v20, %v6332_v20  ;;  %v2300_v35 = vcombine.low %v1271_v23, %v1278_v24 }
  0x6c   : > { %6500 = vmatmul.mubr.msk.bf16.gmra.mrb[36].mxu0 %vm2615_vm1, %v2103_v21  ;;  %v2261_v21 = vrot.slane %v2251_v8, %v6900_v12  ;;  %v6360_v36 = vcombine.high %v1271_v23, %v1278_v24  ;;  %v2284_v37 = vcombine.low %v2275_v26, %v2282_v27  ;;  %v2302_v38 = vcombine.low %v1294_v28, %v1309_v19 }
  0x6d   : > { %6503 = vmatprep.mubr.msk.bf16.mxu0 %vm6650_vm0, %v6649_v2  ;;  %v1333_v39 = vrot.slane %v6332_v20, %v6900_v12  ;;  %v2250_v40 = vcombine.low %v2242_v25, %v2249_v29  ;;  %v2303_v41 = vcombine.low %v1316_v30, %v1317_v31  ;;  %v1340_v43 = vrot.slane %v1326_v32, %v6900_v12 }
  0x6e   : > { %v2283_v34 = vcombine.low %v2261_v21, %v2268_v22  ;;  %v1364_v44 = vcombine.high %v6334_v33, %v6334_v33  ;;  %v2310_v46 = vrot.slane %v2300_v35, %v6900_v12  ;;  %v1318_v48 = vcombine.high %v1316_v30, %v1316_v30  ;;  %v6339_v35 = vld.sshfl [vmem:[%s6905_s29 + $0xbc] sm:$0x1 pattern:$0x75316420] }
  0x6f   : > { %v2298_v50 = vrot.slane %v2284_v37, %v6900_v12  ;;  %v2324_v51 = vrot.slane %v2302_v38, %v6900_v12  ;;  %v1341_v52 = vcombine.high %v1333_v39, %v1333_v39  ;;  %v1356_v53 = vrot.slane %v6333_v42, %v6900_v12 }
  0x70   : > { %v2291_v45 = vrot.slane %v2283_v34, %v6900_v12  ;;  %v2331_v54 = vrot.slane %v2303_v41, %v6900_v12  ;;  %v1342_v55 = vcombine.high %v1340_v43, %v1340_v43  ;;  %v1371_v56 = vrot.slane %v6334_v33, %v6900_v12 }
  0x71   : > { %v1378_v57 = vrot.slane %v1364_v44, %v6900_v12  ;;  %v1388_v59 = vcombine.high %v6335_v49, %v6335_v49  ;;  %v2349_v62 = vcombine.low %v1318_v48, %v1333_v39  ;;  %v2350_v63 = vcombine.low %v1340_v43, %v1341_v52  ;;  %v6340_v39 = vld.sshfl [vmem:[%s6905_s29 + $0xc0] sm:$0x33 pattern:$0x75316420] }
  0x72   : > { %v2299_v0 = vcombine.low %v2291_v45, %v2298_v50  ;;  %v2333_v1 = vcombine.low %v2324_v51, %v2331_v54  ;;  %v2351_v3 = vcombine.low %v1342_v55, %v1356_v53  ;;  %v1395_v7 = vrot.slane %v6335_v49, %v6900_v12  ;;  %v6341_v44 = vld.sshfl [vmem:[%s6905_s29 + $0xc4] sm:$0x33 pattern:$0x75316420] }
  0x73   : > { %v2352_v4 = vcombine.low %v1371_v56, %v1378_v57  ;;  %v1402_v8 = vrot.slane %v1388_v59, %v6900_v12  ;;  %v1418_v9 = vrot.slane %v6336_v58, %v6900_v12  ;;  %v1433_v10 = vrot.slane %v6337_v60, %v6900_v12 }
  0x74   : > { %6504 = vmatmul.mubr.msk.bf16.gmra.mrb[40].mxu0 %vm2615_vm1, %v2152_v47  ;;  %v2317_v47 = vrot.slane %v6360_v36, %v6900_v12  ;;  %v1426_v13 = vcombine.high %v6337_v60, %v6337_v60  ;;  %v2366_v16 = vrot.slane %v2350_v63, %v6900_v12  ;;  %v2347_v17 = vrot.slane %v2333_v1, %v6900_v12 }
  0x75   : > { %6507 = vmatprep.mubr.msk.bf16.mxu0 %vm6650_vm0, %v6649_v2  ;;  %v2373_v18 = vrot.slane %v2351_v3, %v6900_v12  ;;  %v2380_v19 = vrot.slane %v2352_v4, %v6900_v12  ;;  %v1450_v20 = vcombine.high %v6338_v11, %v6338_v11  ;;  %v6361_v21 = vcombine.high %v1371_v56, %v1378_v57  ;;  %v6343_v56 = vld.sshfl [vmem:[%s6905_s29 + $0xcc] sm:$0x33 pattern:$0x75316420] }
  0x76   : > { %v2332_v61 = vcombine.low %v2310_v46, %v2317_v47  ;;  %v2399_v22 = vcombine.low %v1395_v7, %v1402_v8  ;;  %v6362_v23 = vcombine.high %v1395_v7, %v1402_v8  ;;  %v2401_v24 = vcombine.low %v1418_v9, %v1433_v10  ;;  %v6344_v3 = vld.sshfl [vmem:[%s6905_s29 + $0xd0] sm:$0x33 pattern:$0x75316420] }
  0x77   : > { %v1440_v25 = vrot.slane %v1426_v13, %v6900_v12  ;;  %v2382_v28 = vcombine.low %v2373_v18, %v2380_v19  ;;  %v1457_v29 = vrot.slane %v6338_v11, %v6900_v12  ;;  %v1464_v30 = vrot.slane %v1450_v20, %v6900_v12  ;;  %v6342_v13 = vld.sshfl [vmem:[%s6905_s29 + $0xc8] sm:$0x1 pattern:$0x75316420] }
  0x78   : > { %v2340_v14 = vrot.slane %v2332_v61, %v6900_v12  ;;  %v2408_v31 = vrot.slane %v6361_v21, %v6900_v12  ;;  %v2415_v32 = vrot.slane %v2399_v22, %v6900_v12  ;;  %v2422_v33 = vrot.slane %v6362_v23, %v6900_v12 }
  0x79   : > { %v2429_v34 = vrot.slane %v2401_v24, %v6900_v12  ;;  %v1441_v36 = vcombine.high %v1433_v10, %v1433_v10  ;;  %v1442_v37 = vcombine.high %v1440_v25, %v1440_v25  ;;  %v1465_v41 = vcombine.high %v1457_v29, %v1457_v29 }
  0x7a   : > { %v2348_v27 = vcombine.low %v2340_v14, %v2347_v17  ;;  %v1466_v42 = vcombine.high %v1464_v30, %v1464_v30  ;;  %v1480_v43 = vrot.slane %v6339_v35, %v6900_v12  ;;  %v2430_v45 = vcombine.low %v2408_v31, %v2415_v32 }
  0x7b   : > { %v2431_v46 = vcombine.low %v2422_v33, %v2429_v34  ;;  %v2447_v47 = vcombine.low %v1440_v25, %v1441_v36  ;;  %v2448_v48 = vcombine.low %v1442_v37, %v1457_v29  ;;  %v1488_v49 = vcombine.high %v6340_v39, %v6340_v39 }
  0x7c   : > { %6508 = vmatmul.mubr.msk.bf16.gmra.mrb[44].mxu0 %vm2615_vm1, %v2201_v15  ;;  %v2359_v15 = vrot.slane %v2349_v62, %v6900_v12  ;;  %v1512_v50 = vcombine.high %v6341_v44, %v6341_v44  ;;  %v2449_v52 = vcombine.low %v1464_v30, %v1465_v41  ;;  %v2450_v53 = vcombine.low %v1466_v42, %v1480_v43 }
  0x7d   : > { %6511 = vmatprep.mubr.msk.bf16.mxu0 %vm6650_vm0, %v6649_v2  ;;  %v2438_v54 = vrot.slane %v2430_v45, %v6900_v12  ;;  %v2445_v55 = vrot.slane %v2431_v46, %v6900_v12  ;;  %v2457_v57 = vrot.slane %v2447_v47, %v6900_v12  ;;  %v2464_v58 = vrot.slane %v2448_v48, %v6900_v12  ;;  %v6345_v46 = vld.sshfl [vmem:[%s6905_s29 + $0xd4] sm:$0x1 pattern:$0x75316420] }
  0x7e   : > { %v2381_v26 = vcombine.low %v2359_v15, %v2366_v16  ;;  %v1495_v59 = vrot.slane %v6340_v39, %v6900_v12  ;;  %v1502_v60 = vrot.slane %v1488_v49, %v6900_v12  ;;  %v1519_v61 = vrot.slane %v6341_v44, %v6900_v12 }
  0x7f   : > { %v1526_v62 = vrot.slane %v1512_v50, %v6900_v12  ;;  %v2471_v63 = vrot.slane %v2449_v52, %v6900_v12  ;;  %v1550_v1 = vcombine.high %v6343_v56, %v6343_v56  ;;  %v2446_v4 = vcombine.low %v2438_v54, %v2445_v55 }
  0x80   : > { %v2389_v38 = vrot.slane %v2381_v26, %v6900_v12  ;;  %v2479_v7 = vcombine.low %v2457_v57, %v2464_v58  ;;  %v2496_v8 = vcombine.low %v1495_v59, %v1502_v60  ;;  %v6363_v9 = vcombine.high %v1495_v59, %v1502_v60 }
  0x81   : > { %v2498_v10 = vcombine.low %v1519_v61, %v1526_v62  ;;  %v6364_v11 = vcombine.high %v1519_v61, %v1526_v62  ;;  %v1557_v14 = vrot.slane %v6343_v56, %v6900_v12  ;;  %v1564_v16 = vrot.slane %v1550_v1, %v6900_v12 }
  0x82   : > { %v1574_v17 = vcombine.high %v6344_v3, %v6344_v3  ;;  %v1581_v18 = vrot.slane %v6344_v3, %v6900_v12  ;;  %v2487_v19 = vrot.slane %v2479_v7, %v6900_v12  ;;  %v2506_v20 = vrot.slane %v2496_v8, %v6900_v12 }
  0x83   : > { %v1542_v21 = vrot.slane %v6342_v13, %v6900_v12  ;;  %v2513_v22 = vrot.slane %v6363_v9, %v6900_v12  ;;  %v2520_v23 = vrot.slane %v2498_v10, %v6900_v12  ;;  %v2527_v24 = vrot.slane %v6364_v11, %v6900_v12  ;;  %v7396_v11 = vld [vmem:[%s7935_s7] ss:$0 sm:$0xff] }
  0x84   : > { %6512 = vmatmul.mubr.msk.bf16.gmra.mrb[48].mxu0 %vm2615_vm1, %v2250_v40  ;;  %v2396_v40 = vrot.slane %v2382_v28, %v6900_v12  ;;  %v1565_v25 = vcombine.high %v1557_v14, %v1557_v14  ;;  %v1588_v28 = vrot.slane %v1574_v17, %v6900_v12  ;;  %v1589_v29 = vcombine.high %v1581_v18, %v1581_v18 }
  0x85   : > { %6515 = vmatprep.mubr.msk.bf16.mxu0 %vm6650_vm0, %v6649_v2  ;;  %v2528_v30 = vcombine.low %v2506_v20, %v2513_v22  ;;  %v2529_v31 = vcombine.low %v2520_v23, %v2527_v24  ;;  %v2545_v32 = vcombine.low %v1542_v21, %v1557_v14  ;;  %v1604_v50 = vrot.slane %v6345_v46, %v6900_v12 }
  0x86   : > { %v2397_v51 = vcombine.low %v2389_v38, %v2396_v40  ;;  %v2546_v34 = vcombine.low %v1564_v16, %v1565_v25  ;;  %v2548_v36 = vcombine.low %v1588_v28, %v1589_v29  ;;  %v1590_v49 = vcombine.high %v1588_v28, %v1588_v28 }
  0x87   : > { %v2536_v37 = vrot.slane %v2528_v30, %v6900_v12  ;;  %v2555_v38 = vrot.slane %v2545_v32, %v6900_v12  ;;  %v2543_v39 = vrot.slane %v2529_v31, %v6900_v12  ;;  %v2974_v55 = vpop.permute.xlu0 %2973  ;;  %v6653_v8 = vmov 1983009808  }
  0x88   : > { %v2562_v40 = vrot.slane %v2546_v34, %v6900_v12  ;;  %v2576_v42 = vrot.slane %v2548_v36, %v6900_v12  ;;  %v2594_v52 = vcombine.low %v1590_v49, %v1604_v50  ;;  %v7363_v56 = vpop.permute.xlu1 %2983  ;;  %v3250_v9 = vunpack.c.l.s4 %v6653_v8 }
  0x89   : > { %v2544_v43 = vcombine.low %v2536_v37, %v2543_v39 }
  0x8a   : > { %v2577_v44 = vcombine.low %v2555_v38, %v2562_v40  ;;  %v3251_v13 = vunpack.c.0.s8 %v3250_v9 }
  0x8b   : > { %v2979_v57 = vpop.permute.xlu0 %2978 }
  0x8c   : > { %6516 = vmatmul.mubr.msk.bf16.gmra.mrb[52].mxu0 %vm2615_vm1, %v2299_v0  ;;  %v2478_v0 = vrot.slane %v2450_v53, %v6900_v12  ;;  %v2585_v47 = vrot.slane %v2577_v44, %v6900_v12  ;;  %v2601_v53 = vrot.slane %v2594_v52, %v6900_v12  ;;  %v7365_v58 = vpop.permute.xlu1 %2988  ;;  %v7402_v20 = vsub.s32 %v3251_v13, %v6731_v5 }
  0x8d   : > { %6519 = vmatprep.mubr.msk.bf16.mxu0 %vm6650_vm0, %v6649_v2 }
  0x8e   : > { %v2480_v15 = vcombine.low %v2471_v63, %v2478_v0  ;;  %v2608_v54 = vrot.slane %v2601_v53, %v6900_v12 }
  0x8f   : > { %v7367_v59 = vpop.permute.xlu0 %2993 }
  0x90   : > { %v2494_v26 = vrot.slane %v2480_v15, %v6900_v12  ;;  %v7369_v60 = vpop.permute.xlu1 %2998 }
  0x92   : > { %v2495_v33 = vcombine.low %v2487_v19, %v2494_v26 }
  0x93   : > { %v7371_v61 = vpop.permute.xlu0 %3003 }
  0x94   : > { %6520 = vmatmul.mubr.msk.bf16.gmra.mrb[56].mxu0 %vm2615_vm1, %v2348_v27  ;;  %v1566_v27 = vcombine.high %v1564_v16, %v1564_v16  ;;  %v7373_v62 = vpop.permute.xlu1 %3008 }
  0x95   : > { %6523 = vmatprep.mubr.msk.bf16.mxu0 %vm6650_vm0, %v6649_v2 }
  0x96   : > { %v2547_v35 = vcombine.low %v1566_v27, %v1581_v18 }
  0x97   : > { %v7375_v63 = vpop.permute.xlu0 %3013 }
  0x98   : > { %v2569_v41 = vrot.slane %v2547_v35, %v6900_v12 }
  0x9a   : > { %v2578_v45 = vcombine.low %v2569_v41, %v2576_v42 }
  0x9c   : > { %6524 = vmatmul.mubr.msk.bf16.gmra.mrb[60].mxu0 %vm2615_vm1, %v2397_v51  ;;  %v2592_v48 = vrot.slane %v2578_v45, %v6900_v12  ;;  %v7379_v12 = vpop.permute.xlu0 %3023 }
  0x9d   : > { %6527 = vmatprep.mubr.msk.bf16.mxu0 %vm6650_vm0, %v6649_v2 }
  0x9e   : > { %v2593_v51 = vcombine.low %v2585_v47, %v2592_v48 }
  0xa0   : > { %v7383_v1 = vpop.permute.xlu0 %3033 }
  0xa4   : > { %6528 = vmatmul.mubr.msk.bf16.gmra.mrb[64].mxu0 %vm2615_vm1, %v2446_v4 }
  0xa5   : > { %6531 = vmatprep.mubr.msk.bf16.mxu0 %vm6650_vm0, %v6649_v2  ;;  %v7387_v4 = vpop.permute.xlu0 %3043 }
  0xa9   : > { %v7391_v10 = vpop.permute.xlu0 %3053 }
  0xac   : > { %6532 = vmatmul.mubr.msk.bf16.gmra.mrb[68].mxu0 %vm2615_vm1, %v2495_v33 }
  0xad   : > { %6535 = vmatprep.mubr.msk.bf16.mxu0 %vm6650_vm0, %v6649_v2  ;;  %v2964_v23 = vpop.permute.xlu0 %2963 }
  0xb4   : > { %6536 = vmatmul.mubr.msk.bf16.gmra.mrb[72].mxu0 %vm2615_vm1, %v2544_v43 }
  0xb5   : > { %6539 = vmatprep.mubr.msk.bf16.mxu0 %vm6650_vm0, %v6649_v2 }
  0xbc   : > { %6540 = vmatmul.mubr.msk.bf16.gmra.mrb[76].mxu0 %vm2615_vm1, %v2593_v51 }
  0xbd   : > { %6543 = vmatprep.mubr.msk.bf16.mxu0 %vm6650_vm0, %v6649_v2  ;;  %v7377_v2 = vpop.permute.xlu1 %3018 }
  0xc1   : > { %v7381_v0 = vpop.permute.xlu1 %3028 }
  0xc4   : > { %6544 = vmatmul.mubr.msk.bf16.gmra.mrb[80].mxu0 %vm2615_vm1, %v2608_v54 }
  0xc5   : > { %v7385_v3 = vpop.permute.xlu1 %3038 }
  0xc9   : > { %v7389_v7 = vpop.permute.xlu1 %3048 }
  0xcd   : > { %v7398_v14 = vpop.permute.xlu1 %3058 }
  0xd1   : > { %v2969_v26 = vpop.permute.xlu1 %2968 }
  0xf7   : > { %v2713_v15 = vpop.f32.mrb[0].mxu0 }
  0xf8   : > { %v2714_v16 = vadd.f32 %v7396_v11, %v2713_v15  ;;  %v6465_v17 = vpop.f32.mrb[1].mxu0 }
  0xf9   : > { %v2716_v18 = vpop.f32.mrb[2].mxu0 }
  0xfa   : > { %v2879_v19 = vmax.f32 %v2714_v16, 0.0  ;;  %v2717_v21 = vadd.f32 %v7396_v11, %v2716_v18  ;;  %v6466_v22 = vpop.f32.mrb[3].mxu0 }
  0xfc   : > { %v3166_v24 = vmul.f32 %v2964_v23, %v2879_v19  ;;  %v2880_v25 = vmax.f32 %v2717_v21, 0.0 }
  0xfe   : > { %v3248_v27 = vcombine.high %v3166_v24, %v3166_v24  ;;  %v3255_v28 = vrot.slane %v3166_v24, %v7402_v20  ;;  %v3167_v29 = vmul.f32 %v2969_v26, %v2880_v25 }
  0xff   : > { %v2721_v30 = vpop.f32.mrb[4].mxu0 }
 0x100   : > { %v3262_v31 = vrot.slane %v3248_v27, %v7402_v20  ;;  %v3263_v32 = vcombine.high %v3255_v28, %v3255_v28  ;;  %v3265_v33 = vcombine.high %v3167_v29, %v3167_v29  ;;  %v3272_v34 = vrot.slane %v3167_v29, %v7402_v20  ;;  %v6469_v5 = vpop.f32.mrb[5].mxu0 }
 0x101   : > { %v2722_v35 = vadd.f32 %v7396_v11, %v2721_v30  ;;  %v2724_v36 = vpop.f32.mrb[6].mxu0 }
 0x102   : > { %v3264_v37 = vcombine.high %v3262_v31, %v3262_v31  ;;  %v3936_v38 = vcombine.low %v3255_v28, %v3263_v32  ;;  %v3279_v39 = vrot.slane %v3265_v33, %v7402_v20  ;;  %v3280_v40 = vcombine.high %v3272_v34, %v3272_v34  ;;  %v6470_v41 = vpop.f32.mrb[7].mxu0 }
 0x103   : > { %v2881_v42 = vmax.f32 %v2722_v35, 0.0  ;;  %v2725_v43 = vadd.f32 %v7396_v11, %v2724_v36 }
 0x104   : > { %v3937_v44 = vcombine.low %v3262_v31, %v3264_v37  ;;  %v3281_v45 = vcombine.high %v3279_v39, %v3279_v39  ;;  %v3953_v46 = vcombine.low %v3272_v34, %v3280_v40  ;;  %v3944_v49 = vrot.slane %v3936_v38, %v7402_v20 }
 0x105   : > { %v3168_v47 = vmul.f32 %v2974_v55, %v2881_v42  ;;  %v2882_v48 = vmax.f32 %v2725_v43, 0.0 }
 0x106   : > { %v3951_v50 = vrot.slane %v3937_v44, %v7402_v20  ;;  %v3954_v51 = vcombine.low %v3279_v39, %v3281_v45  ;;  %v3961_v13 = vrot.slane %v3953_v46, %v7402_v20 }
 0x107   : > { %v3282_v52 = vcombine.high %v3168_v47, %v3168_v47  ;;  %v3289_v53 = vrot.slane %v3168_v47, %v7402_v20  ;;  %v3169_v54 = vmul.f32 %v2979_v57, %v2882_v48  ;;  %v2729_v8 = vpop.f32.mrb[8].mxu0 }
 0x108   : > { %v3952_v9 = vcombine.low %v3944_v49, %v3951_v50  ;;  %v3968_v15 = vrot.slane %v3954_v51, %v7402_v20  ;;  %v2730_v55 = vadd.f32 %v7396_v11, %v2729_v8  ;;  %v6473_v16 = vpop.f32.mrb[9].mxu0 }
 0x109   : > { %v3296_v17 = vrot.slane %v3282_v52, %v7402_v20  ;;  %v3297_v18 = vcombine.high %v3289_v53, %v3289_v53  ;;  %v3976_v19 = vrot.slane %v3289_v53, %v7402_v20  ;;  %v3299_v21 = vcombine.high %v3169_v54, %v3169_v54  ;;  %v2732_v22 = vpop.f32.mrb[10].mxu0 }
 0x10a   : > { %4729 = vst.msk [vmem:[#allocation2] sm:$0xff] %vm4728_vm2, %v3952_v9  ;;  %v3969_v23 = vcombine.low %v3961_v13, %v3968_v15  ;;  %v3306_v57 = vrot.slane %v3169_v54, %v7402_v20  ;;  %v2883_v24 = vmax.f32 %v2730_v55, 0.0  ;;  %v2733_v25 = vadd.f32 %v7396_v11, %v2732_v22  ;;  %v6474_v26 = vpop.f32.mrb[11].mxu0 }
 0x10b   : > { %v3977_v27 = vcombine.low %v3297_v18, %v3296_v17  ;;  %4732 = vst.msk [vmem:[#allocation2 + $0x10] sm:$0x3] %vm4731_vm3, %v3976_v19  ;;  %v3298_v28 = vcombine.high %v3296_v17, %v3296_v17  ;;  %v3313_v29 = vrot.slane %v3299_v21, %v7402_v20 }
 0x10c   : > { %4730 = vst.msk [vmem:[#allocation2 + $0x8] sm:$0xff] %vm4728_vm2, %v3969_v23  ;;  %v3314_v30 = vcombine.high %v3306_v57, %v3306_v57  ;;  %v3170_v31 = vmul.f32 %v7363_v56, %v2883_v24  ;;  %v2884_v32 = vmax.f32 %v2733_v25, 0.0 }
 0x10d   : > { %v3978_v33 = vcombine.low %v3298_v28, %v3306_v57  ;;  %v3315_v34 = vcombine.high %v3313_v29, %v3313_v29  ;;  %v3985_v38 = vrot.slane %v3977_v27, %v7402_v20 }
 0x10e   : > { %v3994_v5 = vcombine.low %v3314_v30, %v3313_v29  ;;  %v3316_v35 = vcombine.high %v3170_v31, %v3170_v31  ;;  %v3323_v36 = vrot.slane %v3170_v31, %v7402_v20  ;;  %v3171_v37 = vmul.f32 %v7365_v58, %v2884_v32 }
 0x10f   : > { %v3992_v39 = vrot.slane %v3978_v33, %v7402_v20  ;;  %v2737_v40 = vpop.f32.mrb[12].mxu0 }
 0x110   : > { %v4002_v41 = vrot.slane %v3994_v5, %v7402_v20  ;;  %v3330_v42 = vrot.slane %v3316_v35, %v7402_v20  ;;  %v3331_v43 = vcombine.high %v3323_v36, %v3323_v36  ;;  %v3995_v56 = vcombine.low %v3315_v34, %v3323_v36  ;;  %v6477_v44 = vpop.f32.mrb[13].mxu0 }
 0x111   : > { %v3993_v45 = vcombine.low %v3985_v38, %v3992_v39  ;;  %v3333_v46 = vcombine.high %v3171_v37, %v3171_v37  ;;  %v3340_v47 = vrot.slane %v3171_v37, %v7402_v20  ;;  %v2738_v48 = vadd.f32 %v7396_v11, %v2737_v40  ;;  %v2740_v49 = vpop.f32.mrb[14].mxu0  ;;  %v4928_v21 = vld [vmem:[#allocation2] sm:$0xff] }
 0x112   : > { %v3332_v58 = vcombine.high %v3330_v42, %v3330_v42  ;;  %v4009_v50 = vrot.slane %v3995_v56, %v7402_v20  ;;  %v4017_v51 = vrot.slane %v3331_v43, %v7402_v20  ;;  %v2741_v52 = vadd.f32 %v7396_v11, %v2740_v49  ;;  %v6478_v53 = vpop.f32.mrb[15].mxu0 }
 0x113   : > { %4733 = vst.msk [vmem:[#allocation2 + $0x18] sm:$0xff] %vm4728_vm2, %v3993_v45  ;;  %v3347_v54 = vrot.slane %v3333_v46, %v7402_v20  ;;  %v3348_v8 = vcombine.high %v3340_v47, %v3340_v47  ;;  %v2885_v9 = vmax.f32 %v2738_v48, 0.0  ;;  %v4992_v13 = vld [vmem:[#allocation2 + $0x1] sm:$0xff]  ;;  %v4993_v15 = vld [vmem:[#allocation2 + $0x9] sm:$0xff] }
 0x114   : > { %v4929_v55 = vld [vmem:[#allocation2 + $0x8] sm:$0xff]  ;;  %v4010_v16 = vcombine.low %v4002_v41, %v4009_v50  ;;  %v4018_v17 = vcombine.low %v3330_v42, %v3332_v58  ;;  %4735 = vst.msk [vmem:[#allocation2 + $0x28] sm:$0x3] %vm4731_vm3, %v4017_v51  ;;  %v2886_v18 = vmax.f32 %v2741_v52, 0.0  ;;  %v5024_v19 = vpack.c.bf16 %v4993_v15, %v4992_v13 }
 0x115   : > { %v5056_v22 = vld [vmem:[#allocation2 + $0x2] sm:$0xff]  ;;  %v5057_v23 = vld [vmem:[#allocation2 + $0xa] sm:$0xff]  ;;  %v3349_v57 = vcombine.high %v3347_v54, %v3347_v54  ;;  %v4019_v24 = vcombine.low %v3340_v47, %v3348_v8  ;;  %v3172_v25 = vmul.f32 %v7367_v59, %v2885_v9  ;;  %v4960_v26 = vpack.c.bf16 %v4929_v55, %v4928_v21 }
 0x116   : > { %v4026_v27 = vrot.slane %v4018_v17, %v7402_v20  ;;  %4734 = vst.msk [vmem:[#allocation2 + $0x20] sm:$0xff] %vm4728_vm2, %v4010_v16  ;;  %v3173_v28 = vmul.f32 %v7369_v60, %v2886_v18  ;;  %5040 = vst.msk [vmem:[#allocation3 + $0x8] sm:$0xff] %vm4728_vm2, %v5024_v19  ;;  %v5088_v29 = vpack.c.bf16 %v5057_v23, %v5056_v22 }
 0x117   : > { %v4033_v30 = vrot.slane %v4019_v24, %v7402_v20  ;;  %v3350_v31 = vcombine.high %v3172_v25, %v3172_v25  ;;  %v3357_v32 = vrot.slane %v3172_v25, %v7402_v20  ;;  %v2745_v33 = vpop.f32.mrb[16].mxu0  ;;  %4976 = vst.msk [vmem:[#allocation3] sm:$0xff] %vm4728_vm2, %v4960_v26  ;;  %v4035_v36 = vcombine.low %v3347_v54, %v3349_v57 }
 0x118   : > { %v3367_v34 = vcombine.high %v3173_v28, %v3173_v28  ;;  %v3374_v59 = vrot.slane %v3173_v28, %v7402_v20  ;;  %v2746_v5 = vadd.f32 %v7396_v11, %v2745_v33  ;;  %v6481_v35 = vpop.f32.mrb[17].mxu0  ;;  %5104 = vst.msk [vmem:[#allocation3 + $0x10] sm:$0xff] %vm4728_vm2, %v5088_v29 }
 0x119   : > { %v4034_v60 = vcombine.low %v4026_v27, %v4033_v30  ;;  %v3364_v37 = vrot.slane %v3350_v31, %v7402_v20  ;;  %v3365_v38 = vcombine.high %v3357_v32, %v3357_v32  ;;  %v2748_v39 = vpop.f32.mrb[18].mxu0  ;;  %v4043_v58 = vrot.slane %v4035_v36, %v7402_v20 }
 0x11a   : > { %v3381_v40 = vrot.slane %v3367_v34, %v7402_v20  ;;  %v3382_v41 = vcombine.high %v3374_v59, %v3374_v59  ;;  %v2887_v42 = vmax.f32 %v2746_v5, 0.0  ;;  %v2749_v43 = vadd.f32 %v7396_v11, %v2748_v39  ;;  %v6482_v56 = vpop.f32.mrb[19].mxu0  ;;  %v4930_v29 = vld [vmem:[#allocation2 + $0x18] sm:$0xff] }
 0x11b   : > { %4736 = vst.msk [vmem:[#allocation2 + $0x30] sm:$0xff] %vm4728_vm2, %v4034_v60  ;;  %v4036_v44 = vcombine.low %v3357_v32, %v3365_v38  ;;  %v4058_v45 = vrot.slane %v3364_v37, %v7402_v20  ;;  %v3366_v46 = vcombine.high %v3364_v37, %v3364_v37  ;;  %v5121_v39 = vld [vmem:[#allocation2 + $0x18] sm:$0xff] }
 0x11c   : > { %v4060_v47 = vcombine.low %v3382_v41, %v3381_v40  ;;  %v3174_v48 = vmul.f32 %v7371_v61, %v2887_v42  ;;  %v2888_v49 = vmax.f32 %v2749_v43, 0.0  ;;  %v3383_v52 = vcombine.high %v3381_v40, %v3381_v40 }
 0x11d   : > { %v4050_v50 = vrot.slane %v4036_v44, %v7402_v20  ;;  %4738 = vst.msk [vmem:[#allocation2 + $0x40] sm:$0x3] %vm4731_vm3, %v4058_v45  ;;  %v4059_v51 = vcombine.low %v3366_v46, %v3374_v59  ;;  %v5527_v53 = vld [vmem:[#allocation3 + $0x8] sm:$0xff]  ;;  %v4995_v8 = vld [vmem:[#allocation2 + $0x21] sm:$0xff] }
 0x11e   : > { %v4994_v54 = vld [vmem:[#allocation2 + $0x19] sm:$0xff]  ;;  %v4074_v9 = vrot.slane %v4060_v47, %v7402_v20  ;;  %v3384_v13 = vcombine.high %v3174_v48, %v3174_v48  ;;  %v3391_v15 = vrot.slane %v3174_v48, %v7402_v20  ;;  %v3175_v55 = vmul.f32 %v7373_v62, %v2888_v49  ;;  %5786 = vmatprep.subr.bf16.mxu0 %v5527_v53  ;;  %v5526_v61 = vld [vmem:[#allocation3] sm:$0xff]  ;;  %v5250_v17 = vld [vmem:[#allocation2 + $0x22] sm:$0xff] }
 0x11f   : > { %v5249_v16 = vld [vmem:[#allocation2 + $0x1a] sm:$0xff]  ;;  %v4051_v18 = vcombine.low %v4043_v58, %v4050_v50  ;;  %v4067_v19 = vrot.slane %v4059_v51, %v7402_v20  ;;  %v2753_v21 = vpop.f32.mrb[20].mxu0  ;;  %5787 = vmatpush1.bf16.xpose.msra.mxu0 %v5526_v61  ;;  %v5025_v22 = vpack.c.bf16 %v4995_v8, %v4994_v54  ;;  %v5059_v5 = vld [vmem:[#allocation2 + $0x22] sm:$0xff] }
 0x120   : > { %v5281_v23 = vpack.c.bf16 %v5250_v17, %v5249_v16  ;;  %v4931_v57 = vld [vmem:[#allocation2 + $0x20] sm:$0xff]  ;;  %v3398_v24 = vrot.slane %v3384_v13, %v7402_v20  ;;  %v3399_v25 = vcombine.high %v3391_v15, %v3391_v15  ;;  %v4076_v26 = vcombine.low %v3383_v52, %v3391_v15  ;;  %v6485_v28 = vpop.f32.mrb[21].mxu0 }
 0x121   : > { %v3401_v27 = vcombine.high %v3175_v55, %v3175_v55  ;;  %v5122_v62 = vld [vmem:[#allocation2 + $0x20] sm:$0xff]  ;;  %4737 = vst.msk [vmem:[#allocation2 + $0x38] sm:$0xff] %vm4728_vm2, %v4051_v18  ;;  %v4075_v30 = vcombine.low %v4067_v19, %v4074_v9  ;;  %v3408_v31 = vrot.slane %v3175_v55, %v7402_v20  ;;  %v2754_v32 = vadd.f32 %v7396_v11, %v2753_v21  ;;  %v2756_v33 = vpop.f32.mrb[22].mxu0 }
 0x122   : > { %5041 = vst.msk [vmem:[#allocation3 + $0x50] sm:$0xff] %vm4728_vm2, %v5025_v22  ;;  %5297 = vst.msk [vmem:[#allocation3 + $0x28] sm:$0xff] %vm4728_vm2, %v5281_v23  ;;  %v4961_v34 = vpack.c.bf16 %v4931_v57, %v4930_v29  ;;  %v5058_v59 = vld [vmem:[#allocation2 + $0x1a] sm:$0xff]  ;;  %v3400_v35 = vcombine.high %v3398_v24, %v3398_v24  ;;  %v4077_v60 = vcombine.low %v3399_v25, %v3398_v24  ;;  %v6486_v38 = vpop.f32.mrb[23].mxu0 }
 0x123   : > { %5233 = vst.msk [vmem:[#allocation3 + $0x20] sm:$0xff] %vm4728_vm2, %v5025_v22  ;;  %v4084_v36 = vrot.slane %v4076_v26, %v7402_v20  ;;  %v3415_v37 = vrot.slane %v3401_v27, %v7402_v20  ;;  %4739 = vst.msk [vmem:[#allocation2 + $0x48] sm:$0xff] %vm4728_vm2, %v4075_v30  ;;  %v3416_v40 = vcombine.high %v3408_v31, %v3408_v31  ;;  %v2889_v41 = vmax.f32 %v2754_v32, 0.0 }
 0x124   : > { %v2757_v42 = vadd.f32 %v7396_v11, %v2756_v33  ;;  %4977 = vst.msk [vmem:[#allocation3 + $0x48] sm:$0xff] %vm4728_vm2, %v4961_v34  ;;  %v5153_v43 = vpack.c.bf16 %v5122_v62, %v5121_v39  ;;  %v4091_v56 = vrot.slane %v4077_v60, %v7402_v20  ;;  %v4099_v44 = vrot.slane %v3400_v35, %v7402_v20  ;;  %v6610_v34 = vld [vmem:[%s7932_s4 + $0x4] ss:$36 sps:$4 sm:$0xff]  }
 0x125   : > { %v3417_v45 = vcombine.high %v3415_v37, %v3415_v37  ;;  %v5089_v46 = vpack.c.bf16 %v5059_v5, %v5058_v59  ;;  %v4100_v47 = vcombine.low %v3408_v31, %v3416_v40  ;;  %v3176_v48 = vmul.f32 %v7375_v63, %v2889_v41  ;;  %5818 = vmatprep.mubr.bf16.mxu0 %v6610_v34 }
 0x126   : > { %v2890_v49 = vmax.f32 %v2757_v42, 0.0  ;;  %5169 = vst.msk [vmem:[#allocation3 + $0x18] sm:$0xff] %vm4728_vm2, %v5153_v43  ;;  %v4092_v58 = vcombine.low %v4084_v36, %v4091_v56  ;;  %v4932_v42 = vld [vmem:[#allocation2 + $0x30] sm:$0xff] }
 0x127   : > { %4741 = vst.msk [vmem:[#allocation2 + $0x58] sm:$0x3] %vm4731_vm3, %v4099_v44  ;;  %v4101_v50 = vcombine.low %v3415_v37, %v3417_v45  ;;  %v3418_v51 = vcombine.high %v3176_v48, %v3176_v48  ;;  %v3425_v52 = vrot.slane %v3176_v48, %v7402_v20  ;;  %v2761_v54 = vpop.f32.mrb[24].mxu0  ;;  %v4108_v8 = vrot.slane %v4100_v47, %v7402_v20 }
 0x128   : > { %5105 = vst.msk [vmem:[#allocation3 + $0x58] sm:$0xff] %vm4728_vm2, %v5089_v46  ;;  %v3177_v53 = vmul.f32 %v7377_v2, %v2890_v49  ;;  %4740 = vst.msk [vmem:[#allocation2 + $0x50] sm:$0xff] %vm4728_vm2, %v4092_v58  ;;  %v2762_v9 = vadd.f32 %v7396_v11, %v2761_v54  ;;  %v6489_v13 = vpop.f32.mrb[25].mxu0  ;;  %v4996_v21 = vld [vmem:[#allocation2 + $0x31] sm:$0xff]  ;;  %v4997_v22 = vld [vmem:[#allocation2 + $0x39] sm:$0xff] }
 0x129   : > { %v4115_v63 = vrot.slane %v4101_v50, %v7402_v20  ;;  %v5536_v15 = vld [vmem:[#allocation3 + $0x50] sm:$0xff]  ;;  %v5531_v55 = vld [vmem:[#allocation3 + $0x28] sm:$0xff]  ;;  %v3432_v16 = vrot.slane %v3418_v51, %v7402_v20  ;;  %v3433_v17 = vcombine.high %v3425_v52, %v3425_v52  ;;  %v2764_v2 = vpop.f32.mrb[26].mxu0  ;;  %v5026_v28 = vpack.c.bf16 %v4997_v22, %v4996_v21  ;;  %v5123_v46 = vld [vmem:[#allocation2 + $0x30] sm:$0xff] }
 0x12a   : > { %v5530_v61 = vld [vmem:[#allocation3 + $0x20] sm:$0xff]  ;;  %v3435_v18 = vcombine.high %v3177_v53, %v3177_v53  ;;  %v3442_v19 = vrot.slane %v3177_v53, %v7402_v20  ;;  %5788 = vmatprep.subr.bf16.mxu0 %v5536_v15  ;;  %v2891_v24 = vmax.f32 %v2762_v9, 0.0  ;;  %5892 = vmatprep.subr.bf16.mxu1 %v5531_v55  ;;  %v2765_v25 = vadd.f32 %v7396_v11, %v2764_v2  ;;  %v6490_v27 = vpop.f32.mrb[27].mxu0  ;;  %v5252_v29 = vld [vmem:[#allocation2 + $0x3a] sm:$0xff] }
 0x12b   : > { %v5251_v23 = vld [vmem:[#allocation2 + $0x32] sm:$0xff]  ;;  %v4116_v57 = vcombine.low %v4108_v8, %v4115_v63  ;;  %v3434_v62 = vcombine.high %v3432_v16, %v3432_v16  ;;  %v4117_v30 = vcombine.low %v3425_v52, %v3433_v17  ;;  %5893 = vmatpush1.bf16.xpose.msra.mxu1 %v5530_v61  ;;  %5042 = vst.msk [vmem:[#allocation3 + $0x98] sm:$0xff] %vm4728_vm2, %v5026_v28  ;;  %5234 = vst.msk [vmem:[#allocation3 + $0x68] sm:$0xff] %vm4728_vm2, %v5026_v28 }
 0x12c   : > { %v5535_v26 = vld [vmem:[#allocation3 + $0x48] sm:$0xff]  ;;  %v3449_v31 = vrot.slane %v3435_v18, %v7402_v20  ;;  %v3450_v32 = vcombine.high %v3442_v19, %v3442_v19  ;;  %v4140_v59 = vrot.slane %v3442_v19, %v7402_v20  ;;  %v3178_v5 = vmul.f32 %v7379_v12, %v2891_v24 }
 0x12d   : > { %5789 = vmatpush1.bf16.xpose.msra.mxu0 %v5535_v26  ;;  %v4933_v33 = vld [vmem:[#allocation2 + $0x38] sm:$0xff]  ;;  %4742 = vst.msk [vmem:[#allocation2 + $0x60] sm:$0xff] %vm4728_vm2, %v4116_v57  ;;  %v2892_v35 = vmax.f32 %v2765_v25, 0.0  ;;  %v5282_v60 = vpack.c.bf16 %v5252_v29, %v5251_v23  ;;  %v4118_v38 = vcombine.low %v3432_v16, %v3434_v62  ;;  %v4125_v39 = vrot.slane %v4117_v30, %v7402_v20  ;;  %v4934_v23 = vld [vmem:[#allocation2 + $0x48] sm:$0xff] }
 0x12e   : > { %v5124_v36 = vld [vmem:[#allocation2 + $0x38] sm:$0xff]  ;;  %v4141_v40 = vcombine.low %v3450_v32, %v3449_v31  ;;  %v3451_v41 = vcombine.high %v3449_v31, %v3449_v31  ;;  %4744 = vst.msk [vmem:[#allocation2 + $0x70] sm:$0x3] %vm4731_vm3, %v4140_v59  ;;  %v3452_v12 = vcombine.high %v3178_v5, %v3178_v5  ;;  %v3459_v56 = vrot.slane %v3178_v5, %v7402_v20  ;;  %v5125_v62 = vld [vmem:[#allocation2 + $0x48] sm:$0xff] }
 0x12f   : > { %v5378_v37 = vld [vmem:[#allocation2 + $0x31] sm:$0xff]  ;;  %v5379_v43 = vld [vmem:[#allocation2 + $0x39] sm:$0xff]  ;;  %v3179_v44 = vmul.f32 %v7381_v0, %v2892_v35  ;;  %5298 = vst.msk [vmem:[#allocation3 + $0x70] sm:$0xff] %vm4728_vm2, %v5282_v60  ;;  %v4962_v45 = vpack.c.bf16 %v4933_v33, %v4932_v42  ;;  %v4132_v47 = vrot.slane %v4118_v38, %v7402_v20  ;;  %v2769_v49 = vpop.f32.mrb[28].mxu0  ;;  %v4998_v58 = vld [vmem:[#allocation2 + $0x49] sm:$0xff]  ;;  %v5154_v51 = vpack.c.bf16 %v5124_v36, %v5123_v46 }
 0x130   : > { %v4149_v48 = vrot.slane %v4141_v40, %v7402_v20  ;;  %v4999_v50 = vld [vmem:[#allocation2 + $0x51] sm:$0xff]  ;;  %v5410_v52 = vpack.c.bf16 %v5379_v43, %v5378_v37  ;;  %v3466_v53 = vrot.slane %v3452_v12, %v7402_v20  ;;  %v3467_v54 = vcombine.high %v3459_v56, %v3459_v56  ;;  %v6493_v9 = vpop.f32.mrb[29].mxu0  ;;  %v5380_v30 = vld [vmem:[#allocation2 + $0x49] sm:$0xff]  ;;  %v5061_v60 = vld [vmem:[#allocation2 + $0x3a] sm:$0xff] }
 0x131   : > { %v4142_v8 = vcombine.low %v3451_v41, %v3459_v56  ;;  %v3469_v63 = vcombine.high %v3179_v44, %v3179_v44  ;;  %4978 = vst.msk [vmem:[#allocation3 + $0x90] sm:$0xff] %vm4728_vm2, %v4962_v45  ;;  %v5253_v0 = vld [vmem:[#allocation2 + $0x4a] sm:$0xff]  ;;  %v5254_v13 = vld [vmem:[#allocation2 + $0x52] sm:$0xff]  ;;  %v4133_v15 = vcombine.low %v4125_v39, %v4132_v47  ;;  %v3476_v55 = vrot.slane %v3179_v44, %v7402_v20  ;;  %v2772_v16 = vpop.f32.mrb[30].mxu0 }
 0x132   : > { %v2770_v61 = vadd.f32 %v7396_v11, %v2769_v49  ;;  %v5027_v17 = vpack.c.bf16 %v4999_v50, %v4998_v58  ;;  %5170 = vst.msk [vmem:[#allocation3 + $0x60] sm:$0xff] %vm4728_vm2, %v5154_v51  ;;  %5426 = vst.msk [vmem:[#allocation3 + $0x38] sm:$0xff] %vm4728_vm2, %v5410_v52  ;;  %v4158_v19 = vcombine.low %v3467_v54, %v3466_v53  ;;  %v6494_v22 = vpop.f32.mrb[31].mxu0  ;;  %v4935_v57 = vld [vmem:[#allocation2 + $0x50] sm:$0xff]  ;;  %v5545_v28 = vld [vmem:[#allocation3 + $0x98] sm:$0xff] }
 0x133   : > { %5362 = vst.msk [vmem:[#allocation3 + $0x30] sm:$0xff] %vm4728_vm2, %v5154_v51  ;;  %v4156_v18 = vrot.slane %v4142_v8, %v7402_v20  ;;  %v3468_v2 = vcombine.high %v3466_v53, %v3466_v53  ;;  %v3483_v21 = vrot.slane %v3469_v63, %v7402_v20  ;;  %v5126_v24 = vld [vmem:[#allocation2 + $0x50] sm:$0xff]  ;;  %4743 = vst.msk [vmem:[#allocation2 + $0x68] sm:$0xff] %vm4728_vm2, %v4133_v15  ;;  %5790 = vmatprep.subr.bf16.mxu0 %v5545_v28  ;;  %v5539_v5 = vld [vmem:[#allocation3 + $0x68] sm:$0xff] }
 0x134   : > { %v3484_v25 = vcombine.high %v3476_v55, %v3476_v55  ;;  %v2893_v26 = vmax.f32 %v2770_v61, 0.0  ;;  %v2773_v27 = vadd.f32 %v7396_v11, %v2772_v16  ;;  %5043 = vst.msk [vmem:[#allocation3 + $0xe0] sm:$0xff] %vm4728_vm2, %v5027_v17  ;;  %v5283_v29 = vpack.c.bf16 %v5254_v13, %v5253_v0  ;;  %5235 = vst.msk [vmem:[#allocation3 + $0xb0] sm:$0xff] %vm4728_vm2, %v5027_v17  ;;  %v5381_v31 = vld [vmem:[#allocation2 + $0x51] sm:$0xff] }
 0x135   : > { %v4157_v32 = vcombine.low %v4149_v48, %v4156_v18  ;;  %v4166_v33 = vrot.slane %v4158_v19, %v7402_v20  ;;  %v3485_v34 = vcombine.high %v3483_v21, %v3483_v21  ;;  %v4159_v59 = vcombine.low %v3468_v2, %v3476_v55  ;;  %v5060_v35 = vld [vmem:[#allocation2 + $0x32] sm:$0xff]  ;;  %v5062_v41 = vld [vmem:[#allocation2 + $0x4a] sm:$0xff] }
 0x136   : > { %v4181_v36 = vrot.slane %v3484_v25, %v7402_v20  ;;  %v3180_v37 = vmul.f32 %v7383_v1, %v2893_v26  ;;  %v2894_v38 = vmax.f32 %v2773_v27, 0.0  ;;  %v5540_v39 = vld [vmem:[#allocation3 + $0x70] sm:$0xff]  ;;  %5299 = vst.msk [vmem:[#allocation3 + $0xb8] sm:$0xff] %vm4728_vm2, %v5283_v29  ;;  %v4963_v40 = vpack.c.bf16 %v4935_v57, %v4934_v23  ;;  %v5063_v42 = vld [vmem:[#allocation2 + $0x52] sm:$0xff] }
 0x137   : > { %4745 = vst.msk [vmem:[#allocation2 + $0x78] sm:$0xff] %vm4728_vm2, %v4157_v32  ;;  %v4173_v43 = vrot.slane %v4159_v59, %v7402_v20  ;;  %v7526_v12 = vcombine.low %v3483_v21, %v3485_v34  ;;  %5894 = vmatprep.subr.bf16.mxu1 %v5540_v39  ;;  %v5155_v56 = vpack.c.bf16 %v5126_v24, %v5125_v62  ;;  %v2777_v48 = vpop.f32.mrb[32].mxu0  ;;  %v6613_v9 = vld [vmem:[%s7932_s4 + $0x14] ss:$36 sps:$4 sm:$0xff]  }
 0x138   : > { %v5411_v44 = vpack.c.bf16 %v5381_v31, %v5380_v30  ;;  %4747 = vst.msk [vmem:[#allocation2 + $0x88] sm:$0x3] %vm4731_vm3, %v4181_v36  ;;  %v3486_v45 = vcombine.high %v3180_v37, %v3180_v37  ;;  %v3493_v1 = vrot.slane %v3180_v37, %v7402_v20  ;;  %v3181_v46 = vmul.f32 %v7385_v3, %v2894_v38  ;;  %v5544_v47 = vld [vmem:[#allocation3 + $0x90] sm:$0xff]  ;;  %v6497_v51 = vpop.f32.mrb[33].mxu0 }
 0x139   : > { %5895 = vmatpush1.bf16.xpose.msra.mxu1 %v5539_v5  ;;  %4979 = vst.msk [vmem:[#allocation3 + $0xd8] sm:$0xff] %vm4728_vm2, %v4963_v40  ;;  %v5090_v49 = vpack.c.bf16 %v5061_v60, %v5060_v35  ;;  %v4174_v58 = vcombine.low %v4166_v33, %v4173_v43  ;;  %5791 = vmatpush1.bf16.xpose.msra.mxu0 %v5544_v47  ;;  %5171 = vst.msk [vmem:[#allocation3 + $0xa8] sm:$0xff] %vm4728_vm2, %v5155_v56  ;;  %v2780_v63 = vpop.f32.mrb[34].mxu0  ;;  %v4936_v35 = vld [vmem:[#allocation2 + $0x60] sm:$0xff] }
 0x13a   : > { %v2778_v50 = vadd.f32 %v7396_v11, %v2777_v48  ;;  %5427 = vst.msk [vmem:[#allocation3 + $0x80] sm:$0xff] %vm4728_vm2, %v5411_v44  ;;  %5363 = vst.msk [vmem:[#allocation3 + $0x78] sm:$0xff] %vm4728_vm2, %v5155_v56  ;;  %v5091_v52 = vpack.c.bf16 %v5063_v42, %v5062_v41  ;;  %v3500_v3 = vrot.slane %v3486_v45, %v7402_v20  ;;  %v6498_v55 = vpop.f32.mrb[35].mxu0  ;;  %v5000_v16 = vld [vmem:[#allocation2 + $0x61] sm:$0xff]  ;;  %v5001_v21 = vld [vmem:[#allocation2 + $0x69] sm:$0xff]  ;;  %5924 = vmatprep.mubr.bf16.mxu1 %v6613_v9 }
 0x13b   : > { %v3501_v53 = vcombine.high %v3493_v1, %v3493_v1  ;;  %v3503_v54 = vcombine.high %v3181_v46, %v3181_v46  ;;  %v3510_v8 = vrot.slane %v3181_v46, %v7402_v20  ;;  %5106 = vst.msk [vmem:[#allocation3 + $0xa0] sm:$0xff] %vm4728_vm2, %v5090_v49  ;;  %5490 = vst.msk [vmem:[#allocation3 + $0x40] sm:$0xff] %vm4728_vm2, %v5090_v49  ;;  %v5554_v61 = vld [vmem:[#allocation3 + $0xe0] sm:$0xff]  ;;  %v5255_v22 = vld [vmem:[#allocation2 + $0x62] sm:$0xff] }
 0x13c   : > { %v4190_v0 = vrot.slane %v7526_v12, %v7402_v20  ;;  %4746 = vst.msk [vmem:[#allocation2 + $0x80] sm:$0xff] %vm4728_vm2, %v4174_v58  ;;  %v2895_v13 = vmax.f32 %v2778_v50, 0.0  ;;  %v2781_v15 = vadd.f32 %v7396_v11, %v2780_v63  ;;  %5107 = vst.msk [vmem:[#allocation3 + $0xe8] sm:$0xff] %vm4728_vm2, %v5091_v52  ;;  %v3502_v17 = vcombine.high %v3500_v3, %v3500_v3  ;;  %v5256_v23 = vld [vmem:[#allocation2 + $0x6a] sm:$0xff]  ;;  %v5548_v26 = vld [vmem:[#allocation3 + $0xb0] sm:$0xff] }
 0x13d   : > { %5491 = vst.msk [vmem:[#allocation3 + $0x88] sm:$0xff] %vm4728_vm2, %v5091_v52  ;;  %v4183_v18 = vcombine.low %v3493_v1, %v3501_v53  ;;  %v3517_v19 = vrot.slane %v3503_v54, %v7402_v20  ;;  %v3518_v2 = vcombine.high %v3510_v8, %v3510_v8  ;;  %5792 = vmatprep.subr.bf16.mxu0 %v5554_v61  ;;  %v5549_v25 = vld [vmem:[#allocation3 + $0xb8] sm:$0xff]  ;;  %v5127_v56 = vld [vmem:[#allocation2 + $0x60] sm:$0xff] }
 0x13e   : > { %v3182_v57 = vmul.f32 %v7387_v4, %v2895_v13  ;;  %v2896_v24 = vmax.f32 %v2781_v15, 0.0  ;;  %v5028_v27 = vpack.c.bf16 %v5001_v21, %v5000_v16  ;;  %v5284_v28 = vpack.c.bf16 %v5256_v23, %v5255_v22  ;;  %v4937_v29 = vld [vmem:[#allocation2 + $0x68] sm:$0xff]  ;;  %5896 = vmatprep.subr.bf16.mxu1 %v5549_v25  ;;  %v4938_v15 = vld [vmem:[#allocation2 + $0x78] sm:$0xff] }
 0x13f   : > { %v4197_v62 = vrot.slane %v4183_v18, %v7402_v20  ;;  %v4199_v30 = vcombine.low %v3500_v3, %v3502_v17  ;;  %v4200_v31 = vcombine.low %v3510_v8, %v3518_v2  ;;  %v4222_v32 = vrot.slane %v3517_v19, %v7402_v20  ;;  %v5128_v60 = vld [vmem:[#allocation2 + $0x68] sm:$0xff]  ;;  %v2785_v39 = vpop.f32.mrb[36].mxu0 }
 0x140   : > { %v3519_v33 = vcombine.high %v3517_v19, %v3517_v19  ;;  %v3520_v34 = vcombine.high %v3182_v57, %v3182_v57  ;;  %v3527_v59 = vrot.slane %v3182_v57, %v7402_v20  ;;  %v3183_v4 = vmul.f32 %v7389_v7, %v2896_v24  ;;  %v5553_v5 = vld [vmem:[#allocation3 + $0xd8] sm:$0xff]  ;;  %5044 = vst.msk [vmem:[#allocation3 + $0x128] sm:$0xff] %vm4728_vm2, %v5028_v27  ;;  %v6501_v12 = vpop.f32.mrb[37].mxu0 }
 0x141   : > { %5300 = vst.msk [vmem:[#allocation3 + $0x100] sm:$0xff] %vm4728_vm2, %v5284_v28  ;;  %5236 = vst.msk [vmem:[#allocation3 + $0xf8] sm:$0xff] %vm4728_vm2, %v5028_v27  ;;  %v4198_v36 = vcombine.low %v4190_v0, %v4197_v62  ;;  %v4207_v37 = vrot.slane %v4199_v30, %v7402_v20  ;;  %v4214_v38 = vrot.slane %v4200_v31, %v7402_v20  ;;  %5897 = vmatpush1.bf16.xpose.msra.mxu1 %v5548_v26  ;;  %v2788_v46 = vpop.f32.mrb[38].mxu0  ;;  %v5382_v55 = vld [vmem:[#allocation2 + $0x61] sm:$0xff]  ;;  %v5383_v61 = vld [vmem:[#allocation2 + $0x69] sm:$0xff] }
 0x142   : > { %4750 = vst.msk [vmem:[#allocation2 + $0xa0] sm:$0x3] %vm4731_vm3, %v4222_v32  ;;  %v4964_v40 = vpack.c.bf16 %v4937_v29, %v4936_v35  ;;  %v3534_v7 = vrot.slane %v3520_v34, %v7402_v20  ;;  %v3535_v41 = vcombine.high %v3527_v59, %v3527_v59  ;;  %v4223_v42 = vcombine.low %v3519_v33, %v3527_v59  ;;  %v6502_v53 = vpop.f32.mrb[39].mxu0  ;;  %v5129_v59 = vld [vmem:[#allocation2 + $0x78] sm:$0xff] }
 0x143   : > { %v3537_v43 = vcombine.high %v3183_v4, %v3183_v4  ;;  %5793 = vmatpush1.bf16.xpose.msra.mxu0 %v5553_v5  ;;  %4748 = vst.msk [vmem:[#allocation2 + $0x90] sm:$0xff] %vm4728_vm2, %v4198_v36  ;;  %v4215_v44 = vcombine.low %v4207_v37, %v4214_v38  ;;  %v3544_v45 = vrot.slane %v3183_v4, %v7402_v20  ;;  %v5002_v47 = vld [vmem:[#allocation2 + $0x79] sm:$0xff]  ;;  %v5003_v48 = vld [vmem:[#allocation2 + $0x81] sm:$0xff]  ;;  %v5065_v5 = vld [vmem:[#allocation2 + $0x6a] sm:$0xff] }
 0x144   : > { %v2786_v1 = vadd.f32 %v7396_v11, %v2785_v39  ;;  %4980 = vst.msk [vmem:[#allocation3 + $0x120] sm:$0xff] %vm4728_vm2, %v4964_v40  ;;  %v5257_v49 = vld [vmem:[#allocation2 + $0x7a] sm:$0xff]  ;;  %v5156_v58 = vpack.c.bf16 %v5128_v60, %v5127_v56  ;;  %v4224_v50 = vcombine.low %v3535_v41, %v3534_v7  ;;  %v4231_v51 = vrot.slane %v4223_v42, %v7402_v20  ;;  %v5258_v54 = vld [vmem:[#allocation2 + $0x82] sm:$0xff] }
 0x145   : > { %v3536_v52 = vcombine.high %v3534_v7, %v3534_v7  ;;  %v3551_v3 = vrot.slane %v3537_v43, %v7402_v20  ;;  %v4939_v8 = vld [vmem:[#allocation2 + $0x80] sm:$0xff]  ;;  %4749 = vst.msk [vmem:[#allocation2 + $0x98] sm:$0xff] %vm4728_vm2, %v4215_v44  ;;  %v3552_v63 = vcombine.high %v3544_v45, %v3544_v45  ;;  %v2789_v0 = vadd.f32 %v7396_v11, %v2788_v46 }
 0x146   : > { %v2897_v9 = vmax.f32 %v2786_v1, 0.0  ;;  %v5029_v13 = vpack.c.bf16 %v5003_v48, %v5002_v47  ;;  %5172 = vst.msk [vmem:[#allocation3 + $0xf0] sm:$0xff] %vm4728_vm2, %v5156_v58  ;;  %5364 = vst.msk [vmem:[#allocation3 + $0xc0] sm:$0xff] %vm4728_vm2, %v5156_v58  ;;  %v4238_v16 = vrot.slane %v4224_v50, %v7402_v20  ;;  %v5285_v19 = vpack.c.bf16 %v5258_v54, %v5257_v49  ;;  %v5130_v2 = vld [vmem:[#allocation2 + $0x80] sm:$0xff]  ;;  %v3064_v48 = vpop.permute.xlu0 %3063 }
 0x147   : > { %v3553_v17 = vcombine.high %v3551_v3, %v3551_v3  ;;  %v4240_v18 = vcombine.low %v3536_v52, %v3544_v45  ;;  %v5384_v21 = vld [vmem:[#allocation2 + $0x79] sm:$0xff]  ;;  %v5385_v22 = vld [vmem:[#allocation2 + $0x81] sm:$0xff]  ;;  %v4241_v23 = vcombine.low %v3552_v63, %v3551_v3  ;;  %v2898_v24 = vmax.f32 %v2789_v0, 0.0  ;;  %v2793_v34 = vpop.f32.mrb[40].mxu0 }
 0x148   : > { %v3184_v57 = vmul.f32 %v7391_v10, %v2897_v9  ;;  %v5563_v25 = vld [vmem:[#allocation3 + $0x128] sm:$0xff]  ;;  %v5558_v26 = vld [vmem:[#allocation3 + $0x100] sm:$0xff]  ;;  %v5557_v27 = vld [vmem:[#allocation3 + $0xf8] sm:$0xff]  ;;  %5045 = vst.msk [vmem:[#allocation3 + $0x170] sm:$0xff] %vm4728_vm2, %v5029_v13  ;;  %v4965_v28 = vpack.c.bf16 %v4939_v8, %v4938_v15  ;;  %v4239_v29 = vcombine.low %v4231_v51, %v4238_v16  ;;  %v2794_v60 = vadd.f32 %v7396_v11, %v2793_v34  ;;  %v6505_v36 = vpop.f32.mrb[41].mxu0 }
 0x149   : > { %5237 = vst.msk [vmem:[#allocation3 + $0x140] sm:$0xff] %vm4728_vm2, %v5029_v13  ;;  %v4248_v62 = vrot.slane %v4240_v18, %v7402_v20  ;;  %v4263_v30 = vrot.slane %v3553_v17, %v7402_v20  ;;  %5794 = vmatprep.subr.bf16.mxu0 %v5563_v25  ;;  %5898 = vmatprep.subr.bf16.mxu1 %v5558_v26  ;;  %5301 = vst.msk [vmem:[#allocation3 + $0x148] sm:$0xff] %vm4728_vm2, %v5285_v19  ;;  %v5064_v4 = vld [vmem:[#allocation2 + $0x62] sm:$0xff]  ;;  %v2796_v42 = vpop.f32.mrb[42].mxu0  ;;  %v3069_v13 = vpop.permute.xlu1 %3068 }
 0x14a   : > { %v4255_v10 = vrot.slane %v4241_v23, %v7402_v20  ;;  %v3554_v31 = vcombine.high %v3184_v57, %v3184_v57  ;;  %v3561_v32 = vrot.slane %v3184_v57, %v7402_v20  ;;  %v3185_v33 = vmul.f32 %v7398_v14, %v2898_v24  ;;  %5899 = vmatpush1.bf16.xpose.msra.mxu1 %v5557_v27  ;;  %v6506_v44 = vpop.f32.mrb[43].mxu0  ;;  %v4940_v0 = vld [vmem:[#allocation2 + $0x90] sm:$0xff]  ;;  %v5067_v36 = vld [vmem:[#allocation2 + $0x82] sm:$0xff] }
 0x14b   : > { %4981 = vst.msk [vmem:[#allocation3 + $0x168] sm:$0xff] %vm4728_vm2, %v4965_v28  ;;  %4751 = vst.msk [vmem:[#allocation2 + $0xa8] sm:$0xff] %vm4728_vm2, %v4239_v29  ;;  %v5562_v35 = vld [vmem:[#allocation3 + $0x120] sm:$0xff]  ;;  %v5412_v37 = vpack.c.bf16 %v5383_v61, %v5382_v55  ;;  %v5157_v38 = vpack.c.bf16 %v5130_v2, %v5129_v59  ;;  %v5413_v39 = vpack.c.bf16 %v5385_v22, %v5384_v21  ;;  %v2899_v12 = vmax.f32 %v2794_v60, 0.0  ;;  %v5066_v60 = vld [vmem:[#allocation2 + $0x7a] sm:$0xff] }
 0x14c   : > { %4753 = vst.msk [vmem:[#allocation2 + $0xb8] sm:$0x3] %vm4731_vm3, %v4263_v30  ;;  %v4256_v40 = vcombine.low %v4248_v62, %v4255_v10  ;;  %v3568_v14 = vrot.slane %v3554_v31, %v7402_v20  ;;  %v3569_v7 = vcombine.high %v3561_v32, %v3561_v32  ;;  %v3571_v41 = vcombine.high %v3185_v33, %v3185_v33  ;;  %v5004_v45 = vld [vmem:[#allocation2 + $0x91] sm:$0xff]  ;;  %v5005_v1 = vld [vmem:[#allocation2 + $0x99] sm:$0xff] }
 0x14d   : > { %5795 = vmatpush1.bf16.xpose.msra.mxu0 %v5562_v35  ;;  %v3578_v43 = vrot.slane %v3185_v33, %v7402_v20  ;;  %v2797_v56 = vadd.f32 %v7396_v11, %v2796_v42  ;;  %v5259_v46 = vld [vmem:[#allocation2 + $0x92] sm:$0xff]  ;;  %5428 = vst.msk [vmem:[#allocation3 + $0xc8] sm:$0xff] %vm4728_vm2, %v5412_v37  ;;  %5173 = vst.msk [vmem:[#allocation3 + $0x138] sm:$0xff] %vm4728_vm2, %v5157_v38  ;;  %v5092_v47 = vpack.c.bf16 %v5065_v5, %v5064_v4  ;;  %v5260_v51 = vld [vmem:[#allocation2 + $0x9a] sm:$0xff] }
 0x14e   : > { %5429 = vst.msk [vmem:[#allocation3 + $0x110] sm:$0xff] %vm4728_vm2, %v5413_v39  ;;  %5365 = vst.msk [vmem:[#allocation3 + $0x108] sm:$0xff] %vm4728_vm2, %v5157_v38  ;;  %v3570_v49 = vcombine.high %v3568_v14, %v3568_v14  ;;  %v4264_v58 = vcombine.low %v3561_v32, %v3569_v7  ;;  %v3585_v11 = vrot.slane %v3571_v41, %v7402_v20  ;;  %v4941_v52 = vld [vmem:[#allocation2 + $0x98] sm:$0xff]  ;;  %v5131_v24 = vld [vmem:[#allocation2 + $0x90] sm:$0xff] }
 0x14f   : > { %4752 = vst.msk [vmem:[#allocation2 + $0xb0] sm:$0xff] %vm4728_vm2, %v4256_v40  ;;  %v5030_v50 = vpack.c.bf16 %v5005_v1, %v5004_v45  ;;  %v3586_v3 = vcombine.high %v3578_v43, %v3578_v43  ;;  %v3186_v53 = vmul.f32 %v3064_v48, %v2899_v12  ;;  %v2900_v54 = vmax.f32 %v2797_v56, 0.0  ;;  %v5572_v8 = vld [vmem:[#allocation3 + $0x170] sm:$0xff]  ;;  %5108 = vst.msk [vmem:[#allocation3 + $0x130] sm:$0xff] %vm4728_vm2, %v5092_v47  ;;  %v5132_v18 = vld [vmem:[#allocation2 + $0x98] sm:$0xff]  ;;  %v2801_v28 = vpop.f32.mrb[44].mxu0 }
 0x150   : > { %v5566_v63 = vld [vmem:[#allocation3 + $0x140] sm:$0xff]  ;;  %v5286_v9 = vpack.c.bf16 %v5260_v51, %v5259_v46  ;;  %5492 = vst.msk [vmem:[#allocation3 + $0xd0] sm:$0xff] %vm4728_vm2, %v5092_v47  ;;  %v4265_v15 = vcombine.low %v3568_v14, %v3570_v49  ;;  %v4272_v55 = vrot.slane %v4264_v58, %v7402_v20  ;;  %v3587_v61 = vcombine.high %v3585_v11, %v3585_v11  ;;  %v5567_v16 = vld [vmem:[#allocation3 + $0x148] sm:$0xff]  ;;  %v6509_v33 = vpop.f32.mrb[45].mxu0  ;;  %v7616_v39 = vld [vmem:[%s7935_s7] ss:$0 sm:$0xff] }
 0x151   : > { %5796 = vmatprep.subr.bf16.mxu0 %v5572_v8  ;;  %5046 = vst.msk [vmem:[#allocation3 + $0x1b8] sm:$0xff] %vm4728_vm2, %v5030_v50  ;;  %v4966_v17 = vpack.c.bf16 %v4941_v52, %v4940_v0  ;;  %5238 = vst.msk [vmem:[#allocation3 + $0x188] sm:$0xff] %vm4728_vm2, %v5030_v50  ;;  %v5386_v19 = vld [vmem:[#allocation2 + $0x91] sm:$0xff]  ;;  %v4281_v2 = vcombine.low %v3578_v43, %v3586_v3  ;;  %v3588_v21 = vcombine.high %v3186_v53, %v3186_v53  ;;  %v5387_v25 = vld [vmem:[#allocation2 + $0x99] sm:$0xff]  ;;  %v2804_v35 = vpop.f32.mrb[46].mxu0 }
 0x152   : > { %v3595_v22 = vrot.slane %v3186_v53, %v7402_v20  ;;  %v3187_v23 = vmul.f32 %v3069_v13, %v2900_v54  ;;  %5900 = vmatprep.subr.bf16.mxu1 %v5567_v16  ;;  %v5571_v57 = vld [vmem:[#allocation3 + $0x168] sm:$0xff]  ;;  %5302 = vst.msk [vmem:[#allocation3 + $0x190] sm:$0xff] %vm4728_vm2, %v5286_v9  ;;  %v4279_v26 = vrot.slane %v4265_v15, %v7402_v20  ;;  %v6510_v7 = vpop.f32.mrb[47].mxu0  ;;  %v4942_v47 = vld [vmem:[#allocation2 + $0xa8] sm:$0xff]  ;;  %v3074_v53 = vpop.permute.xlu0 %3073 }
 0x153   : > { %v4282_v27 = vcombine.low %v3585_v11, %v3587_v61  ;;  %5901 = vmatpush1.bf16.xpose.msra.mxu1 %v5566_v63  ;;  %4982 = vst.msk [vmem:[#allocation3 + $0x1b0] sm:$0xff] %vm4728_vm2, %v4966_v17  ;;  %v5158_v29 = vpack.c.bf16 %v5132_v18, %v5131_v24  ;;  %v5414_v62 = vpack.c.bf16 %v5387_v25, %v5386_v19  ;;  %v5068_v12 = vld [vmem:[#allocation2 + $0x92] sm:$0xff]  ;;  %v5133_v52 = vld [vmem:[#allocation2 + $0xa8] sm:$0xff]  ;;  %v5069_v3 = vld [vmem:[#allocation2 + $0x9a] sm:$0xff]  ;;  %v3079_v54 = vpop.permute.xlu1 %3078 }
 0x154   : > { %v4289_v30 = vrot.slane %v4281_v2, %v7402_v20  ;;  %v3602_v10 = vrot.slane %v3588_v21, %v7402_v20  ;;  %v3603_v31 = vcombine.high %v3595_v22, %v3595_v22  ;;  %v4304_v32 = vrot.slane %v3595_v22, %v7402_v20 }
 0x155   : > { %v4280_v34 = vcombine.low %v4272_v55, %v4279_v26  ;;  %v4296_v59 = vrot.slane %v4282_v27, %v7402_v20  ;;  %v3605_v4 = vcombine.high %v3187_v23, %v3187_v23  ;;  %v3612_v5 = vrot.slane %v3187_v23, %v7402_v20  ;;  %5797 = vmatpush1.bf16.xpose.msra.mxu0 %v5571_v57 }
 0x156   : > { %5174 = vst.msk [vmem:[#allocation3 + $0x180] sm:$0xff] %vm4728_vm2, %v5158_v29  ;;  %5430 = vst.msk [vmem:[#allocation3 + $0x158] sm:$0xff] %vm4728_vm2, %v5414_v62  ;;  %v4305_v37 = vcombine.low %v3603_v31, %v3602_v10  ;;  %v3604_v38 = vcombine.high %v3602_v10, %v3602_v10  ;;  %v2802_v40 = vadd.f32 %v7616_v39, %v2801_v28  ;;  %v5006_v41 = vld [vmem:[#allocation2 + $0xa9] sm:$0xff]  ;;  %v5007_v42 = vld [vmem:[#allocation2 + $0xb1] sm:$0xff] }
 0x157   : > { %5366 = vst.msk [vmem:[#allocation3 + $0x150] sm:$0xff] %vm4728_vm2, %v5158_v29  ;;  %v2805_v14 = vadd.f32 %v7616_v39, %v2804_v35  ;;  %v5261_v43 = vld [vmem:[#allocation2 + $0xaa] sm:$0xff]  ;;  %4754 = vst.msk [vmem:[#allocation2 + $0xc0] sm:$0xff] %vm4728_vm2, %v4280_v34  ;;  %v4297_v56 = vcombine.low %v4289_v30, %v4296_v59  ;;  %v7622_v44 = vrot.slane %v3605_v4, %v7402_v20  ;;  %v5262_v46 = vld [vmem:[#allocation2 + $0xb2] sm:$0xff]  ;;  %v2809_v23 = vpop.f32.mrb[48].mxu0 }
 0x158   : > { %4756 = vst.msk [vmem:[#allocation2 + $0xd0] sm:$0x3] %vm4731_vm3, %v4304_v32  ;;  %v3620_v45 = vcombine.high %v3612_v5, %v3612_v5  ;;  %v5031_v1 = vpack.c.bf16 %v5007_v42, %v5006_v41  ;;  %v4943_v48 = vld [vmem:[#allocation2 + $0xb0] sm:$0xff]  ;;  %v4306_v49 = vcombine.low %v3604_v38, %v3612_v5  ;;  %v2901_v58 = vmax.f32 %v2802_v40, 0.0  ;;  %v5581_v50 = vld [vmem:[#allocation3 + $0x1b8] sm:$0xff]  ;;  %v5575_v51 = vld [vmem:[#allocation3 + $0x188] sm:$0xff]  ;;  %v3084_v40 = vpop.permute.xlu0 %3083 }
 0x159   : > { %v2902_v11 = vmax.f32 %v2805_v14, 0.0  ;;  %4755 = vst.msk [vmem:[#allocation2 + $0xc8] sm:$0xff] %vm4728_vm2, %v4297_v56  ;;  %v4313_v8 = vrot.slane %v4305_v37, %v7402_v20  ;;  %5798 = vmatprep.subr.bf16.mxu0 %v5581_v50  ;;  %v5576_v9 = vld [vmem:[#allocation3 + $0x190] sm:$0xff]  ;;  %v5287_v0 = vpack.c.bf16 %v5262_v46, %v5261_v43  ;;  %v4967_v13 = vpack.c.bf16 %v4943_v48, %v4942_v47  ;;  %v5134_v15 = vld [vmem:[#allocation2 + $0xb0] sm:$0xff]  ;;  %v6513_v30 = vpop.f32.mrb[49].mxu0 }
 0x15a   : > { %v7627_v63 = vcombine.low %v3620_v45, %v7622_v44  ;;  %5047 = vst.msk [vmem:[#allocation3 + $0x200] sm:$0xff] %vm4728_vm2, %v5031_v1  ;;  %5239 = vst.msk [vmem:[#allocation3 + $0x1d0] sm:$0xff] %vm4728_vm2, %v5031_v1  ;;  %v5388_v55 = vld [vmem:[#allocation2 + $0xa9] sm:$0xff]  ;;  %v4320_v61 = vrot.slane %v4306_v49, %v7402_v20  ;;  %v3188_v16 = vmul.f32 %v3074_v53, %v2901_v58  ;;  %5902 = vmatprep.subr.bf16.mxu1 %v5576_v9  ;;  %v5580_v18 = vld [vmem:[#allocation3 + $0x1b0] sm:$0xff]  ;;  %v2812_v32 = vpop.f32.mrb[50].mxu0  ;;  %v3089_v49 = vpop.permute.xlu1 %3088 }
 0x15b   : > { %v3189_v17 = vmul.f32 %v3079_v54, %v2902_v11  ;;  %v5093_v19 = vpack.c.bf16 %v5067_v36, %v5066_v60  ;;  %v5389_v2 = vld [vmem:[#allocation2 + $0xb1] sm:$0xff]  ;;  %v3621_v22 = vcombine.high %v7622_v44, %v7622_v44  ;;  %5903 = vmatpush1.bf16.xpose.msra.mxu1 %v5575_v51  ;;  %5303 = vst.msk [vmem:[#allocation3 + $0x1d8] sm:$0xff] %vm4728_vm2, %v5287_v0  ;;  %4983 = vst.msk [vmem:[#allocation3 + $0x1f8] sm:$0xff] %vm4728_vm2, %v4967_v13  ;;  %v6514_v35 = vpop.f32.mrb[51].mxu0 }
 0x15c   : > { %v5070_v21 = vld [vmem:[#allocation2 + $0xaa] sm:$0xff]  ;;  %v5159_v57 = vpack.c.bf16 %v5134_v15, %v5133_v52  ;;  %v5415_v24 = vpack.c.bf16 %v5389_v2, %v5388_v55  ;;  %v5094_v25 = vpack.c.bf16 %v5069_v3, %v5068_v12  ;;  %v5071_v26 = vld [vmem:[#allocation2 + $0xb2] sm:$0xff]  ;;  %v4321_v27 = vcombine.low %v4313_v8, %v4320_v61 }
 0x15d   : > { %v3622_v28 = vcombine.high %v3188_v16, %v3188_v16  ;;  %v3629_v29 = vrot.slane %v3188_v16, %v7402_v20  ;;  %v3639_v62 = vcombine.high %v3189_v17, %v3189_v17  ;;  %5109 = vst.msk [vmem:[#allocation3 + $0x178] sm:$0xff] %vm4728_vm2, %v5093_v19  ;;  %5493 = vst.msk [vmem:[#allocation3 + $0x118] sm:$0xff] %vm4728_vm2, %v5093_v19  ;;  %5799 = vmatpush1.bf16.xpose.msra.mxu0 %v5580_v18 }
 0x15e   : > { %v3646_v10 = vrot.slane %v3189_v17, %v7402_v20  ;;  %v2810_v31 = vadd.f32 %v7616_v39, %v2809_v23  ;;  %5175 = vst.msk [vmem:[#allocation3 + $0x1c8] sm:$0xff] %vm4728_vm2, %v5159_v57  ;;  %5431 = vst.msk [vmem:[#allocation3 + $0x1a0] sm:$0xff] %vm4728_vm2, %v5415_v24  ;;  %v5095_v33 = vpack.c.bf16 %v5071_v26, %v5070_v21 }
 0x15f   : > { %5110 = vst.msk [vmem:[#allocation3 + $0x1c0] sm:$0xff] %vm4728_vm2, %v5094_v25  ;;  %5367 = vst.msk [vmem:[#allocation3 + $0x198] sm:$0xff] %vm4728_vm2, %v5159_v57  ;;  %v3636_v34 = vrot.slane %v3622_v28, %v7402_v20  ;;  %v3637_v59 = vcombine.high %v3629_v29, %v3629_v29  ;;  %v4323_v4 = vcombine.low %v3621_v22, %v3629_v29  ;;  %v2817_v9 = vpop.f32.mrb[52].mxu0  ;;  %v4944_v22 = vld [vmem:[#allocation2 + $0xc0] sm:$0xff] }
 0x160   : > { %5494 = vst.msk [vmem:[#allocation3 + $0x160] sm:$0xff] %vm4728_vm2, %v5094_v25  ;;  %4757 = vst.msk [vmem:[#allocation2 + $0xd8] sm:$0xff] %vm4728_vm2, %v4321_v27  ;;  %v3653_v5 = vrot.slane %v3639_v62, %v7402_v20  ;;  %v4330_v60 = vrot.slane %v7627_v63, %v7402_v20  ;;  %v3654_v36 = vcombine.high %v3646_v10, %v3646_v10  ;;  %v2903_v37 = vmax.f32 %v2810_v31, 0.0  ;;  %v5008_v56 = vld [vmem:[#allocation2 + $0xc1] sm:$0xff]  ;;  %v5009_v46 = vld [vmem:[#allocation2 + $0xc9] sm:$0xff]  ;;  %v6517_v61 = vpop.f32.mrb[53].mxu0  ;;  %v3094_v62 = vpop.permute.xlu0 %3093 }
 0x161   : > { %v2813_v38 = vadd.f32 %v7616_v39, %v2812_v32  ;;  %5111 = vst.msk [vmem:[#allocation3 + $0x208] sm:$0xff] %vm4728_vm2, %v5095_v33  ;;  %5495 = vst.msk [vmem:[#allocation3 + $0x1a8] sm:$0xff] %vm4728_vm2, %v5095_v33  ;;  %v3638_v14 = vcombine.high %v3636_v34, %v3636_v34  ;;  %v4337_v7 = vrot.slane %v4323_v4, %v7402_v20  ;;  %v5590_v43 = vld [vmem:[#allocation3 + $0x200] sm:$0xff]  ;;  %v5584_v12 = vld [vmem:[#allocation3 + $0x1d0] sm:$0xff]  ;;  %v2820_v21 = vpop.f32.mrb[54].mxu0 }
 0x162   : > { %v4345_v41 = vrot.slane %v3637_v59, %v7402_v20  ;;  %v3655_v42 = vcombine.high %v3653_v5, %v3653_v5  ;;  %v4347_v44 = vcombine.low %v3646_v10, %v3654_v36  ;;  %v3190_v45 = vmul.f32 %v3084_v40, %v2903_v37  ;;  %5800 = vmatprep.subr.bf16.mxu0 %v5590_v43  ;;  %v5263_v47 = vld [vmem:[#allocation2 + $0xc2] sm:$0xff]  ;;  %v5264_v48 = vld [vmem:[#allocation2 + $0xca] sm:$0xff]  ;;  %v6518_v26 = vpop.f32.mrb[55].mxu0  ;;  %v3099_v36 = vpop.permute.xlu1 %3098 }
 0x163   : > { %v2904_v1 = vmax.f32 %v2813_v38, 0.0  ;;  %v4338_v58 = vcombine.low %v4330_v60, %v4337_v7  ;;  %v4346_v11 = vcombine.low %v3636_v34, %v3638_v14  ;;  %v5585_v51 = vld [vmem:[#allocation3 + $0x1d8] sm:$0xff]  ;;  %v5032_v3 = vpack.c.bf16 %v5009_v46, %v5008_v56  ;;  %v5135_v33 = vld [vmem:[#allocation2 + $0xc0] sm:$0xff] }
 0x164   : > { %4759 = vst.msk [vmem:[#allocation2 + $0xe8] sm:$0x3] %vm4731_vm3, %v4345_v41  ;;  %v7657_v50 = vcombine.low %v3653_v5, %v3655_v42  ;;  %v5589_v52 = vld [vmem:[#allocation3 + $0x1f8] sm:$0xff]  ;;  %v4361_v53 = vrot.slane %v4347_v44, %v7402_v20  ;;  %v3656_v54 = vcombine.high %v3190_v45, %v3190_v45  ;;  %v3663_v8 = vrot.slane %v3190_v45, %v7402_v20 }
 0x165   : > { %v3191_v63 = vmul.f32 %v3089_v49, %v2904_v1  ;;  %5904 = vmatprep.subr.bf16.mxu1 %v5585_v51  ;;  %v4945_v0 = vld [vmem:[#allocation2 + $0xc8] sm:$0xff]  ;;  %v4354_v13 = vrot.slane %v4346_v11, %v7402_v20  ;;  %4758 = vst.msk [vmem:[#allocation2 + $0xe0] sm:$0xff] %vm4728_vm2, %v4338_v58  ;;  %v2818_v55 = vadd.f32 %v7616_v39, %v2817_v9  ;;  %5048 = vst.msk [vmem:[#allocation3 + $0x248] sm:$0xff] %vm4728_vm2, %v5032_v3 }
 0x166   : > { %v4371_v15 = vrot.slane %v7657_v50, %v7402_v20  ;;  %5905 = vmatpush1.bf16.xpose.msra.mxu1 %v5584_v12  ;;  %v5288_v16 = vpack.c.bf16 %v5264_v48, %v5263_v47  ;;  %5240 = vst.msk [vmem:[#allocation3 + $0x218] sm:$0xff] %vm4728_vm2, %v5032_v3  ;;  %v3670_v17 = vrot.slane %v3656_v54, %v7402_v20  ;;  %v5136_v23 = vld [vmem:[#allocation2 + $0xc8] sm:$0xff] }
 0x167   : > { %v3671_v18 = vcombine.high %v3663_v8, %v3663_v8  ;;  %v3673_v19 = vcombine.high %v3191_v63, %v3191_v63  ;;  %v3680_v2 = vrot.slane %v3191_v63, %v7402_v20  ;;  %5801 = vmatpush1.bf16.xpose.msra.mxu0 %v5589_v52  ;;  %v4362_v57 = vcombine.low %v4354_v13, %v4361_v53  ;;  %v5390_v28 = vld [vmem:[#allocation2 + $0xc1] sm:$0xff]  ;;  %v5391_v29 = vld [vmem:[#allocation2 + $0xc9] sm:$0xff]  ;;  %v2825_v45 = vpop.f32.mrb[56].mxu0  ;;  %v4946_v13 = vld [vmem:[#allocation2 + $0xd8] sm:$0xff] }
 0x168   : > { %v2905_v24 = vmax.f32 %v2818_v55, 0.0  ;;  %v2821_v25 = vadd.f32 %v7616_v39, %v2820_v21  ;;  %5304 = vst.msk [vmem:[#allocation3 + $0x220] sm:$0xff] %vm4728_vm2, %v5288_v16  ;;  %v4968_v27 = vpack.c.bf16 %v4945_v0, %v4944_v22  ;;  %v4386_v10 = vrot.slane %v3670_v17, %v7402_v20  ;;  %v5072_v35 = vld [vmem:[#allocation2 + $0xc2] sm:$0xff]  ;;  %v5073_v60 = vld [vmem:[#allocation2 + $0xca] sm:$0xff]  ;;  %v6521_v50 = vpop.f32.mrb[57].mxu0 }
 0x169   : > { %v4364_v30 = vcombine.low %v3663_v8, %v3671_v18  ;;  %v3672_v31 = vcombine.high %v3670_v17, %v3670_v17  ;;  %v3687_v32 = vrot.slane %v3673_v19, %v7402_v20  ;;  %4760 = vst.msk [vmem:[#allocation2 + $0xf0] sm:$0xff] %vm4728_vm2, %v4362_v57  ;;  %v3688_v34 = vcombine.high %v3680_v2, %v3680_v2  ;;  %v2828_v63 = vpop.f32.mrb[58].mxu0 }
 0x16a   : > { %v3192_v59 = vmul.f32 %v3094_v62, %v2905_v24  ;;  %v2906_v4 = vmax.f32 %v2821_v25, 0.0  ;;  %4984 = vst.msk [vmem:[#allocation3 + $0x240] sm:$0xff] %vm4728_vm2, %v4968_v27  ;;  %v5160_v5 = vpack.c.bf16 %v5136_v23, %v5135_v33  ;;  %v5416_v14 = vpack.c.bf16 %v5391_v29, %v5390_v28  ;;  %v6522_v18 = vpop.f32.mrb[59].mxu0  ;;  %v3104_v28 = vpop.permute.xlu0 %3103 }
 0x16b   : > { %v4378_v37 = vrot.slane %v4364_v30, %v7402_v20  ;;  %4762 = vst.msk [vmem:[#allocation2 + $0x100] sm:$0x3] %vm4731_vm3, %v4386_v10  ;;  %v4387_v38 = vcombine.low %v3672_v31, %v3680_v2  ;;  %v3689_v40 = vcombine.high %v3687_v32, %v3687_v32  ;;  %v4388_v7 = vcombine.low %v3688_v34, %v3687_v32 }
 0x16c   : > { %v3690_v41 = vcombine.high %v3192_v59, %v3192_v59  ;;  %v3697_v42 = vrot.slane %v3192_v59, %v7402_v20  ;;  %v3193_v43 = vmul.f32 %v3099_v36, %v2906_v4  ;;  %5176 = vst.msk [vmem:[#allocation3 + $0x210] sm:$0xff] %vm4728_vm2, %v5160_v5  ;;  %5368 = vst.msk [vmem:[#allocation3 + $0x1e0] sm:$0xff] %vm4728_vm2, %v5160_v5  ;;  %v5599_v44 = vld [vmem:[#allocation3 + $0x248] sm:$0xff]  ;;  %v5011_v51 = vld [vmem:[#allocation2 + $0xe1] sm:$0xff]  ;;  %v3109_v36 = vpop.permute.xlu1 %3108 }
 0x16d   : > { %v4379_v12 = vcombine.low %v4371_v15, %v4378_v37  ;;  %v4395_v56 = vrot.slane %v4387_v38, %v7402_v20  ;;  %v5010_v1 = vld [vmem:[#allocation2 + $0xd9] sm:$0xff]  ;;  %5432 = vst.msk [vmem:[#allocation3 + $0x1e8] sm:$0xff] %vm4728_vm2, %v5416_v14  ;;  %v5096_v46 = vpack.c.bf16 %v5073_v60, %v5072_v35  ;;  %v4402_v47 = vrot.slane %v4388_v7, %v7402_v20  ;;  %v5593_v11 = vld [vmem:[#allocation3 + $0x218] sm:$0xff] }
 0x16e   : > { %v3704_v48 = vrot.slane %v3690_v41, %v7402_v20  ;;  %v3705_v49 = vcombine.high %v3697_v42, %v3697_v42  ;;  %v4404_v58 = vcombine.low %v3689_v40, %v3697_v42  ;;  %5802 = vmatprep.subr.bf16.mxu0 %v5599_v44  ;;  %v5265_v52 = vld [vmem:[#allocation2 + $0xda] sm:$0xff]  ;;  %v3707_v3 = vcombine.high %v3193_v43, %v3193_v43  ;;  %v5266_v0 = vld [vmem:[#allocation2 + $0xe2] sm:$0xff] }
 0x16f   : > { %4761 = vst.msk [vmem:[#allocation2 + $0xf8] sm:$0xff] %vm4728_vm2, %v4379_v12  ;;  %v3714_v53 = vrot.slane %v3193_v43, %v7402_v20  ;;  %v5594_v54 = vld [vmem:[#allocation3 + $0x220] sm:$0xff]  ;;  %v2826_v8 = vadd.f32 %v7616_v39, %v2825_v45  ;;  %v5033_v9 = vpack.c.bf16 %v5011_v51, %v5010_v1  ;;  %v4947_v15 = vld [vmem:[#allocation2 + $0xe0] sm:$0xff]  ;;  %5112 = vst.msk [vmem:[#allocation3 + $0x250] sm:$0xff] %vm4728_vm2, %v5096_v46  ;;  %v2833_v14 = vpop.f32.mrb[60].mxu0 }
 0x170   : > { %5496 = vst.msk [vmem:[#allocation3 + $0x1f0] sm:$0xff] %vm4728_vm2, %v5096_v46  ;;  %v4403_v55 = vcombine.low %v4395_v56, %v4402_v47  ;;  %v3706_v61 = vcombine.high %v3704_v48, %v3704_v48  ;;  %v4405_v16 = vcombine.low %v3705_v49, %v3704_v48  ;;  %v4412_v17 = vrot.slane %v4404_v58, %v7402_v20  ;;  %v5392_v19 = vld [vmem:[#allocation2 + $0xd9] sm:$0xff]  ;;  %v5393_v2 = vld [vmem:[#allocation2 + $0xe1] sm:$0xff]  ;;  %v6525_v43 = vpop.f32.mrb[61].mxu0 }
 0x171   : > { %5906 = vmatprep.subr.bf16.mxu1 %v5594_v54  ;;  %v5329_v21 = vld [vmem:[#allocation2 + $0xe0] sm:$0xff]  ;;  %v3721_v22 = vrot.slane %v3707_v3, %v7402_v20  ;;  %v3722_v23 = vcombine.high %v3714_v53, %v3714_v53  ;;  %v2907_v57 = vmax.f32 %v2826_v8, 0.0  ;;  %v5598_v24 = vld [vmem:[#allocation3 + $0x240] sm:$0xff]  ;;  %v2829_v25 = vadd.f32 %v7616_v39, %v2828_v63  ;;  %5049 = vst.msk [vmem:[#allocation3 + $0x290] sm:$0xff] %vm4728_vm2, %v5033_v9  ;;  %v5328_v59 = vld [vmem:[#allocation2 + $0xd8] sm:$0xff]  ;;  %v2836_v47 = vpop.f32.mrb[62].mxu0  ;;  %v3114_v54 = vpop.permute.xlu0 %3113 }
 0x172   : > { %5907 = vmatpush1.bf16.xpose.msra.mxu1 %v5593_v11  ;;  %5241 = vst.msk [vmem:[#allocation3 + $0x260] sm:$0xff] %vm4728_vm2, %v5033_v9  ;;  %v5074_v26 = vld [vmem:[#allocation2 + $0xda] sm:$0xff]  ;;  %v5075_v27 = vld [vmem:[#allocation2 + $0xe2] sm:$0xff]  ;;  %4763 = vst.msk [vmem:[#allocation2 + $0x108] sm:$0xff] %vm4728_vm2, %v4403_v55  ;;  %v4419_v29 = vrot.slane %v4405_v16, %v7402_v20  ;;  %v4427_v62 = vrot.slane %v3706_v61, %v7402_v20  ;;  %5803 = vmatpush1.bf16.xpose.msra.mxu0 %v5598_v24  ;;  %v6526_v3 = vpop.f32.mrb[63].mxu0 }
 0x173   : > { %v5289_v30 = vpack.c.bf16 %v5266_v0, %v5265_v52  ;;  %v4969_v10 = vpack.c.bf16 %v4947_v15, %v4946_v13  ;;  %v3723_v31 = vcombine.high %v3721_v22, %v3721_v22  ;;  %v4428_v32 = vcombine.low %v3714_v53, %v3722_v23  ;;  %v4948_v13 = vld [vmem:[#allocation2 + $0xf0] sm:$0xff] }
 0x174   : > { %v3194_v33 = vmul.f32 %v3104_v28, %v2907_v57  ;;  %v2908_v34 = vmax.f32 %v2829_v25, 0.0  ;;  %v4420_v4 = vcombine.low %v4412_v17, %v4419_v29  ;;  %4765 = vst.msk [vmem:[#allocation2 + $0x118] sm:$0x3] %vm4731_vm3, %v4427_v62  ;;  %v5417_v5 = vpack.c.bf16 %v5393_v2, %v5392_v19  ;;  %v3119_v25 = vpop.permute.xlu1 %3118 }
 0x175   : > { %5305 = vst.msk [vmem:[#allocation3 + $0x268] sm:$0xff] %vm4728_vm2, %v5289_v30  ;;  %4985 = vst.msk [vmem:[#allocation3 + $0x288] sm:$0xff] %vm4728_vm2, %v4969_v10  ;;  %v5353_v35 = vpack.c.bf16 %v5329_v21, %v5328_v59  ;;  %v5097_v60 = vpack.c.bf16 %v5075_v27, %v5074_v26  ;;  %v4429_v37 = vcombine.low %v3721_v22, %v3723_v31 }
 0x176   : > { %5177 = vst.msk [vmem:[#allocation3 + $0x258] sm:$0xff] %vm4728_vm2, %v4969_v10  ;;  %v3724_v38 = vcombine.high %v3194_v33, %v3194_v33  ;;  %v3731_v40 = vrot.slane %v3194_v33, %v7402_v20  ;;  %4764 = vst.msk [vmem:[#allocation2 + $0x110] sm:$0xff] %vm4728_vm2, %v4420_v4  ;;  %v4436_v7 = vrot.slane %v4428_v32, %v7402_v20  ;;  %v5012_v12 = vld [vmem:[#allocation2 + $0xf1] sm:$0xff]  ;;  %v5013_v56 = vld [vmem:[#allocation2 + $0xf9] sm:$0xff] }
 0x177   : > { %v3195_v41 = vmul.f32 %v3109_v36, %v2908_v34  ;;  %v2834_v42 = vadd.f32 %v7616_v39, %v2833_v14  ;;  %v5267_v44 = vld [vmem:[#allocation2 + $0xf2] sm:$0xff]  ;;  %5433 = vst.msk [vmem:[#allocation3 + $0x230] sm:$0xff] %vm4728_vm2, %v5417_v5  ;;  %5369 = vst.msk [vmem:[#allocation3 + $0x228] sm:$0xff] %vm4728_vm2, %v5353_v35  ;;  %v4443_v45 = vrot.slane %v4429_v37, %v7402_v20  ;;  %v5268_v49 = vld [vmem:[#allocation2 + $0xfa] sm:$0xff]  ;;  %v2841_v10 = vpop.f32.mrb[64].mxu0 }
 0x178   : > { %5113 = vst.msk [vmem:[#allocation3 + $0x298] sm:$0xff] %vm4728_vm2, %v5097_v60  ;;  %5497 = vst.msk [vmem:[#allocation3 + $0x238] sm:$0xff] %vm4728_vm2, %v5097_v60  ;;  %v3738_v1 = vrot.slane %v3724_v38, %v7402_v20  ;;  %v3739_v46 = vcombine.high %v3731_v40, %v3731_v40  ;;  %v5034_v48 = vpack.c.bf16 %v5013_v56, %v5012_v12  ;;  %v5608_v51 = vld [vmem:[#allocation3 + $0x290] sm:$0xff]  ;;  %v4949_v53 = vld [vmem:[#allocation2 + $0xf8] sm:$0xff]  ;;  %v6529_v4 = vpop.f32.mrb[65].mxu0 }
 0x179   : > { %v3741_v58 = vcombine.high %v3195_v41, %v3195_v41  ;;  %v3748_v11 = vrot.slane %v3195_v41, %v7402_v20  ;;  %v2909_v50 = vmax.f32 %v2834_v42, 0.0  ;;  %v2837_v52 = vadd.f32 %v7616_v39, %v2836_v47  ;;  %5804 = vmatprep.subr.bf16.mxu0 %v5608_v51  ;;  %v5602_v17 = vld [vmem:[#allocation3 + $0x260] sm:$0xff]  ;;  %v5459_v19 = vld [vmem:[#allocation2 + $0xfa] sm:$0xff] }
 0x17a   : > { %v4444_v8 = vcombine.low %v4436_v7, %v4443_v45  ;;  %v3740_v63 = vcombine.high %v3738_v1, %v3738_v1  ;;  %v4445_v9 = vcombine.low %v3731_v40, %v3739_v46  ;;  %5050 = vst.msk [vmem:[#allocation3 + $0x2d8] sm:$0xff] %vm4728_vm2, %v5034_v48  ;;  %v5290_v0 = vpack.c.bf16 %v5268_v49, %v5267_v44  ;;  %v5458_v18 = vld [vmem:[#allocation2 + $0xf2] sm:$0xff]  ;;  %v2844_v40 = vpop.f32.mrb[66].mxu0 }
 0x17b   : > { %5242 = vst.msk [vmem:[#allocation3 + $0x2a8] sm:$0xff] %vm4728_vm2, %v5034_v48  ;;  %5434 = vst.msk [vmem:[#allocation3 + $0x278] sm:$0xff] %vm4728_vm2, %v5034_v48  ;;  %v3755_v15 = vrot.slane %v3741_v58, %v7402_v20  ;;  %v3756_v55 = vcombine.high %v3748_v11, %v3748_v11  ;;  %v4468_v61 = vrot.slane %v3748_v11, %v7402_v20  ;;  %v2910_v23 = vmax.f32 %v2837_v52, 0.0  ;;  %v6530_v43 = vpop.f32.mrb[67].mxu0  ;;  %v3124_v11 = vpop.permute.xlu0 %3123 }
 0x17c   : > { %v3196_v16 = vmul.f32 %v3114_v54, %v2909_v50  ;;  %4766 = vst.msk [vmem:[#allocation2 + $0x120] sm:$0xff] %vm4728_vm2, %v4444_v8  ;;  %v4446_v2 = vcombine.low %v3738_v1, %v3740_v63  ;;  %v4453_v21 = vrot.slane %v4445_v9, %v7402_v20  ;;  %v5603_v22 = vld [vmem:[#allocation3 + $0x268] sm:$0xff]  ;;  %5306 = vst.msk [vmem:[#allocation3 + $0x2b0] sm:$0xff] %vm4728_vm2, %v5290_v0  ;;  %v3129_v8 = vpop.permute.xlu1 %3128 }
 0x17d   : > { %v5607_v57 = vld [vmem:[#allocation3 + $0x288] sm:$0xff]  ;;  %v4970_v24 = vpack.c.bf16 %v4949_v53, %v4948_v13  ;;  %5114 = vst.msk [vmem:[#allocation3 + $0x2e0] sm:$0xff] %vm4728_vm2, %v5290_v0  ;;  %v4469_v26 = vcombine.low %v3756_v55, %v3755_v15  ;;  %v3757_v27 = vcombine.high %v3755_v15, %v3755_v15  ;;  %5908 = vmatprep.subr.bf16.mxu1 %v5603_v22  ;;  %v5014_v5 = vld [vmem:[#allocation2 + $0x109] sm:$0xff] }
 0x17e   : > { %4768 = vst.msk [vmem:[#allocation2 + $0x130] sm:$0x3] %vm4731_vm3, %v4468_v61  ;;  %v3758_v28 = vcombine.high %v3196_v16, %v3196_v16  ;;  %v3765_v29 = vrot.slane %v3196_v16, %v7402_v20  ;;  %v4460_v62 = vrot.slane %v4446_v2, %v7402_v20  ;;  %v3197_v30 = vmul.f32 %v3119_v25, %v2910_v23  ;;  %v5015_v35 = vld [vmem:[#allocation2 + $0x111] sm:$0xff]  ;;  %v4950_v15 = vld [vmem:[#allocation2 + $0x108] sm:$0xff] }
 0x17f   : > { %5805 = vmatpush1.bf16.xpose.msra.mxu0 %v5607_v57  ;;  %5909 = vmatpush1.bf16.xpose.msra.mxu1 %v5602_v17  ;;  %4986 = vst.msk [vmem:[#allocation3 + $0x2d0] sm:$0xff] %vm4728_vm2, %v4970_v24  ;;  %5178 = vst.msk [vmem:[#allocation3 + $0x2a0] sm:$0xff] %vm4728_vm2, %v4970_v24  ;;  %v5482_v31 = vpack.c.bf16 %v5459_v19, %v5458_v18  ;;  %v4477_v32 = vrot.slane %v4469_v26, %v7402_v20  ;;  %v5269_v56 = vld [vmem:[#allocation2 + $0x10a] sm:$0xff]  ;;  %v5270_v44 = vld [vmem:[#allocation2 + $0x112] sm:$0xff]  ;;  %v2849_v22 = vpop.f32.mrb[68].mxu0  ;;  %v3134_v4 = vpop.permute.xlu0 %3133 }
 0x180   : > { %5370 = vst.msk [vmem:[#allocation3 + $0x270] sm:$0xff] %vm4728_vm2, %v4970_v24  ;;  %v3772_v33 = vrot.slane %v3758_v28, %v7402_v20  ;;  %v3773_v34 = vcombine.high %v3765_v29, %v3765_v29  ;;  %v4470_v59 = vcombine.low %v3757_v27, %v3765_v29  ;;  %v4461_v60 = vcombine.low %v4453_v21, %v4460_v62  ;;  %v4951_v48 = vld [vmem:[#allocation2 + $0x110] sm:$0xff]  ;;  %v6533_v26 = vpop.f32.mrb[69].mxu0 }
 0x181   : > { %v3775_v36 = vcombine.high %v3197_v30, %v3197_v30  ;;  %v3782_v37 = vrot.slane %v3197_v30, %v7402_v20  ;;  %v2842_v38 = vadd.f32 %v7616_v39, %v2841_v10  ;;  %5498 = vst.msk [vmem:[#allocation3 + $0x280] sm:$0xff] %vm4728_vm2, %v5482_v31  ;;  %v2845_v42 = vadd.f32 %v7616_v39, %v2844_v40  ;;  %v5617_v12 = vld [vmem:[#allocation3 + $0x2d8] sm:$0xff]  ;;  %v5461_v58 = vld [vmem:[#allocation2 + $0x112] sm:$0xff]  ;;  %v2852_v29 = vpop.f32.mrb[70].mxu0 }
 0x182   : > { %v4484_v14 = vrot.slane %v4470_v59, %v7402_v20  ;;  %v4486_v7 = vcombine.low %v3773_v34, %v3772_v33  ;;  %v3774_v41 = vcombine.high %v3772_v33, %v3772_v33  ;;  %4767 = vst.msk [vmem:[#allocation2 + $0x128] sm:$0xff] %vm4728_vm2, %v4461_v60  ;;  %5806 = vmatprep.subr.bf16.mxu0 %v5617_v12  ;;  %v5460_v49 = vld [vmem:[#allocation2 + $0x10a] sm:$0xff]  ;;  %v5611_v54 = vld [vmem:[#allocation3 + $0x2a8] sm:$0xff] }
 0x183   : > { %v3789_v45 = vrot.slane %v3775_v36, %v7402_v20  ;;  %v3790_v1 = vcombine.high %v3782_v37, %v3782_v37  ;;  %v2911_v46 = vmax.f32 %v2842_v38, 0.0  ;;  %v5035_v47 = vpack.c.bf16 %v5015_v35, %v5014_v5  ;;  %v5612_v53 = vld [vmem:[#allocation3 + $0x2b0] sm:$0xff] }
 0x184   : > { %v4485_v50 = vcombine.low %v4477_v32, %v4484_v14  ;;  %v4494_v51 = vrot.slane %v4486_v7, %v7402_v20  ;;  %v4487_v52 = vcombine.low %v3774_v41, %v3782_v37  ;;  %v2912_v3 = vmax.f32 %v2845_v42, 0.0  ;;  %5910 = vmatprep.subr.bf16.mxu1 %v5612_v53  ;;  %v6534_v32 = vpop.f32.mrb[71].mxu0 }
 0x185   : > { %v3791_v63 = vcombine.high %v3789_v45, %v3789_v45  ;;  %v4509_v9 = vrot.slane %v3790_v1, %v7402_v20  ;;  %v3198_v0 = vmul.f32 %v3124_v11, %v2911_v46  ;;  %5051 = vst.msk [vmem:[#allocation3 + $0x320] sm:$0xff] %vm4728_vm2, %v5035_v47  ;;  %v5291_v13 = vpack.c.bf16 %v5270_v44, %v5269_v56  ;;  %v4952_v46 = vld [vmem:[#allocation2 + $0x120] sm:$0xff]  ;;  %v3144_v32 = vpop.permute.xlu0 %3143 }
 0x186   : > { %5243 = vst.msk [vmem:[#allocation3 + $0x2f0] sm:$0xff] %vm4728_vm2, %v5035_v47  ;;  %5435 = vst.msk [vmem:[#allocation3 + $0x2c0] sm:$0xff] %vm4728_vm2, %v5035_v47  ;;  %v4501_v55 = vrot.slane %v4487_v52, %v7402_v20  ;;  %v3199_v61 = vmul.f32 %v3129_v8, %v2912_v3  ;;  %v5616_v16 = vld [vmem:[#allocation3 + $0x2d0] sm:$0xff]  ;;  %v4971_v17 = vpack.c.bf16 %v4951_v48, %v4950_v15  ;;  %v3139_v48 = vpop.permute.xlu1 %3138 }
 0x187   : > { %4769 = vst.msk [vmem:[#allocation2 + $0x138] sm:$0xff] %vm4728_vm2, %v4485_v50  ;;  %v5483_v18 = vpack.c.bf16 %v5461_v58, %v5460_v49  ;;  %v4510_v19 = vcombine.low %v3789_v45, %v3791_v63  ;;  %v3792_v2 = vcombine.high %v3198_v0, %v3198_v0  ;;  %v3799_v21 = vrot.slane %v3198_v0, %v7402_v20  ;;  %v2857_v8 = vpop.f32.mrb[72].mxu0 }
 0x188   : > { %4771 = vst.msk [vmem:[#allocation2 + $0x148] sm:$0x3] %vm4731_vm3, %v4509_v9  ;;  %5807 = vmatpush1.bf16.xpose.msra.mxu0 %v5616_v16  ;;  %5911 = vmatpush1.bf16.xpose.msra.mxu1 %v5611_v54  ;;  %v4502_v23 = vcombine.low %v4494_v51, %v4501_v55  ;;  %v3809_v57 = vcombine.high %v3199_v61, %v3199_v61  ;;  %v6537_v15 = vpop.f32.mrb[73].mxu0 }
 0x189   : > { %5307 = vst.msk [vmem:[#allocation3 + $0x2f8] sm:$0xff] %vm4728_vm2, %v5291_v13  ;;  %5115 = vst.msk [vmem:[#allocation3 + $0x328] sm:$0xff] %vm4728_vm2, %v5291_v13  ;;  %v3816_v24 = vrot.slane %v3199_v61, %v7402_v20  ;;  %v2850_v25 = vadd.f32 %v7616_v39, %v2849_v22  ;;  %v3806_v27 = vrot.slane %v3792_v2, %v7402_v20  ;;  %v5016_v33 = vld [vmem:[#allocation2 + $0x121] sm:$0xff]  ;;  %v5017_v34 = vld [vmem:[#allocation2 + $0x129] sm:$0xff] }
 0x18a   : > { %4987 = vst.msk [vmem:[#allocation3 + $0x318] sm:$0xff] %vm4728_vm2, %v4971_v17  ;;  %5179 = vst.msk [vmem:[#allocation3 + $0x2e8] sm:$0xff] %vm4728_vm2, %v4971_v17  ;;  %v3807_v28 = vcombine.high %v3799_v21, %v3799_v21  ;;  %v3823_v62 = vrot.slane %v3809_v57, %v7402_v20  ;;  %v2853_v31 = vadd.f32 %v7616_v39, %v2852_v29  ;;  %v5271_v59 = vld [vmem:[#allocation2 + $0x122] sm:$0xff]  ;;  %v5272_v37 = vld [vmem:[#allocation2 + $0x12a] sm:$0xff] }
 0x18b   : > { %5371 = vst.msk [vmem:[#allocation3 + $0x2b8] sm:$0xff] %vm4728_vm2, %v4971_v17  ;;  %5499 = vst.msk [vmem:[#allocation3 + $0x2c8] sm:$0xff] %vm4728_vm2, %v5483_v18  ;;  %v3824_v30 = vcombine.high %v3816_v24, %v3816_v24  ;;  %v2913_v10 = vmax.f32 %v2850_v25, 0.0  ;;  %v4518_v5 = vrot.slane %v4510_v19, %v7402_v20  ;;  %v3808_v35 = vcombine.high %v3806_v27, %v3806_v27  ;;  %v4953_v38 = vld [vmem:[#allocation2 + $0x128] sm:$0xff]  ;;  %v2860_v18 = vpop.f32.mrb[74].mxu0 }
 0x18c   : > { %4770 = vst.msk [vmem:[#allocation2 + $0x140] sm:$0xff] %vm4728_vm2, %v4502_v23  ;;  %v4511_v60 = vcombine.low %v3799_v21, %v3807_v28  ;;  %v5036_v36 = vpack.c.bf16 %v5017_v34, %v5016_v33  ;;  %v4550_v14 = vrot.slane %v3823_v62, %v7402_v20  ;;  %v3825_v41 = vcombine.high %v3823_v62, %v3823_v62  ;;  %v5626_v42 = vld [vmem:[#allocation3 + $0x320] sm:$0xff]  ;;  %v5462_v43 = vld [vmem:[#allocation2 + $0x122] sm:$0xff]  ;;  %v6538_v25 = vpop.f32.mrb[75].mxu0 }
 0x18d   : > { %v4528_v40 = vcombine.low %v3816_v24, %v3824_v30  ;;  %v3200_v7 = vmul.f32 %v3134_v4, %v2913_v10  ;;  %v4527_v56 = vcombine.low %v3806_v27, %v3808_v35  ;;  %v2914_v44 = vmax.f32 %v2853_v31, 0.0  ;;  %5808 = vmatprep.subr.bf16.mxu0 %v5626_v42  ;;  %v5620_v45 = vld [vmem:[#allocation3 + $0x2f0] sm:$0xff]  ;;  %v5463_v47 = vld [vmem:[#allocation2 + $0x12a] sm:$0xff] }
 0x18e   : > { %v4525_v12 = vrot.slane %v4511_v60, %v7402_v20  ;;  %5052 = vst.msk [vmem:[#allocation3 + $0x368] sm:$0xff] %vm4728_vm2, %v5036_v36  ;;  %v5292_v1 = vpack.c.bf16 %v5272_v37, %v5271_v59  ;;  %5244 = vst.msk [vmem:[#allocation3 + $0x338] sm:$0xff] %vm4728_vm2, %v5036_v36  ;;  %v4972_v51 = vpack.c.bf16 %v4953_v38, %v4952_v46  ;;  %v4954_v35 = vld [vmem:[#allocation2 + $0x138] sm:$0xff]  ;;  %v3149_v60 = vpop.permute.xlu1 %3148 }
 0x18f   : > { %5436 = vst.msk [vmem:[#allocation3 + $0x308] sm:$0xff] %vm4728_vm2, %v5036_v36  ;;  %v4542_v49 = vrot.slane %v4528_v40, %v7402_v20  ;;  %v3826_v58 = vcombine.high %v3200_v7, %v3200_v7  ;;  %v3833_v11 = vrot.slane %v3200_v7, %v7402_v20  ;;  %v4535_v3 = vrot.slane %v4527_v56, %v7402_v20 }
 0x190   : > { %4774 = vst.msk [vmem:[#allocation2 + $0x160] sm:$0x3] %vm4731_vm3, %v4550_v14  ;;  %v5621_v50 = vld [vmem:[#allocation3 + $0x2f8] sm:$0xff]  ;;  %v4526_v52 = vcombine.low %v4518_v5, %v4525_v12  ;;  %v3201_v53 = vmul.f32 %v3139_v48, %v2914_v44  ;;  %v5484_v63 = vpack.c.bf16 %v5463_v47, %v5462_v43  ;;  %v2858_v17 = vadd.f32 %v7616_v39, %v2857_v8  ;;  %v2865_v47 = vpop.f32.mrb[76].mxu0 }
 0x191   : > { %5912 = vmatprep.subr.bf16.mxu1 %v5621_v50  ;;  %v5625_v54 = vld [vmem:[#allocation3 + $0x318] sm:$0xff]  ;;  %5308 = vst.msk [vmem:[#allocation3 + $0x340] sm:$0xff] %vm4728_vm2, %v5292_v1  ;;  %5116 = vst.msk [vmem:[#allocation3 + $0x370] sm:$0xff] %vm4728_vm2, %v5292_v1  ;;  %v3840_v9 = vrot.slane %v3826_v58, %v7402_v20  ;;  %v3841_v0 = vcombine.high %v3833_v11, %v3833_v11  ;;  %v4551_v13 = vcombine.low %v3825_v41, %v3833_v11  ;;  %v6541_v11 = vpop.f32.mrb[77].mxu0 }
 0x192   : > { %5809 = vmatpush1.bf16.xpose.msra.mxu0 %v5625_v54  ;;  %5913 = vmatpush1.bf16.xpose.msra.mxu1 %v5620_v45  ;;  %4988 = vst.msk [vmem:[#allocation3 + $0x360] sm:$0xff] %vm4728_vm2, %v4972_v51  ;;  %5180 = vst.msk [vmem:[#allocation3 + $0x330] sm:$0xff] %vm4728_vm2, %v4972_v51  ;;  %v4543_v55 = vcombine.low %v4535_v3, %v4542_v49  ;;  %v3843_v61 = vcombine.high %v3201_v53, %v3201_v53  ;;  %v2915_v62 = vmax.f32 %v2858_v17, 0.0  ;;  %v2868_v3 = vpop.f32.mrb[78].mxu0 }
 0x193   : > { %5372 = vst.msk [vmem:[#allocation3 + $0x300] sm:$0xff] %vm4728_vm2, %v4972_v51  ;;  %4772 = vst.msk [vmem:[#allocation2 + $0x150] sm:$0xff] %vm4728_vm2, %v4526_v52  ;;  %v3850_v16 = vrot.slane %v3201_v53, %v7402_v20  ;;  %v5018_v19 = vld [vmem:[#allocation2 + $0x139] sm:$0xff]  ;;  %v5019_v2 = vld [vmem:[#allocation2 + $0x141] sm:$0xff]  ;;  %v4552_v22 = vcombine.low %v3841_v0, %v3840_v9  ;;  %v4559_v23 = vrot.slane %v4551_v13, %v7402_v20 }
 0x194   : > { %v5273_v21 = vld [vmem:[#allocation2 + $0x13a] sm:$0xff]  ;;  %5500 = vst.msk [vmem:[#allocation3 + $0x310] sm:$0xff] %vm4728_vm2, %v5484_v63  ;;  %v3842_v57 = vcombine.high %v3840_v9, %v3840_v9  ;;  %v2861_v24 = vadd.f32 %v7616_v39, %v2860_v18  ;;  %v5274_v26 = vld [vmem:[#allocation2 + $0x142] sm:$0xff]  ;;  %4773 = vst.msk [vmem:[#allocation2 + $0x158] sm:$0xff] %vm4728_vm2, %v4543_v55  ;;  %v3857_v28 = vrot.slane %v3843_v61, %v7402_v20  ;;  %v6542_v9 = vpop.f32.mrb[79].mxu0  ;;  %v3154_v55 = vpop.permute.xlu0 %3153 }
 0x195   : > { %v4955_v27 = vld [vmem:[#allocation2 + $0x140] sm:$0xff]  ;;  %v3858_v29 = vcombine.high %v3850_v16, %v3850_v16  ;;  %v5037_v30 = vpack.c.bf16 %v5019_v2, %v5018_v19  ;;  %v4566_v33 = vrot.slane %v4552_v22, %v7402_v20  ;;  %v5635_v4 = vld [vmem:[#allocation3 + $0x368] sm:$0xff]  ;;  %v5293_v5 = vpack.c.bf16 %v5274_v26, %v5273_v21  ;;  %v5629_v40 = vld [vmem:[#allocation3 + $0x338] sm:$0xff] }
 0x196   : > { %v5464_v10 = vld [vmem:[#allocation2 + $0x13a] sm:$0xff]  ;;  %v5465_v31 = vld [vmem:[#allocation2 + $0x142] sm:$0xff]  ;;  %v4568_v34 = vcombine.low %v3842_v57, %v3850_v16  ;;  %v2916_v59 = vmax.f32 %v2861_v24, 0.0  ;;  %v3859_v36 = vcombine.high %v3857_v28, %v3857_v28  ;;  %v3202_v38 = vmul.f32 %v3144_v32, %v2915_v62  ;;  %5810 = vmatprep.subr.bf16.mxu0 %v5635_v4  ;;  %v3159_v62 = vpop.permute.xlu1 %3158 }
 0x197   : > { %v4569_v37 = vcombine.low %v3858_v29, %v3857_v28  ;;  %5053 = vst.msk [vmem:[#allocation3 + $0x3b0] sm:$0xff] %vm4728_vm2, %v5037_v30  ;;  %v4973_v14 = vpack.c.bf16 %v4955_v27, %v4954_v35  ;;  %5245 = vst.msk [vmem:[#allocation3 + $0x380] sm:$0xff] %vm4728_vm2, %v5037_v30  ;;  %v4567_v7 = vcombine.low %v4559_v23, %v4566_v33  ;;  %v2873_v35 = vpop.f32.mrb[80].mxu0 }
 0x198   : > { %5437 = vst.msk [vmem:[#allocation3 + $0x350] sm:$0xff] %vm4728_vm2, %v5037_v30  ;;  %v4576_v41 = vrot.slane %v4568_v34, %v7402_v20  ;;  %v3203_v42 = vmul.f32 %v3149_v60, %v2916_v59  ;;  %v5630_v43 = vld [vmem:[#allocation3 + $0x340] sm:$0xff]  ;;  %5309 = vst.msk [vmem:[#allocation3 + $0x388] sm:$0xff] %vm4728_vm2, %v5293_v5  ;;  %v5485_v12 = vpack.c.bf16 %v5465_v31, %v5464_v10 }
 0x199   : > { %5117 = vst.msk [vmem:[#allocation3 + $0x3b8] sm:$0xff] %vm4728_vm2, %v5293_v5  ;;  %v4583_v56 = vrot.slane %v4569_v37, %v7402_v20  ;;  %v4591_v44 = vrot.slane %v3859_v36, %v7402_v20  ;;  %v3860_v45 = vcombine.high %v3202_v38, %v3202_v38  ;;  %v3867_v1 = vrot.slane %v3202_v38, %v7402_v20  ;;  %v5634_v46 = vld [vmem:[#allocation3 + $0x360] sm:$0xff] }
 0x19a   : > { %5914 = vmatprep.subr.bf16.mxu1 %v5630_v43  ;;  %4989 = vst.msk [vmem:[#allocation3 + $0x3a8] sm:$0xff] %vm4728_vm2, %v4973_v14  ;;  %5181 = vst.msk [vmem:[#allocation3 + $0x378] sm:$0xff] %vm4728_vm2, %v4973_v14  ;;  %v3877_v48 = vcombine.high %v3203_v42, %v3203_v42  ;;  %v3884_v49 = vrot.slane %v3203_v42, %v7402_v20  ;;  %5811 = vmatpush1.bf16.xpose.msra.mxu0 %v5634_v46  ;;  %v4956_v24 = vld [vmem:[#allocation2 + $0x150] sm:$0xff]  ;;  %v6640_v43 = vld [vmem:[%s7935_s7] ss:$0 sm:$0xff] }
 0x19b   : > { %5373 = vst.msk [vmem:[#allocation3 + $0x348] sm:$0xff] %vm4728_vm2, %v4973_v14  ;;  %4775 = vst.msk [vmem:[#allocation2 + $0x168] sm:$0xff] %vm4728_vm2, %v4567_v7  ;;  %5915 = vmatpush1.bf16.xpose.msra.mxu1 %v5629_v40  ;;  %v2866_v58 = vadd.f32 %v7616_v39, %v2865_v47  ;;  %v4584_v50 = vcombine.low %v4576_v41, %v4583_v56  ;;  %v3874_v51 = vrot.slane %v3860_v45, %v7402_v20  ;;  %v5020_v0 = vld [vmem:[#allocation2 + $0x151] sm:$0xff]  ;;  %v5021_v13 = vld [vmem:[#allocation2 + $0x159] sm:$0xff]  ;;  %v6545_v14 = vpop.f32.mrb[81].mxu0 }
 0x19c   : > { %5501 = vst.msk [vmem:[#allocation3 + $0x358] sm:$0xff] %vm4728_vm2, %v5485_v12  ;;  %v3875_v52 = vcombine.high %v3867_v1, %v3867_v1  ;;  %v3891_v53 = vrot.slane %v3877_v48, %v7402_v20  ;;  %v3892_v54 = vcombine.high %v3884_v49, %v3884_v49  ;;  %v2869_v63 = vadd.f32 %v7616_v39, %v2868_v3  ;;  %v5275_v15 = vld [vmem:[#allocation2 + $0x152] sm:$0xff]  ;;  %v5276_v18 = vld [vmem:[#allocation2 + $0x15a] sm:$0xff] }
 0x19d   : > { %4777 = vst.msk [vmem:[#allocation2 + $0x178] sm:$0x3] %vm4731_vm3, %v4591_v44  ;;  %v2917_v8 = vmax.f32 %v2866_v58, 0.0  ;;  %v3876_v61 = vcombine.high %v3874_v51, %v3874_v51  ;;  %v5038_v17 = vpack.c.bf16 %v5021_v13, %v5020_v0  ;;  %v4957_v19 = vld [vmem:[#allocation2 + $0x158] sm:$0xff]  ;;  %v5294_v27 = vpack.c.bf16 %v5276_v18, %v5275_v15  ;;  %v2876_v44 = vpop.f32.mrb[82].mxu0 }
 0x19e   : > { %4776 = vst.msk [vmem:[#allocation2 + $0x170] sm:$0xff] %vm4728_vm2, %v4584_v50  ;;  %v4592_v16 = vcombine.low %v3867_v1, %v3875_v52  ;;  %v3893_v2 = vcombine.high %v3891_v53, %v3891_v53  ;;  %v4609_v21 = vcombine.low %v3884_v49, %v3892_v54  ;;  %v2918_v23 = vmax.f32 %v2869_v63, 0.0  ;;  %v5644_v57 = vld [vmem:[#allocation3 + $0x3b0] sm:$0xff]  ;;  %v5466_v25 = vld [vmem:[#allocation2 + $0x152] sm:$0xff]  ;;  %v6546_v58 = vpop.f32.mrb[83].mxu0  ;;  %v5533_v44 = vld [vmem:[#allocation3 + $0x38] sm:$0xff] }
 0x19f   : > { %v3204_v22 = vmul.f32 %v3154_v55, %v2917_v8  ;;  %v4593_v39 = vcombine.low %v3874_v51, %v3876_v61  ;;  %5812 = vmatprep.subr.bf16.mxu0 %v5644_v57  ;;  %v5639_v26 = vld [vmem:[#allocation3 + $0x388] sm:$0xff]  ;;  %5054 = vst.msk [vmem:[#allocation3 + $0x3f8] sm:$0xff] %vm4728_vm2, %v5038_v17  ;;  %v4974_v28 = vpack.c.bf16 %v4957_v19, %v4956_v24  ;;  %5246 = vst.msk [vmem:[#allocation3 + $0x3c8] sm:$0xff] %vm4728_vm2, %v5038_v17  ;;  %v5638_v34 = vld [vmem:[#allocation3 + $0x380] sm:$0xff]  ;;  %v3164_v8 = vpop.permute.xlu0 %3163 }
 0x1a0   : > { %5438 = vst.msk [vmem:[#allocation3 + $0x398] sm:$0xff] %vm4728_vm2, %v5038_v17  ;;  %v5467_v29 = vld [vmem:[#allocation2 + $0x15a] sm:$0xff]  ;;  %v4600_v30 = vrot.slane %v4592_v16, %v7402_v20  ;;  %v4610_v10 = vcombine.low %v3891_v53, %v3893_v2  ;;  %5916 = vmatprep.subr.bf16.mxu1 %v5639_v26  ;;  %v4617_v4 = vrot.slane %v4609_v21, %v7402_v20  ;;  %5310 = vst.msk [vmem:[#allocation3 + $0x3d0] sm:$0xff] %vm4728_vm2, %v5294_v27  ;;  %v6619_v58 = vld [vmem:[%s7932_s4 + $0xc] ss:$36 sps:$4 sm:$0xff]  }
 0x1a1   : > { %v3894_v31 = vcombine.high %v3204_v22, %v3204_v22  ;;  %v3901_v32 = vrot.slane %v3204_v22, %v7402_v20  ;;  %v5643_v33 = vld [vmem:[#allocation3 + $0x3a8] sm:$0xff]  ;;  %v4607_v59 = vrot.slane %v4593_v39, %v7402_v20  ;;  %v3205_v5 = vmul.f32 %v3159_v62, %v2918_v23  ;;  %4990 = vst.msk [vmem:[#allocation3 + $0x3f0] sm:$0xff] %vm4728_vm2, %v4974_v28 }
 0x1a2   : > { %5182 = vst.msk [vmem:[#allocation3 + $0x3c0] sm:$0xff] %vm4728_vm2, %v4974_v28  ;;  %5374 = vst.msk [vmem:[#allocation3 + $0x390] sm:$0xff] %vm4728_vm2, %v4974_v28  ;;  %v5486_v60 = vpack.c.bf16 %v5467_v29, %v5466_v25  ;;  %v4624_v36 = vrot.slane %v4610_v10, %v7402_v20  ;;  %5813 = vmatpush1.bf16.xpose.msra.mxu0 %v5643_v33  ;;  %v2874_v12 = vadd.f32 %v6640_v43, %v2873_v35  ;;  %v4958_v56 = vld [vmem:[#allocation2 + $0x168] sm:$0xff] }
 0x1a3   : > { %5118 = vst.msk [vmem:[#allocation3 + $0x400] sm:$0xff] %vm4728_vm2, %v5294_v27  ;;  %v3908_v37 = vrot.slane %v3894_v31, %v7402_v20  ;;  %v3909_v38 = vcombine.high %v3901_v32, %v3901_v32  ;;  %v4632_v40 = vrot.slane %v3901_v32, %v7402_v20  ;;  %v4608_v7 = vcombine.low %v4600_v30, %v4607_v59 }
 0x1a4   : > { %v3911_v41 = vcombine.high %v3205_v5, %v3205_v5  ;;  %v3918_v42 = vrot.slane %v3205_v5, %v7402_v20  ;;  %5917 = vmatpush1.bf16.xpose.msra.mxu1 %v5638_v34  ;;  %5502 = vst.msk [vmem:[#allocation3 + $0x3a0] sm:$0xff] %vm4728_vm2, %v5486_v60  ;;  %v4625_v45 = vcombine.low %v4617_v4, %v4624_v36  ;;  %v2919_v51 = vmax.f32 %v2874_v12, 0.0  ;;  %v5529_v60 = vld [vmem:[#allocation3 + $0x18] sm:$0xff]  ;;  %v6608_v36 = vld [vmem:[%s7932_s4] ss:$36 sps:$4 sm:$0xff]  }
 0x1a5   : > { %v4633_v1 = vcombine.low %v3909_v38, %v3908_v37  ;;  %4780 = vst.msk [vmem:[#allocation2 + $0x190] sm:$0x3] %vm4731_vm3, %v4632_v40  ;;  %v3910_v46 = vcombine.high %v3908_v37, %v3908_v37  ;;  %v5022_v47 = vld [vmem:[#allocation2 + $0x169] sm:$0xff]  ;;  %v5023_v48 = vld [vmem:[#allocation2 + $0x171] sm:$0xff] }
 0x1a6   : > { %v5277_v49 = vld [vmem:[#allocation2 + $0x16a] sm:$0xff]  ;;  %4778 = vst.msk [vmem:[#allocation2 + $0x180] sm:$0xff] %vm4728_vm2, %v4608_v7  ;;  %v3925_v11 = vrot.slane %v3911_v41, %v7402_v20  ;;  %v3926_v50 = vcombine.high %v3918_v42, %v3918_v42  ;;  %v5039_v52 = vpack.c.bf16 %v5023_v48, %v5022_v47  ;;  %v5278_v3 = vld [vmem:[#allocation2 + $0x172] sm:$0xff]  ;;  %4779 = vst.msk [vmem:[#allocation2 + $0x188] sm:$0xff] %vm4728_vm2, %v4625_v45 }
 0x1a7   : > { %v4959_v53 = vld [vmem:[#allocation2 + $0x170] sm:$0xff]  ;;  %v4634_v63 = vcombine.low %v3910_v46, %v3918_v42  ;;  %v5653_v9 = vld [vmem:[#allocation3 + $0x3f8] sm:$0xff]  ;;  %v5295_v0 = vpack.c.bf16 %v5278_v3, %v5277_v49  ;;  %v3206_v15 = vmul.f32 %v3164_v8, %v2919_v51  ;;  %v4641_v61 = vrot.slane %v4633_v1, %v7402_v20  ;;  %v5648_v17 = vld [vmem:[#allocation3 + $0x3d0] sm:$0xff] }
 0x1a8   : > { %v5468_v54 = vld [vmem:[#allocation2 + $0x16a] sm:$0xff]  ;;  %v4975_v13 = vpack.c.bf16 %v4959_v53, %v4958_v56  ;;  %5814 = vmatprep.subr.bf16.mxu0 %v5653_v9  ;;  %5055 = vst.msk [vmem:[#allocation3 + $0x440] sm:$0xff] %vm4728_vm2, %v5039_v52  ;;  %5247 = vst.msk [vmem:[#allocation3 + $0x410] sm:$0xff] %vm4728_vm2, %v5039_v52  ;;  %v5469_v55 = vld [vmem:[#allocation2 + $0x172] sm:$0xff]  ;;  %v4650_v21 = vcombine.low %v3926_v50, %v3925_v11  ;;  %v3927_v22 = vcombine.high %v3925_v11, %v3925_v11 }
 0x1a9   : > { %5439 = vst.msk [vmem:[#allocation3 + $0x3e0] sm:$0xff] %vm4728_vm2, %v5039_v52  ;;  %v4648_v16 = vrot.slane %v4634_v63, %v7402_v20  ;;  %v5652_v18 = vld [vmem:[#allocation3 + $0x3f0] sm:$0xff]  ;;  %v5647_v19 = vld [vmem:[#allocation3 + $0x3c8] sm:$0xff]  ;;  %5311 = vst.msk [vmem:[#allocation3 + $0x418] sm:$0xff] %vm4728_vm2, %v5295_v0  ;;  %v5487_v2 = vpack.c.bf16 %v5469_v55, %v5468_v54  ;;  %v3934_v23 = vrot.slane %v3206_v15, %v7402_v20  ;;  %5918 = vmatprep.subr.bf16.mxu1 %v5648_v17 }
 0x1aa   : > { %4991 = vst.msk [vmem:[#allocation3 + $0x438] sm:$0xff] %vm4728_vm2, %v4975_v13  ;;  %5183 = vst.msk [vmem:[#allocation3 + $0x408] sm:$0xff] %vm4728_vm2, %v4975_v13  ;;  %5815 = vmatpush1.bf16.xpose.msra.mxu0 %v5652_v18  ;;  %v4658_v39 = vrot.slane %v4650_v21, %v7402_v20  ;;  %v6614_v37 = vld [vmem:[%s7932_s4 + $0x4c] ss:$36 sps:$4 sm:$0xff]   ;;  %v5528_v7 = vld [vmem:[#allocation3 + $0x10] sm:$0xff] }
 0x1ab   : > { %5375 = vst.msk [vmem:[#allocation3 + $0x3d8] sm:$0xff] %vm4728_vm2, %v4975_v13  ;;  %5119 = vst.msk [vmem:[#allocation3 + $0x448] sm:$0xff] %vm4728_vm2, %v5295_v0  ;;  %v4649_v57 = vcombine.low %v4641_v61, %v4648_v16  ;;  %v3935_v24 = vcombine.high %v3934_v23, %v3934_v23  ;;  %v4651_v25 = vcombine.low %v3927_v22, %v3934_v23  ;;  %v5538_v42 = vld [vmem:[#allocation3 + $0x60] sm:$0xff]  ;;  %v6616_v48 = vld [vmem:[%s7932_s4 + $0x48] ss:$36 sps:$4 sm:$0xff]  }
 0x1ac   : > { %5503 = vst.msk [vmem:[#allocation3 + $0x3e8] sm:$0xff] %vm4728_vm2, %v5487_v2  ;;  %5919 = vmatpush1.bf16.xpose.msra.mxu1 %v5647_v19  ;;  %v6611_v49 = vld [vmem:[%s7932_s4 + $0x10] ss:$36 sps:$4 sm:$0xff]   ;;  %v5537_v11 = vld [vmem:[#allocation3 + $0x58] sm:$0xff]  ;;  %v6620_v50 = vld [vmem:[%s7932_s4 + $0x5c] ss:$36 sps:$4 sm:$0xff]  }
 0x1ad   : > { %4781 = vst.msk [vmem:[#allocation2 + $0x198] sm:$0xff] %vm4728_vm2, %v4649_v57  ;;  %v4665_v26 = vrot.slane %v4651_v25, %v7402_v20  ;;  %v4673_v27 = vrot.slane %v3935_v24, %v7402_v20  ;;  %v5279_v28 = vld [vmem:[#allocation2 + $0x182] sm:$0xff]  ;;  %v5280_v29 = vld [vmem:[#allocation2 + $0x18a] sm:$0xff]  ;;  %v5547_v51 = vld [vmem:[#allocation3 + $0xa8] sm:$0xff] }
 0x1ae   : > { %v5215_v62 = vld [vmem:[#allocation2 + $0x181] sm:$0xff]  ;;  %v5296_v10 = vpack.c.bf16 %v5280_v29, %v5279_v28  ;;  %v5216_v31 = vld [vmem:[#allocation2 + $0x189] sm:$0xff]  ;;  %v6622_v53 = vld [vmem:[%s7932_s4 + $0x58] ss:$36 sps:$4 sm:$0xff]  }
 0x1af   : > { %v5662_v30 = vld [vmem:[#allocation3 + $0x440] sm:$0xff]  ;;  %v4666_v32 = vcombine.low %v4658_v39, %v4665_v26  ;;  %4783 = vst.msk [vmem:[#allocation2 + $0x1a8] sm:$0x3] %vm4731_vm3, %v4673_v27  ;;  %v5232_v59 = vpack.c.bf16 %v5216_v31, %v5215_v62  ;;  %v5656_v4 = vld [vmem:[#allocation3 + $0x410] sm:$0xff]  ;;  %v5152_v35 = vld [vmem:[#allocation2 + $0x188] sm:$0xff] }
 0x1b0   : > { %5816 = vmatprep.subr.bf16.mxu0 %v5662_v30  ;;  %v5657_v33 = vld [vmem:[#allocation3 + $0x418] sm:$0xff]  ;;  %5312 = vst.msk [vmem:[#allocation3 + $0x460] sm:$0xff] %vm4728_vm2, %v5296_v10  ;;  %v5151_v5 = vld [vmem:[#allocation2 + $0x180] sm:$0xff]  ;;  %5504 = vst.msk [vmem:[#allocation3 + $0x430] sm:$0xff] %vm4728_vm2, %v5296_v10 }
 0x1b1   : > { %v5661_v34 = vld [vmem:[#allocation3 + $0x438] sm:$0xff]  ;;  %5920 = vmatprep.subr.bf16.mxu1 %v5657_v33  ;;  %4782 = vst.msk [vmem:[#allocation2 + $0x1a0] sm:$0xff] %vm4728_vm2, %v4666_v32  ;;  %5248 = vst.msk [vmem:[#allocation3 + $0x458] sm:$0xff] %vm4728_vm2, %v5232_v59  ;;  %v5168_v20 = vpack.c.bf16 %v5152_v35, %v5151_v5  ;;  %v5532_v52 = vld [vmem:[#allocation3 + $0x30] sm:$0xff] }
 0x1b2   : > { %5440 = vst.msk [vmem:[#allocation3 + $0x428] sm:$0xff] %vm4728_vm2, %v5232_v59  ;;  %5817 = vmatpush1.bf16.xpose.msra.mxu0 %v5661_v34  ;;  %v5542_v3 = vld [vmem:[#allocation3 + $0x80] sm:$0xff]  ;;  %v6628_v54 = vld [vmem:[%s7932_s4 + $0x1c] ss:$36 sps:$4 sm:$0xff]   ;;  %v5541_v9 = vld [vmem:[#allocation3 + $0x78] sm:$0xff] }
 0x1b3   : > { %5839 = vmatprep.subr.bf16.mxu0 %v5529_v60  ;;  %5184 = vst.msk [vmem:[#allocation3 + $0x450] sm:$0xff] %vm4728_vm2, %v5168_v20  ;;  %5376 = vst.msk [vmem:[#allocation3 + $0x420] sm:$0xff] %vm4728_vm2, %v5168_v20  ;;  %v5546_v8 = vld [vmem:[#allocation3 + $0xa0] sm:$0xff]  ;;  %v5556_v63 = vld [vmem:[#allocation3 + $0xf0] sm:$0xff] }
 0x1b4   : > { %5921 = vmatpush1.bf16.xpose.msra.mxu1 %v5656_v4  ;;  %v5344_v12 = vld [vmem:[#allocation2 + $0x198] sm:$0xff]  ;;  %v5565_v15 = vld [vmem:[#allocation3 + $0x138] sm:$0xff]  ;;  %v5550_v55 = vld [vmem:[#allocation3 + $0xc0] sm:$0xff] }
 0x1b5   : > { %v5551_v0 = vld [vmem:[#allocation3 + $0xc8] sm:$0xff]  ;;  %v5560_v61 = vld [vmem:[#allocation3 + $0x110] sm:$0xff]  ;;  %v5574_v17 = vld [vmem:[#allocation3 + $0x180] sm:$0xff] }
 0x1b6   : > { %v5555_v13 = vld [vmem:[#allocation3 + $0xe8] sm:$0xff]  ;;  %v5564_v16 = vld [vmem:[#allocation3 + $0x130] sm:$0xff]  ;;  %v5569_v19 = vld [vmem:[#allocation3 + $0x158] sm:$0xff] }
 0x1b7   : > { %v5666_v38 = vld [vmem:[#allocation3 + $0x460] sm:$0xff]  ;;  %v5559_v18 = vld [vmem:[#allocation3 + $0x108] sm:$0xff]  ;;  %v5573_v2 = vld [vmem:[#allocation3 + $0x178] sm:$0xff] }
 0x1b8   : > { %5922 = vmatprep.subr.bf16.mxu1 %v5666_v38  ;;  %v5665_v40 = vld [vmem:[#allocation3 + $0x458] sm:$0xff]  ;;  %v5408_v14 = vld [vmem:[#allocation2 + $0x199] sm:$0xff]  ;;  %v5578_v23 = vld [vmem:[#allocation3 + $0x1a0] sm:$0xff] }
 0x1b9   : > { %5819 = vmatmul.mubr.bf16.vlgmr.msra.gmra.mrb[84].mxu0 %v6608_v36  ;;  %v5409_v41 = vld [vmem:[#allocation2 + $0x1a1] sm:$0xff]  ;;  %v5583_v21 = vld [vmem:[#allocation3 + $0x1c8] sm:$0xff]  ;;  %v5582_v57 = vld [vmem:[#allocation3 + $0x1c0] sm:$0xff] }
 0x1ba   : > { %5840 = vmatpush1.bf16.xpose.msra.mxu0 %v5528_v7  ;;  %5828 = vmatprep.mubr.bf16.mxu0 %v6614_v37  ;;  %v5425_v43 = vpack.c.bf16 %v5409_v41, %v5408_v14  ;;  %v5345_v56 = vld [vmem:[#allocation2 + $0x1a0] sm:$0xff]  ;;  %v5577_v25 = vld [vmem:[#allocation3 + $0x198] sm:$0xff]  ;;  %v5587_v39 = vld [vmem:[#allocation3 + $0x1e8] sm:$0xff] }
 0x1bb   : > { %5841 = vmatprep.subr.bf16.mxu0 %v5538_v42  ;;  %v5361_v45 = vpack.c.bf16 %v5345_v56, %v5344_v12  ;;  %v5472_v1 = vld [vmem:[#allocation2 + $0x19a] sm:$0xff]  ;;  %v5473_v46 = vld [vmem:[#allocation2 + $0x1a2] sm:$0xff]  ;;  %v5586_v28 = vld [vmem:[#allocation3 + $0x1e0] sm:$0xff] }
 0x1bc   : > { %5923 = vmatpush1.bf16.xpose.msra.mxu1 %v5665_v40  ;;  %5441 = vst.msk [vmem:[#allocation3 + $0x470] sm:$0xff] %vm4728_vm2, %v5425_v43  ;;  %v5489_v47 = vpack.c.bf16 %v5473_v46, %v5472_v1  ;;  %v5568_v22 = vld [vmem:[#allocation3 + $0x150] sm:$0xff]  ;;  %v5591_v26 = vld [vmem:[#allocation3 + $0x208] sm:$0xff]  ;;  %v5601_v27 = vld [vmem:[#allocation3 + $0x258] sm:$0xff] }
 0x1bd   : > { %5945 = vmatprep.subr.bf16.mxu1 %v5533_v44  ;;  %5377 = vst.msk [vmem:[#allocation3 + $0x468] sm:$0xff] %vm4728_vm2, %v5361_v45  ;;  %v5592_v24 = vld [vmem:[#allocation3 + $0x210] sm:$0xff]  ;;  %v5610_v30 = vld [vmem:[#allocation3 + $0x2a0] sm:$0xff]  ;;  %v5595_v10 = vld [vmem:[#allocation3 + $0x228] sm:$0xff] }
 0x1be   : > { %5505 = vst.msk [vmem:[#allocation3 + $0x478] sm:$0xff] %vm4728_vm2, %v5489_v47  ;;  %v5596_v29 = vld [vmem:[#allocation3 + $0x230] sm:$0xff]  ;;  %v5605_v31 = vld [vmem:[#allocation3 + $0x278] sm:$0xff]  ;;  %v5619_v33 = vld [vmem:[#allocation3 + $0x2e8] sm:$0xff] }
 0x1bf   : > { %v5600_v62 = vld [vmem:[#allocation3 + $0x250] sm:$0xff]  ;;  %v5609_v32 = vld [vmem:[#allocation3 + $0x298] sm:$0xff]  ;;  %v5614_v59 = vld [vmem:[#allocation3 + $0x2c0] sm:$0xff] }
 0x1c0   : > { %v5604_v34 = vld [vmem:[#allocation3 + $0x270] sm:$0xff]  ;;  %v5618_v4 = vld [vmem:[#allocation3 + $0x2e0] sm:$0xff]  ;;  %v5613_v35 = vld [vmem:[#allocation3 + $0x2b8] sm:$0xff] }
 0x1c1   : > { %5829 = vmatmul.mubr.bf16.gmra.mrb[88].mxu0 %v6616_v48  ;;  %v5628_v5 = vld [vmem:[#allocation3 + $0x330] sm:$0xff]  ;;  %v5623_v20 = vld [vmem:[#allocation3 + $0x308] sm:$0xff]  ;;  %v5637_v36 = vld [vmem:[#allocation3 + $0x378] sm:$0xff] }
 0x1c2   : > { %5842 = vmatpush1.bf16.xpose.msra.mxu0 %v5537_v11  ;;  %5871 = vmatprep.mubr.bf16.mxu0 %v6619_v58  ;;  %v5627_v60 = vld [vmem:[#allocation3 + $0x328] sm:$0xff]  ;;  %v5622_v37 = vld [vmem:[#allocation3 + $0x300] sm:$0xff]  ;;  %v5632_v38 = vld [vmem:[#allocation3 + $0x350] sm:$0xff] }
 0x1c3   : > { %5925 = vmatmul.mubr.bf16.vlgmr.msra.gmra.mrb[0].mxu1 %v6611_v49  ;;  %5843 = vmatprep.subr.bf16.mxu0 %v5547_v51  ;;  %v5636_v40 = vld [vmem:[#allocation3 + $0x370] sm:$0xff]  ;;  %v5646_v14 = vld [vmem:[#allocation3 + $0x3c0] sm:$0xff]  ;;  %v5631_v7 = vld [vmem:[#allocation3 + $0x348] sm:$0xff] }
 0x1c4   : > { %5946 = vmatpush1.bf16.xpose.msra.mxu1 %v5532_v52  ;;  %5934 = vmatprep.mubr.bf16.mxu1 %v6620_v50  ;;  %v5641_v41 = vld [vmem:[#allocation3 + $0x398] sm:$0xff]  ;;  %v5655_v43 = vld [vmem:[#allocation3 + $0x408] sm:$0xff]  ;;  %v5640_v12 = vld [vmem:[#allocation3 + $0x390] sm:$0xff] }
 0x1c5   : > { %5947 = vmatprep.subr.bf16.mxu1 %v5542_v3  ;;  %v5645_v42 = vld [vmem:[#allocation3 + $0x3b8] sm:$0xff]  ;;  %v5650_v56 = vld [vmem:[#allocation3 + $0x3e0] sm:$0xff]  ;;  %v5664_v45 = vld [vmem:[#allocation3 + $0x450] sm:$0xff] }
 0x1c6   : > { %v5654_v44 = vld [vmem:[#allocation3 + $0x400] sm:$0xff]  ;;  %v5649_v1 = vld [vmem:[#allocation3 + $0x3d8] sm:$0xff]  ;;  %v5659_v46 = vld [vmem:[#allocation3 + $0x428] sm:$0xff] }
 0x1c7   : > { %v5663_v47 = vld [vmem:[#allocation3 + $0x448] sm:$0xff]  ;;  %v5658_v48 = vld [vmem:[#allocation3 + $0x420] sm:$0xff]  ;;  %v5668_v49 = vld [vmem:[#allocation3 + $0x470] sm:$0xff] }
 0x1c8   : > { %v6617_v58 = vld [vmem:[%s7932_s4 + $0x8] ss:$36 sps:$4 sm:$0xff]   ;;  %v6623_v11 = vld [vmem:[%s7932_s4 + $0x54] ss:$36 sps:$4 sm:$0xff]  }
 0x1c9   : > { %v5667_v50 = vld [vmem:[#allocation3 + $0x468] sm:$0xff]  ;;  %v5606_v51 = vld [vmem:[#allocation3 + $0x280] sm:$0xff] }
 0x1ca   : > { %5844 = vmatpush1.bf16.xpose.msra.mxu0 %v5546_v8  ;;  %v6625_v52 = vld [vmem:[%s7932_s4 + $0x50] ss:$36 sps:$4 sm:$0xff]   ;;  %v6626_v3 = vld [vmem:[%s7932_s4 + $0x18] ss:$36 sps:$4 sm:$0xff]  }
 0x1cb   : > { %5935 = vmatmul.mubr.bf16.gmra.mrb[4].mxu1 %v6622_v53  ;;  %5845 = vmatprep.subr.bf16.mxu0 %v5556_v63  ;;  %v6629_v53 = vld [vmem:[%s7932_s4 + $0x64] ss:$36 sps:$4 sm:$0xff]   ;;  %v5615_v8 = vld [vmem:[#allocation3 + $0x2c8] sm:$0xff] }
 0x1cc   : > { %5948 = vmatpush1.bf16.xpose.msra.mxu1 %v5541_v9  ;;  %5977 = vmatprep.mubr.bf16.mxu1 %v6628_v54  ;;  %v5534_v54 = vld [vmem:[#allocation3 + $0x40] sm:$0xff]  ;;  %v6631_v63 = vld [vmem:[%s7932_s4 + $0x60] ss:$36 sps:$4 sm:$0xff]  }
 0x1cd   : > { %5949 = vmatprep.subr.bf16.mxu1 %v5551_v0  ;;  %v6632_v9 = vld [vmem:[%s7932_s4 + $0x20] ss:$36 sps:$4 sm:$0xff]   ;;  %v5543_v0 = vld [vmem:[#allocation3 + $0x88] sm:$0xff] }
 0x1d2   : > { %5846 = vmatpush1.bf16.xpose.msra.mxu0 %v5555_v13  ;;  %v5624_v13 = vld [vmem:[#allocation3 + $0x310] sm:$0xff] }
 0x1d3   : > { %5847 = vmatprep.subr.bf16.mxu0 %v5565_v15  ;;  %v5552_v15 = vld [vmem:[#allocation3 + $0xd0] sm:$0xff] }
 0x1d4   : > { %5950 = vmatpush1.bf16.xpose.msra.mxu1 %v5550_v55  ;;  %v5633_v55 = vld [vmem:[#allocation3 + $0x358] sm:$0xff] }
 0x1d5   : > { %5951 = vmatprep.subr.bf16.mxu1 %v5560_v61  ;;  %v5561_v61 = vld [vmem:[#allocation3 + $0x118] sm:$0xff] }
 0x1da   : > { %5848 = vmatpush1.bf16.xpose.msra.mxu0 %v5564_v16  ;;  %v5642_v16 = vld [vmem:[#allocation3 + $0x3a0] sm:$0xff] }
 0x1db   : > { %5849 = vmatprep.subr.bf16.mxu0 %v5574_v17  ;;  %v5570_v17 = vld [vmem:[#allocation3 + $0x160] sm:$0xff] }
 0x1dc   : > { %5952 = vmatpush1.bf16.xpose.msra.mxu1 %v5559_v18  ;;  %v5651_v18 = vld [vmem:[#allocation3 + $0x3e8] sm:$0xff] }
 0x1dd   : > { %5953 = vmatprep.subr.bf16.mxu1 %v5569_v19  ;;  %v5579_v19 = vld [vmem:[#allocation3 + $0x1a8] sm:$0xff] }
 0x1e2   : > { %5850 = vmatpush1.bf16.xpose.msra.mxu0 %v5573_v2  ;;  %v5660_v2 = vld [vmem:[#allocation3 + $0x430] sm:$0xff] }
 0x1e3   : > { %5851 = vmatprep.subr.bf16.mxu0 %v5583_v21  ;;  %v5588_v21 = vld [vmem:[#allocation3 + $0x1f0] sm:$0xff] }
 0x1e4   : > { %5954 = vmatpush1.bf16.xpose.msra.mxu1 %v5568_v22  ;;  %v5669_v22 = vld [vmem:[#allocation3 + $0x478] sm:$0xff] }
 0x1e5   : > { %5955 = vmatprep.subr.bf16.mxu1 %v5578_v23  ;;  %v5597_v23 = vld [vmem:[#allocation3 + $0x238] sm:$0xff] }
 0x1ea   : > { %5852 = vmatpush1.bf16.xpose.msra.mxu0 %v5582_v57  ;;  %v6633_v57 = vld [vmem:[%s7932_s4 + $0x68] ss:$36 sps:$4 sm:$0xff]  }
 0x1eb   : > { %5853 = vmatprep.subr.bf16.mxu0 %v5592_v24  ;;  %v6634_v24 = vld [vmem:[%s374_s21] ss:$8 sps:$4 sm:$0xff]  }
 0x1ec   : > { %5956 = vmatpush1.bf16.xpose.msra.mxu1 %v5577_v25  ;;  %v6636_v25 = vld [vmem:[%s374_s21 + $0x4] ss:$8 sps:$4 sm:$0xff]  }
 0x1ed   : > { %5957 = vmatprep.subr.bf16.mxu1 %v5587_v39  ;;  %v6637_v39 = vld [vmem:[%s7934_s6] sm:$0xff]  }
 0x1f2   : > { %5854 = vmatpush1.bf16.xpose.msra.mxu0 %v5591_v26 }
 0x1f3   : > { %5855 = vmatprep.subr.bf16.mxu0 %v5601_v27 }
 0x1f4   : > { %5958 = vmatpush1.bf16.xpose.msra.mxu1 %v5586_v28 }
 0x1f5   : > { %5959 = vmatprep.subr.bf16.mxu1 %v5596_v29 }
 0x1fa   : > { %5856 = vmatpush1.bf16.xpose.msra.mxu0 %v5600_v62 }
 0x1fb   : > { %5857 = vmatprep.subr.bf16.mxu0 %v5610_v30 }
 0x1fc   : > { %5960 = vmatpush1.bf16.xpose.msra.mxu1 %v5595_v10 }
 0x1fd   : > { %5961 = vmatprep.subr.bf16.mxu1 %v5605_v31 }
 0x202   : > { %5858 = vmatpush1.bf16.xpose.msra.mxu0 %v5609_v32  ;;  %v5677_v32 = vpop.permute.xlu1 %5676 }
 0x203   : > { %5859 = vmatprep.subr.bf16.mxu0 %v5619_v33 }
 0x204   : > { %5962 = vmatpush1.bf16.xpose.msra.mxu1 %v5604_v34  ;;  %v5682_v34 = vpop.permute.xlu0 %5681 }
 0x205   : > { %5963 = vmatprep.subr.bf16.mxu1 %v5614_v59 }
 0x20a   : > { %5860 = vmatpush1.bf16.xpose.msra.mxu0 %v5618_v4 }
 0x20b   : > { %5861 = vmatprep.subr.bf16.mxu0 %v5628_v5 }
 0x20c   : > { %5964 = vmatpush1.bf16.xpose.msra.mxu1 %v5613_v35 }
 0x20d   : > { %5965 = vmatprep.subr.bf16.mxu1 %v5623_v20 }
 0x212   : > { %5862 = vmatpush1.bf16.xpose.msra.mxu0 %v5627_v60 }
 0x213   : > { %5863 = vmatprep.subr.bf16.mxu0 %v5637_v36 }
 0x214   : > { %5966 = vmatpush1.bf16.xpose.msra.mxu1 %v5622_v37 }
 0x215   : > { %5967 = vmatprep.subr.bf16.mxu1 %v5632_v38 }
 0x21a   : > { %5864 = vmatpush1.bf16.xpose.msra.mxu0 %v5636_v40 }
 0x21b   : > { %5865 = vmatprep.subr.bf16.mxu0 %v5646_v14 }
 0x21c   : > { %5968 = vmatpush1.bf16.xpose.msra.mxu1 %v5631_v7 }
 0x21d   : > { %5969 = vmatprep.subr.bf16.mxu1 %v5641_v41  ;;  %v5687_v41 = vpop.permute.xlu1 %5686 }
 0x222   : > { %5866 = vmatpush1.bf16.xpose.msra.mxu0 %v5645_v42 }
 0x223   : > { %5867 = vmatprep.subr.bf16.mxu0 %v5655_v43 }
 0x224   : > { %5970 = vmatpush1.bf16.xpose.msra.mxu1 %v5640_v12 }
 0x225   : > { %5971 = vmatprep.subr.bf16.mxu1 %v5650_v56 }
 0x22a   : > { %5868 = vmatpush1.bf16.xpose.msra.mxu0 %v5654_v44  ;;  %v5692_v44 = vpop.permute.xlu0 %5691 }
 0x22b   : > { %5869 = vmatprep.subr.bf16.mxu0 %v5664_v45 }
 0x22c   : > { %5972 = vmatpush1.bf16.xpose.msra.mxu1 %v5649_v1 }
 0x22d   : > { %5973 = vmatprep.subr.bf16.mxu1 %v5659_v46 }
 0x232   : > { %5870 = vmatpush1.bf16.xpose.msra.mxu0 %v5663_v47 }
 0x233   : > { %6087 = vmatprep.subr.bf16.mxu0 %v6636_v25 }
 0x234   : > { %5974 = vmatpush1.bf16.xpose.msra.mxu1 %v5658_v48 }
 0x235   : > { %5975 = vmatprep.subr.bf16.mxu1 %v5668_v49 }
 0x239   : > { %5872 = vmatmul.mubr.bf16.vlgmr.msra.gmra.mrb[84].mxu0 %v6617_v58 }
 0x23a   : > { %5881 = vmatprep.mubr.bf16.mxu0 %v6623_v11  ;;  %6088 = vmatpush1.bf16.msra.mxu0 %v6634_v24 }
 0x23c   : > { %5976 = vmatpush1.bf16.xpose.msra.mxu1 %v5667_v50 }
 0x23d   : > { %6441 = vmatprep.subr.bf16.mxu1 %v5606_v51 }
 0x241   : > { %5882 = vmatmul.mubr.bf16.gmra.mrb[88].mxu0 %v6625_v52 }
 0x242   : > { %6119 = vmatprep.mubr.bf16.mxu0 %v6652_v6 }
 0x243   : > { %5978 = vmatmul.mubr.bf16.vlgmr.msra.gmra.mrb[0].mxu1 %v6626_v3 }
 0x244   : > { %6442 = vmatpush3.bf16.xpose.msra.mxu1 %v5534_v54  ;;  %5987 = vmatprep.mubr.bf16.mxu1 %v6629_v53 }
 0x245   : > { %6443 = vmatprep.subr.bf16.mxu1 %v5615_v8 }
 0x249   : > { %6408 = vmatmul.mubr.msk.bf16.vlgmr.msra.gmra.mrb[92].mxu0 %vm2615_vm1, %v6637_v39 }
 0x24a   : > { %6170 = vmatprep.mubr.bf16.mxu0 %v6652_v6 }
 0x24b   : > { %5988 = vmatmul.mubr.bf16.gmra.mrb[4].mxu1 %v6631_v63 }
 0x24c   : > { %6444 = vmatpush3.bf16.xpose.msra.mxu1 %v5543_v0  ;;  %6457 = vmatprep.mubr.bf16.mxu1 %v6632_v9 }
 0x24d   : > { %6445 = vmatprep.subr.bf16.mxu1 %v5624_v13  ;;  %v6638_v13 = vld [vmem:[%s7933_s5] sm:$0xff]  }
 0x254   : > { %6446 = vmatpush3.bf16.xpose.msra.mxu1 %v5552_v15  ;;  %v6186_v15 = vpop.permute.xlu1 %6185 }
 0x255   : > { %6447 = vmatprep.subr.bf16.mxu1 %v5633_v55 }
 0x25c   : > { %6448 = vmatpush3.bf16.xpose.msra.mxu1 %v5561_v61 }
 0x25d   : > { %6449 = vmatprep.subr.bf16.mxu1 %v5642_v16 }
 0x264   : > { %6450 = vmatpush3.bf16.xpose.msra.mxu1 %v5570_v17  ;;  %v6191_v17 = vpop.permute.xlu0 %6190 }
 0x265   : > { %6451 = vmatprep.subr.bf16.mxu1 %v5651_v18 }
 0x26c   : > { %6452 = vmatpush3.bf16.xpose.msra.mxu1 %v5579_v19 }
 0x26d   : > { %6453 = vmatprep.subr.bf16.mxu1 %v5660_v2 }
 0x274   : > { %6454 = vmatpush3.bf16.xpose.msra.mxu1 %v5588_v21 }
 0x275   : > { %6455 = vmatprep.subr.bf16.mxu1 %v5669_v22 }
 0x27c   : > { %6456 = vmatpush3.bf16.xpose.msra.mxu1 %v5597_v23 }
 0x283   : > { %6458 = vmatmul.mubr.bf16.vlgmr.msra.gmra.mrb[0].mxu1 %v6632_v9 }
 0x284   : > { %6459 = vmatprep.mubr.bf16.mxu1 %v6633_v57 }
 0x28b   : > { %6460 = vmatmul.mubr.bf16.gmra.mrb[4].mxu1 %v6633_v57 }
 0x30c   : > { %v5873_v26 = vpop.f32.mrb[84].mxu0 }
 0x30d   : > { %v5875_v27 = vpop.f32.mrb[85].mxu0  ;;  %v6547_v33 = vadd.f32 %v5873_v26, %v5677_v32 }
 0x30e   : > { %v5877_v28 = vpop.f32.mrb[86].mxu0  ;;  %v6549_v59 = vadd.f32 %v5875_v27, %v5677_v32 }
 0x30f   : > { %v5879_v29 = vpop.f32.mrb[87].mxu0  ;;  %v6551_v5 = vadd.f32 %v5877_v28, %v5682_v34 }
 0x310   : > { %v6553_v60 = vadd.f32 %v5879_v29, %v5682_v34 }
 0x314   : > { %v5883_v62 = vpop.f32.mrb[88].mxu0 }
 0x315   : > { %v5885_v30 = vpop.f32.mrb[89].mxu0  ;;  %v6555_v12 = vadd.f32 %v5883_v62, %v5687_v41 }
 0x316   : > { %v5887_v10 = vpop.f32.mrb[90].mxu0  ;;  %v6557_v45 = vadd.f32 %v5885_v30, %v5687_v41 }
 0x317   : > { %v5889_v31 = vpop.f32.mrb[91].mxu0  ;;  %v6559_v47 = vadd.f32 %v5887_v10, %v5692_v44 }
 0x318   : > { %v6561_v58 = vadd.f32 %v5889_v31, %v5692_v44 }
 0x356   : > { %v6032_v4 = vpop.f32.mrb[0].mxu1 }
 0x357   : > { %v6548_v35 = vadd.f32 %v6547_v33, %v6032_v4  ;;  %v6034_v20 = vpop.f32.mrb[1].mxu1 }
 0x358   : > { %v6550_v36 = vadd.f32 %v6549_v59, %v6034_v20  ;;  %v6036_v37 = vpop.f32.mrb[2].mxu1 }
 0x359   : > { %v6552_v6 = vadd.f32 %v6551_v5, %v6036_v37  ;;  %v6038_v38 = vpop.f32.mrb[3].mxu1  ;;  %v6051_v14 = vmax.f32 %v6548_v35, 0.0 }
 0x35a   : > { %v6554_v40 = vadd.f32 %v6553_v60, %v6038_v38  ;;  %v6052_v42 = vmax.f32 %v6550_v36, 0.0 }
 0x35b   : > { %v6053_v7 = vmax.f32 %v6552_v6, 0.0 }
 0x35c   : > { %v6054_v43 = vmax.f32 %v6554_v40, 0.0 }
 0x35d   : > { %v6059_v56 = vpack.c.bf16 %v6053_v7, %v6051_v14 }
 0x35e   : > { %v6060_v1 = vpack.c.bf16 %v6054_v43, %v6052_v42  ;;  %v6042_v46 = vpop.f32.mrb[4].mxu1 }
 0x35f   : > { %v6556_v48 = vadd.f32 %v6555_v12, %v6042_v46  ;;  %v6044_v49 = vpop.f32.mrb[5].mxu1 }
 0x360   : > { %v6558_v11 = vadd.f32 %v6557_v45, %v6044_v49  ;;  %v6046_v50 = vpop.f32.mrb[6].mxu1  ;;  %6138 = vmatprep.subr.bf16.mxu0 %v6060_v1 }
 0x361   : > { %v6560_v51 = vadd.f32 %v6559_v47, %v6046_v50  ;;  %v6048_v52 = vpop.f32.mrb[7].mxu1  ;;  %6139 = vmatpush1.bf16.msra.mxu0 %v6059_v56  ;;  %v6055_v53 = vmax.f32 %v6556_v48, 0.0 }
 0x362   : > { %v6562_v3 = vadd.f32 %v6561_v58, %v6048_v52  ;;  %v6056_v8 = vmax.f32 %v6558_v11, 0.0 }
 0x363   : > { %v6057_v54 = vmax.f32 %v6560_v51, 0.0 }
 0x364   : > { %v6058_v63 = vmax.f32 %v6562_v3, 0.0 }
 0x365   : > { %v6061_v9 = vpack.c.bf16 %v6057_v54, %v6055_v53 }
 0x366   : > { %v6062_v0 = vpack.c.bf16 %v6058_v63, %v6056_v8 }
 0x368   : > { %6140 = vmatprep.subr.bf16.mxu0 %v6062_v0 }
 0x369   : > { %6141 = vmatpush1.bf16.msra.mxu0 %v6061_v9 }
 0x36c   : > { %6410 = vmatmul.mubr.msk.bf16.vlgmr.msra.gmra.mrb[92].mxu0 %vm4728_vm2, %v6638_v13 }
 0x43f   : > { %v6172_v55 = vpop.f32.mrb[92].mxu0 }
 0x440   : > { %v6193_v61 = vadd.f32 %v6186_v15, %v6172_v55  ;;  %v6174_v16 = vpop.f32.mrb[93].mxu0 }
 0x441   : > { %v6194_v18 = vadd.f32 %v6186_v15, %v6174_v16  ;;  %v6176_v19 = vpop.f32.mrb[94].mxu0 }
 0x442   : > { %v6197_v2 = vmax.f32 %v6193_v61, 0.0  ;;  %v6195_v21 = vadd.f32 %v6191_v17, %v6176_v19  ;;  %v6178_v22 = vpop.f32.mrb[95].mxu0 }
 0x443   : > { %v6198_v23 = vmax.f32 %v6194_v18, 0.0  ;;  %v6196_v57 = vadd.f32 %v6191_v17, %v6178_v22 }
 0x444   : > { %v6199_v24 = vmax.f32 %v6195_v21, 0.0 }
 0x445   : > { %v6417_v25 = vpack.c.bf16 %v6198_v23, %v6197_v2  ;;  %v6200_v39 = vmax.f32 %v6196_v57, 0.0 }
 0x447   : > { %6213 = vst [vmem:[%s379_s28] sm:$0xff] %v6417_v25  ;;  %v6418_v26 = vpack.c.bf16 %v6200_v39, %v6199_v24 }
 0x449   : > { %6214 = vst [vmem:[%s379_s28 + $0x8] sm:$0xff] %v6418_v26 }
 0x44a PF: > { %s20_s13 = sadd.s32 1, %s6647_s13  }
 0x44b   : > { %p17_p4 = scmp.ge.s32.totalorder %s20_s13, 4  }
 0x44d   :  { %19 = sbr.rel (!%p17_p4) target bundleno = 1 (0x1), region = 95 }

// kernel: resnext_chunk_fwd.3
= control target key start
LH: loop header
LB: loop body
LE: loop exit
PB: predicated region body
PF: predicated region fallthrough
CT: control target
= control target key end

     0   :  { %s10448_s25 = smov 0   ;;  %s12231_s0 = inlined_call_operand.vmem [shape: bf16[2,4,9,9,16], index: 0, kind: input, shape index: {}]   ;;  %s12232_s1 = inlined_call_operand.vmem [shape: bf16[2,16,64], index: 1, kind: input, shape index: {}]   ;;  %s12233_s2 = inlined_call_operand.vmem [shape: f32[4,81,1], index: 2, kind: input, shape index: {}]   ;;  %s12234_s3 = inlined_call_operand.vmem [shape: bf16[16,32], index: 3, kind: input, shape index: {}]   ;;  %s12235_s4 = inlined_call_operand.vmem [shape: bf16[32,1152], index: 4, kind: input, shape index: {}]   ;;  %s12236_s5 = inlined_call_operand.vmem [shape: bf16[32,32], index: 5, kind: input, shape index: {}]   ;;  %s12237_s6 = inlined_call_operand.vmem [shape: bf16[32,16], index: 6, kind: input, shape index: {}]   ;;  %s12238_s7 = inlined_call_operand.vmem [shape: f32[1,32], index: 7, kind: input, shape index: {}]   ;;  %s12239_s8 = inlined_call_operand.vmem [shape: f32[32,1], index: 8, kind: input, shape index: {}]   ;;  %s12240_s9 = inlined_call_operand.vmem [shape: f32[32,1], index: 9, kind: input, shape index: {}]   ;;  %s12241_s10 = inlined_call_operand.vmem [shape: bf16[2,16,64], index: 10, kind: input, shape index: {}]   ;;  %s12242_s11 = inlined_call_operand.vmem [shape: bf16[32,16], index: 11, kind: input, shape index: {}]   ;;  %s12243_s12 = inlined_call_operand.vmem [shape: f32[32,1], index: 12, kind: input, shape index: {}]   ;;  %s12244_s13 = inlined_call_operand.vmem [shape: f32[2,32,64], index: 13, kind: output, shape index: {}]  }
   0x1 LB: > { %s9782_s26 = sadd.s32 4294967295, %s10374_s25   ;;  %p9786_p0 = scmp.ge.s32.totalorder %s10374_s25, 1  ;;  %s10374_s25 = sphi %s10448_s25, %s23_s25  }
   0x2   : > { %p407_p1 = scmp.lt.s32.totalorder %s10374_s25, 3 }
   0x4   : > { %p408_p2 = pnand %p9786_p0, %p407_p1 }
   0x6   : > { %411 = sbr.rel (%p408_p2) target bundleno = 1087 (0x43f), region = 72 }
   0xd   : > { %v10009_v0 = vld [vmem:[%s12233_s2 + $0xb8] sm:$0xff]  ;;  %v10008_v1 = vld [vmem:[%s12233_s2 + $0xb0] sm:$0xff]  ;;  %p10464_p3 = scmp.lt.s32.totalorder %s9782_s26, 1  ;;  %v529_v2 = vlaneseq  ;;  %v10376_v3 = vmov 0   ;;  %v10329_v4 = vld [vmem:[%s12234_s3] sm:$0xff]   ;;  %vm1256_vm0 = vcmask 130048  }
   0xe   : > { %10327 = vset.pattern.permute.xlu0 %v10376_v3  ;;  %8806 = vst [vmem:[#allocation3] sm:$0xff] %v10376_v3  ;;  %8807 = vst [vmem:[#allocation3 + $0x8] sm:$0xff] %v10376_v3  ;;  %10328 = vset.pattern.permute.xlu1 %v10376_v3  ;;  %v1367_v5 = vld [vmem:[%s12233_s2 + $0x8] sm:$0xff]  ;;  %v1366_v6 = vld [vmem:[%s12233_s2] sm:$0xff]  ;;  %v10377_v7 = vmov 1966171168  }
   0xf   : > { %8808 = vst [vmem:[#allocation3 + $0x10] sm:$0xff] %v10376_v3  ;;  %8809 = vst [vmem:[#allocation3 + $0x18] sm:$0xff] %v10376_v3  ;;  %5547 = vperm.xlu0 %10327, %v10009_v0   ;;  %5542 = vperm.xlu1 %10328, %v10008_v1   ;;  %s12262_s26 = smov (!%p10464_p3, %s9782_s26), 1  ;;  %v527_v8 = vunpack.c.l.s4 %v10377_v7  ;;  %v530_v9 = vshrl.u32 %v529_v2, 7  ;;  %v10487_v10 = vld [vmem:[%s12234_s3] sm:$0xff]   ;;  %v1368_v16 = vld [vmem:[%s12233_s2 + $0x10] sm:$0xff] }
  0x10   : > { %8810 = vst [vmem:[#allocation3 + $0x20] sm:$0xff] %v10376_v3  ;;  %8811 = vst [vmem:[#allocation3 + $0x28] sm:$0xff] %v10376_v3  ;;  %10198 = vmatprep.subr.bf16.mxu0 %v10329_v4  ;;  %10286 = vmatprep.subr.bf16.mxu1 %v10329_v4  ;;  %s10316_s21 = smul.u32 288, %s12262_s26  ;;  %v10492_v12 = vld [vmem:[%s12234_s3] sm:$0xff]   ;;  %v10011_v26 = vld [vmem:[%s12233_s2 + $0xc8] sm:$0xff]  ;;  %vm2545_vm1 = vcmask 253952  }
  0x11   : > { %8812 = vst [vmem:[#allocation3 + $0x30] sm:$0xff] %v10376_v3  ;;  %8813 = vst [vmem:[#allocation3 + $0x38] sm:$0xff] %v10376_v3  ;;  %10199 = vmatpush3.bf16.msra.mxu0 %v10329_v4  ;;  %10287 = vmatpush3.bf16.msra.mxu1 %v10329_v4  ;;  %v528_v11 = vunpack.c.0.s8 %v527_v8  ;;  %v10010_v13 = vld [vmem:[%s12233_s2 + $0xc0] sm:$0xff]  ;;  %v1369_v27 = vld [vmem:[%s12233_s2 + $0x18] sm:$0xff]  ;;  %vm2543_vm2 = vcmask 261120   ;;  %s10151_s19 = sshll.u32 %s12262_s26, 3 }
  0x12   : > { %8814 = vst [vmem:[#allocation3 + $0x40] sm:$0xff] %v10376_v3  ;;  %8815 = vst [vmem:[#allocation3 + $0x48] sm:$0xff] %v10376_v3  ;;  %s10497_s30 = scalar_lea.vmem %s12231_s0, %s10316_s21  ;;  %10226 = vmatprep.subr.bf16.mxu0 %v10487_v10  ;;  %10212 = vmatprep.subr.bf16.mxu1 %v10492_v12  ;;  %v10012_v44 = vld [vmem:[%s12233_s2 + $0xd0] sm:$0xff]  ;;  %v1370_v49 = vld [vmem:[%s12233_s2 + $0x20] sm:$0xff]  ;;  %s12205_s16 = scalar_lea.vmem %s12241_s10, %s10151_s19  ;;  %vm9698_vm3 = vcmask 523264  }
  0x13   : > { %8816 = vst [vmem:[#allocation3 + $0x50] sm:$0xff] %v10376_v3  ;;  %8817 = vst [vmem:[#allocation3 + $0x58] sm:$0xff] %v10376_v3  ;;  %1384 = vperm.xlu0 %10327, %v1367_v5   ;;  %1379 = vperm.xlu1 %10328, %v1366_v6   ;;  %v9794_v14 = vld.sshfl [vmem:[%s10497_s30] sm:$0x33 pattern:$0x75316420]  ;;  %v10503_v15 = vsub.s32 %v528_v11, %v530_v9 }
  0x14   : > { %8818 = vst [vmem:[#allocation3 + $0x60] sm:$0xff] %v10376_v3  ;;  %8819 = vst [vmem:[#allocation3 + $0x68] sm:$0xff] %v10376_v3  ;;  %v9795_v17 = vld.sshfl [vmem:[%s10497_s30 + $0x4] sm:$0x1 pattern:$0x75316420]  ;;  %v525_v18 = vcombine.high %v9794_v14, %v9794_v14 }
  0x15   : > { %8820 = vst [vmem:[#allocation3 + $0x70] sm:$0xff] %v10376_v3  ;;  %8821 = vst [vmem:[#allocation3 + $0x78] sm:$0xff] %v10376_v3  ;;  %v9796_v19 = vld.sshfl [vmem:[%s10497_s30 + $0x8] sm:$0x33 pattern:$0x75316420]  ;;  %v532_v20 = vrot.slane %v9794_v14, %v10503_v15  ;;  %v555_v21 = vrot.slane %v9795_v17, %v10503_v15 }
  0x16   : > { %8822 = vst [vmem:[#allocation3 + $0x80] sm:$0xff] %v10376_v3  ;;  %8823 = vst [vmem:[#allocation3 + $0x88] sm:$0xff] %v10376_v3  ;;  %v539_v22 = vrot.slane %v525_v18, %v10503_v15  ;;  %v563_v23 = vcombine.high %v9796_v19, %v9796_v19  ;;  %v570_v24 = vrot.slane %v9796_v19, %v10503_v15  ;;  %v9797_v25 = vld.sshfl [vmem:[%s10497_s30 + $0xc] sm:$0x1 pattern:$0x75316420] }
  0x17   : > { %8824 = vst [vmem:[#allocation3 + $0x90] sm:$0xff] %v10376_v3  ;;  %8825 = vst [vmem:[#allocation3 + $0x98] sm:$0xff] %v10376_v3  ;;  %5552 = vperm.xlu0 %10327, %v10010_v13   ;;  %1389 = vperm.xlu1 %10328, %v1368_v16   ;;  %v9798_v28 = vld.sshfl [vmem:[%s10497_s30 + $0x10] sm:$0x33 pattern:$0x75316420]  ;;  %v593_v29 = vrot.slane %v9797_v25, %v10503_v15 }
  0x18   : > { %8826 = vst [vmem:[#allocation3 + $0xa0] sm:$0xff] %v10376_v3  ;;  %8827 = vst [vmem:[#allocation3 + $0xa8] sm:$0xff] %v10376_v3  ;;  %v577_v30 = vrot.slane %v563_v23, %v10503_v15  ;;  %v578_v31 = vcombine.high %v570_v24, %v570_v24  ;;  %v870_v32 = vunpack.i.h.s16 %v570_v24  ;;  %v9813_v33 = vpack.i.b16 %v570_v24, %v555_v21  ;;  %v9799_v36 = vld.sshfl [vmem:[%s10497_s30 + $0x14] sm:$0x1 pattern:$0x75316420] }
  0x19   : > { %8828 = vst [vmem:[#allocation3 + $0xb0] sm:$0xff] %v10376_v3  ;;  %8829 = vst [vmem:[#allocation3 + $0xb8] sm:$0xff] %v10376_v3  ;;  %v991_v34 = vcombine.low %v532_v20, %v539_v22  ;;  %v9833_v35 = vcombine.high %v532_v20, %v539_v22  ;;  %v601_v37 = vcombine.high %v9798_v28, %v9798_v28  ;;  %v9800_v43 = vld.sshfl [vmem:[%s10497_s30 + $0x18] sm:$0x33 pattern:$0x75316420] }
  0x1a   : > { %8830 = vst [vmem:[#allocation3 + $0xc0] sm:$0xff] %v10376_v3  ;;  %8831 = vst [vmem:[#allocation3 + $0xc8] sm:$0xff] %v10376_v3  ;;  %v608_v38 = vrot.slane %v9798_v28, %v10503_v15  ;;  %v579_v39 = vcombine.high %v577_v30, %v577_v30  ;;  %v872_v40 = vunpack.i.h.s16 %v577_v30  ;;  %v874_v41 = vunpack.i.h.s16 %v578_v31  ;;  %v9808_v54 = vld.sshfl [vmem:[%s10497_s30 + $0x38] sm:$0x33 pattern:$0x75316420] }
  0x1b   : > { %8832 = vst [vmem:[#allocation3 + $0xd0] sm:$0xff] %v10376_v3  ;;  %8833 = vst [vmem:[#allocation3 + $0xd8] sm:$0xff] %v10376_v3  ;;  %v9814_v42 = vpack.i.b16 %v577_v30, %v870_v32  ;;  %5557 = vperm.xlu0 %10327, %v10011_v26   ;;  %1394 = vperm.xlu1 %10328, %v1369_v27   ;;  %v1001_v45 = vrot.slane %v991_v34, %v10503_v15  ;;  %v10013_v63 = vld [vmem:[%s12233_s2 + $0xd8] sm:$0xff]  ;;  %v1371_v4 = vld [vmem:[%s12233_s2 + $0x28] sm:$0xff]  ;;  %s10153_s22 = sshll.u32 %s12262_s26, 5 }
  0x1c   : > { %8834 = vst [vmem:[#allocation3 + $0xe0] sm:$0xff] %v10376_v3  ;;  %8835 = vst [vmem:[#allocation3 + $0xe8] sm:$0xff] %v10376_v3  ;;  %v1008_v46 = vrot.slane %v9833_v35, %v10503_v15  ;;  %v615_v47 = vrot.slane %v601_v37, %v10503_v15  ;;  %v616_v48 = vcombine.high %v608_v38, %v608_v38  ;;  %v876_v50 = vunpack.i.h.s16 %v579_v39  ;;  %v9809_v9 = vld.sshfl [vmem:[%s10497_s30 + $0x3c] sm:$0x1 pattern:$0x75316420]  ;;  %s480_s27 = scalar_lea.vmem %s12244_s13, %s10153_s22 }
  0x1d   : > { %8836 = vst [vmem:[#allocation3 + $0xf0] sm:$0xff] %v10376_v3  ;;  %8837 = vst [vmem:[#allocation3 + $0xf8] sm:$0xff] %v10376_v3  ;;  %v9815_v51 = vpack.i.b16 %v578_v31, %v872_v40  ;;  %v9816_v52 = vpack.i.b16 %v579_v39, %v874_v41  ;;  %v993_v53 = vcombine.low %v9813_v33, %v9814_v42  ;;  %v9810_v16 = vld.sshfl [vmem:[%s10497_s30 + $0x40] sm:$0x33 pattern:$0x75316420] }
  0x1e   : > { %8838 = vst [vmem:[#allocation3 + $0x100] sm:$0xff] %v10376_v3  ;;  %8839 = vst [vmem:[#allocation3 + $0x108] sm:$0xff] %v10376_v3  ;;  %v1023_v55 = vcombine.low %v1001_v45, %v1008_v46  ;;  %v617_v56 = vcombine.high %v615_v47, %v615_v47  ;;  %v631_v57 = vrot.slane %v9799_v36, %v10503_v15  ;;  %v10014_v26 = vld [vmem:[%s12233_s2 + $0xe0] sm:$0xff]  ;;  %v1372_v31 = vld [vmem:[%s12233_s2 + $0x30] sm:$0xff] }
  0x1f   : > { %8840 = vst [vmem:[#allocation3 + $0x110] sm:$0xff] %v10376_v3  ;;  %8841 = vst [vmem:[#allocation3 + $0x118] sm:$0xff] %v10376_v3  ;;  %v639_v58 = vcombine.high %v9800_v43, %v9800_v43  ;;  %v994_v59 = vcombine.low %v9815_v51, %v9816_v52  ;;  %v1015_v60 = vrot.slane %v993_v53, %v10503_v15  ;;  %5562 = vperm.xlu0 %10327, %v10012_v44   ;;  %v10015_v36 = vld [vmem:[%s12233_s2 + $0xe8] sm:$0xff]  ;;  %v1373_v42 = vld [vmem:[%s12233_s2 + $0x38] sm:$0xff] }
  0x20   : > { %v646_v61 = vrot.slane %v9800_v43, %v10503_v15  ;;  %v9817_v62 = vpack.i.b16 %v593_v29, %v876_v50  ;;  %v1031_v0 = vrot.slane %v1023_v55, %v10503_v15  ;;  %v1041_v2 = vcombine.low %v615_v47, %v616_v48  ;;  %1399 = vperm.xlu1 %10328, %v1370_v49   ;;  %v9811_v41 = vld.sshfl [vmem:[%s10497_s30 + $0x44] sm:$0x1 pattern:$0x75316420] }
  0x21   : > { %v653_v1 = vrot.slane %v639_v58, %v10503_v15  ;;  %v791_v3 = vcombine.high %v9808_v54, %v9808_v54  ;;  %v1022_v5 = vrot.slane %v994_v59, %v10503_v15  ;;  %v10557_v17 = vrot.slane %v9808_v54, %v10503_v15  ;;  %v9801_v47 = vld.sshfl [vmem:[%s10497_s30 + $0x1c] sm:$0x1 pattern:$0x75316420] }
  0x22   : > { %v10551_v6 = vcombine.high %v646_v61, %v646_v61  ;;  %v888_v7 = vunpack.i.h.s16 %v646_v61  ;;  %v9818_v8 = vpack.i.b16 %v646_v61, %v631_v57  ;;  %v1040_v13 = vcombine.low %v9817_v62, %v608_v38  ;;  %v9802_v52 = vld.sshfl [vmem:[%s10497_s30 + $0x20] sm:$0x33 pattern:$0x75316420]  ;;  %v10016_v62 = vld [vmem:[%s12233_s2 + $0xf0] sm:$0xff] }
  0x23   : > { %v890_v11 = vunpack.i.h.s16 %v653_v1  ;;  %v1057_v14 = vrot.slane %v1041_v2, %v10503_v15  ;;  %v1024_v18 = vcombine.low %v1015_v60, %v1022_v5  ;;  %v805_v21 = vrot.slane %v791_v3, %v10503_v15  ;;  %5567 = vperm.xlu0 %10327, %v10013_v63   ;;  %v9804_v3 = vld.sshfl [vmem:[%s10497_s30 + $0x28] sm:$0x33 pattern:$0x75316420] }
  0x24   : > { %v9819_v19 = vpack.i.b16 %v653_v1, %v888_v7  ;;  %v1042_v20 = vcombine.low %v617_v56, %v9818_v8  ;;  %v1050_v23 = vrot.slane %v1040_v13, %v10503_v15  ;;  %v806_v24 = vcombine.high %v10557_v17, %v10557_v17  ;;  %1404 = vperm.xlu1 %10328, %v1371_v4   ;;  %v9803_v56 = vld.sshfl [vmem:[%s10497_s30 + $0x24] sm:$0x1 pattern:$0x75316420] }
  0x25   : > { %v9820_v22 = vpack.i.b16 %v10551_v6, %v890_v11  ;;  %v821_v25 = vrot.slane %v9809_v9, %v10503_v15  ;;  %v1038_v27 = vrot.slane %v1024_v18, %v10503_v15  ;;  %v807_v29 = vcombine.high %v805_v21, %v805_v21  ;;  %v1374_v9 = vld [vmem:[%s12233_s2 + $0x40] sm:$0xff] }
  0x26   : > { %v1064_v28 = vrot.slane %v1042_v20, %v10503_v15  ;;  %v829_v30 = vcombine.high %v9810_v16, %v9810_v16  ;;  %v1072_v33 = vcombine.low %v1050_v23, %v1057_v14  ;;  %v836_v34 = vrot.slane %v9810_v16, %v10503_v15 }
  0x27   : > { %v1043_v32 = vcombine.low %v9819_v19, %v9820_v22  ;;  %v924_v35 = vunpack.i.h.s16 %v10557_v17  ;;  %v1039_v37 = vcombine.low %v1031_v0, %v1038_v27  ;;  %v926_v39 = vunpack.i.h.s16 %v805_v21  ;;  %5572 = vperm.xlu0 %10327, %v10014_v26   ;;  %v9805_v26 = vld.sshfl [vmem:[%s10497_s30 + $0x2c] sm:$0x1 pattern:$0x75316420]  ;;  %v10097_v27 = vld [vmem:[%s12233_s2 + $0x110] sm:$0xff] }
  0x28   : > { %v843_v38 = vrot.slane %v829_v30, %v10503_v15  ;;  %v928_v40 = vunpack.i.h.s16 %v806_v24  ;;  %v1080_v44 = vrot.slane %v1072_v33, %v10503_v15  ;;  %v930_v45 = vunpack.i.h.s16 %v807_v29  ;;  %1409 = vperm.xlu1 %10328, %v1372_v31  }
  0x29   : > { %v1071_v43 = vrot.slane %v1043_v32, %v10503_v15  ;;  %v9829_v46 = vpack.i.b16 %v805_v21, %v924_v35  ;;  %10200 = vmatprep.mubr.msk.bf16.mxu0 %vm1256_vm0, %v1039_v37  ;;  %v9830_v48 = vpack.i.b16 %v806_v24, %v926_v39  ;;  %v859_v55 = vrot.slane %v9811_v41, %v10503_v15  ;;  %v9806_v32 = vld.sshfl [vmem:[%s10497_s30 + $0x30] sm:$0x33 pattern:$0x75316420] }
  0x2a   : > { %v9831_v49 = vpack.i.b16 %v807_v29, %v928_v40  ;;  %v1189_v50 = vcombine.low %v836_v34, %v843_v38  ;;  %v9835_v51 = vcombine.high %v836_v34, %v843_v38  ;;  %v9832_v54 = vpack.i.b16 %v821_v25, %v930_v45  ;;  %v9807_v37 = vld.sshfl [vmem:[%s10497_s30 + $0x34] sm:$0x1 pattern:$0x75316420] }
  0x2b   : > { %v1073_v53 = vcombine.low %v1064_v28, %v1071_v43  ;;  %v655_v57 = vcombine.high %v653_v1, %v653_v1  ;;  %v1187_v58 = vcombine.low %v9829_v46, %v9830_v48  ;;  %v669_v61 = vrot.slane %v9801_v47, %v10503_v15  ;;  %5577 = vperm.xlu0 %10327, %v10015_v36  }
  0x2c   : > { %v1211_v59 = vrot.slane %v1189_v50, %v10503_v15  ;;  %v1218_v60 = vrot.slane %v9835_v51, %v10503_v15  ;;  %v1188_v0 = vcombine.low %v9831_v49, %v9832_v54  ;;  %v940_v2 = vunpack.i.l.s16 %v859_v55  ;;  %1414 = vperm.xlu1 %10328, %v1373_v42   ;;  %v10632_v49 = vld [vmem:[%s12234_s3] sm:$0xff]   ;;  %v9871_v54 = vld.sshfl [vmem:[%s10497_s30 + $0x48] sm:$0x33 pattern:$0x75316420] }
  0x2d   : > { %v1087_v63 = vrot.slane %v1073_v53, %v10503_v15  ;;  %v677_v4 = vcombine.high %v9802_v52, %v9802_v52  ;;  %v1197_v1 = vrot.slane %v1187_v58, %v10503_v15  ;;  %v684_v7 = vrot.slane %v9802_v52, %v10503_v15 }
  0x2e   : > { %v1220_v5 = vcombine.low %v1211_v59, %v1218_v60  ;;  %v707_v8 = vrot.slane %v9803_v56, %v10503_v15  ;;  %v1204_v13 = vrot.slane %v1188_v0, %v10503_v15  ;;  %v1242_v14 = vrot.slane %v940_v2, %v10503_v15  ;;  %v9921_v59 = vld [vmem:[%s12233_s2 + $0x60] sm:$0xff]  ;;  %v9872_v0 = vld.sshfl [vmem:[%s10497_s30 + $0x4c] sm:$0x1 pattern:$0x75316420]  ;;  %v9920_v2 = vld [vmem:[%s12233_s2 + $0x58] sm:$0xff] }
  0x2f   : > { %v1088_v11 = vcombine.low %v1080_v44, %v1087_v63  ;;  %v691_v16 = vrot.slane %v677_v4, %v10503_v15  ;;  %v715_v19 = vcombine.high %v9804_v3, %v9804_v3  ;;  %v722_v20 = vrot.slane %v9804_v3, %v10503_v15  ;;  %5582 = vperm.xlu0 %10327, %v10016_v62  }
  0x30   : > { %v1234_v18 = vrot.slane %v1220_v5, %v10503_v15  ;;  %v892_v21 = vunpack.i.h.s16 %v10551_v6  ;;  %v1219_v22 = vcombine.low %v1197_v1, %v1204_v13  ;;  %v1249_v23 = vrot.slane %v1242_v14, %v10503_v15  ;;  %1419 = vperm.xlu1 %10328, %v1374_v9   ;;  %v10096_v6 = vld [vmem:[%s12233_s2 + $0x108] sm:$0xff]  ;;  %v9873_v1 = vld.sshfl [vmem:[%s10497_s30 + $0x50] sm:$0x33 pattern:$0x75316420] }
  0x31   : > { %10201 = vmatmul.mubr.msk.bf16.vlgmr.msra.gmra.mrb[0].mxu0 %vm1256_vm0, %v1088_v11  ;;  %v894_v24 = vunpack.i.h.s16 %v655_v57  ;;  %v1090_v25 = vcombine.low %v684_v7, %v691_v16  ;;  %v729_v28 = vrot.slane %v715_v19, %v10503_v15  ;;  %v906_v29 = vunpack.i.h.s16 %v722_v20  ;;  %v10098_v19 = vld [vmem:[%s12233_s2 + $0x118] sm:$0xff] }
  0x32   : > { %10227 = vmatpush3.bf16.msra.mxu0 %v10487_v10  ;;  %v9821_v30 = vpack.i.b16 %v655_v57, %v892_v21  ;;  %v9823_v31 = vpack.i.b16 %v722_v20, %v707_v8  ;;  %v1227_v33 = vrot.slane %v1219_v22, %v10503_v15  ;;  %v9834_v35 = vcombine.high %v684_v7, %v691_v16 }
  0x33   : > { %v9822_v34 = vpack.i.b16 %v669_v61, %v894_v24  ;;  %v1106_v36 = vrot.slane %v1090_v25, %v10503_v15  ;;  %v9824_v38 = vpack.i.b16 %v729_v28, %v906_v29  ;;  %v730_v39 = vcombine.high %v722_v20, %v722_v20  ;;  %7628 = vperm.xlu0 %10327, %v10097_v27   ;;  %v10099_v24 = vld [vmem:[%s12233_s2 + $0x120] sm:$0xff] }
  0x34   : > { %v731_v40 = vcombine.high %v729_v28, %v729_v28  ;;  %v745_v41 = vrot.slane %v9805_v26, %v10503_v15  ;;  %v1235_v10 = vcombine.low %v1227_v33, %v1234_v18  ;;  %v1113_v43 = vrot.slane %v9834_v35, %v10503_v15  ;;  %7623 = vperm.xlu1 %10328, %v10096_v6   ;;  %v9874_v18 = vld.sshfl [vmem:[%s10497_s30 + $0x54] sm:$0x1 pattern:$0x75316420] }
  0x35   : > { %v1089_v42 = vcombine.low %v9821_v30, %v9822_v34  ;;  %v753_v44 = vcombine.high %v9806_v32, %v9806_v32  ;;  %v1092_v45 = vcombine.low %v9823_v31, %v9824_v38  ;;  %v760_v46 = vrot.slane %v9806_v32, %v10503_v15  ;;  %v9875_v31 = vld.sshfl [vmem:[%s10497_s30 + $0x58] sm:$0x33 pattern:$0x75316420] }
  0x36   : > { %v783_v47 = vrot.slane %v9807_v37, %v10503_v15  ;;  %v908_v48 = vunpack.i.h.s16 %v729_v28  ;;  %10208 = vmatprep.mubr.msk.bf16.mxu1 %vm1256_vm0, %v1235_v10  ;;  %v910_v52 = vunpack.i.h.s16 %v730_v39  ;;  %v912_v53 = vunpack.i.h.s16 %v731_v40  ;;  %v9922_v37 = vld [vmem:[%s12233_s2 + $0x68] sm:$0xff]  ;;  %v9876_v10 = vld.sshfl [vmem:[%s10497_s30 + $0x5c] sm:$0x1 pattern:$0x75316420] }
  0x37   : > { %v1099_v50 = vrot.slane %v1089_v42, %v10503_v15  ;;  %v767_v51 = vrot.slane %v753_v44, %v10503_v15  ;;  %10209 = vmatmul.mubr.msk.bf16.vlgmr.msra.gmra.mrb[0].mxu1 %vm1256_vm0, %v1249_v23  ;;  %v1120_v55 = vrot.slane %v1092_v45, %v10503_v15  ;;  %v768_v56 = vcombine.high %v760_v46, %v760_v46  ;;  %v9923_v42 = vld [vmem:[%s12233_s2 + $0x70] sm:$0xff] }
  0x38   : > { %v9825_v57 = vpack.i.b16 %v730_v39, %v908_v48  ;;  %v9828_v58 = vpack.i.b16 %v10557_v17, %v783_v47  ;;  %10213 = vmatpush3.bf16.msra.mxu1 %v10492_v12  ;;  %v9826_v62 = vpack.i.b16 %v731_v40, %v910_v52  ;;  %v9827_v63 = vpack.i.b16 %v745_v41, %v912_v53 }
  0x39   : > { %v1121_v60 = vcombine.low %v1099_v50, %v1106_v36  ;;  %v769_v61 = vcombine.high %v767_v51, %v767_v51  ;;  %v1122_v3 = vcombine.low %v1113_v43, %v1120_v55  ;;  %v1140_v4 = vcombine.low %v767_v51, %v768_v56  ;;  %10240 = vmatprep.subr.bf16.mxu1 %v10632_v49 }
  0x3a   : > { %v2607_v17 = vcombine.high %v9871_v54, %v9871_v54  ;;  %v2614_v5 = vrot.slane %v9871_v54, %v10503_v15  ;;  %v1138_v7 = vcombine.low %v9825_v57, %v9826_v62  ;;  %v1139_v8 = vcombine.low %v9827_v63, %v760_v46  ;;  %3466 = vperm.xlu0 %10327, %v9921_v59   ;;  %v9877_v46 = vld.sshfl [vmem:[%s10497_s30 + $0x60] sm:$0x33 pattern:$0x75316420]  ;;  %v10100_v57 = vld [vmem:[%s12233_s2 + $0x128] sm:$0xff]  ;;  %v9924_v63 = vld [vmem:[%s12233_s2 + $0x78] sm:$0xff] }
  0x3b   : > { %v1129_v12 = vrot.slane %v1121_v60, %v10503_v15  ;;  %v1141_v9 = vcombine.low %v769_v61, %v9828_v58  ;;  %v1136_v11 = vrot.slane %v1122_v3, %v10503_v15  ;;  %v1162_v13 = vrot.slane %v1140_v4, %v10503_v15  ;;  %3461 = vperm.xlu1 %10328, %v9920_v2   ;;  %v9959_v62 = vld.sshfl [vmem:[%s10497_s30 + $0x90] sm:$0x33 pattern:$0x75316420] }
  0x3c   : > { %v2621_v14 = vrot.slane %v2607_v17, %v10503_v15  ;;  %v2637_v16 = vrot.slane %v9872_v0, %v10503_v15  ;;  %v1148_v20 = vrot.slane %v1138_v7, %v10503_v15  ;;  %v1155_v21 = vrot.slane %v1139_v8, %v10503_v15  ;;  %v9960_v7 = vld.sshfl [vmem:[%s10497_s30 + $0x94] sm:$0x1 pattern:$0x75316420] }
  0x3d   : > { %v1169_v22 = vrot.slane %v1141_v9, %v10503_v15  ;;  %v2645_v23 = vcombine.high %v9873_v1, %v9873_v1  ;;  %v1137_v25 = vcombine.low %v1129_v12, %v1136_v11  ;;  %v2652_v26 = vrot.slane %v9873_v1, %v10503_v15 }
  0x3e   : > { %v3073_v27 = vcombine.low %v2614_v5, %v2621_v14  ;;  %v9910_v6 = vcombine.high %v2614_v5, %v2621_v14  ;;  %v1170_v28 = vcombine.low %v1148_v20, %v1155_v21  ;;  %v2675_v32 = vrot.slane %v9874_v18, %v10503_v15  ;;  %7633 = vperm.xlu0 %10327, %v10098_v19   ;;  %v9962_v21 = vld.sshfl [vmem:[%s10497_s30 + $0x9c] sm:$0x1 pattern:$0x75316420] }
  0x3f   : > { %v1171_v29 = vcombine.low %v1162_v13, %v1169_v22  ;;  %v2659_v30 = vrot.slane %v2645_v23, %v10503_v15  ;;  %10204 = vmatprep.mubr.msk.bf16.mxu0 %vm1256_vm0, %v1137_v25  ;;  %v2660_v33 = vcombine.high %v2652_v26, %v2652_v26  ;;  %v2952_v34 = vunpack.i.h.s16 %v2652_v26  ;;  %7638 = vperm.xlu1 %10328, %v10099_v24   ;;  %v9961_v13 = vld.sshfl [vmem:[%s10497_s30 + $0x98] sm:$0x33 pattern:$0x75316420] }
  0x40   : > { %v9890_v35 = vpack.i.b16 %v2652_v26, %v2637_v16  ;;  %v3083_v36 = vrot.slane %v3073_v27, %v10503_v15  ;;  %v1178_v38 = vrot.slane %v1170_v28, %v10503_v15  ;;  %v3090_v45 = vrot.slane %v9910_v6, %v10503_v15  ;;  %v10101_v16 = vld [vmem:[%s12233_s2 + $0x130] sm:$0xff]  ;;  %v10102_v23 = vld [vmem:[%s12233_s2 + $0x138] sm:$0xff] }
  0x41   : > { %v1185_v39 = vrot.slane %v1171_v29, %v10503_v15  ;;  %v2661_v40 = vcombine.high %v2659_v30, %v2659_v30  ;;  %v2954_v41 = vunpack.i.h.s16 %v2659_v30  ;;  %v2956_v43 = vunpack.i.h.s16 %v2660_v33 }
  0x42   : > { %v9891_v44 = vpack.i.b16 %v2659_v30, %v2952_v34  ;;  %v2683_v47 = vcombine.high %v9875_v31, %v9875_v31  ;;  %v2690_v52 = vrot.slane %v9875_v31, %v10503_v15  ;;  %3471 = vperm.xlu0 %10327, %v9922_v37   ;;  %v3105_v55 = vcombine.low %v3083_v36, %v3090_v45 }
  0x43   : > { %v1186_v48 = vcombine.low %v1178_v38, %v1185_v39  ;;  %v2958_v50 = vunpack.i.h.s16 %v2661_v40  ;;  %v9892_v51 = vpack.i.b16 %v2660_v33, %v2954_v41  ;;  %v9893_v53 = vpack.i.b16 %v2661_v40, %v2956_v43  ;;  %3476 = vperm.xlu1 %10328, %v9923_v42   ;;  %v9926_v40 = vld [vmem:[%s12233_s2 + $0x88] sm:$0xff] }
  0x44   : > { %v3075_v54 = vcombine.low %v9890_v35, %v9891_v44  ;;  %v2697_v56 = vrot.slane %v2683_v47, %v10503_v15  ;;  %v2698_v58 = vcombine.high %v2690_v52, %v2690_v52  ;;  %v2713_v59 = vrot.slane %v9876_v10, %v10503_v15  ;;  %v9925_v35 = vld [vmem:[%s12233_s2 + $0x80] sm:$0xff] }
  0x45   : > { %10205 = vmatmul.mubr.msk.bf16.gmra.mrb[4].mxu0 %vm1256_vm0, %v1186_v48  ;;  %v2721_v60 = vcombine.high %v9877_v46, %v9877_v46  ;;  %v2728_v61 = vrot.slane %v9877_v46, %v10503_v15  ;;  %v3076_v0 = vcombine.low %v9892_v51, %v9893_v53  ;;  %v3113_v3 = vrot.slane %v3105_v55, %v10503_v15  ;;  %v9878_v48 = vld.sshfl [vmem:[%s10497_s30 + $0x64] sm:$0x1 pattern:$0x75316420] }
  0x46   : > { %v3097_v2 = vrot.slane %v3075_v54, %v10503_v15  ;;  %v2699_v4 = vcombine.high %v2697_v56, %v2697_v56  ;;  %v9894_v12 = vpack.i.b16 %v2675_v32, %v2958_v50  ;;  %7643 = vperm.xlu0 %10327, %v10100_v57   ;;  %v3123_v11 = vcombine.low %v2697_v56, %v2698_v58  ;;  %v9879_v54 = vld.sshfl [vmem:[%s10497_s30 + $0x68] sm:$0x33 pattern:$0x75316420]  ;;  %v10103_v55 = vld [vmem:[%s12233_s2 + $0x140] sm:$0xff] }
  0x47   : > { %v2735_v1 = vrot.slane %v2721_v60, %v10503_v15  ;;  %v10699_v17 = vcombine.high %v2728_v61, %v2728_v61  ;;  %v2970_v5 = vunpack.i.h.s16 %v2728_v61  ;;  %v3104_v8 = vrot.slane %v3076_v0, %v10503_v15  ;;  %3481 = vperm.xlu1 %10328, %v9924_v63  }
  0x48   : > { %v9895_v9 = vpack.i.b16 %v2728_v61, %v2713_v59  ;;  %v4688_v14 = vcombine.high %v9959_v62, %v9959_v62  ;;  %v3122_v20 = vcombine.low %v9894_v12, %v2690_v52  ;;  %v4695_v22 = vrot.slane %v9959_v62, %v10503_v15  ;;  %v9880_v59 = vld.sshfl [vmem:[%s10497_s30 + $0x6c] sm:$0x1 pattern:$0x75316420] }
  0x49   : > { %v2972_v18 = vunpack.i.h.s16 %v2735_v1  ;;  %v9896_v19 = vpack.i.b16 %v2735_v1, %v2970_v5  ;;  %v3106_v24 = vcombine.low %v3097_v2, %v3104_v8  ;;  %v3139_v26 = vrot.slane %v3123_v11, %v10503_v15  ;;  %v10104_v61 = vld [vmem:[%s12233_s2 + $0x148] sm:$0xff]  ;;  %v9881_v2 = vld.sshfl [vmem:[%s10497_s30 + $0x70] sm:$0x33 pattern:$0x75316420] }
  0x4a   : > { %v3124_v25 = vcombine.low %v2699_v4, %v9895_v9  ;;  %v4702_v27 = vrot.slane %v4688_v14, %v10503_v15  ;;  %v3132_v28 = vrot.slane %v3122_v20, %v10503_v15  ;;  %v4718_v29 = vrot.slane %v9960_v7, %v10503_v15  ;;  %7648 = vperm.xlu0 %10327, %v10101_v16  }
  0x4b   : > { %v9897_v6 = vpack.i.b16 %v10699_v17, %v2972_v18  ;;  %v4726_v30 = vcombine.high %v9961_v13, %v9961_v13  ;;  %v3120_v31 = vrot.slane %v3106_v24, %v10503_v15  ;;  %v4733_v33 = vrot.slane %v9961_v13, %v10503_v15  ;;  %7653 = vperm.xlu1 %10328, %v10102_v23   ;;  %v9927_v13 = vld [vmem:[%s12233_s2 + $0x90] sm:$0xff]  ;;  %v9963_v24 = vld.sshfl [vmem:[%s10497_s30 + $0xa0] sm:$0x33 pattern:$0x75316420] }
  0x4c   : > { %v3146_v32 = vrot.slane %v3124_v25, %v10503_v15  ;;  %v4756_v34 = vrot.slane %v9962_v21, %v10503_v15  ;;  %v3154_v37 = vcombine.low %v3132_v28, %v3139_v26  ;;  %v5154_v39 = vcombine.low %v4695_v22, %v4702_v27  ;;  %v9928_v25 = vld [vmem:[%s12233_s2 + $0x98] sm:$0xff] }
  0x4d   : > { %v3125_v36 = vcombine.low %v9896_v19, %v9897_v6  ;;  %v4740_v38 = vrot.slane %v4726_v30, %v10503_v15  ;;  %v3121_v41 = vcombine.low %v3113_v3, %v3120_v31  ;;  %v4741_v10 = vcombine.high %v4733_v33, %v4733_v33 }
  0x4e   : > { %v5033_v42 = vunpack.i.h.s16 %v4733_v33  ;;  %v9978_v43 = vpack.i.b16 %v4733_v33, %v4718_v29  ;;  %v3162_v45 = vrot.slane %v3154_v37, %v10503_v15  ;;  %3486 = vperm.xlu0 %10327, %v9925_v35   ;;  %v9998_v52 = vcombine.high %v4695_v22, %v4702_v27  ;;  %v9964_v29 = vld.sshfl [vmem:[%s10497_s30 + $0xa4] sm:$0x1 pattern:$0x75316420] }
  0x4f   : > { %v3153_v44 = vrot.slane %v3125_v36, %v10503_v15  ;;  %v4742_v46 = vcombine.high %v4740_v38, %v4740_v38  ;;  %v5035_v47 = vunpack.i.h.s16 %v4740_v38  ;;  %10214 = vmatprep.mubr.msk.bf16.mxu1 %vm1256_vm0, %v3121_v41  ;;  %v5037_v50 = vunpack.i.h.s16 %v4741_v10  ;;  %3491 = vperm.xlu1 %10328, %v9926_v40   ;;  %v9965_v33 = vld.sshfl [vmem:[%s10497_s30 + $0xa8] sm:$0x33 pattern:$0x75316420] }
  0x50   : > { %v9979_v51 = vpack.i.b16 %v4740_v38, %v5033_v42  ;;  %v5164_v53 = vrot.slane %v5154_v39, %v10503_v15  ;;  %v2737_v60 = vcombine.high %v2735_v1, %v2735_v1  ;;  %v5171_v0 = vrot.slane %v9998_v52, %v10503_v15 }
  0x51   : > { %v3155_v56 = vcombine.low %v3146_v32, %v3153_v44  ;;  %v5039_v57 = vunpack.i.h.s16 %v4742_v46  ;;  %v9980_v58 = vpack.i.b16 %v4741_v10, %v5035_v47  ;;  %v9981_v62 = vpack.i.b16 %v4742_v46, %v5037_v50 }
  0x52   : > { %v5156_v63 = vcombine.low %v9978_v43, %v9979_v51  ;;  %v2751_v3 = vrot.slane %v9878_v48, %v10503_v15  ;;  %v2759_v12 = vcombine.high %v9879_v54, %v9879_v54  ;;  %v2766_v7 = vrot.slane %v9879_v54, %v10503_v15  ;;  %7658 = vperm.xlu0 %10327, %v10103_v55   ;;  %v1376_v51 = vld [vmem:[%s12233_s2 + $0x50] sm:$0x1] }
  0x53   : > { %v3169_v4 = vrot.slane %v3155_v56, %v10503_v15  ;;  %v10745_v5 = vpack.i.b16 %v4756_v34, %v5039_v57  ;;  %v5157_v1 = vcombine.low %v9980_v58, %v9981_v62  ;;  %v5186_v9 = vcombine.low %v5164_v53, %v5171_v0  ;;  %7663 = vperm.xlu1 %10328, %v10104_v61   ;;  %v9929_v34 = vld [vmem:[%s12233_s2 + $0xa0] sm:$0xff] }
  0x54   : > { %v5178_v8 = vrot.slane %v5156_v63, %v10503_v15  ;;  %v2789_v11 = vrot.slane %v9880_v59, %v10503_v15  ;;  %v2773_v16 = vrot.slane %v2759_v12, %v10503_v15  ;;  %v2797_v18 = vcombine.high %v9881_v2, %v9881_v2  ;;  %v9044_v61 = vld [vmem:[%s12239_s8] sm:$0xff] }
  0x55   : > { %v3170_v14 = vcombine.low %v3162_v45, %v3169_v4  ;;  %v2804_v19 = vrot.slane %v9881_v2, %v10503_v15  ;;  %v5185_v20 = vrot.slane %v5157_v1, %v10503_v15  ;;  %v5194_v21 = vrot.slane %v5186_v9, %v10503_v15 }
  0x56   : > { %v2974_v22 = vunpack.i.h.s16 %v10699_v17  ;;  %v2976_v23 = vunpack.i.h.s16 %v2737_v60  ;;  %v10764_v26 = vrot.slane %v2797_v18, %v10503_v15  ;;  %v3172_v28 = vcombine.low %v2766_v7, %v2773_v16  ;;  %3496 = vperm.xlu0 %10327, %v9927_v13  }
  0x57   : > { %10215 = vmatmul.mubr.msk.bf16.vlgmr.msra.gmra.mrb[4].mxu1 %vm1256_vm0, %v3170_v14  ;;  %v2988_v27 = vunpack.i.h.s16 %v2804_v19  ;;  %v9900_v6 = vpack.i.b16 %v2804_v19, %v2789_v11  ;;  %v5187_v30 = vcombine.low %v5178_v8, %v5185_v20  ;;  %v9911_v17 = vcombine.high %v2766_v7, %v2773_v16  ;;  %3501 = vperm.xlu1 %10328, %v9928_v25   ;;  %v9884_v7 = vld.sshfl [vmem:[%s10497_s30 + $0x7c] sm:$0x1 pattern:$0x75316420]  ;;  %v9045_v8 = vld [vmem:[%s12239_s8 + $0x8] sm:$0xff] }
  0x58   : > { %v9898_v31 = vpack.i.b16 %v2737_v60, %v2974_v22  ;;  %v9899_v32 = vpack.i.b16 %v2751_v3, %v2976_v23  ;;  %10241 = vmatpush3.bf16.msra.mxu1 %v10632_v49  ;;  %v3188_v36 = vrot.slane %v3172_v28, %v10503_v15  ;;  %v4764_v37 = vcombine.high %v9963_v24, %v9963_v24  ;;  %v1375_v49 = vld [vmem:[%s12233_s2 + $0x48] sm:$0xff]  ;;  %v9882_v60 = vld.sshfl [vmem:[%s10497_s30 + $0x74] sm:$0x1 pattern:$0x75316420] }
  0x59   : > { %v9901_v35 = vpack.i.b16 %v10764_v26, %v2988_v27  ;;  %v4771_v38 = vrot.slane %v9963_v24, %v10503_v15  ;;  %v5201_v39 = vrot.slane %v5187_v30, %v10503_v15  ;;  %v3195_v41 = vrot.slane %v9911_v17, %v10503_v15  ;;  %v9883_v3 = vld.sshfl [vmem:[%s10497_s30 + $0x78] sm:$0x33 pattern:$0x75316420]  ;;  %v9046_v22 = vld [vmem:[%s12239_s8 + $0x10] sm:$0xff] }
  0x5a   : > { %v3171_v40 = vcombine.low %v9898_v31, %v9899_v32  ;;  %v4794_v10 = vrot.slane %v9964_v29, %v10503_v15  ;;  %v4778_v43 = vrot.slane %v4764_v37, %v10503_v15  ;;  %v4802_v45 = vcombine.high %v9965_v33, %v9965_v33  ;;  %3506 = vperm.xlu0 %10327, %v9929_v34   ;;  %v10808_v14 = vld.sshfl [vmem:[%s10497_s30 + $0x80] sm:$0x33 pattern:$0x75316420]  ;;  %v9047_v32 = vld [vmem:[%s12239_s8 + $0x18] sm:$0xff] }
  0x5b   : > { %v3174_v42 = vcombine.low %v9900_v6, %v9901_v35  ;;  %v4779_v44 = vcombine.high %v4771_v38, %v4771_v38  ;;  %v5202_v46 = vcombine.low %v5194_v21, %v5201_v39  ;;  %v4809_v48 = vrot.slane %v9965_v33, %v10503_v15  ;;  %1424 = vperm.xlu1 %10328, %v1375_v49   ;;  %v9966_v31 = vld.sshfl [vmem:[%s10497_s30 + $0xac] sm:$0x1 pattern:$0x75316420] }
  0x5c   : > { %v3181_v47 = vrot.slane %v3171_v40, %v10503_v15  ;;  %v5203_v50 = vcombine.low %v10745_v5, %v4771_v38  ;;  %v4780_v53 = vcombine.high %v4778_v43, %v4778_v43  ;;  %v4816_v54 = vrot.slane %v4802_v45, %v10503_v15  ;;  %v9967_v35 = vld.sshfl [vmem:[%s10497_s30 + $0xb0] sm:$0x33 pattern:$0x75316420] }
  0x5d   : > { %v3202_v52 = vrot.slane %v3174_v42, %v10503_v15  ;;  %v5204_v55 = vcombine.low %v4778_v43, %v4779_v44  ;;  %10228 = vmatprep.mubr.msk.bf16.mxu0 %vm1256_vm0, %v5202_v46  ;;  %v10791_v57 = vcombine.high %v4809_v48, %v4809_v48  ;;  %v5051_v58 = vunpack.i.h.s16 %v4809_v48  ;;  %v9968_v40 = vld.sshfl [vmem:[%s10497_s30 + $0xb4] sm:$0x1 pattern:$0x75316420] }
  0x5e   : > { %v3203_v56 = vcombine.low %v3181_v47, %v3188_v36  ;;  %v9983_v59 = vpack.i.b16 %v4809_v48, %v4794_v10  ;;  %v5053_v63 = vunpack.i.h.s16 %v4816_v54  ;;  %v5213_v0 = vrot.slane %v5203_v50, %v10503_v15  ;;  %1429 = vperm.xlu0 %10327, %v1376_v51   ;;  %v9969_v43 = vld.sshfl [vmem:[%s10497_s30 + $0xb8] sm:$0x33 pattern:$0x75316420]  ;;  %v10105_v50 = vld [vmem:[%s12233_s2 + $0x150] sm:$0xff] }
  0x5f   : > { %v3204_v62 = vcombine.low %v3195_v41, %v3202_v52  ;;  %v5220_v2 = vrot.slane %v5204_v55, %v10503_v15  ;;  %v9984_v5 = vpack.i.b16 %v4816_v54, %v5051_v58  ;;  %v2812_v1 = vcombine.high %v2804_v19, %v2804_v19  ;;  %9050 = vperm.xlu1 %10328, %v9044_v61   ;;  %v10017_v41 = vld [vmem:[%s12233_s2 + $0xf8] sm:$0xff] }
  0x60   : > { %v3211_v4 = vrot.slane %v3203_v56, %v10503_v15  ;;  %v5205_v12 = vcombine.low %v4780_v53, %v9983_v59  ;;  %v9985_v11 = vpack.i.b16 %v10791_v57, %v5053_v63  ;;  %v2813_v16 = vcombine.high %v10764_v26, %v10764_v26 }
  0x61   : > { %v3218_v9 = vrot.slane %v3204_v62, %v10503_v15  ;;  %v5235_v13 = vcombine.low %v5213_v0, %v5220_v2  ;;  %v2827_v19 = vrot.slane %v9882_v60, %v10503_v15  ;;  %v2835_v20 = vcombine.high %v9883_v3, %v9883_v3  ;;  %v9930_v0 = vld [vmem:[%s12233_s2 + $0xa8] sm:$0x1] }
  0x62   : > { %v5227_v18 = vrot.slane %v5205_v12, %v10503_v15  ;;  %v2842_v21 = vrot.slane %v9883_v3, %v10503_v15  ;;  %v5206_v24 = vcombine.low %v9984_v5, %v9985_v11  ;;  %v2865_v27 = vrot.slane %v9884_v7, %v10503_v15  ;;  %9055 = vperm.xlu0 %10327, %v9045_v8   ;;  %v10018_v12 = vld [vmem:[%s12233_s2 + $0x100] sm:$0x1] }
  0x63   : > { %v3219_v23 = vcombine.low %v3211_v4, %v3218_v9  ;;  %v5243_v25 = vrot.slane %v5235_v13, %v10503_v15  ;;  %v2849_v6 = vrot.slane %v2835_v20, %v10503_v15  ;;  %v10823_v29 = vrot.slane %v10808_v14, %v10503_v15  ;;  %9060 = vperm.xlu1 %10328, %v9046_v22   ;;  %v9886_v9 = vld.sshfl [vmem:[%s10497_s30 + $0x84] sm:$0x1 pattern:$0x75316420] }
  0x64   : > { %v2850_v28 = vcombine.high %v2842_v21, %v2842_v21  ;;  %v2990_v30 = vunpack.i.h.s16 %v10764_v26  ;;  %v5234_v17 = vrot.slane %v5206_v24, %v10503_v15  ;;  %v2992_v33 = vunpack.i.h.s16 %v2812_v1  ;;  %v10106_v24 = vld [vmem:[%s12233_s2 + $0x158] sm:$0x1] }
  0x65   : > { %10218 = vmatprep.mubr.msk.bf16.mxu1 %vm1256_vm0, %v3219_v23  ;;  %v2994_v34 = vunpack.i.h.s16 %v2813_v16  ;;  %v4818_v36 = vcombine.high %v4816_v54, %v4816_v54  ;;  %v2851_v37 = vcombine.high %v2849_v6, %v2849_v6  ;;  %v9905_v39 = vpack.i.b16 %v10823_v29, %v2865_v27 }
  0x66   : > { %v9902_v38 = vpack.i.b16 %v2812_v1, %v2990_v30  ;;  %v3222_v26 = vcombine.low %v2849_v6, %v2850_v28  ;;  %v5236_v10 = vcombine.low %v5227_v18, %v5234_v17  ;;  %v9903_v49 = vpack.i.b16 %v2813_v16, %v2992_v33  ;;  %9065 = vperm.xlu0 %10327, %v9047_v32   ;;  %v9557_v30 = vld [vmem:[%s12240_s9] sm:$0xff] }
  0x67   : > { %v9904_v42 = vpack.i.b16 %v2827_v19, %v2994_v34  ;;  %v4832_v44 = vrot.slane %v9966_v31, %v10503_v15  ;;  %v3223_v45 = vcombine.low %v2851_v37, %v9905_v39  ;;  %v4840_v47 = vcombine.high %v9967_v35, %v9967_v35  ;;  %5587 = vperm.xlu1 %10328, %v10017_v41   ;;  %v9887_v19 = vld.sshfl [vmem:[%s10497_s30 + $0x88] sm:$0x33 pattern:$0x75316420] }
  0x68   : > { %v3244_v46 = vrot.slane %v3222_v26, %v10503_v15  ;;  %v4847_v48 = vrot.slane %v9967_v35, %v10503_v15  ;;  %v5250_v51 = vrot.slane %v5236_v10, %v10503_v15  ;;  %v3220_v52 = vcombine.low %v9902_v38, %v9903_v49  ;;  %v9970_v26 = vld.sshfl [vmem:[%s10497_s30 + $0xbc] sm:$0x1 pattern:$0x75316420]  ;;  %v9558_v41 = vld [vmem:[%s12240_s9 + $0x8] sm:$0xff] }
  0x69   : > { %v3221_v53 = vcombine.low %v9904_v42, %v2842_v21  ;;  %v4870_v54 = vrot.slane %v9968_v40, %v10503_v15  ;;  %v3251_v55 = vrot.slane %v3223_v45, %v10503_v15  ;;  %v4854_v56 = vrot.slane %v4840_v47, %v10503_v15  ;;  %v9971_v42 = vld.sshfl [vmem:[%s10497_s30 + $0xc0] sm:$0x33 pattern:$0x75316420] }
  0x6a   : > { %v4878_v58 = vcombine.high %v9969_v43, %v9969_v43  ;;  %v4885_v59 = vrot.slane %v9969_v43, %v10503_v15  ;;  %v5251_v60 = vcombine.low %v5243_v25, %v5250_v51  ;;  %v3230_v61 = vrot.slane %v3220_v52, %v10503_v15  ;;  %7668 = vperm.xlu0 %10327, %v10105_v50   ;;  %v9972_v50 = vld.sshfl [vmem:[%s10497_s30 + $0xc4] sm:$0x1 pattern:$0x75316420] }
  0x6b   : > { %v3237_v62 = vrot.slane %v3221_v53, %v10503_v15  ;;  %v5055_v63 = vunpack.i.h.s16 %v10791_v57  ;;  %v3253_v2 = vcombine.low %v3244_v46, %v3251_v55  ;;  %v5057_v4 = vunpack.i.h.s16 %v4818_v36  ;;  %3511 = vperm.xlu1 %10328, %v9930_v0  }
  0x6c   : > { %v10857_v3 = vrot.slane %v4878_v58, %v10503_v15  ;;  %v5069_v5 = vunpack.i.h.s16 %v4885_v59  ;;  %10229 = vmatmul.mubr.msk.bf16.vlgmr.msra.gmra.mrb[8].mxu0 %vm1256_vm0, %v5251_v60  ;;  %v9988_v1 = vpack.i.b16 %v4885_v59, %v4870_v54  ;;  %v5253_v8 = vcombine.low %v4847_v48, %v4854_v56  ;;  %v9973_v54 = vld.sshfl [vmem:[%s10497_s30 + $0xc8] sm:$0x33 pattern:$0x75316420] }
  0x6d   : > { %v3252_v7 = vcombine.low %v3230_v61, %v3237_v62  ;;  %v9986_v57 = vpack.i.b16 %v4818_v36, %v5055_v63  ;;  %v3267_v11 = vrot.slane %v3253_v2, %v10503_v15  ;;  %v9987_v13 = vpack.i.b16 %v4832_v44, %v5057_v4  ;;  %v9559_v44 = vld [vmem:[%s12240_s9 + $0x10] sm:$0xff]  ;;  %v9560_v61 = vld [vmem:[%s12240_s9 + $0x18] sm:$0xff]  ;;  %v9670_v4 = vld [vmem:[%s12243_s12] sm:$0xff] }
  0x6e   : > { %v9989_v16 = vpack.i.b16 %v10857_v3, %v5069_v5  ;;  %v9999_v18 = vcombine.high %v4847_v48, %v4854_v56  ;;  %v5269_v21 = vrot.slane %v5253_v8, %v10503_v15  ;;  %v2873_v22 = vcombine.high %v10808_v14, %v10808_v14  ;;  %5592 = vperm.xlu0 %10327, %v10018_v12  }
  0x6f   : > { %v3260_v20 = vrot.slane %v3252_v7, %v10503_v15  ;;  %v2888_v23 = vcombine.high %v10823_v29, %v10823_v29  ;;  %v5252_v25 = vcombine.low %v9986_v57, %v9987_v13  ;;  %v2903_v28 = vrot.slane %v9886_v9, %v10503_v15  ;;  %7673 = vperm.xlu1 %10328, %v10106_v24   ;;  %v9888_v13 = vld.sshfl [vmem:[%s10497_s30 + $0x8c] sm:$0x1 pattern:$0x75316420] }
  0x70   : > { %v5255_v27 = vcombine.low %v9988_v1, %v9989_v16  ;;  %v5276_v6 = vrot.slane %v9999_v18, %v10503_v15  ;;  %v2887_v31 = vrot.slane %v2873_v22, %v10503_v15  ;;  %v2911_v32 = vcombine.high %v9887_v19, %v9887_v19 }
  0x71   : > { %v3268_v14 = vcombine.low %v3260_v20, %v3267_v11  ;;  %v2918_v17 = vrot.slane %v9887_v19, %v10503_v15  ;;  %v5262_v33 = vrot.slane %v5252_v25, %v10503_v15  ;;  %v3006_v35 = vunpack.i.h.s16 %v10823_v29 }
  0x72   : > { %v5283_v34 = vrot.slane %v5255_v27, %v10503_v15  ;;  %v3010_v36 = vunpack.i.h.s16 %v2888_v23  ;;  %v2889_v37 = vcombine.high %v2887_v31, %v2887_v31  ;;  %v2925_v38 = vrot.slane %v2911_v32, %v10503_v15  ;;  %9563 = vperm.xlu0 %10327, %v9557_v30   ;;  %v9672_v27 = vld [vmem:[%s12243_s12 + $0x10] sm:$0xff] }
  0x73   : > { %10219 = vmatmul.mubr.msk.bf16.gmra.mrb[8].mxu1 %vm1256_vm0, %v3268_v14  ;;  %v3008_v39 = vunpack.i.h.s16 %v2887_v31  ;;  %v4893_v40 = vcombine.high %v4885_v59, %v4885_v59  ;;  %v5284_v10 = vcombine.low %v5262_v33, %v5269_v21  ;;  %v9906_v29 = vpack.i.b16 %v2887_v31, %v3006_v35  ;;  %9568 = vperm.xlu1 %10328, %v9558_v41   ;;  %v9671_v21 = vld [vmem:[%s12243_s12 + $0x8] sm:$0xff]  ;;  %v9975_v31 = vld.sshfl [vmem:[%s10497_s30 + $0xd0] sm:$0x33 pattern:$0x75316420] }
  0x74   : > { %v5285_v49 = vcombine.low %v5276_v6, %v5283_v34  ;;  %v4894_v43 = vcombine.high %v10857_v3, %v10857_v3  ;;  %v3012_v45 = vunpack.i.h.s16 %v2889_v37  ;;  %v9908_v47 = vpack.i.b16 %v2889_v37, %v3010_v36 }
  0x75   : > { %v9907_v46 = vpack.i.b16 %v2888_v23, %v3008_v39  ;;  %v3271_v48 = vcombine.low %v2918_v17, %v2925_v38  ;;  %v5292_v51 = vrot.slane %v5284_v10, %v10503_v15  ;;  %v9912_v53 = vcombine.high %v2918_v17, %v2925_v38  ;;  %v9673_v39 = vld [vmem:[%s12243_s12 + $0x18] sm:$0xff] }
  0x76   : > { %v5299_v52 = vrot.slane %v5285_v49, %v10503_v15  ;;  %v4908_v55 = vrot.slane %v9970_v26, %v10503_v15  ;;  %v9909_v56 = vpack.i.b16 %v2903_v28, %v3012_v45  ;;  %v4916_v60 = vcombine.high %v9971_v42, %v9971_v42  ;;  %9573 = vperm.xlu0 %10327, %v9559_v44  }
  0x77   : > { %v3269_v58 = vcombine.low %v9906_v29, %v9907_v46  ;;  %v3293_v59 = vrot.slane %v3271_v48, %v10503_v15  ;;  %v3300_v63 = vrot.slane %v9912_v53, %v10503_v15  ;;  %v4923_v0 = vrot.slane %v9971_v42, %v10503_v15  ;;  %9578 = vperm.xlu1 %10328, %v9560_v61   ;;  %v9976_v48 = vld.sshfl [vmem:[%s10497_s30 + $0xd4] sm:$0x1 pattern:$0x75316420] }
  0x78   : > { %v5300_v62 = vcombine.low %v5292_v51, %v5299_v52  ;;  %v4946_v2 = vrot.slane %v9972_v50, %v10503_v15  ;;  %v3270_v5 = vcombine.low %v9908_v47, %v9909_v56  ;;  %v4930_v7 = vrot.slane %v4916_v60, %v10503_v15 }
  0x79   : > { %v3279_v12 = vrot.slane %v3269_v58, %v10503_v15  ;;  %v4961_v57 = vrot.slane %v9973_v54, %v10503_v15  ;;  %v3302_v1 = vcombine.low %v3293_v59, %v3300_v63  ;;  %v4931_v8 = vcombine.high %v4923_v0, %v4923_v0 }
  0x7a   : > { %10232 = vmatprep.mubr.msk.bf16.mxu0 %vm1256_vm0, %v5300_v62  ;;  %v5071_v9 = vunpack.i.h.s16 %v10857_v3  ;;  %v5073_v11 = vunpack.i.h.s16 %v4893_v40  ;;  %v3286_v16 = vrot.slane %v3270_v5, %v10503_v15  ;;  %v4932_v18 = vcombine.high %v4930_v7, %v4930_v7  ;;  %9676 = vperm.xlu0 %10327, %v9670_v4   ;;  %v9974_v3 = vld.sshfl [vmem:[%s10497_s30 + $0xcc] sm:$0x1 pattern:$0x75316420] }
  0x7b   : > { %v5075_v19 = vunpack.i.h.s16 %v4894_v43  ;;  %v9993_v20 = vpack.i.b16 %v4961_v57, %v4946_v2  ;;  %v3316_v22 = vrot.slane %v3302_v1, %v10503_v15  ;;  %v5303_v25 = vcombine.low %v4930_v7, %v4931_v8  ;;  %9681 = vperm.xlu1 %10328, %v9671_v21  }
  0x7c   : > { %v9990_v23 = vpack.i.b16 %v4893_v40, %v5071_v9  ;;  %v9991_v24 = vpack.i.b16 %v4894_v43, %v5073_v11  ;;  %v3301_v6 = vcombine.low %v3279_v12, %v3286_v16  ;;  %v2941_v14 = vrot.slane %v9888_v13, %v10503_v15  ;;  %v10049_v12 = vld.sshfl [vmem:[%s10497_s30 + $0xe0] sm:$0x33 pattern:$0x75316420] }
  0x7d   : > { %v9992_v28 = vpack.i.b16 %v4908_v55, %v5075_v19  ;;  %v5304_v30 = vcombine.low %v4932_v18, %v9993_v20  ;;  %v5325_v17 = vrot.slane %v5303_v25, %v10503_v15  ;;  %v4954_v33 = vcombine.high %v9973_v54, %v9973_v54  ;;  %v10047_v54 = vld.sshfl [vmem:[%s10497_s30 + $0xd8] sm:$0x33 pattern:$0x75316420] }
  0x7e   : > { %v5301_v32 = vcombine.low %v9990_v23, %v9991_v24  ;;  %v4969_v34 = vcombine.high %v4961_v57, %v4961_v57  ;;  %v3309_v35 = vrot.slane %v3301_v6, %v10503_v15  ;;  %v3022_v38 = vunpack.i.l.s16 %v2941_v14  ;;  %9686 = vperm.xlu0 %10327, %v9672_v27   ;;  %v10050_v11 = vld.sshfl [vmem:[%s10497_s30 + $0xe4] sm:$0x1 pattern:$0x75316420] }
  0x7f   : > { %v5302_v36 = vcombine.low %v9992_v28, %v4923_v0  ;;  %v5332_v37 = vrot.slane %v5304_v30, %v10503_v15  ;;  %v4968_v40 = vrot.slane %v4954_v33, %v10503_v15  ;;  %v4984_v41 = vrot.slane %v9974_v3, %v10503_v15  ;;  %9691 = vperm.xlu1 %10328, %v9673_v39   ;;  %v10048_v0 = vld.sshfl [vmem:[%s10497_s30 + $0xdc] sm:$0x1 pattern:$0x75316420] }
  0x80   : > { %v5311_v26 = vrot.slane %v5301_v32, %v10503_v15  ;;  %v4992_v10 = vcombine.high %v9975_v31, %v9975_v31  ;;  %v3317_v49 = vcombine.low %v3309_v35, %v3316_v22  ;;  %v3324_v43 = vrot.slane %v3022_v38, %v10503_v15 }
  0x81   : > { %v5318_v29 = vrot.slane %v5302_v36, %v10503_v15  ;;  %v5334_v42 = vcombine.low %v5325_v17, %v5332_v37  ;;  %v4970_v44 = vcombine.high %v4968_v40, %v4968_v40  ;;  %v4999_v45 = vrot.slane %v9975_v31, %v10503_v15  ;;  %v10051_v31 = vld.sshfl [vmem:[%s10497_s30 + $0xe8] sm:$0x33 pattern:$0x75316420] }
  0x82   : > { %v5006_v46 = vrot.slane %v4992_v10, %v10503_v15  ;;  %v5087_v47 = vunpack.i.h.s16 %v4961_v57  ;;  %10222 = vmatprep.mubr.msk.bf16.mxu1 %vm1256_vm0, %v3317_v49  ;;  %v3331_v52 = vrot.slane %v3324_v43, %v10503_v15  ;;  %v5089_v53 = vunpack.i.h.s16 %v4968_v40  ;;  %v10053_v43 = vld.sshfl [vmem:[%s10497_s30 + $0xf0] sm:$0x33 pattern:$0x75316420] }
  0x83   : > { %v5333_v50 = vcombine.low %v5311_v26, %v5318_v29  ;;  %v5348_v51 = vrot.slane %v5334_v42, %v10503_v15  ;;  %v5091_v55 = vunpack.i.h.s16 %v4969_v34  ;;  %v5093_v56 = vunpack.i.h.s16 %v4970_v44 }
  0x84   : > { %v9994_v58 = vpack.i.b16 %v4968_v40, %v5087_v47  ;;  %v5352_v59 = vcombine.low %v4999_v45, %v5006_v46  ;;  %10223 = vmatmul.mubr.msk.bf16.gmra.mrb[12].mxu1 %vm1256_vm0, %v3331_v52  ;;  %v9995_v61 = vpack.i.b16 %v4969_v34, %v5089_v53  ;;  %v10000_v62 = vcombine.high %v4999_v45, %v5006_v46 }
  0x85   : > { %v5341_v60 = vrot.slane %v5333_v50, %v10503_v15  ;;  %v5022_v63 = vrot.slane %v9976_v48, %v10503_v15  ;;  %v9996_v2 = vpack.i.b16 %v4970_v44, %v5091_v55  ;;  %v9997_v4 = vpack.i.b16 %v4984_v41, %v5093_v56  ;;  %v10052_v41 = vld.sshfl [vmem:[%s10497_s30 + $0xec] sm:$0x1 pattern:$0x75316420] }
  0x86   : > { %v5374_v5 = vrot.slane %v5352_v59, %v10503_v15  ;;  %v6769_v7 = vcombine.high %v10047_v54, %v10047_v54  ;;  %v5350_v1 = vcombine.low %v9994_v58, %v9995_v61  ;;  %v5381_v8 = vrot.slane %v10000_v62, %v10503_v15  ;;  %v10054_v50 = vld.sshfl [vmem:[%s10497_s30 + $0xf4] sm:$0x1 pattern:$0x75316420] }
  0x87   : > { %v5349_v57 = vcombine.low %v5341_v60, %v5348_v51  ;;  %v5103_v9 = vunpack.i.l.s16 %v5022_v63  ;;  %v5351_v13 = vcombine.low %v9996_v2, %v9997_v4  ;;  %v6776_v16 = vrot.slane %v10047_v54, %v10503_v15  ;;  %v10055_v55 = vld.sshfl [vmem:[%s10497_s30 + $0xf8] sm:$0x33 pattern:$0x75316420] }
  0x88   : > { %v6783_v18 = vrot.slane %v6769_v7, %v10503_v15  ;;  %v6799_v19 = vrot.slane %v10048_v0, %v10503_v15  ;;  %v5360_v20 = vrot.slane %v5350_v1, %v10503_v15  ;;  %v5383_v21 = vcombine.low %v5374_v5, %v5381_v8  ;;  %v10056_v5 = vld.sshfl [vmem:[%s10497_s30 + $0xfc] sm:$0x1 pattern:$0x75316420] }
  0x89   : > { %10233 = vmatmul.mubr.msk.bf16.gmra.mrb[12].mxu0 %vm1256_vm0, %v5349_v57  ;;  %v5405_v22 = vrot.slane %v5103_v9, %v10503_v15  ;;  %v6807_v23 = vcombine.high %v10049_v12, %v10049_v12  ;;  %v5367_v24 = vrot.slane %v5351_v13, %v10503_v15  ;;  %v6814_v25 = vrot.slane %v10049_v12, %v10503_v15 }
  0x8a   : > { %v6837_v3 = vrot.slane %v10050_v11, %v10503_v15  ;;  %v7235_v27 = vcombine.low %v6776_v16, %v6783_v18  ;;  %v5397_v6 = vrot.slane %v5383_v21, %v10503_v15  ;;  %v10086_v14 = vcombine.high %v6776_v16, %v6783_v18  ;;  %v10057_v11 = vld.sshfl [vmem:[%s10497_s30 + $0x100] sm:$0x33 pattern:$0x75316420] }
  0x8b   : > { %v5412_v28 = vrot.slane %v5405_v22, %v10503_v15  ;;  %v6821_v30 = vrot.slane %v6807_v23, %v10503_v15  ;;  %v5382_v32 = vcombine.low %v5360_v20, %v5367_v24  ;;  %v6822_v17 = vcombine.high %v6814_v25, %v6814_v25 }
  0x8c   : > { %v7114_v33 = vunpack.i.h.s16 %v6814_v25  ;;  %v10066_v34 = vpack.i.b16 %v6814_v25, %v6799_v19  ;;  %v7245_v37 = vrot.slane %v7235_v27, %v10503_v15  ;;  %v7252_v38 = vrot.slane %v10086_v14, %v10503_v15 }
  0x8d   : > { %v6823_v35 = vcombine.high %v6821_v30, %v6821_v30  ;;  %v7116_v36 = vunpack.i.h.s16 %v6821_v30  ;;  %v5390_v39 = vrot.slane %v5382_v32, %v10503_v15  ;;  %v7118_v26 = vunpack.i.h.s16 %v6822_v17 }
  0x8e   : > { %v10067_v40 = vpack.i.b16 %v6821_v30, %v7114_v33  ;;  %v6845_v10 = vcombine.high %v10051_v31, %v10051_v31  ;;  %v7267_v42 = vcombine.low %v7245_v37, %v7252_v38  ;;  %v6852_v44 = vrot.slane %v10051_v31, %v10503_v15 }
  0x8f   : > { %v7120_v49 = vunpack.i.h.s16 %v6823_v35  ;;  %v10068_v29 = vpack.i.b16 %v6822_v17, %v7116_v36  ;;  %v5398_v45 = vcombine.low %v5390_v39, %v5397_v6  ;;  %v10069_v46 = vpack.i.b16 %v6823_v35, %v7118_v26  ;;  %v10059_v39 = vld.sshfl [vmem:[%s10497_s30 + $0x108] sm:$0x33 pattern:$0x75316420] }
  0x90   : > { %v7237_v47 = vcombine.low %v10066_v34, %v10067_v40  ;;  %v6859_v48 = vrot.slane %v6845_v10, %v10503_v15  ;;  %v7275_v52 = vrot.slane %v7267_v42, %v10503_v15  ;;  %v6860_v53 = vcombine.high %v6852_v44, %v6852_v44  ;;  %v10058_v34 = vld.sshfl [vmem:[%s10497_s30 + $0x104] sm:$0x1 pattern:$0x75316420] }
  0x91   : > { %v10070_v51 = vpack.i.b16 %v6837_v3, %v7120_v49  ;;  %v6875_v54 = vrot.slane %v10052_v41, %v10503_v15  ;;  %10236 = vmatprep.mubr.msk.bf16.mxu0 %vm1256_vm0, %v5398_v45  ;;  %v7238_v56 = vcombine.low %v10068_v29, %v10069_v46  ;;  %v6883_v60 = vcombine.high %v10053_v43, %v10053_v43  ;;  %v10060_v10 = vld.sshfl [vmem:[%s10497_s30 + $0x10c] sm:$0x1 pattern:$0x75316420]  ;;  %v11006_v46 = vpop.permute.xlu0 %5547 }
  0x92   : > { %v7259_v58 = vrot.slane %v7237_v47, %v10503_v15  ;;  %v6861_v59 = vcombine.high %v6859_v48, %v6859_v48  ;;  %10237 = vmatmul.mubr.msk.bf16.gmra.mrb[16].mxu0 %vm1256_vm0, %v5412_v28  ;;  %v6890_v61 = vrot.slane %v10053_v43, %v10503_v15  ;;  %v7285_v63 = vcombine.low %v6859_v48, %v6860_v53  ;;  %v10061_v43 = vld.sshfl [vmem:[%s10497_s30 + $0x110] sm:$0x33 pattern:$0x75316420] }
  0x93   : > { %v7284_v62 = vcombine.low %v10070_v51, %v6852_v44  ;;  %v6913_v0 = vrot.slane %v10054_v50, %v10503_v15  ;;  %v7266_v2 = vrot.slane %v7238_v56, %v10503_v15  ;;  %v6897_v4 = vrot.slane %v6883_v60, %v10503_v15 }
  0x94   : > { %v6921_v12 = vcombine.high %v10055_v55, %v10055_v55  ;;  %v6928_v7 = vrot.slane %v10055_v55, %v10503_v15  ;;  %v6898_v57 = vcombine.high %v6890_v61, %v6890_v61  ;;  %v7132_v1 = vunpack.i.h.s16 %v6890_v61 }
  0x95   : > { %v10071_v8 = vpack.i.b16 %v6890_v61, %v6875_v54  ;;  %v7294_v9 = vrot.slane %v7284_v62, %v10503_v15  ;;  %v7268_v13 = vcombine.low %v7259_v58, %v7266_v2  ;;  %v7134_v16 = vunpack.i.h.s16 %v6897_v4 }
  0x96   : > { %v7301_v18 = vrot.slane %v7285_v63, %v10503_v15  ;;  %v6899_v19 = vcombine.high %v6897_v4, %v6897_v4  ;;  %v10072_v20 = vpack.i.b16 %v6897_v4, %v7132_v1  ;;  %v6935_v22 = vrot.slane %v6921_v12, %v10503_v15 }
  0x97   : > { %v7286_v21 = vcombine.low %v6861_v59, %v10071_v8  ;;  %v6951_v23 = vrot.slane %v10056_v5, %v10503_v15  ;;  %v7282_v24 = vrot.slane %v7268_v13, %v10503_v15  ;;  %v10073_v25 = vpack.i.b16 %v6898_v57, %v7134_v16  ;;  %v11020_v13 = vpop.permute.xlu0 %1384 }
  0x98   : > { %v7316_v3 = vcombine.low %v7294_v9, %v7301_v18  ;;  %v6959_v27 = vcombine.high %v10057_v11, %v10057_v11  ;;  %v6966_v28 = vrot.slane %v10057_v11, %v10503_v15  ;;  %v7136_v30 = vunpack.i.h.s16 %v6898_v57  ;;  %v10063_v11 = vld.sshfl [vmem:[%s10497_s30 + $0x118] sm:$0x33 pattern:$0x75316420] }
  0x99   : > { %v7308_v6 = vrot.slane %v7286_v21, %v10503_v15  ;;  %v7138_v14 = vunpack.i.h.s16 %v6899_v19  ;;  %v7283_v31 = vcombine.low %v7275_v52, %v7282_v24  ;;  %v7287_v32 = vcombine.low %v10072_v20, %v10073_v25 }
  0x9a   : > { %v7324_v17 = vrot.slane %v7316_v3, %v10503_v15  ;;  %v6973_v33 = vrot.slane %v6959_v27, %v10503_v15  ;;  %v7150_v35 = vunpack.i.h.s16 %v6966_v28  ;;  %v10074_v36 = vpack.i.b16 %v6899_v19, %v7136_v30 }
  0x9b   : > { %v10075_v37 = vpack.i.b16 %v6913_v0, %v7138_v14  ;;  %v10076_v38 = vpack.i.b16 %v6966_v28, %v6951_v23  ;;  %10242 = vmatprep.mubr.msk.bf16.mxu1 %vm1256_vm0, %v7283_v31  ;;  %v7315_v26 = vrot.slane %v7287_v32, %v10503_v15  ;;  %v7334_v40 = vcombine.low %v6928_v7, %v6935_v22 }
  0x9c   : > { %v10087_v41 = vcombine.high %v6928_v7, %v6935_v22  ;;  %v6974_v49 = vcombine.high %v6966_v28, %v6966_v28  ;;  %v10077_v29 = vpack.i.b16 %v6973_v33, %v7150_v35  ;;  %v6975_v44 = vcombine.high %v6973_v33, %v6973_v33  ;;  %v10062_v7 = vld.sshfl [vmem:[%s10497_s30 + $0x114] sm:$0x1 pattern:$0x75316420] }
  0x9d   : > { %v7333_v42 = vcombine.low %v10074_v36, %v10075_v37  ;;  %v6989_v45 = vrot.slane %v10058_v34, %v10503_v15  ;;  %v7317_v47 = vcombine.low %v7308_v6, %v7315_v26  ;;  %v7350_v48 = vrot.slane %v7334_v40, %v10503_v15  ;;  %v10064_v28 = vld.sshfl [vmem:[%s10497_s30 + $0x11c] sm:$0x1 pattern:$0x75316420]  ;;  %v11035_v26 = vpop.permute.xlu0 %5552  ;;  %s470_s30 = scalar_lea.vmem %s12232_s1, %s10151_s19 }
  0x9e   : > { %v7357_v50 = vrot.slane %v10087_v41, %v10503_v15  ;;  %v6997_v51 = vcombine.high %v10059_v39, %v10059_v39  ;;  %v7336_v52 = vcombine.low %v10076_v38, %v10077_v29  ;;  %v7004_v54 = vrot.slane %v10059_v39, %v10503_v15 }
  0x9f   : > { %v7343_v53 = vrot.slane %v7333_v42, %v10503_v15  ;;  %v7027_v55 = vrot.slane %v10060_v10, %v10503_v15  ;;  %v7331_v56 = vrot.slane %v7317_v47, %v10503_v15  ;;  %v7042_v59 = vrot.slane %v10061_v43, %v10503_v15 }
  0xa0   : > { %v7011_v58 = vrot.slane %v6997_v51, %v10503_v15  ;;  %v7152_v60 = vunpack.i.h.s16 %v6973_v33  ;;  %v7364_v61 = vrot.slane %v7336_v52, %v10503_v15  ;;  %v7012_v63 = vcombine.high %v7004_v54, %v7004_v54 }
  0xa1   : > { %v7365_v62 = vcombine.low %v7343_v53, %v7350_v48  ;;  %v7154_v0 = vunpack.i.h.s16 %v6974_v49  ;;  %v7332_v2 = vcombine.low %v7324_v17, %v7331_v56  ;;  %v7156_v5 = vunpack.i.h.s16 %v6975_v44 }
  0xa2   : > { %v7013_v4 = vcombine.high %v7011_v58, %v7011_v58  ;;  %v10078_v12 = vpack.i.b16 %v6974_v49, %v7152_v60  ;;  %v7366_v57 = vcombine.low %v7357_v50, %v7364_v61  ;;  %v10081_v9 = vpack.i.b16 %v7042_v59, %v7027_v55 }
  0xa3   : > { %v7373_v1 = vrot.slane %v7365_v62, %v10503_v15  ;;  %v10079_v8 = vpack.i.b16 %v6975_v44, %v7154_v0  ;;  %10243 = vmatmul.mubr.msk.bf16.vlgmr.msra.gmra.mrb[16].mxu1 %vm1256_vm0, %v7332_v2  ;;  %v10080_v16 = vpack.i.b16 %v6989_v45, %v7156_v5  ;;  %v7384_v18 = vcombine.low %v7011_v58, %v7012_v63  ;;  %v11042_v58 = vpop.permute.xlu0 %5557 }
  0xa4   : > { %v7035_v19 = vcombine.high %v10061_v43, %v10061_v43  ;;  %v7050_v20 = vcombine.high %v7042_v59, %v7042_v59  ;;  %v7380_v21 = vrot.slane %v7366_v57, %v10503_v15  ;;  %v7385_v23 = vcombine.low %v7013_v4, %v10081_v9 }
  0xa5   : > { %v7382_v22 = vcombine.low %v10078_v12, %v10079_v8  ;;  %v7065_v24 = vrot.slane %v10062_v7, %v10503_v15  ;;  %v7383_v25 = vcombine.low %v10080_v16, %v7004_v54  ;;  %v7406_v3 = vrot.slane %v7384_v18, %v10503_v15  ;;  %v11056_v12 = vpop.permute.xlu1 %5542 }
  0xa6   : > { %v7049_v27 = vrot.slane %v7035_v19, %v10503_v15  ;;  %v7073_v6 = vcombine.high %v10063_v11, %v10063_v11  ;;  %v7381_v30 = vcombine.low %v7373_v1, %v7380_v21  ;;  %v7413_v31 = vrot.slane %v7385_v23, %v10503_v15 }
  0xa7   : > { %v7392_v14 = vrot.slane %v7382_v22, %v10503_v15  ;;  %v7080_v32 = vrot.slane %v10063_v11, %v10503_v15  ;;  %v7399_v17 = vrot.slane %v7383_v25, %v10503_v15  ;;  %v7168_v35 = vunpack.i.h.s16 %v7042_v59  ;;  %v11050_v2 = vpop.permute.xlu0 %5562 }
  0xa8   : > { %v7051_v33 = vcombine.high %v7049_v27, %v7049_v27  ;;  %v7087_v34 = vrot.slane %v7073_v6, %v10503_v15  ;;  %10246 = vmatprep.mubr.msk.bf16.mxu1 %vm1256_vm0, %v7381_v30  ;;  %v7415_v36 = vcombine.low %v7406_v3, %v7413_v31  ;;  %v7170_v37 = vunpack.i.h.s16 %v7049_v27 }
  0xa9   : > { %v7172_v38 = vunpack.i.h.s16 %v7050_v20  ;;  %v7103_v39 = vrot.slane %v10064_v28, %v10503_v15  ;;  %v7414_v40 = vcombine.low %v7392_v14, %v7399_v17  ;;  %v10082_v10 = vpack.i.b16 %v7049_v27, %v7168_v35  ;;  %v1380_v57 = vpop.permute.xlu1 %1379 }
  0xaa   : > { %v7174_v41 = vunpack.i.h.s16 %v7051_v33  ;;  %v7433_v49 = vcombine.low %v7080_v32, %v7087_v34  ;;  %v7429_v29 = vrot.slane %v7415_v36, %v10503_v15  ;;  %v10083_v42 = vpack.i.b16 %v7050_v20, %v7170_v37 }
  0xab   : > { %v10084_v43 = vpack.i.b16 %v7051_v33, %v7172_v38  ;;  %v10088_v44 = vcombine.high %v7080_v32, %v7087_v34  ;;  %v7422_v45 = vrot.slane %v7414_v40, %v10503_v15  ;;  %v7184_v52 = vunpack.i.l.s16 %v7103_v39  ;;  %v11054_v5 = vpop.permute.xlu0 %5567  ;;  %v11099_v32 = vld [vmem:[%s12238_s7] ss:$0 sm:$0xff] }
  0xac   : > { %v10085_v47 = vpack.i.b16 %v7065_v24, %v7174_v41  ;;  %v7455_v48 = vrot.slane %v7433_v49, %v10503_v15  ;;  %v7431_v50 = vcombine.low %v10082_v10, %v10083_v42 }
  0xad   : > { %v7462_v51 = vrot.slane %v10088_v44, %v10503_v15  ;;  %v7430_v53 = vcombine.low %v7422_v45, %v7429_v29  ;;  %v7486_v60 = vrot.slane %v7184_v52, %v10503_v15  ;;  %v1390_v8 = vpop.permute.xlu1 %1389 }
  0xae   : > { %v7432_v54 = vcombine.low %v10084_v43, %v10085_v47  ;;  %v7441_v55 = vrot.slane %v7431_v50, %v10503_v15 }
  0xaf   : > { %v7464_v56 = vcombine.low %v7455_v48, %v7462_v51  ;;  %10247 = vmatmul.mubr.msk.bf16.gmra.mrb[20].mxu1 %vm1256_vm0, %v7430_v53  ;;  %v7493_v0 = vrot.slane %v7486_v60, %v10503_v15  ;;  %v11058_v7 = vpop.permute.xlu0 %5572 }
  0xb0   : > { %v7448_v59 = vrot.slane %v7432_v54, %v10503_v15 }
  0xb1   : > { %v7478_v62 = vrot.slane %v7464_v56, %v10503_v15  ;;  %v1395_v11 = vpop.permute.xlu1 %1394 }
  0xb2   : > { %v7463_v61 = vcombine.low %v7441_v55, %v7448_v59 }
  0xb3   : > { %v11060_v1 = vpop.permute.xlu0 %5577 }
  0xb4   : > { %v7471_v63 = vrot.slane %v7463_v61, %v10503_v15 }
  0xb5   : > { %v11066_v18 = vpop.permute.xlu1 %1399 }
  0xb6   : > { %v7479_v4 = vcombine.low %v7471_v63, %v7478_v62 }
  0xb7   : > { %v11062_v9 = vpop.permute.xlu0 %5582 }
  0xb8   : > { %10250 = vmatprep.mubr.msk.bf16.mxu1 %vm1256_vm0, %v7479_v4 }
  0xb9   : > { %10251 = vmatmul.mubr.msk.bf16.gmra.mrb[24].mxu1 %vm1256_vm0, %v7493_v0  ;;  %v11070_v20 = vpop.permute.xlu1 %1404 }
  0xbb   : > { %v11064_v16 = vpop.permute.xlu0 %7628 }
  0xbd   : > { %v11074_v22 = vpop.permute.xlu1 %1409 }
  0xbf   : > { %v11068_v19 = vpop.permute.xlu0 %3466 }
  0xc1   : > { %v11078_v24 = vpop.permute.xlu1 %1414 }
  0xc3   : > { %v11072_v21 = vpop.permute.xlu0 %7633 }
  0xc5   : > { %v11082_v3 = vpop.permute.xlu1 %1419 }
  0xc7   : > { %v11076_v23 = vpop.permute.xlu0 %3471 }
  0xc9   : > { %v11086_v6 = vpop.permute.xlu1 %7623 }
  0xcb   : > { %v11080_v25 = vpop.permute.xlu0 %7643 }
  0xcc   : > { %12246 = vst [vmem:[#allocation4_spill] sm:$0xff] %v11080_v25 }
  0xcd   : > { %v11090_v30 = vpop.permute.xlu1 %3461 }
  0xcf   : > { %v11084_v27 = vpop.permute.xlu0 %7648 }
  0xd0   : > { %12247 = vst [vmem:[#allocation5_spill] sm:$0xff] %v11084_v27 }
  0xd1   : > { %v11094_v31 = vpop.permute.xlu1 %7638 }
  0xd3   : > { %v11088_v28 = vpop.permute.xlu0 %3486 }
  0xd5   : > { %v11103_v34 = vpop.permute.xlu1 %3476 }
  0xd7   : > { %v11092_v14 = vpop.permute.xlu0 %7658 }
  0xd8   : > { %12248 = vst [vmem:[#allocation6_spill] sm:$0xff] %v11092_v14 }
  0xd9   : > { %v11111_v47 = vpop.permute.xlu1 %3481 }
  0xdb   : > { %v11101_v17 = vpop.permute.xlu0 %3496 }
  0xdf   : > { %v11109_v29 = vpop.permute.xlu0 %3506 }
 0x104   : > { %v10202_v33 = vpop.f32.mrb[0].mxu0 }
 0x105   : > { %v1318_v35 = vadd.f32 %v10202_v33, %v11099_v32  ;;  %v1309_v36 = vpop.f32.mrb[1].mxu0 }
 0x106   : > { %v1310_v37 = vadd.f32 %v11099_v32, %v1309_v36  ;;  %v10203_v38 = vpop.f32.mrb[2].mxu0 }
 0x107   : > { %v1357_v39 = vmax.f32 %v1318_v35, 0.0  ;;  %v1321_v40 = vadd.f32 %v10203_v38, %v11099_v32  ;;  %v1312_v41 = vpop.f32.mrb[3].mxu0  ;;  %v1430_v35 = vpop.permute.xlu0 %1429 }
 0x108   : > { %v1355_v10 = vmax.f32 %v1310_v37, 0.0  ;;  %v1313_v49 = vadd.f32 %v11099_v32, %v1312_v41 }
 0x109   : > { %v1434_v42 = vmul.f32 %v1390_v8, %v1357_v39  ;;  %v1358_v43 = vmax.f32 %v1321_v40, 0.0 }
 0x10a   : > { %v1432_v44 = vmul.f32 %v1380_v57, %v1355_v10  ;;  %v1356_v45 = vmax.f32 %v1313_v49, 0.0  ;;  %v10210_v51 = vpop.f32.mrb[0].mxu1  ;;  %v11134_v49 = vpop.permute.xlu1 %7653 }
 0x10b   : > { %v1552_v48 = vcombine.high %v1434_v42, %v1434_v42  ;;  %v1559_v50 = vrot.slane %v1434_v42, %v10503_v15  ;;  %v1435_v52 = vmul.f32 %v1395_v11, %v1358_v43  ;;  %v1350_v55 = vadd.f32 %v10210_v51, %v11099_v32  ;;  %v11116_v56 = vpop.f32.mrb[1].mxu1  ;;  %12249 = vst [vmem:[#allocation7_spill] sm:$0xff] %v11134_v49 }
 0x10c   : > { %v1454_v53 = vcombine.high %v1432_v44, %v1432_v44  ;;  %v1461_v54 = vrot.slane %v1432_v44, %v10503_v15  ;;  %v11119_v59 = vmul.f32 %v11020_v13, %v1356_v45  ;;  %v10211_v0 = vpop.f32.mrb[2].mxu1 }
 0x10d   : > { %v1566_v60 = vrot.slane %v1552_v48, %v10503_v15  ;;  %v1567_v61 = vcombine.high %v1559_v50, %v1559_v50  ;;  %v11123_v62 = vrot.slane %v1559_v50, %v10503_v15  ;;  %v1601_v63 = vcombine.high %v1435_v52, %v1435_v52  ;;  %v11127_v33 = vpop.f32.mrb[3].mxu1 }
 0x10e   : > { %v1468_v4 = vrot.slane %v1454_v53, %v10503_v15  ;;  %v1469_v57 = vcombine.high %v1461_v54, %v1461_v54  ;;  %v1477_v8 = vrot.slane %v1461_v54, %v10503_v15  ;;  %v1365_v11 = vmax.f32 %v1350_v55, 0.0 }
 0x10f   : > { %v1568_v36 = vcombine.high %v1566_v60, %v1566_v60  ;;  %v1582_v13 = vrot.slane %v1566_v60, %v10503_v15  ;;  %v1589_v37 = vrot.slane %v1567_v61, %v10503_v15  ;;  %v1608_v38 = vrot.slane %v1435_v52, %v10503_v15 }
 0x110   : > { %v1470_v39 = vcombine.high %v1468_v4, %v1468_v4  ;;  %v1484_v40 = vrot.slane %v1468_v4, %v10503_v15  ;;  %v1491_v41 = vrot.slane %v1469_v57, %v10503_v15  ;;  %v1442_v10 = vmul.f32 %v1430_v35, %v1365_v11 }
 0x111   : > { %v1596_v42 = vrot.slane %v1568_v36, %v10503_v15  ;;  %v2076_v43 = vrot.slane %v1589_v37, %v10503_v15  ;;  %v9845_v44 = vcombine.high %v11123_v62, %v1589_v37  ;;  %v1615_v45 = vrot.slane %v1601_v63, %v10503_v15 }
 0x112   : > { %v1498_v48 = vrot.slane %v1470_v39, %v10503_v15  ;;  %v1958_v50 = vcombine.low %v1477_v8, %v1491_v41  ;;  %v9843_v51 = vcombine.high %v1477_v8, %v1491_v41  ;;  %v1950_v52 = vrot.slane %v1442_v10, %v10503_v15 }
 0x113   : > { %v2083_v53 = vrot.slane %v2076_v43, %v10503_v15  ;;  %v2085_v54 = vcombine.low %v1582_v13, %v1596_v42  ;;  %v9846_v55 = vcombine.high %v1582_v13, %v1596_v42  ;;  %v2094_v60 = vrot.slane %v9845_v44, %v10503_v15 }
 0x114   : > { %v1960_v61 = vcombine.low %v1484_v40, %v1498_v48  ;;  %v9844_v0 = vcombine.high %v1484_v40, %v1498_v48  ;;  %v1968_v4 = vrot.slane %v1958_v50, %v10503_v15  ;;  %v1975_v57 = vrot.slane %v9843_v51, %v10503_v15  ;;  %v11152_v40 = vpop.permute.xlu1 %3491 }
 0x115   : > { %v2101_v63 = vrot.slane %v2085_v54, %v10503_v15  ;;  %v2108_v11 = vrot.slane %v9846_v55, %v10503_v15  ;;  %2548 = vst.msk [vmem:[#allocation2 + $0x18] sm:$0x1] %vm2545_vm1, %v2083_v53  ;;  %v1957_v8 = vrot.slane %v1950_v52, %v10503_v15  ;;  %v1616_v35 = vcombine.high %v1608_v38, %v1608_v38 }
 0x116   : > { %v1982_v36 = vrot.slane %v1960_v61, %v10503_v15  ;;  %v1989_v13 = vrot.slane %v9844_v0, %v10503_v15  ;;  %v1990_v37 = vcombine.low %v1968_v4, %v1975_v57  ;;  %v1617_v39 = vcombine.high %v1615_v45, %v1615_v45 }
 0x117   : > { %v2116_v41 = vcombine.low %v2094_v60, %v2101_v63  ;;  %v2517_v10 = vrot.slane %v1957_v8, %v10503_v15  ;;  %v1624_v42 = vrot.slane %v1608_v38, %v10503_v15  ;;  %v1631_v43 = vrot.slane %v1615_v45, %v10503_v15 }
 0x118   : > { %v1991_v44 = vcombine.low %v1982_v36, %v1989_v13  ;;  %v1998_v48 = vrot.slane %v1990_v37, %v10503_v15  ;;  %v1638_v50 = vrot.slane %v1616_v35, %v10503_v15  ;;  %v11160_v51 = vrot.slane %v1617_v39, %v10503_v15  ;;  %v11162_v52 = vpop.f32.mrb[4].mxu0 }
 0x119   : > { %v2124_v53 = vrot.slane %v2116_v41, %v10503_v15  ;;  %v2524_v54 = vrot.slane %v2517_v10, %v10503_v15  ;;  %v1646_v55 = vcombine.high %v1624_v42, %v1624_v42  ;;  %v1647_v60 = vcombine.high %v1631_v43, %v1631_v43  ;;  %v11166_v61 = vpop.f32.mrb[5].mxu0  ;;  %v11183_v10 = vpop.permute.xlu1 %7663 }
 0x11a   : > { %v2005_v38 = vrot.slane %v1991_v44, %v10503_v15  ;;  %v1648_v45 = vcombine.high %v1638_v50, %v1638_v50  ;;  %v2087_v0 = vcombine.low %v1624_v42, %v1638_v50  ;;  %v1342_v4 = vadd.f32 %v11099_v32, %v11116_v56  ;;  %v11171_v57 = vpop.f32.mrb[6].mxu0  ;;  %12250 = vst [vmem:[#allocation8_spill] sm:$0xff] %v11183_v10 }
 0x11b   : > { %2562 = vst.msk [vmem:[#allocation2 + $0x88] sm:$0x1] %vm2545_vm1, %v2524_v54  ;;  %v2139_v63 = vrot.slane %v1646_v55, %v10503_v15  ;;  %v2148_v8 = vcombine.low %v11160_v51, %v1647_v60  ;;  %v1503_v35 = vcombine.high %v11119_v59, %v11119_v59  ;;  %v1510_v36 = vrot.slane %v11119_v59, %v10503_v15  ;;  %v11180_v13 = vpop.f32.mrb[7].mxu0 }
 0x11c   : > { %v2006_v37 = vcombine.low %v1998_v48, %v2005_v38  ;;  %v2115_v39 = vrot.slane %v2087_v0, %v10503_v15  ;;  %v2147_v56 = vcombine.low %v1648_v45, %v1631_v43  ;;  %v1363_v41 = vmax.f32 %v1342_v4, 0.0 }
 0x11d   : > { %v2146_v42 = vrot.slane %v2139_v63, %v10503_v15  ;;  %v2164_v44 = vrot.slane %v2148_v8, %v10503_v15  ;;  %v1517_v50 = vrot.slane %v1503_v35, %v10503_v15  ;;  %v1518_v54 = vcombine.high %v1510_v36, %v1510_v36 }
 0x11e   : > { %2544 = vst.msk [vmem:[#allocation2] sm:$0xff] %vm2543_vm2, %v2006_v37  ;;  %v2117_v55 = vcombine.low %v2108_v11, %v2115_v39  ;;  %v2157_v59 = vrot.slane %v2147_v56, %v10503_v15  ;;  %v1440_v48 = vmul.f32 %v11082_v3, %v1363_v41  ;;  %v1526_v60 = vrot.slane %v1510_v36, %v10503_v15 }
 0x11f   : > { %2550 = vst.msk [vmem:[#allocation2 + $0x28] sm:$0x1] %vm2545_vm1, %v2146_v42  ;;  %v1519_v43 = vcombine.high %v1517_v50, %v1517_v50  ;;  %v1533_v38 = vrot.slane %v1517_v50, %v10503_v15  ;;  %v1540_v45 = vrot.slane %v1518_v54, %v10503_v15  ;;  %v1345_v0 = vadd.f32 %v11099_v32, %v11127_v33  ;;  %v11205_v33 = vpop.permute.xlu1 %3501 }
 0x120   : > { %v2131_v4 = vrot.slane %v2117_v55, %v10503_v15  ;;  %v11198_v63 = vcombine.low %v2157_v59, %v2164_v44  ;;  %v1846_v11 = vcombine.high %v1440_v48, %v1440_v48  ;;  %v1853_v8 = vrot.slane %v1440_v48, %v10503_v15 }
 0x121   : > { %v1547_v3 = vrot.slane %v1519_v43, %v10503_v15  ;;  %v1548_v35 = vcombine.high %v1526_v60, %v1526_v60  ;;  %v1549_v36 = vcombine.high %v1533_v38, %v1533_v38  ;;  %v1550_v37 = vcombine.high %v1540_v45, %v1540_v45 }
 0x122   : > { %v2132_v39 = vcombine.low %v2124_v53, %v2131_v4  ;;  %v1860_v41 = vrot.slane %v1846_v11, %v10503_v15  ;;  %v1861_v42 = vcombine.high %v1853_v8, %v1853_v8  ;;  %v11208_v44 = vrot.slane %v1853_v8, %v10503_v15 }
 0x123   : > { %v1551_v50 = vcombine.high %v1547_v3, %v1547_v3  ;;  %v2013_v54 = vrot.slane %v1526_v60, %v10503_v15  ;;  %v2021_v55 = vcombine.low %v1540_v45, %v1548_v35  ;;  %v2022_v43 = vcombine.low %v1550_v37, %v1533_v38 }
 0x124   : > { %2549 = vst.msk [vmem:[#allocation2 + $0x20] sm:$0xff] %vm2543_vm2, %v2132_v39  ;;  %v1862_v59 = vcombine.high %v1860_v41, %v1860_v41  ;;  %v1876_v53 = vrot.slane %v1860_v41, %v10503_v15  ;;  %v1883_v48 = vrot.slane %v1861_v42, %v10503_v15  ;;  %v1891_v4 = vcombine.high %v11208_v44, %v11208_v44 }
 0x125   : > { %v2020_v11 = vrot.slane %v2013_v54, %v10503_v15  ;;  %v2023_v56 = vcombine.low %v1547_v3, %v1549_v36  ;;  %v2024_v8 = vcombine.low %v1551_v50, %v11123_v62  ;;  %v2031_v35 = vrot.slane %v2021_v55, %v10503_v15  ;;  %v1425_v50 = vpop.permute.xlu1 %1424 }
 0x126   : > { %v1890_v10 = vrot.slane %v1862_v59, %v10503_v15  ;;  %v1892_v60 = vcombine.high %v1876_v53, %v1876_v53  ;;  %v1893_v45 = vcombine.high %v1883_v48, %v1883_v48  ;;  %v11220_v39 = vcombine.low %v1883_v48, %v1891_v4 }
 0x127   : > { %v2038_v41 = vrot.slane %v2022_v43, %v10503_v15  ;;  %v2045_v38 = vrot.slane %v2023_v56, %v10503_v15  ;;  %v2052_v37 = vrot.slane %v2024_v8, %v10503_v15  ;;  %2546 = vst.msk [vmem:[#allocation2 + $0x8] sm:$0x1] %vm2545_vm1, %v2020_v11  ;;  %v1364_v62 = vmax.f32 %v1345_v0, 0.0 }
 0x128   : > { %v1894_v42 = vcombine.high %v1890_v10, %v1890_v10  ;;  %v2401_v3 = vcombine.low %v1893_v45, %v1876_v53  ;;  %v2402_v36 = vcombine.low %v1890_v10, %v1892_v60  ;;  %v1334_v48 = vadd.f32 %v11162_v52, %v11099_v32 }
 0x129   : > { %v2053_v59 = vcombine.low %v2031_v35, %v2038_v41  ;;  %v2054_v55 = vcombine.low %v2045_v38, %v2052_v37  ;;  %v1441_v11 = vmul.f32 %v1425_v50, %v1364_v62  ;;  %v1326_v60 = vadd.f32 %v11099_v32, %v11166_v61 }
 0x12a   : > { %v2423_v43 = vrot.slane %v2401_v3, %v10503_v15  ;;  %v2430_v56 = vrot.slane %v2402_v36, %v10503_v15  ;;  %v2454_v4 = vrot.slane %v1894_v42, %v10503_v15  ;;  %v10216_v8 = vpop.f32.mrb[4].mxu1  ;;  %v1361_v53 = vmax.f32 %v1334_v48, 0.0 }
 0x12b   : > { %v2061_v10 = vrot.slane %v2053_v59, %v10503_v15  ;;  %v2068_v0 = vrot.slane %v2054_v55, %v10503_v15  ;;  %v11237_v45 = vpop.f32.mrb[5].mxu1  ;;  %v1895_v41 = vcombine.high %v1441_v11, %v1441_v11  ;;  %v1902_v38 = vrot.slane %v1441_v11, %v10503_v15 }
 0x12c   : > { %v11239_v35 = vcombine.low %v2423_v43, %v2430_v56  ;;  %v2461_v52 = vrot.slane %v2454_v4, %v10503_v15  ;;  %v11243_v37 = vpop.f32.mrb[6].mxu1  ;;  %v1438_v3 = vmul.f32 %v11074_v22, %v1361_v53  ;;  %v1359_v36 = vmax.f32 %v1326_v60, 0.0 }
 0x12d   : > { %v2069_v42 = vcombine.low %v2061_v10, %v2068_v0  ;;  %v1649_v62 = vcombine.high %v11160_v51, %v11160_v51  ;;  %v11248_v50 = vpop.f32.mrb[7].mxu1  ;;  %v1909_v59 = vrot.slane %v1895_v41, %v10503_v15  ;;  %v1910_v55 = vcombine.high %v1902_v38, %v1902_v38 }
 0x12e   : > { %2560 = vst.msk [vmem:[#allocation2 + $0x78] sm:$0x1] %vm2545_vm1, %v2461_v52  ;;  %v1918_v48 = vrot.slane %v1902_v38, %v10503_v15  ;;  %v1748_v43 = vcombine.high %v1438_v3, %v1438_v3  ;;  %v1755_v22 = vrot.slane %v1438_v3, %v10503_v15  ;;  %v1436_v56 = vmul.f32 %v11066_v18, %v1359_v36 }
 0x12f   : > { %2547 = vst.msk [vmem:[#allocation2 + $0x10] sm:$0xff] %vm2543_vm2, %v2069_v42  ;;  %v3399_v51 = vadd.f32 %v10216_v8, %v11099_v32  ;;  %v1911_v4 = vcombine.high %v1909_v59, %v1909_v59  ;;  %v1925_v11 = vrot.slane %v1909_v59, %v10503_v15  ;;  %v1932_v10 = vrot.slane %v1910_v55, %v10503_v15 }
 0x130   : > { %v1337_v0 = vadd.f32 %v11171_v57, %v11099_v32  ;;  %v1762_v53 = vrot.slane %v1748_v43, %v10503_v15  ;;  %v1763_v60 = vcombine.high %v1755_v22, %v1755_v22  ;;  %v11265_v52 = vrot.slane %v1755_v22, %v10503_v15 }
 0x131   : > { %v1650_v41 = vcombine.high %v1436_v56, %v1436_v56  ;;  %v1939_v38 = vrot.slane %v1911_v4, %v10503_v15  ;;  %v2462_v18 = vcombine.low %v1918_v48, %v1932_v10  ;;  %v9851_v42 = vcombine.high %v1918_v48, %v1932_v10 }
 0x132   : > { %v1657_v8 = vrot.slane %v1436_v56, %v10503_v15  ;;  %v1764_v3 = vcombine.high %v1762_v53, %v1762_v53  ;;  %v1778_v36 = vrot.slane %v1762_v53, %v10503_v15  ;;  %v1785_v59 = vrot.slane %v1763_v60, %v10503_v15 }
 0x133   : > { %v1793_v57 = vcombine.high %v11265_v52, %v11265_v52  ;;  %v2464_v55 = vcombine.low %v1925_v11, %v1939_v38  ;;  %v9852_v43 = vcombine.high %v1925_v11, %v1939_v38  ;;  %v2472_v22 = vrot.slane %v2462_v18, %v10503_v15 }
 0x134   : > { %v2479_v61 = vrot.slane %v9851_v42, %v10503_v15  ;;  %v1792_v4 = vrot.slane %v1764_v3, %v10503_v15  ;;  %v1795_v54 = vcombine.high %v1785_v59, %v1785_v59  ;;  %v1664_v56 = vrot.slane %v1650_v41, %v10503_v15 }
 0x135   : > { %v2275_v48 = vcombine.low %v1785_v59, %v1793_v57  ;;  %v2486_v10 = vrot.slane %v2464_v55, %v10503_v15  ;;  %v2493_v53 = vrot.slane %v9852_v43, %v10503_v15  ;;  %v1665_v27 = vcombine.high %v1657_v8, %v1657_v8 }
 0x136   : > { %v2494_v60 = vcombine.low %v2472_v22, %v2479_v61  ;;  %v2276_v14 = vcombine.low %v1795_v54, %v1778_v36  ;;  %v2328_v11 = vrot.slane %v1792_v4, %v10503_v15  ;;  %v9849_v38 = vcombine.high %v1778_v36, %v1792_v4 }
 0x137   : > { %v2297_v25 = vrot.slane %v2275_v48, %v10503_v15  ;;  %v2495_v18 = vcombine.low %v2486_v10, %v2493_v53  ;;  %v1666_v3 = vcombine.high %v1664_v56, %v1664_v56  ;;  %v1673_v59 = vrot.slane %v1657_v8, %v10503_v15 }
 0x138   : > { %v2502_v42 = vrot.slane %v2494_v60, %v10503_v15  ;;  %v2304_v41 = vrot.slane %v2276_v14, %v10503_v15  ;;  %v2335_v57 = vrot.slane %v2328_v11, %v10503_v15  ;;  %v11286_v55 = vrot.slane %v9849_v38, %v10503_v15 }
 0x139   : > { %v1680_v54 = vrot.slane %v1664_v56, %v10503_v15  ;;  %v2509_v61 = vrot.slane %v2495_v18, %v10503_v15  ;;  %v1687_v43 = vrot.slane %v1665_v27, %v10503_v15  ;;  %v1694_v36 = vrot.slane %v1666_v3, %v10503_v15 }
 0x13a   : > { %v1695_v22 = vcombine.high %v1673_v59, %v1673_v59  ;;  %v11292_v4 = vcombine.low %v2297_v25, %v2304_v41  ;;  %2556 = vst.msk [vmem:[#allocation2 + $0x58] sm:$0x1] %vm2545_vm1, %v2335_v57  ;;  %v2149_v8 = vcombine.low %v1649_v62, %v1673_v59  ;;  %v3438_v14 = vmax.f32 %v3399_v51, 0.0 }
 0x13b   : > { %v1362_v48 = vmax.f32 %v1337_v0, 0.0  ;;  %v2510_v10 = vcombine.low %v2502_v42, %v2509_v61  ;;  %v1697_v53 = vcombine.high %v1687_v43, %v1687_v43  ;;  %v2210_v11 = vcombine.low %v1680_v54, %v1694_v36 }
 0x13c   : > { %v2150_v60 = vcombine.low %v1687_v43, %v1695_v22  ;;  %v2171_v38 = vrot.slane %v2149_v8, %v10503_v15  ;;  %v9847_v27 = vcombine.high %v1680_v54, %v1694_v36  ;;  %v3516_v18 = vmul.f32 %v11076_v23, %v3438_v14 }
 0x13d   : > { %2561 = vst.msk [vmem:[#allocation2 + $0x80] sm:$0xff] %vm2543_vm2, %v2510_v10  ;;  %v2202_v62 = vrot.slane %v1697_v53, %v10503_v15  ;;  %v2220_v51 = vrot.slane %v2210_v11, %v10503_v15  ;;  %v1439_v0 = vmul.f32 %v11078_v24, %v1362_v48  ;;  %v3391_v41 = vadd.f32 %v11099_v32, %v11237_v45 }
 0x13e   : > { %v2178_v25 = vrot.slane %v2150_v60, %v10503_v15  ;;  %v2227_v42 = vrot.slane %v9847_v27, %v10503_v15  ;;  %v3634_v3 = vcombine.high %v3516_v18, %v3516_v18  ;;  %v3641_v59 = vrot.slane %v3516_v18, %v10503_v15 }
 0x13f   : > { %v2209_v23 = vrot.slane %v2202_v62, %v10503_v15  ;;  %v1797_v54 = vcombine.high %v1439_v0, %v1439_v0  ;;  %v1804_v61 = vrot.slane %v1439_v0, %v10503_v15  ;;  %v11310_v43 = vpop.f32.mrb[8].mxu0  ;;  %v12251_v62 = vrot.slane %v11198_v63, %v10503_v15 }
 0x140   : > { %v2180_v57 = vcombine.low %v2171_v38, %v2178_v25  ;;  %v2242_v36 = vcombine.low %v2220_v51, %v2227_v42  ;;  %v3648_v22 = vrot.slane %v3634_v3, %v10503_v15  ;;  %v3649_v24 = vcombine.high %v3641_v59, %v3641_v59  ;;  %v11316_v14 = vpop.f32.mrb[9].mxu0 }
 0x141   : > { %v11314_v8 = vrot.slane %v3641_v59, %v10503_v15  ;;  %2552 = vst.msk [vmem:[#allocation2 + $0x38] sm:$0x1] %vm2545_vm1, %v2209_v23  ;;  %v1811_v45 = vrot.slane %v1797_v54, %v10503_v15  ;;  %v1812_v10 = vcombine.high %v1804_v61, %v1804_v61  ;;  %v1820_v53 = vrot.slane %v1804_v61, %v10503_v15  ;;  %v11322_v60 = vpop.f32.mrb[10].mxu0 }
 0x142   : > { %v2194_v48 = vrot.slane %v2180_v57, %v10503_v15  ;;  %v11325_v11 = vrot.slane %v2242_v36, %v10503_v15  ;;  %v3650_v38 = vcombine.high %v3648_v22, %v3648_v22  ;;  %v3664_v27 = vrot.slane %v3648_v22, %v10503_v15  ;;  %v11329_v25 = vpop.f32.mrb[11].mxu0 }
 0x143   : > { %v3671_v18 = vrot.slane %v3649_v24, %v10503_v15  ;;  %v1813_v0 = vcombine.high %v1811_v45, %v1811_v45  ;;  %v1827_v42 = vrot.slane %v1811_v45, %v10503_v15  ;;  %v1834_v3 = vrot.slane %v1812_v10, %v10503_v15 }
 0x144   : > { %v2195_v51 = vcombine.low %v12251_v62, %v2194_v48  ;;  %v3678_v59 = vrot.slane %v3650_v38, %v10503_v15  ;;  %v3436_v23 = vmax.f32 %v3391_v41, 0.0 }
 0x145   : > { %v9933_v57 = vcombine.high %v11314_v8, %v3671_v18  ;;  %v1841_v54 = vrot.slane %v1813_v0, %v10503_v15  ;;  %v1843_v61 = vcombine.high %v1827_v42, %v1827_v42  ;;  %v2337_v36 = vcombine.low %v1820_v53, %v1834_v3 }
 0x146   : > { %2551 = vst.msk [vmem:[#allocation2 + $0x30] sm:$0xff] %vm2543_vm2, %v2195_v51  ;;  %v9850_v22 = vcombine.high %v1820_v53, %v1834_v3  ;;  %v11340_v24 = vpop.f32.mrb[8].mxu1  ;;  %v4167_v63 = vcombine.low %v3664_v27, %v3678_v59  ;;  %v9934_v48 = vcombine.high %v3664_v27, %v3678_v59  ;;  %v3514_v27 = vmul.f32 %v11090_v30, %v3436_v23 }
 0x147   : > { %v4176_v45 = vrot.slane %v9933_v57, %v10503_v15  ;;  %v11343_v62 = vpop.f32.mrb[9].mxu1  ;;  %v1845_v10 = vcombine.high %v1841_v54, %v1841_v54  ;;  %v2339_v38 = vcombine.low %v1827_v42, %v1841_v54  ;;  %v2353_v18 = vrot.slane %v2337_v36, %v10503_v15 }
 0x148   : > { %v2360_v41 = vrot.slane %v9850_v22, %v10503_v15  ;;  %v11347_v51 = vpop.f32.mrb[10].mxu1  ;;  %v4183_v0 = vrot.slane %v4167_v63, %v10503_v15  ;;  %v11351_v53 = vrot.slane %v9934_v48, %v10503_v15  ;;  %v2391_v3 = vrot.slane %v1843_v61, %v10503_v15 }
 0x149   : > { %v11355_v59 = vpop.f32.mrb[11].mxu1  ;;  %v2367_v57 = vrot.slane %v2339_v38, %v10503_v15  ;;  %v2368_v42 = vcombine.low %v11286_v55, %v2353_v18  ;;  %v2399_v54 = vcombine.low %v1845_v10, %v11208_v44  ;;  %v1329_v36 = vadd.f32 %v11099_v32, %v11180_v13 }
 0x14a   : > { %v4198_v22 = vcombine.low %v4176_v45, %v4183_v0  ;;  %v2398_v63 = vrot.slane %v2391_v3, %v10503_v15  ;;  %v3536_v48 = vcombine.high %v3514_v27, %v3514_v27  ;;  %v3543_v56 = vrot.slane %v3514_v27, %v10503_v15 }
 0x14b   : > { %v2369_v61 = vcombine.low %v2360_v41, %v2367_v57  ;;  %v2376_v30 = vrot.slane %v2368_v42, %v10503_v15  ;;  %v2409_v23 = vrot.slane %v2399_v54, %v10503_v15  ;;  %v1360_v49 = vmax.f32 %v1329_v36, 0.0 }
 0x14c   : > { %v11367_v38 = vrot.slane %v4198_v22, %v10503_v15  ;;  %2558 = vst.msk [vmem:[#allocation2 + $0x68] sm:$0x1] %vm2545_vm1, %v2398_v63  ;;  %v3550_v44 = vrot.slane %v3536_v48, %v10503_v15  ;;  %v3551_v13 = vcombine.high %v3543_v56, %v3543_v56  ;;  %v3559_v55 = vrot.slane %v3543_v56, %v10503_v15 }
 0x14d   : > { %v2383_v45 = vrot.slane %v2369_v61, %v10503_v15  ;;  %v12252_v10 = vrot.slane %v11220_v39, %v10503_v15  ;;  %v1437_v41 = vmul.f32 %v11070_v20, %v1360_v49  ;;  %v3402_v0 = vadd.f32 %v11243_v37, %v11099_v32 }
 0x14e   : > { %v3552_v3 = vcombine.high %v3550_v44, %v3550_v44  ;;  %v3566_v27 = vrot.slane %v3550_v44, %v10503_v15  ;;  %v3573_v57 = vrot.slane %v3551_v13, %v10503_v15  ;;  %v3394_v42 = vadd.f32 %v11099_v32, %v11248_v50 }
 0x14f   : > { %v2431_v18 = vcombine.low %v2409_v23, %v12252_v10  ;;  %v2384_v56 = vcombine.low %v2376_v30, %v2383_v45  ;;  %v1699_v36 = vcombine.high %v1437_v41, %v1437_v41  ;;  %v1706_v39 = vrot.slane %v1437_v41, %v10503_v15 }
 0x150   : > { %v3580_v22 = vrot.slane %v3552_v3, %v10503_v15  ;;  %v4040_v20 = vcombine.low %v3559_v55, %v3573_v57  ;;  %v9931_v49 = vcombine.high %v3559_v55, %v3573_v57  ;;  %v3439_v63 = vmax.f32 %v3402_v0, 0.0 }
 0x151   : > { %v2439_v54 = vrot.slane %v2431_v18, %v10503_v15  ;;  %v12253_v37 = vrot.slane %v11239_v35, %v10503_v15  ;;  %2557 = vst.msk [vmem:[#allocation2 + $0x60] sm:$0xff] %vm2543_vm2, %v2384_v56  ;;  %v1713_v61 = vrot.slane %v1699_v36, %v10503_v15  ;;  %v1714_v50 = vcombine.high %v1706_v39, %v1706_v39 }
 0x152   : > { %v1722_v30 = vrot.slane %v1706_v39, %v10503_v15  ;;  %v4042_v23 = vcombine.low %v3566_v27, %v3580_v22  ;;  %v9932_v44 = vcombine.high %v3566_v27, %v3580_v22  ;;  %v4050_v13 = vrot.slane %v4040_v20, %v10503_v15 }
 0x153   : > { %v2447_v48 = vcombine.low %v2439_v54, %v12253_v37  ;;  %v4057_v45 = vrot.slane %v9931_v49, %v10503_v15  ;;  %v1715_v55 = vcombine.high %v1713_v61, %v1713_v61  ;;  %v1729_v10 = vrot.slane %v1713_v61, %v10503_v15 }
 0x154   : > { %v1736_v35 = vrot.slane %v1714_v50, %v10503_v15  ;;  %v3517_v18 = vmul.f32 %v11103_v34, %v3439_v63  ;;  %v4064_v41 = vrot.slane %v4042_v23, %v10503_v15  ;;  %v4071_v0 = vrot.slane %v9932_v44, %v10503_v15 }
 0x155   : > { %2559 = vst.msk [vmem:[#allocation2 + $0x70] sm:$0xff] %vm2543_vm2, %v2447_v48  ;;  %v4072_v3 = vcombine.low %v4050_v13, %v4057_v45  ;;  %v3437_v57 = vmax.f32 %v3394_v42, 0.0  ;;  %v1743_v27 = vrot.slane %v1715_v55, %v10503_v15  ;;  %v1745_v56 = vcombine.high %v1729_v10, %v1729_v10 }
 0x156   : > { %v2212_v54 = vcombine.low %v1722_v30, %v1736_v35  ;;  %v9848_v36 = vcombine.high %v1722_v30, %v1736_v35  ;;  %v4073_v39 = vcombine.low %v4064_v41, %v4071_v0  ;;  %v2265_v20 = vrot.slane %v1729_v10, %v10503_v15 }
 0x157   : > { %v4080_v22 = vrot.slane %v4072_v3, %v10503_v15  ;;  %v3683_v49 = vcombine.high %v3517_v18, %v3517_v18  ;;  %v1747_v37 = vcombine.high %v1743_v27, %v1743_v27  ;;  %v2273_v48 = vcombine.low %v1743_v27, %v1745_v56  ;;  %v10224_v61 = vpop.f32.mrb[12].mxu1 }
 0x158   : > { %v2234_v34 = vrot.slane %v2212_v54, %v10503_v15  ;;  %v2241_v63 = vrot.slane %v9848_v36, %v10503_v15  ;;  %v4087_v42 = vrot.slane %v4073_v39, %v10503_v15  ;;  %v2272_v50 = vrot.slane %v2265_v20, %v10503_v15  ;;  %v11409_v44 = vpop.f32.mrb[13].mxu1 }
 0x159   : > { %v3690_v23 = vrot.slane %v3517_v18, %v10503_v15  ;;  %v3697_v30 = vrot.slane %v3683_v49, %v10503_v15  ;;  %v2274_v45 = vcombine.low %v1747_v37, %v11265_v52  ;;  %v2283_v55 = vrot.slane %v2273_v48, %v10503_v15  ;;  %v10225_v35 = vpop.f32.mrb[14].mxu1 }
 0x15a   : > { %v2243_v13 = vcombine.low %v2234_v34, %v2241_v63  ;;  %v3515_v10 = vmul.f32 %v11068_v19, %v3437_v57  ;;  %v4088_v41 = vcombine.low %v4080_v22, %v4087_v42  ;;  %2554 = vst.msk [vmem:[#allocation2 + $0x48] sm:$0x1] %vm2545_vm1, %v2272_v50  ;;  %v11416_v18 = vpop.f32.mrb[15].mxu1 }
 0x15b   : > { %v3698_v0 = vcombine.high %v3690_v23, %v3690_v23  ;;  %v3699_v3 = vcombine.high %v3697_v30, %v3697_v30  ;;  %v3706_v27 = vrot.slane %v3690_v23, %v10503_v15  ;;  %v2290_v54 = vrot.slane %v2274_v45, %v10503_v15 }
 0x15c   : > { %v2257_v56 = vrot.slane %v2243_v13, %v10503_v15  ;;  %v3713_v52 = vrot.slane %v3697_v30, %v10503_v15  ;;  %v3585_v36 = vcombine.high %v3515_v10, %v3515_v10  ;;  %v11421_v39 = vpop.f32.mrb[12].mxu0  ;;  %4626 = vst.msk [vmem:[#allocation2 + $0x90] sm:$0xff] %vm2543_vm2, %v4088_v41  ;;  %v3592_v22 = vrot.slane %v3515_v10, %v10503_v15 }
 0x15d   : > { %v3720_v19 = vrot.slane %v3698_v0, %v10503_v15  ;;  %v11426_v57 = vrot.slane %v3699_v3, %v10503_v15  ;;  %v11429_v20 = vpop.f32.mrb[13].mxu0  ;;  %v2305_v37 = vcombine.low %v2283_v55, %v2290_v54  ;;  %v12254_v41 = vrot.slane %v11292_v4, %v10503_v15 }
 0x15e   : > { %v2258_v49 = vcombine.low %v11325_v11, %v2257_v56  ;;  %v3729_v34 = vcombine.high %v3713_v52, %v3713_v52  ;;  %v3599_v63 = vrot.slane %v3585_v36, %v10503_v15  ;;  %v11433_v48 = vpop.f32.mrb[14].mxu0  ;;  %v3600_v50 = vcombine.high %v3592_v22, %v3592_v22 }
 0x15f   : > { %v3730_v61 = vcombine.high %v3720_v19, %v3720_v19  ;;  %v4169_v42 = vcombine.low %v3706_v27, %v3720_v19  ;;  %v11435_v23 = vpop.f32.mrb[15].mxu0  ;;  %v2313_v30 = vrot.slane %v2305_v37, %v10503_v15  ;;  %v3608_v11 = vrot.slane %v3592_v22, %v10503_v15 }
 0x160   : > { %2553 = vst.msk [vmem:[#allocation2 + $0x40] sm:$0xff] %vm2543_vm2, %v2258_v49  ;;  %v4230_v13 = vcombine.low %v11426_v57, %v3729_v34  ;;  %v3601_v45 = vcombine.high %v3599_v63, %v3599_v63  ;;  %v3615_v35 = vrot.slane %v3599_v63, %v10503_v15  ;;  %v3622_v27 = vrot.slane %v3600_v50, %v10503_v15 }
 0x161   : > { %v4197_v55 = vrot.slane %v4169_v42, %v10503_v15  ;;  %v4229_v10 = vcombine.low %v3730_v61, %v3713_v52  ;;  %v2321_v0 = vcombine.low %v2313_v30, %v12254_v41  ;;  %v3630_v19 = vcombine.high %v3608_v11, %v3608_v11 }
 0x162   : > { %v4246_v3 = vrot.slane %v4230_v13, %v10503_v15  ;;  %v3629_v56 = vrot.slane %v3601_v45, %v10503_v15  ;;  %v3631_v22 = vcombine.high %v3615_v35, %v3615_v35  ;;  %v3632_v52 = vcombine.high %v3622_v27, %v3622_v27 }
 0x163   : > { %v4199_v54 = vcombine.low %v11351_v53, %v4197_v55  ;;  %v4239_v36 = vrot.slane %v4229_v10, %v10503_v15  ;;  %2555 = vst.msk [vmem:[#allocation2 + $0x50] sm:$0xff] %vm2543_vm2, %v2321_v0  ;;  %v5480_v4 = vadd.f32 %v11310_v43, %v11099_v32  ;;  %v4103_v63 = vcombine.low %v3622_v27, %v3630_v19 }
 0x164   : > { %v3633_v49 = vcombine.high %v3629_v56, %v3629_v56  ;;  %v4105_v61 = vcombine.low %v3629_v56, %v3631_v22  ;;  %v4104_v42 = vcombine.low %v3632_v52, %v3615_v35  ;;  %v3731_v27 = vcombine.high %v11426_v57, %v11426_v57 }
 0x165   : > { %v4213_v37 = vrot.slane %v4199_v54, %v10503_v15  ;;  %v11455_v34 = vcombine.low %v4239_v36, %v4246_v3  ;;  %v5519_v50 = vmax.f32 %v5480_v4, 0.0  ;;  %v10238_v30 = vpop.f32.mrb[16].mxu0  ;;  %v4113_v11 = vrot.slane %v4103_v63, %v10503_v15 }
 0x166   : > { %v4106_v53 = vcombine.low %v3633_v49, %v11314_v8  ;;  %v4127_v43 = vrot.slane %v4105_v61, %v10503_v15  ;;  %v11463_v55 = vpop.f32.mrb[17].mxu0  ;;  %v4120_v10 = vrot.slane %v4104_v42, %v10503_v15  ;;  %v3415_v8 = vadd.f32 %v11340_v24, %v11099_v32 }
 0x167   : > { %v4214_v13 = vcombine.low %v11367_v38, %v4213_v37  ;;  %v4269_v45 = vrot.slane %v11455_v34, %v10503_v15  ;;  %v5597_v35 = vmul.f32 %v11035_v26, %v5519_v50  ;;  %v10239_v0 = vpop.f32.mrb[18].mxu0  ;;  %v5472_v38 = vadd.f32 %v11099_v32, %v11316_v14 }
 0x168   : > { %v4134_v41 = vrot.slane %v4106_v53, %v10503_v15  ;;  %v3407_v3 = vadd.f32 %v11099_v32, %v11343_v62  ;;  %v11479_v56 = vadd.f32 %v11322_v60, %v11099_v32  ;;  %v5506_v26 = vpop.f32.mrb[19].mxu0  ;;  %v4135_v54 = vcombine.low %v4113_v11, %v4120_v10 }
 0x169   : > { %4630 = vst.msk [vmem:[#allocation2 + $0xb0] sm:$0xff] %vm2543_vm2, %v4214_v13  ;;  %v5715_v24 = vcombine.high %v5597_v35, %v5597_v35  ;;  %v5722_v19 = vrot.slane %v5597_v35, %v10503_v15  ;;  %v3442_v22 = vmax.f32 %v3415_v8, 0.0  ;;  %v5517_v52 = vmax.f32 %v5472_v38, 0.0 }
 0x16a   : > { %v4136_v36 = vcombine.low %v4127_v43, %v4134_v41  ;;  %v3440_v49 = vmax.f32 %v3407_v3, 0.0  ;;  %v5520_v14 = vmax.f32 %v11479_v56, 0.0  ;;  %v4143_v62 = vrot.slane %v4135_v54, %v10503_v15 }
 0x16b   : > { %v5729_v37 = vrot.slane %v5715_v24, %v10503_v15  ;;  %v5730_v63 = vcombine.high %v5722_v19, %v5722_v19  ;;  %v11487_v32 = vrot.slane %v5722_v19, %v10503_v15  ;;  %v3520_v60 = vmul.f32 %v11152_v40, %v3442_v22 }
 0x16c   : > { %v4150_v4 = vrot.slane %v4136_v36, %v10503_v15  ;;  %v5595_v61 = vmul.f32 %v11056_v12, %v5517_v52  ;;  %v3518_v42 = vmul.f32 %v11111_v47, %v3440_v49 }
 0x16d   : > { %v5731_v50 = vcombine.high %v5729_v37, %v5729_v37  ;;  %v5745_v30 = vrot.slane %v5729_v37, %v10503_v15  ;;  %v5752_v13 = vrot.slane %v5730_v63, %v10503_v15  ;;  %v3830_v11 = vcombine.high %v3520_v60, %v3520_v60 }
 0x16e   : > { %v4151_v53 = vcombine.low %v4143_v62, %v4150_v4  ;;  %v3837_v43 = vrot.slane %v3520_v60, %v10503_v15  ;;  %v5617_v10 = vcombine.high %v5595_v61, %v5595_v61  ;;  %v5624_v41 = vrot.slane %v5595_v61, %v10503_v15 }
 0x16f   : > { %v5759_v40 = vrot.slane %v5731_v50, %v10503_v15  ;;  %v6239_v12 = vrot.slane %v5752_v13, %v10503_v15  ;;  %v10021_v47 = vcombine.high %v11487_v32, %v5752_v13  ;;  %v3732_v35 = vcombine.high %v3518_v42, %v3518_v42 }
 0x170   : > { %4628 = vst.msk [vmem:[#allocation2 + $0xa0] sm:$0xff] %vm2543_vm2, %v4151_v53  ;;  %v3844_v8 = vrot.slane %v3830_v11, %v10503_v15  ;;  %v3845_v0 = vcombine.high %v3837_v43, %v3837_v43  ;;  %v11502_v38 = vrot.slane %v3837_v43, %v10503_v15  ;;  %v5631_v3 = vrot.slane %v5617_v10, %v10503_v15 }
 0x171   : > { %v6246_v26 = vrot.slane %v6239_v12, %v10503_v15  ;;  %v6248_v54 = vcombine.low %v5745_v30, %v5759_v40  ;;  %v10022_v36 = vcombine.high %v5745_v30, %v5759_v40  ;;  %v6257_v24 = vrot.slane %v10021_v47, %v10503_v15 }
 0x172   : > { %v3846_v19 = vcombine.high %v3844_v8, %v3844_v8  ;;  %v3860_v22 = vrot.slane %v3844_v8, %v10503_v15  ;;  %v3867_v52 = vrot.slane %v3845_v0, %v10503_v15  ;;  %v3875_v49 = vcombine.high %v11502_v38, %v11502_v38 }
 0x173   : > { %v6264_v62 = vrot.slane %v6248_v54, %v10503_v15  ;;  %v11513_v4 = vrot.slane %v10022_v36, %v10503_v15  ;;  %6710 = vst.msk [vmem:[#allocation2 + $0x138] sm:$0x1] %vm2545_vm1, %v6246_v26  ;;  %v5632_v37 = vcombine.high %v5624_v41, %v5624_v41  ;;  %v5633_v63 = vcombine.high %v5631_v3, %v5631_v3 }
 0x174   : > { %v3874_v60 = vrot.slane %v3846_v19, %v10503_v15  ;;  %v3877_v61 = vcombine.high %v3867_v52, %v3867_v52  ;;  %v4357_v53 = vcombine.low %v3867_v52, %v3875_v49  ;;  %v5640_v50 = vrot.slane %v5624_v41, %v10503_v15 }
 0x175   : > { %v6279_v30 = vcombine.low %v6257_v24, %v6264_v62  ;;  %v5647_v13 = vrot.slane %v5631_v3, %v10503_v15  ;;  %v5654_v11 = vrot.slane %v5632_v37, %v10503_v15  ;;  %v5661_v43 = vrot.slane %v5633_v63, %v10503_v15 }
 0x176   : > { %v4358_v10 = vcombine.low %v3877_v61, %v3860_v22  ;;  %v4379_v40 = vrot.slane %v4357_v53, %v10503_v15  ;;  %v9937_v12 = vcombine.high %v3860_v22, %v3874_v60  ;;  %v11522_v47 = vpop.f32.mrb[16].mxu1  ;;  %v3739_v62 = vrot.slane %v3518_v42, %v10503_v15  ;;  %v11552_v42 = vld [vmem:[%s12238_s7] ss:$0 sm:$0xff] }
 0x177   : > { %v11525_v8 = vrot.slane %v6279_v30, %v10503_v15  ;;  %v6121_v0 = vcombine.low %v5640_v50, %v5654_v11  ;;  %v10019_v26 = vcombine.high %v5640_v50, %v5654_v11  ;;  %v6123_v54 = vcombine.low %v5647_v13, %v5661_v43  ;;  %v11527_v41 = vpop.f32.mrb[17].mxu1 }
 0x178   : > { %v4386_v3 = vrot.slane %v4358_v10, %v10503_v15  ;;  %v11531_v36 = vrot.slane %v9937_v12, %v10503_v15  ;;  %v10020_v24 = vcombine.high %v5647_v13, %v5661_v43  ;;  %v11533_v19 = vpop.f32.mrb[18].mxu1  ;;  %v3746_v61 = vrot.slane %v3732_v35, %v10503_v15 }
 0x179   : > { %v6131_v22 = vrot.slane %v6121_v0, %v10503_v15  ;;  %v6138_v52 = vrot.slane %v10019_v26, %v10503_v15  ;;  %v6145_v49 = vrot.slane %v6123_v54, %v10503_v15  ;;  %v11539_v37 = vpop.f32.mrb[19].mxu1  ;;  %v5598_v53 = vmul.f32 %v11042_v58, %v5520_v14 }
 0x17a   : > { %v11541_v63 = vcombine.low %v4379_v40, %v4386_v3  ;;  %v6152_v60 = vrot.slane %v10020_v24, %v10503_v15  ;;  %v3747_v30 = vcombine.high %v3739_v62, %v3739_v62  ;;  %v3755_v13 = vrot.slane %v3739_v62, %v10503_v15 }
 0x17b   : > { %v6153_v50 = vcombine.low %v6131_v22, %v6138_v52  ;;  %v3418_v11 = vadd.f32 %v11552_v42, %v11347_v51  ;;  %v3748_v10 = vcombine.high %v3746_v61, %v3746_v61  ;;  %v3762_v56 = vrot.slane %v3746_v61, %v10503_v15 }
 0x17c   : > { %v4402_v43 = vrot.slane %v11541_v63, %v10503_v15  ;;  %v6154_v35 = vcombine.low %v6145_v49, %v6152_v60  ;;  %v3769_v14 = vrot.slane %v3747_v30, %v10503_v15  ;;  %v3777_v40 = vcombine.high %v3755_v13, %v3755_v13 }
 0x17d   : > { %v6161_v58 = vrot.slane %v6153_v50, %v10503_v15  ;;  %v4231_v12 = vcombine.low %v3731_v27, %v3755_v13  ;;  %v3776_v51 = vrot.slane %v3748_v10, %v10503_v15  ;;  %v5764_v26 = vcombine.high %v5598_v53, %v5598_v53 }
 0x17e   : > { %v6168_v0 = vrot.slane %v6154_v35, %v10503_v15  ;;  %v5771_v54 = vrot.slane %v5598_v53, %v10503_v15  ;;  %v4232_v3 = vcombine.low %v3769_v14, %v3777_v40  ;;  %v3443_v22 = vmax.f32 %v3418_v11, 0.0 }
 0x17f   : > { %v4253_v24 = vrot.slane %v4231_v12, %v10503_v15  ;;  %v4292_v49 = vcombine.low %v3762_v56, %v3776_v51  ;;  %v9935_v62 = vcombine.high %v3762_v56, %v3776_v51  ;;  %v5778_v60 = vrot.slane %v5764_v26, %v10503_v15 }
 0x180   : > { %v6169_v52 = vcombine.low %v6161_v58, %v6168_v0  ;;  %v4260_v61 = vrot.slane %v4232_v3, %v10503_v15  ;;  %v5779_v57 = vcombine.high %v5771_v54, %v5771_v54  ;;  %v5787_v27 = vrot.slane %v5771_v54, %v10503_v15 }
 0x181   : > { %v4302_v50 = vrot.slane %v4292_v49, %v10503_v15  ;;  %v4309_v53 = vrot.slane %v9935_v62, %v10503_v15  ;;  %v5780_v30 = vcombine.high %v5778_v60, %v5778_v60  ;;  %v5794_v13 = vrot.slane %v5778_v60, %v10503_v15 }
 0x182   : > { %6707 = vst.msk [vmem:[#allocation2 + $0x120] sm:$0xff] %vm2543_vm2, %v6169_v52  ;;  %v11575_v11 = vpop.f32.mrb[20].mxu1  ;;  %v4262_v35 = vcombine.low %v4253_v24, %v4260_v61  ;;  %v5801_v10 = vrot.slane %v5779_v57, %v10503_v15  ;;  %v5809_v56 = vcombine.high %v5787_v27, %v5787_v27  ;;  %v3521_v0 = vmul.f32 %v11101_v17, %v3443_v22 }
 0x183   : > { %v11578_v58 = vpop.f32.mrb[21].mxu1  ;;  %v4324_v14 = vcombine.low %v4302_v50, %v4309_v53  ;;  %v11581_v40 = vrot.slane %v5780_v30, %v10503_v15  ;;  %v5810_v12 = vcombine.high %v5794_v13, %v5794_v13  ;;  %v5475_v34 = vadd.f32 %v11552_v42, %v11329_v25 }
 0x184   : > { %v11584_v51 = vpop.f32.mrb[22].mxu1  ;;  %v4276_v26 = vrot.slane %v4262_v35, %v10503_v15  ;;  %v5811_v54 = vcombine.high %v5801_v10, %v5801_v10  ;;  %v6250_v3 = vcombine.low %v5787_v27, %v5801_v10  ;;  %v6302_v24 = vrot.slane %v5809_v56, %v10503_v15 }
 0x185   : > { %v11588_v52 = vpop.f32.mrb[23].mxu1  ;;  %v11591_v49 = vrot.slane %v4324_v14, %v10503_v15  ;;  %v6311_v62 = vcombine.low %v11581_v40, %v5810_v12  ;;  %v3879_v60 = vcombine.high %v3521_v0, %v3521_v0  ;;  %v3886_v61 = vrot.slane %v3521_v0, %v10503_v15 }
 0x186   : > { %v4277_v17 = vcombine.low %v4269_v45, %v4276_v26  ;;  %v6278_v22 = vrot.slane %v6250_v3, %v10503_v15  ;;  %v6309_v57 = vrot.slane %v6302_v24, %v10503_v15  ;;  %v6310_v27 = vcombine.low %v5811_v54, %v5794_v13 }
 0x187   : > { %v6327_v50 = vrot.slane %v6311_v62, %v10503_v15  ;;  %v3893_v53 = vrot.slane %v3879_v60, %v10503_v15  ;;  %v3894_v30 = vcombine.high %v3886_v61, %v3886_v61  ;;  %v3902_v35 = vrot.slane %v3886_v61, %v10503_v15  ;;  %v11625_v61 = vpop.permute.xlu1 %9050 }
 0x188   : > { %4632 = vst.msk [vmem:[#allocation2 + $0xc0] sm:$0xff] %vm2543_vm2, %v4277_v17  ;;  %v6280_v10 = vcombine.low %v11513_v4, %v6278_v22  ;;  %v6320_v56 = vrot.slane %v6310_v27, %v10503_v15  ;;  %v3410_v45 = vadd.f32 %v11552_v42, %v11355_v59  ;;  %v11615_v0 = vadd.f32 %v11552_v42, %v11421_v39 }
 0x189   : > { %6712 = vst.msk [vmem:[#allocation2 + $0x148] sm:$0x1] %vm2545_vm1, %v6309_v57  ;;  %v3895_v13 = vcombine.high %v3893_v53, %v3893_v53  ;;  %v3909_v14 = vrot.slane %v3893_v53, %v10503_v15  ;;  %v3916_v12 = vrot.slane %v3894_v30, %v10503_v15  ;;  %v5518_v54 = vmax.f32 %v5475_v34, 0.0 }
 0x18a   : > { %v6294_v4 = vrot.slane %v6280_v10, %v10503_v15  ;;  %v11618_v26 = vcombine.low %v6320_v56, %v6327_v50  ;;  %v3441_v3 = vmax.f32 %v3410_v45, 0.0  ;;  %v5523_v45 = vmax.f32 %v11615_v0, 0.0 }
 0x18b   : > { %v11621_v25 = vrot.slane %v3895_v13, %v10503_v15  ;;  %v4419_v59 = vcombine.low %v3902_v35, %v3916_v12  ;;  %v9938_v62 = vcombine.high %v3902_v35, %v3916_v12  ;;  %v5596_v22 = vmul.f32 %v11006_v46, %v5518_v54 }
 0x18c   : > { %v10252_v24 = vpop.f32.mrb[24].mxu1  ;;  %v6295_v17 = vcombine.low %v11525_v8, %v6294_v4  ;;  %v3519_v57 = vmul.f32 %v11088_v28, %v3441_v3 }
 0x18d   : > { %v11623_v60 = vpop.f32.mrb[25].mxu1  ;;  %v4421_v50 = vcombine.low %v3909_v14, %v11621_v25  ;;  %v4435_v53 = vrot.slane %v4419_v59, %v10503_v15  ;;  %v4442_v30 = vrot.slane %v9938_v62, %v10503_v15  ;;  %v5666_v10 = vcombine.high %v5596_v22, %v5596_v22  ;;  %v11646_v62 = vpop.permute.xlu1 %9060 }
 0x18e   : > { %v10253_v27 = vpop.f32.mrb[26].mxu1  ;;  %6711 = vst.msk [vmem:[#allocation2 + $0x140] sm:$0xff] %vm2543_vm2, %v6295_v17  ;;  %v5673_v8 = vrot.slane %v5596_v22, %v10503_v15  ;;  %v3781_v56 = vcombine.high %v3519_v57, %v3519_v57  ;;  %v3788_v34 = vrot.slane %v3519_v57, %v10503_v15 }
 0x18f   : > { %v7587_v35 = vpop.f32.mrb[27].mxu1  ;;  %v4449_v46 = vrot.slane %v4421_v50, %v10503_v15  ;;  %v4450_v28 = vcombine.low %v11531_v36, %v4435_v53  ;;  %v5680_v13 = vrot.slane %v5666_v10, %v10503_v15 }
 0x190   : > { %v5681_v14 = vcombine.high %v5673_v8, %v5673_v8  ;;  %v5689_v12 = vrot.slane %v5673_v8, %v10503_v15  ;;  %v3795_v4 = vrot.slane %v3781_v56, %v10503_v15  ;;  %v3796_v24 = vcombine.high %v3788_v34, %v3788_v34 }
 0x191   : > { %v4451_v54 = vcombine.low %v4442_v30, %v4449_v46  ;;  %v4458_v3 = vrot.slane %v4450_v28, %v10503_v15  ;;  %v3804_v59 = vrot.slane %v3788_v34, %v10503_v15  ;;  %v5682_v17 = vcombine.high %v5680_v13, %v5680_v13 }
 0x192   : > { %v5696_v36 = vrot.slane %v5680_v13, %v10503_v15  ;;  %v5703_v0 = vrot.slane %v5681_v14, %v10503_v15  ;;  %v5711_v22 = vcombine.high %v5689_v12, %v5689_v12  ;;  %v6176_v27 = vrot.slane %v5689_v12, %v10503_v15 }
 0x193   : > { %v4465_v57 = vrot.slane %v4451_v54, %v10503_v15  ;;  %v3797_v50 = vcombine.high %v3795_v4, %v3795_v4  ;;  %v3811_v53 = vrot.slane %v3795_v4, %v10503_v15  ;;  %v5710_v30 = vrot.slane %v5682_v17, %v10503_v15 }
 0x194   : > { %v5712_v35 = vcombine.high %v5696_v36, %v5696_v36  ;;  %v5713_v10 = vcombine.high %v5703_v0, %v5703_v0  ;;  %v6184_v8 = vcombine.low %v5703_v0, %v5711_v22  ;;  %v6183_v34 = vrot.slane %v6176_v27, %v10503_v15 }
 0x195   : > { %v4466_v56 = vcombine.low %v4458_v3, %v4465_v57  ;;  %v3818_v46 = vrot.slane %v3796_v24, %v10503_v15  ;;  %v3825_v28 = vrot.slane %v3797_v50, %v10503_v15  ;;  %v5714_v13 = vcombine.high %v5710_v30, %v5710_v30  ;;  %v5588_v3 = vpop.permute.xlu1 %5587 }
 0x196   : > { %v6185_v14 = vcombine.low %v5713_v10, %v5696_v36  ;;  %v6186_v54 = vcombine.low %v5710_v30, %v5712_v35  ;;  %v6194_v12 = vrot.slane %v6184_v8, %v10503_v15  ;;  %6708 = vst.msk [vmem:[#allocation2 + $0x128] sm:$0x1] %vm2545_vm1, %v6183_v34  ;;  %v3827_v4 = vcombine.high %v3811_v53, %v3811_v53 }
 0x197   : > { %4638 = vst.msk [vmem:[#allocation2 + $0xf0] sm:$0xff] %vm2543_vm2, %v4466_v56  ;;  %v3829_v17 = vcombine.high %v3825_v28, %v3825_v28  ;;  %v4294_v39 = vcombine.low %v3804_v59, %v3818_v46  ;;  %v9936_v0 = vcombine.high %v3804_v59, %v3818_v46  ;;  %v6187_v22 = vcombine.low %v5714_v13, %v11487_v32 }
 0x198   : > { %v6201_v24 = vrot.slane %v6185_v14, %v10503_v15  ;;  %v6208_v57 = vrot.slane %v6186_v54, %v10503_v15  ;;  %v4355_v50 = vcombine.low %v3825_v28, %v3827_v4  ;;  %v5601_v10 = vmul.f32 %v11058_v7, %v5523_v45 }
 0x199   : > { %v4316_v36 = vrot.slane %v4294_v39, %v10503_v15  ;;  %v4323_v27 = vrot.slane %v9936_v0, %v10503_v15  ;;  %v4356_v30 = vcombine.low %v3829_v17, %v11502_v38  ;;  %v6215_v35 = vrot.slane %v6187_v22, %v10503_v15  ;;  %v3512_v14 = vpop.permute.xlu1 %3511 }
 0x19a   : > { %v6216_v53 = vcombine.low %v6194_v12, %v6201_v24  ;;  %v4365_v8 = vrot.slane %v4355_v50, %v10503_v15  ;;  %v5911_v46 = vcombine.high %v5601_v10, %v5601_v10  ;;  %v5918_v39 = vrot.slane %v5601_v10, %v10503_v15 }
 0x19b   : > { %v4325_v59 = vcombine.low %v4316_v36, %v4323_v27  ;;  %v4372_v32 = vrot.slane %v4356_v30, %v10503_v15  ;;  %v6217_v56 = vcombine.low %v6208_v57, %v6215_v35  ;;  %v5488_v38 = vadd.f32 %v11552_v42, %v11429_v20 }
 0x19c   : > { %v6224_v34 = vrot.slane %v6216_v53, %v10503_v15  ;;  %v5925_v45 = vrot.slane %v5911_v46, %v10503_v15  ;;  %v5926_v54 = vcombine.high %v5918_v39, %v5918_v39  ;;  %v11678_v12 = vrot.slane %v5918_v39, %v10503_v15 }
 0x19d   : > { %v4339_v28 = vrot.slane %v4325_v59, %v10503_v15  ;;  %v4387_v13 = vcombine.low %v4365_v8, %v4372_v32  ;;  %v6231_v7 = vrot.slane %v6217_v56, %v10503_v15  ;;  %v5521_v0 = vmax.f32 %v5488_v38, 0.0 }
 0x19e   : > { %v5927_v22 = vcombine.high %v5925_v45, %v5925_v45  ;;  %v5941_v24 = vrot.slane %v5925_v45, %v10503_v15  ;;  %v5948_v20 = vrot.slane %v5926_v54, %v10503_v15  ;;  %v5956_v36 = vcombine.high %v11678_v12, %v11678_v12 }
 0x19f   : > { %v4340_v4 = vcombine.low %v11591_v49, %v4339_v28  ;;  %v4395_v17 = vrot.slane %v4387_v13, %v10503_v15  ;;  %v6232_v3 = vcombine.low %v6224_v34, %v6231_v7  ;;  %v5599_v49 = vmul.f32 %v11050_v2, %v5521_v0 }
 0x1a0   : > { %v5955_v27 = vrot.slane %v5927_v22, %v10503_v15  ;;  %v5958_v50 = vcombine.high %v5948_v20, %v5948_v20  ;;  %v5812_v30 = vcombine.high %v11581_v40, %v11581_v40  ;;  %v3423_v35 = vadd.f32 %v11552_v42, %v11409_v44 }
 0x1a1   : > { %v4403_v57 = vcombine.low %v4395_v17, %v4402_v43  ;;  %4634 = vst.msk [vmem:[#allocation2 + $0xd0] sm:$0xff] %vm2543_vm2, %v4340_v4  ;;  %6709 = vst.msk [vmem:[#allocation2 + $0x130] sm:$0xff] %vm2543_vm2, %v6232_v3  ;;  %v6438_v63 = vcombine.low %v5948_v20, %v5956_v36  ;;  %v5813_v43 = vcombine.high %v5599_v49, %v5599_v49 }
 0x1a2   : > { %v5820_v53 = vrot.slane %v5599_v49, %v10503_v15  ;;  %v6439_v10 = vcombine.low %v5958_v50, %v5941_v24  ;;  %v6491_v2 = vrot.slane %v5955_v27, %v10503_v15  ;;  %v10025_v59 = vcombine.high %v5941_v24, %v5955_v27 }
 0x1a3   : > { %4636 = vst.msk [vmem:[#allocation2 + $0xe0] sm:$0xff] %vm2543_vm2, %v4403_v57  ;;  %v3444_v8 = vmax.f32 %v3423_v35, 0.0  ;;  %v6460_v32 = vrot.slane %v6438_v63, %v10503_v15  ;;  %v5827_v56 = vrot.slane %v5813_v43, %v10503_v15  ;;  %v3927_v0 = vcombine.high %v11621_v25, %v11621_v25 }
 0x1a4   : > { %v5828_v34 = vcombine.high %v5820_v53, %v5820_v53  ;;  %v6467_v40 = vrot.slane %v6439_v10, %v10503_v15  ;;  %v6498_v44 = vrot.slane %v6491_v2, %v10503_v15  ;;  %v11705_v46 = vrot.slane %v10025_v59, %v10503_v15 }
 0x1a5   : > { %v5836_v39 = vrot.slane %v5820_v53, %v10503_v15  ;;  %v5829_v28 = vcombine.high %v5827_v56, %v5827_v56  ;;  %v5843_v13 = vrot.slane %v5827_v56, %v10503_v15  ;;  %v3522_v54 = vmul.f32 %v11205_v33, %v3444_v8 }
 0x1a6   : > { %v5850_v38 = vrot.slane %v5828_v34, %v10503_v15  ;;  %v11710_v14 = vcombine.low %v6460_v32, %v6467_v40  ;;  %6718 = vst.msk [vmem:[#allocation2 + $0x178] sm:$0x1] %vm2545_vm1, %v6498_v44  ;;  %v5499_v3 = vadd.f32 %v11552_v42, %v11433_v48  ;;  %v5491_v48 = vadd.f32 %v11552_v42, %v11435_v23 }
 0x1a7   : > { %v5858_v7 = vcombine.high %v5836_v39, %v5836_v39  ;;  %v6312_v45 = vcombine.low %v5812_v30, %v5836_v39  ;;  %v5857_v4 = vrot.slane %v5829_v28, %v10503_v15  ;;  %v3928_v57 = vcombine.high %v3522_v54, %v3522_v54 }
 0x1a8   : > { %v5860_v17 = vcombine.high %v5850_v38, %v5850_v38  ;;  %v6483_v22 = vrot.slane %v11710_v14, %v10503_v15  ;;  %v3935_v27 = vrot.slane %v3522_v54, %v10503_v15  ;;  %v5524_v30 = vmax.f32 %v5499_v3, 0.0 }
 0x1a9   : > { %v6313_v24 = vcombine.low %v5850_v38, %v5858_v7  ;;  %v6334_v20 = vrot.slane %v6312_v45, %v10503_v15  ;;  %v6373_v49 = vcombine.low %v5843_v13, %v5857_v4  ;;  %v10023_v33 = vcombine.high %v5843_v13, %v5857_v4  ;;  %v11738_v13 = vpop.permute.xlu0 %9055 }
 0x1aa   : > { %v6365_v36 = vrot.slane %v5860_v17, %v10503_v15  ;;  %v3942_v25 = vrot.slane %v3928_v57, %v10503_v15  ;;  %v3943_v53 = vcombine.high %v3935_v27, %v3935_v27  ;;  %v3951_v59 = vrot.slane %v3935_v27, %v10503_v15 }
 0x1ab   : > { %v6341_v50 = vrot.slane %v6313_v24, %v10503_v15  ;;  %v6383_v63 = vrot.slane %v6373_v49, %v10503_v15  ;;  %v6390_v43 = vrot.slane %v10023_v33, %v10503_v15  ;;  %v5602_v23 = vmul.f32 %v11060_v1, %v5524_v30 }
 0x1ac   : > { %v6372_v35 = vrot.slane %v6365_v36, %v10503_v15  ;;  %v3944_v2 = vcombine.high %v3942_v25, %v3942_v25  ;;  %v3958_v8 = vrot.slane %v3942_v25, %v10503_v15  ;;  %v3965_v56 = vrot.slane %v3943_v53, %v10503_v15 }
 0x1ad   : > { %v6343_v10 = vcombine.low %v6334_v20, %v6341_v50  ;;  %v6405_v32 = vcombine.low %v6383_v63, %v6390_v43  ;;  %v5522_v34 = vmax.f32 %v5491_v48, 0.0  ;;  %v3973_v39 = vcombine.high %v3951_v59, %v3951_v59  ;;  %v11756_v63 = vpop.permute.xlu0 %9065 }
 0x1ae   : > { %6714 = vst.msk [vmem:[#allocation2 + $0x158] sm:$0x1] %vm2545_vm1, %v6372_v35  ;;  %v3972_v44 = vrot.slane %v3944_v2, %v10503_v15  ;;  %v3974_v28 = vcombine.high %v3958_v8, %v3958_v8  ;;  %v3975_v7 = vcombine.high %v3965_v56, %v3965_v56  ;;  %v4481_v45 = vcombine.low %v3927_v0, %v3951_v59  ;;  %v10335_v2 = vld [vmem:[%s12235_s4 + $0x4] ss:$36 sps:$4 sm:$0xff]  }
 0x1af   : > { %v6357_v40 = vrot.slane %v6343_v10, %v10503_v15  ;;  %v11741_v38 = vrot.slane %v6405_v32, %v10503_v15  ;;  %v5960_v54 = vcombine.high %v5602_v23, %v5602_v23  ;;  %v12255_v4 = vrot.slane %v11618_v26, %v10503_v15  ;;  %9192 = vmatprep.mubr.bf16.mxu1 %v10335_v2 }
 0x1b0   : > { %v4482_v1 = vcombine.low %v3965_v56, %v3973_v39  ;;  %v4484_v3 = vcombine.low %v3972_v44, %v3974_v28  ;;  %v4483_v24 = vcombine.low %v3975_v7, %v3958_v8  ;;  %v4491_v20 = vrot.slane %v4481_v45, %v10503_v15 }
 0x1b1   : > { %v6358_v17 = vcombine.low %v12255_v4, %v6357_v40  ;;  %v5967_v57 = vrot.slane %v5602_v23, %v10503_v15  ;;  %v5974_v36 = vrot.slane %v5960_v54, %v10503_v15  ;;  %v5600_v33 = vmul.f32 %v11054_v5, %v5522_v34 }
 0x1b2   : > { %v4498_v49 = vrot.slane %v4482_v1, %v10503_v15  ;;  %v4512_v0 = vrot.slane %v4484_v3, %v10503_v15  ;;  %v4505_v26 = vrot.slane %v4483_v24, %v10503_v15  ;;  %v3426_v56 = vadd.f32 %v11552_v42, %v11416_v18 }
 0x1b3   : > { %6713 = vst.msk [vmem:[#allocation2 + $0x150] sm:$0xff] %vm2543_vm2, %v6358_v17  ;;  %v5975_v27 = vcombine.high %v5967_v57, %v5967_v57  ;;  %v5976_v50 = vcombine.high %v5974_v36, %v5974_v36  ;;  %v5983_v25 = vrot.slane %v5967_v57, %v10503_v15  ;;  %v5990_v48 = vrot.slane %v5974_v36, %v10503_v15  ;;  %v7669_v57 = vpop.permute.xlu0 %7668 }
 0x1b4   : > { %v4513_v30 = vcombine.low %v4491_v20, %v4498_v49  ;;  %v5862_v35 = vcombine.high %v5600_v33, %v5600_v33  ;;  %v4514_v43 = vcombine.low %v4505_v26, %v4512_v0  ;;  %v5869_v5 = vrot.slane %v5600_v33, %v10503_v15 }
 0x1b5   : > { %v5997_v53 = vrot.slane %v5975_v27, %v10503_v15  ;;  %v11760_v10 = vrot.slane %v5976_v50, %v10503_v15  ;;  %v6006_v8 = vcombine.high %v5990_v48, %v5990_v48  ;;  %v3445_v0 = vmax.f32 %v3426_v56, 0.0 }
 0x1b6   : > { %v4521_v59 = vrot.slane %v4513_v30, %v10503_v15  ;;  %v5876_v32 = vrot.slane %v5862_v35, %v10503_v15  ;;  %v4528_v23 = vrot.slane %v4514_v43, %v10503_v15  ;;  %v5877_v28 = vcombine.high %v5869_v5, %v5869_v5 }
 0x1b7   : > { %v6500_v34 = vcombine.low %v5983_v25, %v5997_v53  ;;  %v10026_v40 = vcombine.high %v5983_v25, %v5997_v53  ;;  %v6502_v44 = vcombine.low %v5990_v48, %v11760_v10  ;;  %v6554_v39 = vrot.slane %v6006_v8, %v10503_v15 }
 0x1b8   : > { %v5878_v7 = vcombine.high %v5876_v32, %v5876_v32  ;;  %v5885_v45 = vrot.slane %v5869_v5, %v10503_v15  ;;  %v4529_v54 = vcombine.low %v4521_v59, %v4528_v23  ;;  %v5892_v3 = vrot.slane %v5876_v32, %v10503_v15 }
 0x1b9   : > { %v6516_v4 = vrot.slane %v6500_v34, %v10503_v15  ;;  %v6523_v17 = vrot.slane %v10026_v40, %v10503_v15  ;;  %v6530_v18 = vrot.slane %v6502_v44, %v10503_v15  ;;  %v6561_v1 = vrot.slane %v6554_v39, %v10503_v15  ;;  %v5593_v40 = vpop.permute.xlu0 %5592 }
 0x1ba   : > { %v5899_v24 = vrot.slane %v5877_v28, %v10503_v15  ;;  %v5906_v20 = vrot.slane %v5878_v7, %v10503_v15  ;;  %4640 = vst.msk [vmem:[#allocation2 + $0x100] sm:$0xff] %vm2543_vm2, %v4529_v54  ;;  %v5908_v33 = vcombine.high %v5892_v3, %v5892_v3  ;;  %v6428_v48 = vrot.slane %v5892_v3, %v10503_v15  ;;  %v11807_v7 = vld [vmem:[%s12238_s7] ss:$0 sm:$0xff] }
 0x1bb   : > { %v6531_v36 = vcombine.low %v11705_v46, %v6516_v4  ;;  %v6532_v49 = vcombine.low %v6523_v17, %v6530_v18  ;;  %6720 = vst.msk [vmem:[#allocation2 + $0x188] sm:$0x1] %vm2545_vm1, %v6561_v1  ;;  %v3523_v35 = vmul.f32 %v11109_v29, %v3445_v0  ;;  %v10340_v46 = vld [vmem:[%s12235_s4 + $0xc] ss:$36 sps:$4 sm:$0xff]   ;;  %v5504_v28 = vadd.f32 %v11552_v42, %v11463_v55 }
 0x1bc   : > { %v5910_v26 = vcombine.high %v5906_v20, %v5906_v20  ;;  %v6375_v27 = vcombine.low %v5885_v45, %v5899_v24  ;;  %v10024_v50 = vcombine.high %v5885_v45, %v5899_v24  ;;  %v6436_v5 = vcombine.low %v5906_v20, %v5908_v33  ;;  %9241 = vmatprep.mubr.bf16.mxu0 %v10340_v46 }
 0x1bd   : > { %v6539_v25 = vrot.slane %v6531_v36, %v10503_v15  ;;  %v6546_v30 = vrot.slane %v6532_v49, %v10503_v15  ;;  %v6435_v8 = vrot.slane %v6428_v48, %v10503_v15  ;;  %v3977_v32 = vcombine.high %v3523_v35, %v3523_v35 }
 0x1be   : > { %v6397_v43 = vrot.slane %v6375_v27, %v10503_v15  ;;  %v6404_v53 = vrot.slane %v10024_v50, %v10503_v15  ;;  %v6437_v2 = vcombine.low %v5910_v26, %v11678_v12  ;;  %v3984_v56 = vrot.slane %v3523_v35, %v10503_v15 }
 0x1bf   : > { %v6547_v59 = vcombine.low %v6539_v25, %v6546_v30  ;;  %v6446_v29 = vrot.slane %v6436_v5, %v10503_v15  ;;  %6716 = vst.msk [vmem:[#allocation2 + $0x168] sm:$0x1] %vm2545_vm1, %v6435_v8  ;;  %v3991_v44 = vrot.slane %v3977_v32, %v10503_v15  ;;  %v6008_v4 = vcombine.high %v11760_v10, %v11760_v10 }
 0x1c0   : > { %v6406_v23 = vcombine.low %v6397_v43, %v6404_v53  ;;  %v6453_v34 = vrot.slane %v6437_v2, %v10503_v15  ;;  %v3992_v12 = vcombine.high %v3984_v56, %v3984_v56  ;;  %v4000_v39 = vrot.slane %v3984_v56, %v10503_v15 }
 0x1c1   : > { %6719 = vst.msk [vmem:[#allocation2 + $0x180] sm:$0xff] %vm2543_vm2, %v6547_v59  ;;  %v3993_v17 = vcombine.high %v3991_v44, %v3991_v44  ;;  %v4007_v18 = vrot.slane %v3991_v44, %v10503_v15  ;;  %v5525_v3 = vmax.f32 %v5504_v28, 0.0  ;;  %v7561_v42 = vadd.f32 %v11522_v47, %v11807_v7 }
 0x1c2   : > { %v6420_v45 = vrot.slane %v6406_v23, %v10503_v15  ;;  %v6468_v54 = vcombine.low %v6446_v29, %v6453_v34  ;;  %v4014_v1 = vrot.slane %v3992_v12, %v10503_v15 }
 0x1c3   : > { %v4021_v20 = vrot.slane %v3993_v17, %v10503_v15  ;;  %v5603_v49 = vmul.f32 %v11062_v9, %v5525_v3  ;;  %v7600_v0 = vmax.f32 %v7561_v42, 0.0 }
 0x1c4   : > { %v6421_v24 = vcombine.low %v11741_v38, %v6420_v45  ;;  %v6476_v55 = vrot.slane %v6468_v54, %v10503_v15  ;;  %v4544_v57 = vcombine.low %v4000_v39, %v4014_v1  ;;  %v9939_v36 = vcombine.high %v4000_v39, %v4014_v1 }
 0x1c5   : > { %v7553_v38 = vadd.f32 %v11807_v7, %v11527_v41  ;;  %v4546_v33 = vcombine.low %v4007_v18, %v4021_v20  ;;  %v9940_v26 = vcombine.high %v4007_v18, %v4021_v20  ;;  %v6009_v50 = vcombine.high %v5603_v49, %v5603_v49 }
 0x1c6   : > { %v6484_v10 = vcombine.low %v6476_v55, %v6483_v22  ;;  %6715 = vst.msk [vmem:[#allocation2 + $0x160] sm:$0xff] %vm2543_vm2, %v6421_v24  ;;  %v4554_v47 = vrot.slane %v4544_v57, %v10503_v15  ;;  %v4561_v27 = vrot.slane %v9939_v36, %v10503_v15  ;;  %v6016_v9 = vrot.slane %v5603_v49, %v10503_v15 }
 0x1c7   : > { %v7678_v14 = vmul.f32 %v11072_v21, %v7600_v0  ;;  %v4568_v22 = vrot.slane %v4546_v33, %v10503_v15  ;;  %v4575_v25 = vrot.slane %v9940_v26, %v10503_v15  ;;  %v7598_v48 = vmax.f32 %v7553_v38, 0.0 }
 0x1c8   : > { %6717 = vst.msk [vmem:[#allocation2 + $0x170] sm:$0xff] %vm2543_vm2, %v6484_v10  ;;  %v4576_v30 = vcombine.low %v4554_v47, %v4561_v27  ;;  %v6023_v41 = vrot.slane %v6009_v50, %v10503_v15  ;;  %v6024_v35 = vcombine.high %v6016_v9, %v6016_v9  ;;  %v6032_v46 = vrot.slane %v6016_v9, %v10503_v15 }
 0x1c9   : > { %v4577_v43 = vcombine.low %v4568_v22, %v4575_v25  ;;  %v7796_v5 = vcombine.high %v7678_v14, %v7678_v14  ;;  %v7803_v2 = vrot.slane %v7678_v14, %v10503_v15  ;;  %v7676_v20 = vmul.f32 %v11086_v6, %v7598_v48 }
 0x1ca   : > { %v4584_v53 = vrot.slane %v4576_v30, %v10503_v15  ;;  %v6025_v59 = vcombine.high %v6023_v41, %v6023_v41  ;;  %v6039_v21 = vrot.slane %v6023_v41, %v10503_v15  ;;  %v6046_v8 = vrot.slane %v6024_v35, %v10503_v15 }
 0x1cb   : > { %v6054_v32 = vcombine.high %v6032_v46, %v6032_v46  ;;  %v4591_v56 = vrot.slane %v4577_v43, %v10503_v15  ;;  %v6562_v23 = vcombine.low %v6008_v4, %v6032_v46  ;;  %v7810_v29 = vrot.slane %v7796_v5, %v10503_v15 }
 0x1cc   : > { %v7811_v34 = vcombine.high %v7803_v2, %v7803_v2  ;;  %v6053_v40 = vrot.slane %v6025_v59, %v10503_v15  ;;  %v6055_v44 = vcombine.high %v6039_v21, %v6039_v21  ;;  %v6056_v12 = vcombine.high %v6046_v8, %v6046_v8 }
 0x1cd   : > { %v6563_v39 = vcombine.low %v6046_v8, %v6054_v32  ;;  %v4592_v28 = vcombine.low %v4584_v53, %v4591_v56  ;;  %v6572_v45 = vrot.slane %v6562_v23, %v10503_v15  ;;  %v7812_v54 = vcombine.high %v7810_v29, %v7810_v29 }
 0x1ce   : > { %v11844_v17 = vrot.slane %v7803_v2, %v10503_v15  ;;  %v6057_v18 = vcombine.high %v6053_v40, %v6053_v40  ;;  %v6564_v1 = vcombine.low %v6056_v12, %v6039_v21  ;;  %v6565_v3 = vcombine.low %v6053_v40, %v6055_v44 }
 0x1cf   : > { %v6579_v4 = vrot.slane %v6563_v39, %v10503_v15  ;;  %4642 = vst.msk [vmem:[#allocation2 + $0x110] sm:$0xff] %vm2543_vm2, %v4592_v28  ;;  %v7826_v24 = vrot.slane %v7810_v29, %v10503_v15  ;;  %v7833_v55 = vrot.slane %v7811_v34, %v10503_v15  ;;  %v7840_v42 = vrot.slane %v7812_v54, %v10503_v15 }
 0x1d0   : > { %v6586_v57 = vrot.slane %v6564_v1, %v10503_v15  ;;  %v6593_v36 = vrot.slane %v6565_v3, %v10503_v15  ;;  %v6617_v10 = vrot.slane %v6057_v18, %v10503_v15  ;;  %v7698_v50 = vcombine.high %v7676_v20, %v7676_v20 }
 0x1d1   : > { %v6594_v49 = vcombine.low %v6572_v45, %v6579_v4  ;;  %v10109_v0 = vcombine.high %v11844_v17, %v7833_v55  ;;  %v8329_v38 = vcombine.low %v7826_v24, %v7840_v42  ;;  %v10110_v33 = vcombine.high %v7826_v24, %v7840_v42 }
 0x1d2   : > { %v6595_v26 = vcombine.low %v6586_v57, %v6593_v36  ;;  %v6624_v27 = vrot.slane %v6617_v10, %v10503_v15  ;;  %v7705_v25 = vrot.slane %v7676_v20, %v10503_v15  ;;  %v7712_v30 = vrot.slane %v7698_v50, %v10503_v15 }
 0x1d3   : > { %v6602_v47 = vrot.slane %v6594_v49, %v10503_v15  ;;  %v8338_v9 = vrot.slane %v10109_v0, %v10503_v15  ;;  %v8345_v6 = vrot.slane %v8329_v38, %v10503_v15  ;;  %v8352_v14 = vrot.slane %v10110_v33, %v10503_v15 }
 0x1d4   : > { %v6609_v22 = vrot.slane %v6595_v26, %v10503_v15  ;;  %6722 = vst.msk [vmem:[#allocation2 + $0x198] sm:$0x1] %vm2545_vm1, %v6624_v27  ;;  %v7564_v41 = vadd.f32 %v11533_v19, %v11807_v7  ;;  %v7556_v35 = vadd.f32 %v11807_v7, %v11539_v37  ;;  %v7577_v46 = vadd.f32 %v11575_v11, %v11807_v7 }
 0x1d5   : > { %v8360_v48 = vcombine.low %v8338_v9, %v8345_v6  ;;  %v7713_v53 = vcombine.high %v7705_v25, %v7705_v25  ;;  %v7714_v5 = vcombine.high %v7712_v30, %v7712_v30  ;;  %v7721_v2 = vrot.slane %v7705_v25, %v10503_v15 }
 0x1d6   : > { %v6610_v43 = vcombine.low %v6602_v47, %v6609_v22  ;;  %v7728_v21 = vrot.slane %v7712_v30, %v10503_v15  ;;  %v7601_v8 = vmax.f32 %v7564_v41, 0.0  ;;  %v7599_v37 = vmax.f32 %v7556_v35, 0.0 }
 0x1d7   : > { %v8368_v59 = vrot.slane %v8360_v48, %v10503_v15  ;;  %v7735_v19 = vrot.slane %v7713_v53, %v10503_v15  ;;  %v7742_v32 = vrot.slane %v7714_v5, %v10503_v15  ;;  %v7604_v56 = vmax.f32 %v7577_v46, 0.0  ;;  %v12256_v48 = vld [vmem:[#allocation7_spill] sm:$0xff] }
 0x1d8   : > { %6721 = vst.msk [vmem:[#allocation2 + $0x190] sm:$0xff] %vm2543_vm2, %v6610_v43  ;;  %v7679_v11 = vmul.f32 %v11094_v31, %v7601_v8  ;;  %v11880_v23 = vadd.f32 %v11807_v7, %v11578_v58  ;;  %v11884_v29 = vadd.f32 %v11584_v51, %v11807_v7  ;;  %v7677_v47 = vmul.f32 %v11064_v16, %v7599_v37 }
 0x1d9   : > { %v8202_v34 = vcombine.low %v7721_v2, %v7735_v19  ;;  %v10107_v40 = vcombine.high %v7721_v2, %v7735_v19  ;;  %v8204_v44 = vcombine.low %v7728_v21, %v7742_v32  ;;  %v10108_v12 = vcombine.high %v7728_v21, %v7742_v32 }
 0x1da   : > { %v7845_v39 = vcombine.high %v7679_v11, %v7679_v11  ;;  %v7852_v28 = vrot.slane %v7679_v11, %v10503_v15  ;;  %v7747_v6 = vcombine.high %v7677_v47, %v7677_v47  ;;  %v7754_v22 = vrot.slane %v7677_v47, %v10503_v15 }
 0x1db   : > { %v8212_v45 = vrot.slane %v8202_v34, %v10503_v15  ;;  %v8219_v54 = vrot.slane %v10107_v40, %v10503_v15  ;;  %v8226_v31 = vrot.slane %v8204_v44, %v10503_v15  ;;  %v8233_v58 = vrot.slane %v10108_v12, %v10503_v15 }
 0x1dc   : > { %v7859_v18 = vrot.slane %v7845_v39, %v10503_v15  ;;  %v7860_v3 = vcombine.high %v7852_v28, %v7852_v28  ;;  %v7868_v4 = vrot.slane %v7852_v28, %v10503_v15  ;;  %v7682_v41 = vmul.f32 %v12256_v48, %v7604_v56 }
 0x1dd   : > { %v8234_v1 = vcombine.low %v8212_v45, %v8219_v54  ;;  %v8235_v51 = vcombine.low %v8226_v31, %v8233_v58  ;;  %v7602_v35 = vmax.f32 %v11880_v23, 0.0  ;;  %v7761_v46 = vrot.slane %v7747_v6, %v10503_v15 }
 0x1de   : > { %v7861_v24 = vcombine.high %v7859_v18, %v7859_v18  ;;  %v7875_v20 = vrot.slane %v7859_v18, %v10503_v15  ;;  %v7882_v57 = vrot.slane %v7860_v3, %v10503_v15  ;;  %v7762_v43 = vcombine.high %v7754_v22, %v7754_v22 }
 0x1df   : > { %v8242_v55 = vrot.slane %v8234_v1, %v10503_v15  ;;  %v8249_v42 = vrot.slane %v8235_v51, %v10503_v15  ;;  %v7770_v16 = vrot.slane %v7754_v22, %v10503_v15  ;;  %v7992_v2 = vcombine.high %v7682_v41, %v7682_v41 }
 0x1e0   : > { %v11898_v36 = vrot.slane %v7861_v24, %v10503_v15  ;;  %v7891_v10 = vcombine.high %v7875_v20, %v7875_v20  ;;  %v7892_v0 = vcombine.high %v7882_v57, %v7882_v57  ;;  %v8331_v38 = vcombine.low %v7868_v4, %v7882_v57  ;;  %v12257_v24 = vld [vmem:[#allocation4_spill] sm:$0xff] }
 0x1e1   : > { %v8250_v49 = vcombine.low %v8242_v55, %v8249_v42  ;;  %v7999_v21 = vrot.slane %v7682_v41, %v10503_v15  ;;  %v7777_v8 = vrot.slane %v7761_v46, %v10503_v15  ;;  %v7784_v19 = vrot.slane %v7762_v43, %v10503_v15 }
 0x1e2   : > { %v8391_v33 = vcombine.low %v7892_v0, %v7875_v20  ;;  %v8392_v26 = vcombine.low %v11898_v36, %v7891_v10  ;;  %v8359_v27 = vrot.slane %v8331_v38, %v10503_v15  ;;  %v7792_v37 = vcombine.high %v7770_v16, %v7770_v16  ;;  %v12258_v16 = vld [vmem:[#allocation6_spill] sm:$0xff] }
 0x1e3   : > { %8788 = vst.msk [vmem:[#allocation2 + $0x1b0] sm:$0xff] %vm2543_vm2, %v8250_v49  ;;  %v8006_v56 = vrot.slane %v7992_v2, %v10503_v15  ;;  %v7793_v23 = vcombine.high %v7777_v8, %v7777_v8  ;;  %v7794_v34 = vcombine.high %v7784_v19, %v7784_v19  ;;  %v8007_v40 = vcombine.high %v7999_v21, %v7999_v21 }
 0x1e4   : > { %v8401_v50 = vrot.slane %v8391_v33, %v10503_v15  ;;  %v8408_v9 = vrot.slane %v8392_v26, %v10503_v15  ;;  %v8361_v25 = vcombine.low %v8352_v14, %v8359_v27  ;;  %v7763_v14 = vcombine.high %v7761_v46, %v7761_v46 }
 0x1e5   : > { %v8265_v44 = vcombine.low %v7784_v19, %v7792_v37  ;;  %v8008_v12 = vcombine.high %v8006_v56, %v8006_v56  ;;  %v11923_v39 = vrot.slane %v7999_v21, %v10503_v15  ;;  %v8266_v45 = vcombine.low %v7794_v34, %v7777_v8 }
 0x1e6   : > { %v11907_v30 = vcombine.low %v8401_v50, %v8408_v9  ;;  %v8375_v53 = vrot.slane %v8361_v25, %v10503_v15  ;;  %v7791_v11 = vrot.slane %v7763_v14, %v10503_v15  ;;  %v8029_v58 = vrot.slane %v8007_v40, %v10503_v15 }
 0x1e7   : > { %v8275_v31 = vrot.slane %v8265_v44, %v10503_v15  ;;  %v8036_v18 = vrot.slane %v8008_v12, %v10503_v15  ;;  %v8037_v1 = vcombine.high %v11923_v39, %v11923_v39  ;;  %v8282_v3 = vrot.slane %v8266_v45, %v10503_v15 }
 0x1e8   : > { %v8431_v5 = vrot.slane %v11907_v30, %v10503_v15  ;;  %v8376_v32 = vcombine.low %v8368_v59, %v8375_v53  ;;  %v7795_v28 = vcombine.high %v7791_v11, %v7791_v11  ;;  %v8267_v54 = vcombine.low %v7791_v11, %v7793_v23 }
 0x1e9   : > { %v8022_v59 = vrot.slane %v8006_v56, %v10503_v15  ;;  %v7680_v55 = vmul.f32 %v12257_v24, %v7602_v35  ;;  %v8039_v42 = vcombine.high %v8029_v58, %v8029_v58  ;;  %v8519_v20 = vcombine.low %v8029_v58, %v8037_v1 }
 0x1ea   : > { %8792 = vst.msk [vmem:[#allocation2 + $0x1d0] sm:$0xff] %vm2543_vm2, %v8376_v32  ;;  %v8268_v51 = vcombine.low %v7795_v28, %v11844_v17  ;;  %v8289_v4 = vrot.slane %v8267_v54, %v10503_v15  ;;  %v8297_v10 = vcombine.low %v8275_v31, %v8282_v3  ;;  %v7893_v0 = vcombine.high %v11898_v36, %v11898_v36 }
 0x1eb   : > { %v10113_v57 = vcombine.high %v8022_v59, %v8036_v18  ;;  %v7894_v38 = vcombine.high %v7680_v55, %v7680_v55  ;;  %v8520_v33 = vcombine.low %v8039_v42, %v8022_v59  ;;  %v8541_v26 = vrot.slane %v8519_v20, %v10503_v15  ;;  %v12259_v18 = vld [vmem:[#allocation5_spill] sm:$0xff] }
 0x1ec   : > { %v8296_v49 = vrot.slane %v8268_v51, %v10503_v15  ;;  %v8305_v27 = vrot.slane %v8297_v10, %v10503_v15  ;;  %v7901_v50 = vrot.slane %v7680_v55, %v10503_v15  ;;  %v7605_v22 = vmax.f32 %v11884_v29, 0.0 }
 0x1ed   : > { %v11940_v17 = vrot.slane %v10113_v57, %v10503_v15  ;;  %v7908_v9 = vrot.slane %v7894_v38, %v10503_v15  ;;  %v8548_v6 = vrot.slane %v8520_v33, %v10503_v15  ;;  %v7572_v36 = vadd.f32 %v11807_v7, %v11588_v52  ;;  %v7674_v33 = vpop.permute.xlu1 %7673 }
 0x1ee   : > { %v8298_v47 = vcombine.low %v8289_v4, %v8296_v49  ;;  %v7909_v48 = vcombine.high %v7901_v50, %v7901_v50  ;;  %v7917_v35 = vrot.slane %v7901_v50, %v10503_v15  ;;  %v7683_v53 = vmul.f32 %v12258_v16, %v7605_v22 }
 0x1ef   : > { %v7910_v41 = vcombine.high %v7908_v9, %v7908_v9  ;;  %v11951_v46 = vcombine.low %v8541_v26, %v8548_v6  ;;  %v7924_v43 = vrot.slane %v7908_v9, %v10503_v15  ;;  %v7603_v2 = vmax.f32 %v7572_v36, 0.0 }
 0x1f0   : > { %v8312_v25 = vrot.slane %v8298_v47, %v10503_v15  ;;  %v7931_v14 = vrot.slane %v7909_v48, %v10503_v15  ;;  %v7939_v8 = vcombine.high %v7917_v35, %v7917_v35  ;;  %v8393_v19 = vcombine.low %v7893_v0, %v7917_v35 }
 0x1f1   : > { %v7938_v29 = vrot.slane %v7910_v41, %v10503_v15  ;;  %v8564_v52 = vrot.slane %v11951_v46, %v10503_v15  ;;  %v8041_v32 = vcombine.high %v7683_v53, %v7683_v53  ;;  %v8048_v37 = vrot.slane %v7683_v53, %v10503_v15 }
 0x1f2   : > { %v8313_v21 = vcombine.low %v8305_v27, %v8312_v25  ;;  %v8394_v56 = vcombine.low %v7931_v14, %v7939_v8  ;;  %v8415_v34 = vrot.slane %v8393_v19, %v10503_v15  ;;  %v7681_v1 = vmul.f32 %v12259_v18, %v7603_v2  ;;  %v12260_v19 = vld [vmem:[#allocation8_spill] sm:$0xff] }
 0x1f3   : > { %v8454_v11 = vcombine.low %v7924_v43, %v7938_v29  ;;  %v10111_v23 = vcombine.high %v7924_v43, %v7938_v29  ;;  %v8055_v40 = vrot.slane %v8041_v32, %v10503_v15  ;;  %v8056_v44 = vcombine.high %v8048_v37, %v8048_v37 }
 0x1f4   : > { %8790 = vst.msk [vmem:[#allocation2 + $0x1c0] sm:$0xff] %vm2543_vm2, %v8313_v21  ;;  %v8064_v12 = vrot.slane %v8048_v37, %v10503_v15  ;;  %v8422_v28 = vrot.slane %v8394_v56, %v10503_v15  ;;  %v7943_v57 = vcombine.high %v7681_v1, %v7681_v1  ;;  %v7950_v49 = vrot.slane %v7681_v1, %v10503_v15  ;;  %v12003_v37 = vld [vmem:[#allocation2 + $0x10] sm:$0xff] }
 0x1f5   : > { %v8464_v45 = vrot.slane %v8454_v11, %v10503_v15  ;;  %v8471_v54 = vrot.slane %v10111_v23, %v10503_v15  ;;  %v8057_v59 = vcombine.high %v8055_v40, %v8055_v40  ;;  %v8071_v31 = vrot.slane %v8055_v40, %v10503_v15  ;;  %v12007_v40 = vld [vmem:[#allocation2 + $0xc0] sm:$0xff] }
 0x1f6   : > { %v8078_v58 = vrot.slane %v8056_v44, %v10503_v15  ;;  %v8424_v51 = vcombine.low %v8415_v34, %v8422_v28  ;;  %v7957_v47 = vrot.slane %v7943_v57, %v10503_v15  ;;  %v7958_v27 = vcombine.high %v7950_v49, %v7950_v49  ;;  %v8858_v34 = vld [vmem:[#allocation2 + $0x90] sm:$0xff] }
 0x1f7   : > { %v8486_v3 = vcombine.low %v8464_v45, %v8471_v54  ;;  %v11971_v4 = vrot.slane %v8057_v59, %v10503_v15  ;;  %v7966_v50 = vrot.slane %v7950_v49, %v10503_v15  ;;  %v7585_v30 = vadd.f32 %v11807_v7, %v11623_v60  ;;  %v12000_v7 = vld [vmem:[#allocation2 + $0xa0] sm:$0xff]  ;;  %v8891_v54 = vld [vmem:[#allocation2 + $0x130] sm:$0xff] }
 0x1f8   : > { %v8581_v24 = vcombine.low %v8064_v12, %v8078_v58  ;;  %v10114_v55 = vcombine.high %v8064_v12, %v8078_v58  ;;  %v8438_v42 = vrot.slane %v8424_v51, %v10503_v15  ;;  %v7959_v22 = vcombine.high %v7957_v47, %v7957_v47  ;;  %v8842_v45 = vld [vmem:[#allocation2] sm:$0xff]  ;;  %v12015_v58 = vld [vmem:[#allocation2 + $0xb0] sm:$0xff] }
 0x1f9   : > { %v11975_v20 = vrot.slane %v8486_v3, %v10503_v15  ;;  %v8583_v10 = vcombine.low %v8071_v31, %v11971_v4  ;;  %v7973_v36 = vrot.slane %v7957_v47, %v10503_v15  ;;  %v7980_v25 = vrot.slane %v7958_v27, %v10503_v15 }
 0x1fa   : > { %v8597_v0 = vrot.slane %v8581_v24, %v10503_v15  ;;  %v8604_v38 = vrot.slane %v10114_v55, %v10503_v15  ;;  %v8439_v26 = vcombine.low %v8431_v5, %v8438_v42  ;;  %v8089_v41 = vcombine.high %v11971_v4, %v11971_v4  ;;  %v8890_v4 = vld [vmem:[#allocation2 + $0x120] sm:$0xff] }
 0x1fb   : > { %v8611_v9 = vrot.slane %v8583_v10, %v10503_v15  ;;  %v7987_v35 = vrot.slane %v7959_v22, %v10503_v15  ;;  %v7989_v43 = vcombine.high %v7973_v36, %v7973_v36  ;;  %v10112_v16 = vcombine.high %v7966_v50, %v7980_v25 }
 0x1fc   : > { %v8612_v6 = vcombine.low %v11940_v17, %v8597_v0  ;;  %8794 = vst.msk [vmem:[#allocation2 + $0x1e0] sm:$0xff] %vm2543_vm2, %v8439_v26  ;;  %v8456_v17 = vcombine.low %v7966_v50, %v7980_v25  ;;  %v7606_v2 = vmax.f32 %v7585_v30, 0.0  ;;  %v8866_v28 = vpack.c.bf16 %v12000_v7, %v8858_v34  ;;  %v8874_v25 = vld [vmem:[#allocation2 + $0x1] sm:$0xff]  ;;  %v12036_v30 = vld [vmem:[#allocation2 + $0x11] sm:$0xff] }
 0x1fd   : > { %v8613_v5 = vcombine.low %v8604_v38, %v8611_v9  ;;  %v7991_v21 = vcombine.high %v7987_v35, %v7987_v35  ;;  %v8485_v29 = vrot.slane %v10112_v16, %v10503_v15  ;;  %v8517_v60 = vcombine.low %v7987_v35, %v7989_v43  ;;  %v12047_v16 = vld [vmem:[#allocation2 + $0x50] sm:$0xff] }
 0x1fe   : > { %v8620_v48 = vrot.slane %v8612_v6, %v10503_v15  ;;  %v8478_v14 = vrot.slane %v8456_v17, %v10503_v15  ;;  %v7684_v32 = vmul.f32 %v12260_v19, %v7606_v2  ;;  %8870 = vst.msk [vmem:[#allocation3 + $0x8] sm:$0xff] %vm2543_vm2, %v8866_v28  ;;  %v8867_v3 = vpack.c.bf16 %v12007_v40, %v12015_v58  ;;  %v12045_v17 = vld [vmem:[#allocation2 + $0x31] sm:$0xff]  ;;  %v12066_v28 = vld [vmem:[#allocation2 + $0x100] sm:$0xff] }
 0x1ff   : > { %v8627_v53 = vrot.slane %v8613_v5, %v10503_v15  ;;  %v8518_v11 = vcombine.low %v7991_v21, %v11923_v39  ;;  %v8527_v23 = vrot.slane %v8517_v60, %v10503_v15  ;;  %v8850_v39 = vpack.c.bf16 %v12003_v37, %v8842_v45  ;;  %v8893_v21 = vld [vmem:[#allocation2 + $0x150] sm:$0xff]  ;;  %v8878_v45 = vld [vmem:[#allocation2 + $0x41] sm:$0xff] }
 0x200   : > { %v8487_v56 = vcombine.low %v8478_v14, %v8485_v29  ;;  %v8090_v44 = vcombine.high %v7684_v32, %v7684_v32  ;;  %v8097_v12 = vrot.slane %v7684_v32, %v10503_v15  ;;  %v8898_v42 = vpack.c.bf16 %v8891_v54, %v8890_v4  ;;  %8871 = vst.msk [vmem:[#allocation3 + $0x50] sm:$0xff] %vm2543_vm2, %v8867_v3  ;;  %v12050_v14 = vld [vmem:[#allocation2 + $0xe0] sm:$0xff]  ;;  %v12061_v34 = vld [vmem:[#allocation2 + $0x70] sm:$0xff] }
 0x201   : > { %v8628_v8 = vcombine.low %v8620_v48, %v8627_v53  ;;  %v8534_v31 = vrot.slane %v8518_v11, %v10503_v15  ;;  %8854 = vst.msk [vmem:[#allocation3] sm:$0xff] %vm2543_vm2, %v8850_v39  ;;  %v12039_v48 = vld [vmem:[#allocation2 + $0x20] sm:$0xff]  ;;  %v8882_v2 = vpack.c.bf16 %v12036_v30, %v8874_v25  ;;  %v12078_v3 = vld [vmem:[#allocation2 + $0x71] sm:$0xff] }
 0x202   : > { %v8501_v59 = vrot.slane %v8487_v56, %v10503_v15  ;;  %v8104_v18 = vrot.slane %v8090_v44, %v10503_v15  ;;  %v8105_v1 = vcombine.high %v8097_v12, %v8097_v12  ;;  %v8113_v51 = vrot.slane %v8097_v12, %v10503_v15  ;;  %8902 = vst.msk [vmem:[#allocation3 + $0x18] sm:$0xff] %vm2543_vm2, %v8898_v42  ;;  %v12052_v29 = vld [vmem:[#allocation2 + $0x21] sm:$0xff]  ;;  %v12064_v44 = vld [vmem:[#allocation2 + $0xd0] sm:$0xff] }
 0x203   : > { %8800 = vst.msk [vmem:[#allocation2 + $0x210] sm:$0xff] %vm2543_vm2, %v8628_v8  ;;  %v8549_v55 = vcombine.low %v8527_v23, %v8534_v31  ;;  %v8892_v56 = vld [vmem:[#allocation2 + $0x140] sm:$0xff]  ;;  %v12059_v23 = vld [vmem:[#allocation2 + $0x51] sm:$0xff]  ;;  %8886 = vst.msk [vmem:[#allocation3 + $0x10] sm:$0xff] %vm2543_vm2, %v8882_v2  ;;  %v8868_v31 = vpack.c.bf16 %v12050_v14, %v12064_v44  ;;  %v8883_v39 = vpack.c.bf16 %v12045_v17, %v12052_v29 }
 0x204   : > { %v8502_v24 = vcombine.low %v11975_v20, %v8501_v59  ;;  %v8106_v57 = vcombine.high %v8104_v18, %v8104_v18  ;;  %v8120_v49 = vrot.slane %v8104_v18, %v10503_v15  ;;  %v8127_v10 = vrot.slane %v8105_v1, %v10503_v15  ;;  %v12057_v11 = vld [vmem:[#allocation2 + $0x40] sm:$0xff]  ;;  %v8895_v12 = vld [vmem:[#allocation2 + $0x170] sm:$0xff] }
 0x205   : > { %v8135_v0 = vcombine.high %v8113_v51, %v8113_v51  ;;  %v8557_v38 = vrot.slane %v8549_v55, %v10503_v15  ;;  %v8643_v33 = vcombine.low %v8089_v41, %v8113_v51  ;;  %v9009_v5 = vld [vmem:[#allocation3 + $0x8] sm:$0xff]  ;;  %v12041_v41 = vld [vmem:[#allocation2 + $0x30] sm:$0xff]  ;;  %v8899_v59 = vpack.c.bf16 %v8893_v21, %v8892_v56  ;;  %v12076_v1 = vld [vmem:[#allocation2 + $0x60] sm:$0xff]  ;;  %8872 = vst.msk [vmem:[#allocation3 + $0x98] sm:$0xff] %vm2543_vm2, %v8868_v31 }
 0x206   : > { %8796 = vst.msk [vmem:[#allocation2 + $0x1f0] sm:$0xff] %vm2543_vm2, %v8502_v24  ;;  %v8134_v20 = vrot.slane %v8106_v57, %v10503_v15  ;;  %v8136_v26 = vcombine.high %v8120_v49, %v8120_v49  ;;  %v8137_v47 = vcombine.high %v8127_v10, %v8127_v10  ;;  %9160 = vmatprep.subr.bf16.mxu1 %v9009_v5  ;;  %v12074_v18 = vld [vmem:[#allocation2 + $0xf0] sm:$0xff]  ;;  %v8880_v24 = vld [vmem:[#allocation2 + $0x61] sm:$0xff]  ;;  %8887 = vst.msk [vmem:[#allocation3 + $0x58] sm:$0xff] %vm2543_vm2, %v8883_v39 }
 0x207   : > { %v8644_v27 = vcombine.low %v8127_v10, %v8135_v0  ;;  %v8565_v50 = vcombine.low %v8557_v38, %v8564_v52  ;;  %v8653_v9 = vrot.slane %v8643_v33, %v10503_v15  ;;  %v9018_v53 = vld [vmem:[#allocation3 + $0x50] sm:$0xff]  ;;  %v8851_v32 = vpack.c.bf16 %v12041_v41, %v12039_v48  ;;  %v8922_v55 = vld [vmem:[#allocation2 + $0x121] sm:$0xff]  ;;  %8903 = vst.msk [vmem:[#allocation3 + $0x60] sm:$0xff] %vm2543_vm2, %v8899_v59 }
 0x208   : > { %v8645_v6 = vcombine.low %v8137_v47, %v8120_v49  ;;  %v8646_v22 = vcombine.low %v8134_v20, %v8136_v26  ;;  %v9008_v43 = vld [vmem:[#allocation3] sm:$0xff]  ;;  %v8897_v51 = vld [vmem:[#allocation2 + $0x190] sm:$0xff]  ;;  %v8852_v4 = vpack.c.bf16 %v12047_v16, %v12057_v11  ;;  %v8869_v10 = vpack.c.bf16 %v12066_v28, %v12074_v18 }
 0x209   : > { %v8660_v36 = vrot.slane %v8644_v27, %v10503_v15  ;;  %8798 = vst.msk [vmem:[#allocation2 + $0x200] sm:$0xff] %vm2543_vm2, %v8565_v50  ;;  %9161 = vmatpush1.bf16.xpose.msra.mxu1 %v9008_v43  ;;  %v9011_v19 = vld [vmem:[#allocation3 + $0x18] sm:$0xff]  ;;  %8855 = vst.msk [vmem:[#allocation3 + $0x48] sm:$0xff] %vm2543_vm2, %v8851_v32  ;;  %v8884_v0 = vpack.c.bf16 %v12059_v23, %v8878_v45  ;;  %v8896_v38 = vld [vmem:[#allocation2 + $0x180] sm:$0xff]  ;;  %v8853_v26 = vpack.c.bf16 %v12061_v34, %v12076_v1 }
 0x20a   : > { %v8667_v35 = vrot.slane %v8645_v6, %v10503_v15  ;;  %v8674_v46 = vrot.slane %v8646_v22, %v10503_v15  ;;  %9162 = vmatprep.subr.bf16.mxu1 %v9018_v53  ;;  %9209 = vmatprep.subr.bf16.mxu0 %v9011_v19  ;;  %v8923_v42 = vld [vmem:[#allocation2 + $0x131] sm:$0xff]  ;;  %v8907_v33 = vld [vmem:[#allocation2 + $0x1c0] sm:$0xff]  ;;  %8856 = vst.msk [vmem:[#allocation3 + $0x90] sm:$0xff] %vm2543_vm2, %v8852_v4  ;;  %8873 = vst.msk [vmem:[#allocation3 + $0xe0] sm:$0xff] %vm2543_vm2, %v8869_v10 }
 0x20b   : > { %v8675_v52 = vcombine.low %v8653_v9, %v8660_v36  ;;  %v8925_v20 = vld [vmem:[#allocation2 + $0x151] sm:$0xff]  ;;  %v8901_v47 = vpack.c.bf16 %v8897_v51, %v8896_v38  ;;  %v8909_v27 = vld [vmem:[#allocation2 + $0x1e0] sm:$0xff]  ;;  %8888 = vst.msk [vmem:[#allocation3 + $0xa0] sm:$0xff] %vm2543_vm2, %v8884_v0  ;;  %v8980_v22 = vpack.c.bf16 %v12052_v29, %v12036_v30  ;;  %v8885_v36 = vpack.c.bf16 %v12078_v3, %v8880_v24  ;;  %v10338_v10 = vld [vmem:[%s12235_s4 + $0x8] ss:$36 sps:$4 sm:$0xff]  }
 0x20c   : > { %v8676_v60 = vcombine.low %v8667_v35, %v8674_v46  ;;  %v8927_v50 = vld [vmem:[#allocation2 + $0x171] sm:$0xff]  ;;  %v8979_v9 = vld [vmem:[#allocation2 + $0x81] sm:$0xff]  ;;  %v8930_v25 = vpack.c.bf16 %v8923_v42, %v8922_v55  ;;  %v8981_v5 = vpack.c.bf16 %v8878_v45, %v12045_v17  ;;  %8857 = vst.msk [vmem:[#allocation3 + $0xd8] sm:$0xff] %vm2543_vm2, %v8853_v26  ;;  %v8982_v2 = vpack.c.bf16 %v8880_v24, %v12059_v23 }
 0x20d   : > { %v8683_v8 = vrot.slane %v8675_v52, %v10503_v15  ;;  %v8906_v35 = vld [vmem:[#allocation2 + $0x1b0] sm:$0xff]  ;;  %v8924_v46 = vld [vmem:[#allocation2 + $0x141] sm:$0xff]  ;;  %8905 = vst.msk [vmem:[#allocation3 + $0xf0] sm:$0xff] %vm2543_vm2, %v8901_v47  ;;  %8984 = vst.msk [vmem:[#allocation3 + $0x40] sm:$0xff] %vm2543_vm2, %v8980_v22  ;;  %v8983_v19 = vpack.c.bf16 %v8979_v9, %v12078_v3  ;;  %v8947_v59 = vpack.c.bf16 %v12039_v48, %v12003_v37 }
 0x20e   : > { %v8690_v54 = vrot.slane %v8676_v60, %v10503_v15  ;;  %v8894_v15 = vld [vmem:[#allocation2 + $0x160] sm:$0xff]  ;;  %v8929_v52 = vld [vmem:[#allocation2 + $0x191] sm:$0xff]  ;;  %v8914_v43 = vpack.c.bf16 %v8907_v33, %v8906_v35  ;;  %v8931_v53 = vpack.c.bf16 %v8925_v20, %v8924_v46  ;;  %8889 = vst.msk [vmem:[#allocation3 + $0xe8] sm:$0xff] %vm2543_vm2, %v8885_v36  ;;  %8934 = vst.msk [vmem:[#allocation3 + $0x28] sm:$0xff] %vm2543_vm2, %v8930_v25 }
 0x20f   : > { %v8900_v49 = vpack.c.bf16 %v8895_v12, %v8894_v15  ;;  %v8908_v21 = vld [vmem:[#allocation2 + $0x1d0] sm:$0xff]  ;;  %v8926_v60 = vld [vmem:[#allocation2 + $0x161] sm:$0xff]  ;;  %8985 = vst.msk [vmem:[#allocation3 + $0x88] sm:$0xff] %vm2543_vm2, %v8981_v5  ;;  %8986 = vst.msk [vmem:[#allocation3 + $0xd0] sm:$0xff] %vm2543_vm2, %v8982_v2  ;;  %v8965_v31 = vpack.c.bf16 %v12064_v44, %v12007_v40  ;;  %v8948_v39 = vpack.c.bf16 %v12057_v11, %v12041_v41 }
 0x210   : > { %v8691_v57 = vcombine.low %v8683_v8, %v8690_v54  ;;  %v8911_v6 = vld [vmem:[#allocation2 + $0x200] sm:$0xff]  ;;  %v8910_v8 = vld [vmem:[#allocation2 + $0x1f0] sm:$0xff]  ;;  %v8915_v17 = vpack.c.bf16 %v8909_v27, %v8908_v21  ;;  %v8932_v29 = vpack.c.bf16 %v8927_v50, %v8926_v60  ;;  %v9017_v23 = vld [vmem:[#allocation3 + $0x48] sm:$0xff]  ;;  %8918 = vst.msk [vmem:[#allocation3 + $0x20] sm:$0xff] %vm2543_vm2, %v8914_v43  ;;  %v8964_v54 = vpack.c.bf16 %v12015_v58, %v12000_v7 }
 0x211   : > { %8904 = vst.msk [vmem:[#allocation3 + $0xa8] sm:$0xff] %vm2543_vm2, %v8900_v49  ;;  %v9010_v30 = vld [vmem:[#allocation3 + $0x10] sm:$0xff]  ;;  %v8916_v32 = vpack.c.bf16 %v8911_v6, %v8910_v8  ;;  %v8928_v56 = vld [vmem:[#allocation2 + $0x181] sm:$0xff]  ;;  %8935 = vst.msk [vmem:[#allocation3 + $0x70] sm:$0xff] %vm2543_vm2, %v8931_v53  ;;  %9163 = vmatpush1.bf16.xpose.msra.mxu1 %v9017_v23  ;;  %v8966_v7 = vpack.c.bf16 %v12074_v18, %v12050_v14  ;;  %v8949_v37 = vpack.c.bf16 %v12076_v1, %v12047_v16 }
 0x212   : > { %8802 = vst.msk [vmem:[#allocation2 + $0x220] sm:$0xff] %vm2543_vm2, %v8691_v57  ;;  %v8963_v12 = vld [vmem:[#allocation2 + $0x110] sm:$0xff]  ;;  %9210 = vmatpush1.bf16.xpose.msra.mxu0 %v9010_v30  ;;  %v8933_v45 = vpack.c.bf16 %v8929_v52, %v8928_v56  ;;  %8919 = vst.msk [vmem:[#allocation3 + $0x68] sm:$0xff] %vm2543_vm2, %v8915_v17  ;;  %v8946_v58 = vld [vmem:[#allocation2 + $0x80] sm:$0xff] }
 0x213   : > { %8936 = vst.msk [vmem:[#allocation3 + $0xb8] sm:$0xff] %vm2543_vm2, %v8932_v29  ;;  %8987 = vst.msk [vmem:[#allocation3 + $0x118] sm:$0xff] %vm2543_vm2, %v8983_v19  ;;  %v9020_v48 = vld [vmem:[#allocation3 + $0x60] sm:$0xff]  ;;  %v9027_v51 = vld [vmem:[#allocation3 + $0x98] sm:$0xff]  ;;  %v8967_v40 = vpack.c.bf16 %v8963_v12, %v12066_v28  ;;  %v8950_v44 = vpack.c.bf16 %v8946_v58, %v12061_v34 }
 0x214   : > { %8920 = vst.msk [vmem:[#allocation3 + $0xb0] sm:$0xff] %vm2543_vm2, %v8916_v32  ;;  %8937 = vst.msk [vmem:[#allocation3 + $0x100] sm:$0xff] %vm2543_vm2, %v8933_v45  ;;  %9211 = vmatprep.subr.bf16.mxu0 %v9020_v48  ;;  %9164 = vmatprep.subr.bf16.mxu1 %v9027_v51  ;;  %v8912_v41 = vld [vmem:[#allocation2 + $0x210] sm:$0xff]  ;;  %v9019_v11 = vld [vmem:[#allocation3 + $0x58] sm:$0xff] }
 0x215   : > { %8968 = vst.msk [vmem:[#allocation3 + $0x38] sm:$0xff] %vm2543_vm2, %v8964_v54  ;;  %8951 = vst.msk [vmem:[#allocation3 + $0x30] sm:$0xff] %vm2543_vm2, %v8947_v59  ;;  %v9026_v34 = vld [vmem:[#allocation3 + $0x90] sm:$0xff]  ;;  %v9036_v18 = vld [vmem:[#allocation3 + $0xe0] sm:$0xff] }
 0x216   : > { %8969 = vst.msk [vmem:[#allocation3 + $0x80] sm:$0xff] %vm2543_vm2, %v8965_v31  ;;  %8952 = vst.msk [vmem:[#allocation3 + $0x78] sm:$0xff] %vm2543_vm2, %v8948_v39  ;;  %v9028_v1 = vld [vmem:[#allocation3 + $0xa0] sm:$0xff]  ;;  %v9035_v3 = vld [vmem:[#allocation3 + $0xd8] sm:$0xff] }
 0x217   : > { %8970 = vst.msk [vmem:[#allocation3 + $0xc8] sm:$0xff] %vm2543_vm2, %v8966_v7  ;;  %8953 = vst.msk [vmem:[#allocation3 + $0xc0] sm:$0xff] %vm2543_vm2, %v8949_v37  ;;  %v9038_v4 = vld [vmem:[#allocation3 + $0xf0] sm:$0xff]  ;;  %v9016_v15 = vld [vmem:[#allocation3 + $0x40] sm:$0xff] }
 0x218   : > { %8971 = vst.msk [vmem:[#allocation3 + $0x110] sm:$0xff] %vm2543_vm2, %v8967_v40  ;;  %8954 = vst.msk [vmem:[#allocation3 + $0x108] sm:$0xff] %vm2543_vm2, %v8950_v44  ;;  %v9029_v28 = vld [vmem:[#allocation3 + $0xa8] sm:$0xff]  ;;  %v10333_v24 = vld [vmem:[%s12235_s4] ss:$36 sps:$4 sm:$0xff]  }
 0x219   : > { %v8913_v16 = vld [vmem:[#allocation2 + $0x220] sm:$0xff]  ;;  %9165 = vmatpush1.bf16.xpose.msra.mxu1 %v9026_v34  ;;  %v10336_v55 = vld [vmem:[%s12235_s4 + $0x4c] ss:$36 sps:$4 sm:$0xff]   ;;  %v10342_v38 = vld [vmem:[%s12235_s4 + $0x54] ss:$36 sps:$4 sm:$0xff]  }
 0x21a   : > { %v8917_v14 = vpack.c.bf16 %v8913_v16, %v8912_v41  ;;  %9212 = vmatpush1.bf16.xpose.msra.mxu0 %v9019_v11  ;;  %9166 = vmatprep.subr.bf16.mxu1 %v9036_v18  ;;  %v9037_v42 = vld [vmem:[#allocation3 + $0xe8] sm:$0xff]  ;;  %v9012_v33 = vld [vmem:[#allocation3 + $0x20] sm:$0xff]  ;;  %v9022_v26 = vld [vmem:[#allocation3 + $0x70] sm:$0xff] }
 0x21b   : > { %9213 = vmatprep.subr.bf16.mxu0 %v9029_v28  ;;  %v9013_v57 = vld [vmem:[#allocation3 + $0x28] sm:$0xff]  ;;  %v10354_v20 = vld [vmem:[%s12235_s4 + $0x20] ss:$36 sps:$4 sm:$0xff]   ;;  %v9034_v47 = vld [vmem:[#allocation3 + $0xd0] sm:$0xff] }
 0x21c   : > { %8921 = vst.msk [vmem:[#allocation3 + $0xf8] sm:$0xff] %vm2543_vm2, %v8917_v14  ;;  %v9025_v49 = vld [vmem:[#allocation3 + $0x88] sm:$0xff]  ;;  %v10344_v27 = vld [vmem:[%s12235_s4 + $0x50] ss:$36 sps:$4 sm:$0xff]   ;;  %v9031_v6 = vld [vmem:[#allocation3 + $0xb8] sm:$0xff] }
 0x21d   : > { %v10341_v0 = vld [vmem:[%s12235_s4 + $0x48] ss:$36 sps:$4 sm:$0xff]   ;;  %v10347_v50 = vld [vmem:[%s12235_s4 + $0x14] ss:$36 sps:$4 sm:$0xff]   ;;  %v9040_v25 = vld [vmem:[#allocation3 + $0x100] sm:$0xff] }
 0x21e   : > { %v9021_v9 = vld [vmem:[#allocation3 + $0x68] sm:$0xff]  ;;  %v9043_v22 = vld [vmem:[#allocation3 + $0x118] sm:$0xff]  ;;  %v9030_v36 = vld [vmem:[#allocation3 + $0xb0] sm:$0xff] }
 0x21f   : > { %v10355_v5 = vld [vmem:[%s12235_s4 + $0x68] ss:$36 sps:$4 sm:$0xff]   ;;  %v9015_v46 = vld [vmem:[#allocation3 + $0x38] sm:$0xff]  ;;  %v10345_v52 = vld [vmem:[%s12235_s4 + $0x10] ss:$36 sps:$4 sm:$0xff]  }
 0x220   : > { %v10348_v43 = vld [vmem:[%s12235_s4 + $0x5c] ss:$36 sps:$4 sm:$0xff]   ;;  %v9014_v53 = vld [vmem:[#allocation3 + $0x30] sm:$0xff]  ;;  %v9033_v30 = vld [vmem:[#allocation3 + $0xc8] sm:$0xff] }
 0x221   : > { %9167 = vmatpush1.bf16.xpose.msra.mxu1 %v9035_v3  ;;  %v9024_v2 = vld [vmem:[#allocation3 + $0x80] sm:$0xff]  ;;  %v10350_v21 = vld [vmem:[%s12235_s4 + $0x58] ss:$36 sps:$4 sm:$0xff]   ;;  %v9042_v29 = vld [vmem:[#allocation3 + $0x110] sm:$0xff] }
 0x222   : > { %9214 = vmatpush1.bf16.xpose.msra.mxu0 %v9028_v1  ;;  %10254 = vmatprep.subr.bf16.mxu1 %v9016_v15  ;;  %v10353_v60 = vld [vmem:[%s12235_s4 + $0x1c] ss:$36 sps:$4 sm:$0xff]   ;;  %v9041_v19 = vld [vmem:[#allocation3 + $0x108] sm:$0xff] }
 0x223   : > { %9215 = vmatprep.subr.bf16.mxu0 %v9038_v4  ;;  %v9039_v35 = vld [vmem:[#allocation3 + $0xf8] sm:$0xff]  ;;  %v9032_v17 = vld [vmem:[#allocation3 + $0xc0] sm:$0xff]  ;;  %v10361_v54 = vld [vmem:[%s12237_s6 + $0x8] sm:$0xff]  }
 0x224   : > { %v9023_v8 = vld [vmem:[#allocation3 + $0x78] sm:$0xff]  ;;  %v10356_v56 = vld [vmem:[%s12235_s4 + $0x64] ss:$36 sps:$4 sm:$0xff]  }
 0x225   : > { %v10351_v32 = vld [vmem:[%s12235_s4 + $0x18] ss:$36 sps:$4 sm:$0xff]   ;;  %v10358_v12 = vld [vmem:[%s12235_s4 + $0x60] ss:$36 sps:$4 sm:$0xff]  }
 0x226   : > { %v10359_v23 = vld [vmem:[%s470_s30] sm:$0xff]  }
 0x227   : > { %v10360_v45 = vld [vmem:[%s12237_s6] sm:$0xff]  }
 0x228   : > { %9193 = vmatmul.mubr.bf16.vlgmr.msra.gmra.mrb[28].mxu1 %v10333_v24  ;;  %v10362_v59 = vld [vmem:[%s12236_s5] sm:$0xff]  }
 0x229   : > { %10255 = vmatpush3.bf16.xpose.msra.mxu1 %v9016_v15  ;;  %9200 = vmatprep.mubr.bf16.mxu1 %v10336_v55 }
 0x22a   : > { %9216 = vmatpush1.bf16.xpose.msra.mxu0 %v9037_v42  ;;  %10256 = vmatprep.subr.bf16.mxu1 %v9025_v49 }
 0x22b   : > { %9258 = vmatprep.subr.bf16.mxu0 %v9013_v57 }
 0x230   : > { %9201 = vmatmul.mubr.bf16.gmra.mrb[32].mxu1 %v10341_v0 }
 0x231   : > { %9242 = vmatmul.mubr.bf16.vlgmr.msra.gmra.mrb[20].mxu0 %v10338_v10  ;;  %10257 = vmatpush3.bf16.xpose.msra.mxu1 %v9025_v49 }
 0x232   : > { %9259 = vmatpush1.bf16.xpose.msra.mxu0 %v9012_v33  ;;  %10258 = vmatprep.subr.bf16.mxu1 %v9034_v47 }
 0x233   : > { %9260 = vmatprep.subr.bf16.mxu0 %v9022_v26  ;;  %9249 = vmatprep.mubr.bf16.mxu0 %v10342_v38 }
 0x234   : > { %10262 = vmatprep.mubr.bf16.mxu1 %v10354_v20 }
 0x239   : > { %9250 = vmatmul.mubr.bf16.gmra.mrb[24].mxu0 %v10344_v27  ;;  %10259 = vmatpush3.bf16.xpose.msra.mxu1 %v9034_v47 }
 0x23a   : > { %9261 = vmatpush1.bf16.xpose.msra.mxu0 %v9021_v9  ;;  %9290 = vmatprep.mubr.bf16.mxu0 %v10347_v50 }
 0x23b   : > { %9262 = vmatprep.subr.bf16.mxu0 %v9031_v6  ;;  %10260 = vmatprep.subr.bf16.mxu1 %v9043_v22 }
 0x241   : > { %10261 = vmatpush3.bf16.xpose.msra.mxu1 %v9043_v22  ;;  %v10363_v22 = vld [vmem:[%s12236_s5 + $0x8] sm:$0xff]  }
 0x242   : > { %9263 = vmatpush1.bf16.xpose.msra.mxu0 %v9030_v36  ;;  %10266 = vmatprep.subr.bf16.mxu1 %v10359_v23  ;;  %v10366_v36 = vld [vmem:[%s12242_s11 + $0x8] sm:$0xff]  }
 0x243   : > { %9264 = vmatprep.subr.bf16.mxu0 %v9040_v25  ;;  %v9564_v25 = vpop.permute.xlu0 %9563 }
 0x248   : > { %10263 = vmatmul.mubr.bf16.vlgmr.msra.gmra.mrb[36].mxu1 %v10355_v5  ;;  %v9569_v5 = vpop.permute.xlu1 %9568 }
 0x249   : > { %10267 = vmatpush3.bf16.msra.mxu1 %v10359_v23  ;;  %10268 = vmatprep.mubr.msk.bf16.mxu1 %vm1256_vm0, %v10360_v45 }
 0x24a   : > { %9265 = vmatpush1.bf16.xpose.msra.mxu0 %v9039_v35  ;;  %v9574_v35 = vpop.permute.xlu0 %9573 }
 0x24b   : > { %9307 = vmatprep.subr.bf16.mxu0 %v9015_v46 }
 0x24c   : > { %v9579_v46 = vpop.permute.xlu1 %9578 }
 0x250   : > { %10269 = vmatmul.mubr.msk.bf16.vlgmr.msra.gmra.mrb[40].mxu1 %vm1256_vm0, %v10361_v54 }
 0x251   : > { %9291 = vmatmul.mubr.bf16.vlgmr.msra.gmra.mrb[20].mxu0 %v10345_v52  ;;  %10276 = vmatprep.mubr.msk.bf16.mxu1 %vm2543_vm2, %v10362_v59 }
 0x252   : > { %9308 = vmatpush1.bf16.xpose.msra.mxu0 %v9014_v53  ;;  %9298 = vmatprep.mubr.bf16.mxu0 %v10348_v43 }
 0x253   : > { %9309 = vmatprep.subr.bf16.mxu0 %v9024_v2 }
 0x259   : > { %9299 = vmatmul.mubr.bf16.gmra.mrb[24].mxu0 %v10350_v21 }
 0x25a   : > { %9310 = vmatpush1.bf16.xpose.msra.mxu0 %v9023_v8  ;;  %9339 = vmatprep.mubr.bf16.mxu0 %v10353_v60  ;;  %v9677_v60 = vpop.permute.xlu0 %9676 }
 0x25b   : > { %9311 = vmatprep.subr.bf16.mxu0 %v9033_v30 }
 0x25e   : > { %v9687_v54 = vpop.permute.xlu0 %9686 }
 0x262   : > { %9312 = vmatpush1.bf16.xpose.msra.mxu0 %v9032_v17  ;;  %v9682_v17 = vpop.permute.xlu1 %9681 }
 0x263   : > { %9313 = vmatprep.subr.bf16.mxu0 %v9042_v29 }
 0x26a   : > { %9314 = vmatpush1.bf16.xpose.msra.mxu0 %v9041_v19 }
 0x271   : > { %9340 = vmatmul.mubr.bf16.vlgmr.msra.gmra.mrb[20].mxu0 %v10351_v32 }
 0x272   : > { %9347 = vmatprep.mubr.bf16.mxu0 %v10356_v56 }
 0x279   : > { %9348 = vmatmul.mubr.bf16.gmra.mrb[24].mxu0 %v10358_v12 }
 0x2fb   : > { %v9194_v31 = vpop.f32.mrb[28].mxu1 }
 0x2fc   : > { %v9196_v39 = vpop.f32.mrb[29].mxu1  ;;  %v9195_v11 = vadd.f32 %v9194_v31, %v11625_v61 }
 0x2fd   : > { %v9197_v7 = vpop.f32.mrb[30].mxu1 }
 0x2fe   : > { %v9199_v37 = vpop.f32.mrb[31].mxu1  ;;  %v9198_v28 = vadd.f32 %v9197_v7, %v11738_v13 }
 0x303   : > { %v9202_v58 = vpop.f32.mrb[32].mxu1 }
 0x304   : > { %v9204_v48 = vpop.f32.mrb[33].mxu1  ;;  %v9203_v42 = vadd.f32 %v9202_v58, %v11646_v62  ;;  %v10364_v62 = vld [vmem:[%s12205_s16] sm:$0xff]  }
 0x305   : > { %v9205_v51 = vpop.f32.mrb[34].mxu1  ;;  %v9692_v48 = vpop.permute.xlu1 %9691 }
 0x306   : > { %v9207_v40 = vpop.f32.mrb[35].mxu1  ;;  %v9206_v0 = vadd.f32 %v9205_v51, %v11756_v63  ;;  %v10365_v63 = vld [vmem:[%s12242_s11] sm:$0xff]  }
 0x31b   : > { %v10264_v44 = vpop.f32.mrb[36].mxu1 }
 0x31c   : > { %v9390_v41 = vpop.f32.mrb[37].mxu1 }
 0x31d   : > { %v10265_v16 = vpop.f32.mrb[38].mxu1 }
 0x31e   : > { %v9393_v14 = vpop.f32.mrb[39].mxu1 }
 0x344   : > { %v9341_v34 = vpop.f32.mrb[20].mxu0 }
 0x345   : > { %v10289_v18 = vadd.f32 %v9341_v34, %v9195_v11  ;;  %v9343_v1 = vpop.f32.mrb[21].mxu0 }
 0x346   : > { %v9344_v3 = vpop.f32.mrb[22].mxu0 }
 0x347   : > { %v9391_v4 = vadd.f32 %v10289_v18, %v9390_v41  ;;  %v10291_v15 = vadd.f32 %v9344_v3, %v9198_v28  ;;  %v9346_v24 = vpop.f32.mrb[23].mxu0 }
 0x349   : > { %v9394_v55 = vadd.f32 %v10291_v15, %v9393_v14  ;;  %v9405_v57 = vmax.f32 %v9391_v4, 0.0 }
 0x34b   : > { %v9406_v49 = vmax.f32 %v9394_v55, 0.0 }
 0x34c   : > { %v9349_v10 = vpop.f32.mrb[24].mxu0 }
 0x34d   : > { %v9409_v38 = vpack.c.bf16 %v9406_v49, %v9405_v57  ;;  %v10293_v61 = vadd.f32 %v9349_v10, %v9203_v42  ;;  %v9351_v33 = vpop.f32.mrb[25].mxu0 }
 0x34e   : > { %v9352_v20 = vpop.f32.mrb[26].mxu0 }
 0x34f   : > { %v9399_v13 = vadd.f32 %v10293_v61, %v10264_v44  ;;  %v10295_v26 = vadd.f32 %v9352_v20, %v9206_v0  ;;  %v9354_v47 = vpop.f32.mrb[27].mxu0  ;;  %10272 = vmatprep.subr.bf16.mxu1 %v9409_v38 }
 0x350   : > { %10273 = vmatpush3.bf16.msra.mxu1 %v9409_v38 }
 0x351   : > { %v9402_v27 = vadd.f32 %v10295_v26, %v10265_v16  ;;  %v9407_v50 = vmax.f32 %v9399_v13, 0.0 }
 0x353   : > { %v9408_v9 = vmax.f32 %v9402_v27, 0.0 }
 0x355   : > { %v9410_v6 = vpack.c.bf16 %v9408_v9, %v9407_v50 }
 0x357   : > { %10274 = vmatprep.subr.bf16.mxu1 %v9410_v6 }
 0x358   : > { %10275 = vmatpush3.bf16.msra.mxu1 %v9410_v6 }
 0x359   : > { %10280 = vmatprep.subr.bf16.mxu1 %v10364_v62 }
 0x35b   : > { %10277 = vmatmul.mubr.msk.bf16.vlgmr.msra.gmra.mrb[40].mxu1 %vm2543_vm2, %v10363_v22 }
 0x35c   : > { %10281 = vmatpush3.bf16.msra.mxu1 %v10364_v62  ;;  %10282 = vmatprep.mubr.msk.bf16.mxu1 %vm1256_vm0, %v10365_v63 }
 0x363   : > { %10283 = vmatmul.mubr.msk.bf16.vlgmr.msra.gmra.mrb[44].mxu1 %vm1256_vm0, %v10366_v36 }
 0x42e   : > { %v10278_v52 = vpop.f32.mrb[40].mxu1 }
 0x42f   : > { %v9542_v43 = vpop.f32.mrb[41].mxu1  ;;  %v9583_v2 = vadd.f32 %v10278_v52, %v9574_v35 }
 0x430   : > { %v10279_v53 = vpop.f32.mrb[42].mxu1  ;;  %v9581_v8 = vadd.f32 %v9564_v25, %v9542_v43 }
 0x431   : > { %v9545_v21 = vpop.f32.mrb[43].mxu1  ;;  %v9584_v30 = vadd.f32 %v10279_v53, %v9579_v46  ;;  %v9587_v19 = vmax.f32 %v9583_v2, 0.0 }
 0x432   : > { %v9582_v29 = vadd.f32 %v9569_v5, %v9545_v21  ;;  %v9585_v32 = vmax.f32 %v9581_v8, 0.0 }
 0x433   : > { %v9588_v12 = vmax.f32 %v9584_v30, 0.0 }
 0x434   : > { %v9586_v59 = vmax.f32 %v9582_v29, 0.0 }
 0x436   : > { %v10284_v56 = vpop.f32.mrb[44].mxu1 }
 0x437   : > { %v9668_v23 = vadd.f32 %v10284_v56, %v9587_v19  ;;  %v9651_v45 = vpop.f32.mrb[45].mxu1 }
 0x438   : > { %v9666_v31 = vadd.f32 %v9651_v45, %v9585_v32  ;;  %v10285_v39 = vpop.f32.mrb[46].mxu1 }
 0x439   : > { %v9696_v7 = vadd.f32 %v9687_v54, %v9668_v23  ;;  %v9669_v37 = vadd.f32 %v10285_v39, %v9588_v12  ;;  %v9654_v58 = vpop.f32.mrb[47].mxu1 }
 0x43a   : > { %v9694_v51 = vadd.f32 %v9677_v60, %v9666_v31  ;;  %v9667_v40 = vadd.f32 %v9654_v58, %v9586_v59 }
 0x43b   : > { %9701 = vst.msk [vmem:[%s480_s27 + $0x10] sm:$0xff] %vm9698_vm3, %v9696_v7  ;;  %v9697_v44 = vadd.f32 %v9692_v48, %v9669_v37 }
 0x43c   : > { %9699 = vst.msk [vmem:[%s480_s27] sm:$0xff] %vm9698_vm3, %v9694_v51  ;;  %v9695_v41 = vadd.f32 %v9682_v17, %v9667_v40 }
 0x43d   : > { %9702 = vst.msk [vmem:[%s480_s27 + $0x18] sm:$0xff] %vm9698_vm3, %v9697_v44 }
 0x43e   : > { %9700 = vst.msk [vmem:[%s480_s27 + $0x8] sm:$0xff] %vm9698_vm3, %v9695_v41 }
 0x43f PF: > { %s23_s25 = sadd.s32 1, %s10374_s25  }
 0x440   : > { %p20_p4 = scmp.ge.s32.totalorder %s23_s25, 4  }
 0x442   :  { %22 = sbr.rel (!%p20_p4) target bundleno = 1 (0x1), region = 119 }

</bundles_post_ra>
